<compile_context>
chip_gen: v6e
topology: v6e:2x2x1
jax: 0.10.0
libtpu: 0.0.40
codegen_flags: <defaults>
</compile_context>

<pallas_src>
import functools
import math

import jax
import jax.numpy as jnp
from jax.experimental import pallas as pl
from jax.experimental.pallas import tpu as pltpu

NEG_INF = -1e30
LN_EPS = 1e-5


def _round_up(x, m):
    return ((x + m - 1) // m) * m


# ------------------------------------------------------------------ projection
def _proj_kernel(x_ref, w_ref, asrc_ref, adst_ref, h_ref, ssrc_ref, sdst_ref,
                 *, diag, n_head):
    x = x_ref[...]                                            # (tm, Fin_p) bf16
    for hd in range(n_head):                                  # heads folded: x read once
        if diag:
            h = x.astype(jnp.float32) * w_ref[hd].astype(jnp.float32)   # (tm,F)*(1,F)
        else:
            h = jnp.dot(x, w_ref[hd], preferred_element_type=jnp.float32)
        h_bf = h.astype(jnp.bfloat16)
        h_ref[hd] = h_bf
        hf = h_bf.astype(jnp.float32)                         # match attention numerics
        ssrc_ref[hd] = jnp.sum(hf * asrc_ref[hd], axis=-1, keepdims=True)   # (tm, 1)
        sdst_ref[hd] = jnp.sum(hf * adst_ref[hd], axis=-1, keepdims=True)   # (tm, 1)


def _project(x_p, w_p, a_src_p, a_dst_p, *, diag, block_n):
    np_, fin_p = x_p.shape
    n_head, _, fout_p = w_p.shape
    return pl.pallas_call(
        functools.partial(_proj_kernel, diag=diag, n_head=n_head),
        out_shape=(jax.ShapeDtypeStruct((n_head, np_, fout_p), jnp.bfloat16),
                   jax.ShapeDtypeStruct((n_head, np_, 1), jnp.float32),
                   jax.ShapeDtypeStruct((n_head, np_, 1), jnp.float32)),
        grid=(np_ // block_n,),
        in_specs=[
            pl.BlockSpec((block_n, fin_p), lambda i: (i, 0)),
            pl.BlockSpec(w_p.shape, lambda i: (0, 0, 0)),
            pl.BlockSpec((n_head, 1, fout_p), lambda i: (0, 0, 0)),
            pl.BlockSpec((n_head, 1, fout_p), lambda i: (0, 0, 0)),
        ],
        out_specs=(
            pl.BlockSpec((n_head, block_n, fout_p), lambda i: (0, i, 0)),
            pl.BlockSpec((n_head, block_n, 1), lambda i: (0, i, 0)),
            pl.BlockSpec((n_head, block_n, 1), lambda i: (0, i, 0)),
        ),
        compiler_params=pltpu.CompilerParams(dimension_semantics=("parallel",)),
    )(x_p, w_p, a_src_p, a_dst_p)


# ------------------------------------------------- masked attention + epilogue
def _attn_kernel(hk_ref, ssrc_ref, sdst_ref, adj_ref, gamma_ref, beta_ref, o_ref,
                 m_sc, l_sc, acc_sc, *, n_head, feat, do_norm, do_relu):
    k = pl.program_id(1)

    @pl.when(k == 0)
    def _():
        m_sc[...] = jnp.full(m_sc.shape, NEG_INF, m_sc.dtype)
        l_sc[...] = jnp.zeros(l_sc.shape, l_sc.dtype)
        acc_sc[...] = jnp.zeros(acc_sc.shape, acc_sc.dtype)

    # One adjacency tile DMA + one convert, shared by all heads.
    adj = adj_ref[...].astype(jnp.float32)                    # (tm, tk) 0/1

    for hd in range(n_head):
        e = ssrc_ref[hd] + sdst_ref[hd]                       # (tm,1)+(1,tk) -> (tm,tk)
        e = jnp.maximum(e, 0.2 * e)                           # LeakyReLU(0.2), 2 VPU ops
        m_prev = m_sc[hd]
        # Running max over the UNMASKED logits (bounded), so no mask selects are
        # needed; masked columns are zeroed by the adj multiply below and the
        # shared max cancels in the softmax normalisation.
        m_new = jnp.maximum(m_prev, jnp.max(e, axis=-1, keepdims=True))
        corr = jnp.exp(m_prev - m_new)
        p = jnp.exp(e - m_new) * adj                          # masked, unnormalised probs
        # TODO(synk): training-mode attn_dropout on p (pltpu.prng_random_bits) not implemented.
        l_sc[hd] = corr * l_sc[hd] + jnp.sum(p, axis=-1, keepdims=True)
        acc_sc[hd] = corr * acc_sc[hd] + jnp.dot(
            p.astype(jnp.bfloat16), hk_ref[hd], preferred_element_type=jnp.float32)
        m_sc[hd] = m_new

    @pl.when(k == pl.num_programs(1) - 1)
    def _():
        # Fused epilogue: head-mean (+ LayerNorm + ReLU) written once per row tile.
        out = jnp.zeros(o_ref.shape, jnp.float32)
        for hd in range(n_head):
            l = l_sc[hd]
            l = jnp.where(l > 0.0, l, 1.0)                    # isolated/padded rows -> 0
            out = out + acc_sc[hd] / l
        out = out * (1.0 / n_head)
        if do_norm:
            col = jax.lax.broadcasted_iota(jnp.int32, out.shape, 1)
            fmask = (col < feat).astype(jnp.float32)          # ignore padded feature lanes
            inv_f = 1.0 / feat
            mean = jnp.sum(out * fmask, axis=-1, keepdims=True) * inv_f
            xc = (out - mean) * fmask
            var = jnp.sum(xc * xc, axis=-1, keepdims=True) * inv_f
            out = xc * jax.lax.rsqrt(var + LN_EPS) * gamma_ref[...] + beta_ref[...] * fmask
        if do_relu:
            out = jnp.maximum(out, 0.0)
        o_ref[...] = out.astype(o_ref.dtype)


def _attend(h, s_src, s_dst, adj_p, gamma_p, beta_p, *,
            feat, do_norm, do_relu, block_n):
    n_head, np_, fp = h.shape
    n_tiles = np_ // block_n
    grid = (n_tiles, n_tiles)

    cost = pl.CostEstimate(
        flops=int(n_head * (2 * np_ * np_ * fp + 6 * np_ * np_)),
        transcendentals=int(n_head * np_ * np_),
        bytes_accessed=int(np_ * np_ * 2                       # adjacency (bf16), once
                           + n_tiles * n_head * np_ * fp * 2   # h keys re-streamed per i
                           + np_ * fp * 4))                    # output

    # VMEM budget: double-buffered blocks + f32 scratch + in-kernel (tm,tk) f32
    # temporaries (e/p/adj) + margin; capped to stay inside v7x's 64 MiB VMEM.
    inter = 4 * block_n * block_n * 4                          # e/p/adj f32 temporaries
    tiles = 2 * (n_head * block_n * fp * 2                     # h key blocks (bf16)
                 + block_n * block_n * 2                       # adjacency block (bf16)
                 + n_head * block_n * 128 * 4                  # s_src (lane-padded)
                 + n_head * 8 * block_n * 4                    # s_dst
                 + block_n * fp * 4)                           # output block (f32)
    scratch = n_head * block_n * fp * 4 + 2 * n_head * block_n * 128 * 4
    vmem_limit = min(int(inter + tiles + scratch + (4 << 20)), 48 << 20)

    return pl.pallas_call(
        functools.partial(_attn_kernel, n_head=n_head, feat=feat,
                          do_norm=do_norm, do_relu=do_relu),
        out_shape=jax.ShapeDtypeStruct((np_, fp), jnp.float32),
        grid=grid,
        in_specs=[
            pl.BlockSpec((n_head, block_n, fp), lambda i, k: (0, k, 0)),   # h (key rows)
            pl.BlockSpec((n_head, block_n, 1), lambda i, k: (0, i, 0)),    # s_src (queries)
            pl.BlockSpec((n_head, 1, block_n), lambda i, k: (0, 0, k)),    # s_dst (keys)
            pl.BlockSpec((block_n, block_n), lambda i, k: (i, k)),         # adjacency mask
            pl.BlockSpec((1, fp), lambda i, k: (0, 0)),                    # LN gamma
            pl.BlockSpec((1, fp), lambda i, k: (0, 0)),                    # LN beta
        ],
        out_specs=pl.BlockSpec((block_n, fp), lambda i, k: (i, 0)),
        scratch_shapes=[
            pltpu.VMEM((n_head, block_n, 1), jnp.float32),     # running max
            pltpu.VMEM((n_head, block_n, 1), jnp.float32),     # running denom
            pltpu.VMEM((n_head, block_n, fp), jnp.float32),    # accumulators
        ],
        compiler_params=pltpu.CompilerParams(
            dimension_semantics=("parallel", "arbitrary"),
            vmem_limit_bytes=vmem_limit),
        cost_estimate=cost,
    )(h, s_src, s_dst, adj_p, gamma_p, beta_p)


# ------------------------------------------------------------------ full forward
def preprocess_adjacency(adj, n, block_n=1024):
    """0/1 bf16 adjacency mask, zero-padded to a multiple of block_n.

    Hoist this out of the jitted forward when the graph is static across calls.
    """
    np_ = _round_up(n, block_n)
    mask = (adj > 0).astype(jnp.bfloat16)
    return jnp.zeros((np_, np_), jnp.bfloat16).at[:n, :n].set(mask)


def simple_gat_forward(x, adj, params, *, diag, instance_normalization,
                       block_n=1024):
    """Eval-mode forward of SimpleGAT on a dense adjacency.

    x: (N, n_units[0]) f32; adj: (N, N) raw (any float; >0 == edge) or an
    already-preprocessed padded bf16 mask from `preprocess_adjacency`.
    Dropout / attn_dropout are identity in eval mode.
    block_n=1024 default (cap for v7x's 64 MiB VMEM; v5e/v6e could go higher).
    # TODO(synk): training-mode dropout (pltpu.prng_random_bits mask) not implemented.
    """
    assert block_n % 128 == 0
    n = x.shape[0]
    n_layers = len(params["w"])
    np_ = _round_up(n, block_n)

    if adj.shape == (np_, np_) and adj.dtype == jnp.bfloat16:
        adj_p = adj                                   # preprocessed (static graph)
    else:
        adj_p = preprocess_adjacency(adj, n, block_n)

    fin = x.shape[1]
    fin_p = _round_up(fin, 128)
    x_p = jnp.zeros((np_, fin_p), jnp.float32).at[:n, :fin].set(x)

    for l in range(n_layers):
        w, a_src, a_dst = params["w"][l], params["a_src"][l], params["a_dst"][l]
        n_head = w.shape[0]
        fout = w.shape[-1]
        fout_p = _round_up(fout, 128)

        # Parameters zero-padded to lane-dense widths; weights stored bf16 (MXU dtype).
        if diag:
            assert fin == fout and fin_p == fout_p
            w_p = jnp.zeros((n_head, 1, fout_p), jnp.bfloat16) \
                     .at[:, :, :fout].set(w.astype(jnp.bfloat16))
        else:
            w_p = jnp.zeros((n_head, fin_p, fout_p), jnp.bfloat16) \
                     .at[:, :fin, :fout].set(w.astype(jnp.bfloat16))
        a_src_p = jnp.zeros((n_head, 1, fout_p), jnp.float32).at[:, 0, :fout].set(a_src)
        a_dst_p = jnp.zeros((n_head, 1, fout_p), jnp.float32).at[:, 0, :fout].set(a_dst)
        gamma_p = jnp.zeros((1, fout_p), jnp.float32).at[0, :fout].set(params["gamma"][l])
        beta_p = jnp.zeros((1, fout_p), jnp.float32).at[0, :fout].set(params["beta"][l])

        h, s_src, s_dst = _project(x_p.astype(jnp.bfloat16), w_p, a_src_p, a_dst_p,
                                   diag=diag, block_n=block_n)
        s_dst = s_dst.reshape(n_head, 1, np_)          # free reshape -> lane-dense rows

        do_norm = instance_normalization
        do_relu = l < n_layers - 1
        # Head combine: mean (required by the LayerNorm(n_units[l+1]) shapes).
        # TODO(synk): MultiHeadGraphAttention's exact head combination is not in the
        # spec; mean is assumed.
        x_p = _attend(h, s_src, s_dst, adj_p, gamma_p, beta_p,
                      feat=fout, do_norm=do_norm, do_relu=do_relu, block_n=block_n)

        fin, fin_p = fout, fout_p

    return x_p[:n, :fin]


# ------------------------------------------------------------------ init / reference
def init_params(key, n_units, n_heads, *, diag):
    params = {"w": [], "a_src": [], "a_dst": [], "gamma": [], "beta": []}
    for i in range(len(n_units) - 1):
        f_in, f_out = n_units[i], n_units[i + 1]
        n_head = n_heads[i] if i < len(n_heads) else 1
        key, k1, k2, k3 = jax.random.split(key, 4)
        if diag:
            w = jax.random.uniform(k1, (n_head, 1, f_out), jnp.float32,
                                   -1.0, 1.0) / math.sqrt(f_out)
        else:
            w = jax.random.uniform(k1, (n_head, f_in, f_out), jnp.float32,
                                   -1.0, 1.0) / math.sqrt(f_in)
        a_src = jax.random.uniform(k2, (n_head, f_out), jnp.float32, -1.0, 1.0) / math.sqrt(f_out)
        a_dst = jax.random.uniform(k3, (n_head, f_out), jnp.float32, -1.0, 1.0) / math.sqrt(f_out)
        params["w"].append(w)
        params["a_src"].append(a_src)
        params["a_dst"].append(a_dst)
        params["gamma"].append(jnp.ones((f_out,), jnp.float32))   # LayerNorm defaults
        params["beta"].append(jnp.zeros((f_out,), jnp.float32))
    return params


def reference_forward(x, adj, params, *, diag, instance_normalization):
    """Pure-JAX reference mirroring the kernel's bf16 mixed precision."""
    mask = adj > 0
    n_layers = len(params["w"])
    h_in = x
    for l in range(n_layers):
        w, a_src, a_dst = params["w"][l], params["a_src"][l], params["a_dst"][l]
        x_b = h_in.astype(jnp.bfloat16)
        outs = []
        for hd in range(w.shape[0]):
            if diag:
                h = x_b.astype(jnp.float32) * w[hd, 0].astype(jnp.bfloat16).astype(jnp.float32)
            else:
                h = jnp.dot(x_b, w[hd].astype(jnp.bfloat16),
                            preferred_element_type=jnp.float32)
            h = h.astype(jnp.bfloat16).astype(jnp.float32)       # bf16 storage of h
            e = (h @ a_src[hd][:, None]) + (h @ a_dst[hd][:, None]).T
            e = jnp.where(e > 0, e, 0.2 * e)
            e = jnp.where(mask, e, NEG_INF)
            m = jnp.max(e, axis=-1, keepdims=True)
            p = jnp.where(mask, jnp.exp(e - m), 0.0)
            denom = jnp.sum(p, axis=-1, keepdims=True)
            alpha = p / jnp.where(denom > 0, denom, 1.0)
            outs.append(jnp.dot(alpha.astype(jnp.bfloat16), h.astype(jnp.bfloat16),
                                preferred_element_type=jnp.float32))
        out = jnp.mean(jnp.stack(outs, axis=0), axis=0)
        if instance_normalization:
            mean = jnp.mean(out, axis=-1, keepdims=True)
            var = jnp.mean((out - mean) ** 2, axis=-1, keepdims=True)
            out = (out - mean) * jax.lax.rsqrt(var + LN_EPS) \
                * params["gamma"][l] + params["beta"][l]
        if l < n_layers - 1:
            out = jnp.maximum(out, 0.0)       # dropout: identity in eval mode
        h_in = out
    return h_in


if __name__ == "__main__":
    key = jax.random.PRNGKey(0)
    kx, ka, kp = jax.random.split(key, 3)

    # Small demo graph: 200 nodes, n_units=[48, 64, 32], 2 heads then 1.
    N = 200
    N_UNITS = [48, 64, 32]
    N_HEADS = [2, 1]
    DIAG = False
    INSTANCE_NORM = True
    BLOCK_N = 128   # small here to exercise the tiled grid; default 1024 for real graphs

    x = jax.random.normal(kx, (N, N_UNITS[0]), jnp.float32)

    a_raw = (jax.random.uniform(ka, (N, N)) < 0.08).astype(jnp.float32)
    adj = jnp.minimum(jnp.maximum(a_raw, a_raw.T) + jnp.eye(N, dtype=jnp.float32), 1.0)
    # Isolated node (no edges, no self-loop) to exercise the l == 0 guard.
    adj = adj.at[7, :].set(0.0).at[:, 7].set(0.0)

    params = init_params(kp, N_UNITS, N_HEADS, diag=DIAG)

    # Adjacency preprocessing hoisted out of the jitted forward (static graph).
    adj_p = preprocess_adjacency(adj, N, BLOCK_N)

    fwd = jax.jit(functools.partial(simple_gat_forward, diag=DIAG,
                                    instance_normalization=INSTANCE_NORM,
                                    block_n=BLOCK_N))
    out = jax.block_until_ready(fwd(x, adj_p, params))
    assert out.shape == (N, N_UNITS[-1])
    assert bool(jnp.all(jnp.isfinite(out)))

    ref = reference_forward(x, adj, params, diag=DIAG,
                            instance_normalization=INSTANCE_NORM)
    # bf16 MXU feeds (x/w, h, attention probs) -> loose tolerance vs the f32 reference.
    assert jnp.allclose(out, ref, atol=5e-2, rtol=5e-2), \
        float(jnp.max(jnp.abs(out - ref)))

    print("KERNEL_OK")
</pallas_src>

<mosaic_0001>
module attributes {stable_mosaic.version = 11 : i64} {
  func.func @_proj_kernel(%arg0: i32, %arg1: memref<128x128xbf16, #tpu.memory_space<vmem>>, %arg2: memref<2x128x128xbf16, #tpu.memory_space<vmem>>, %arg3: memref<2x1x128xf32, #tpu.memory_space<vmem>>, %arg4: memref<2x1x128xf32, #tpu.memory_space<vmem>>, %arg5: memref<2x128x128xbf16, #tpu.memory_space<vmem>>, %arg6: memref<2x128x1xf32, #tpu.memory_space<vmem>>, %arg7: memref<2x128x1xf32, #tpu.memory_space<vmem>>) attributes {dimension_semantics = [#tpu.dimension_semantics<parallel>], iteration_bounds = array<i64: 2>, scalar_prefetch = 0 : i64, scratch_operands = 0 : i64, tpu.core_type = #tpu.core_type<tc>, window_params = [{transform_indices = @transform_0, window_bounds = array<i64: 128, 128>}, {pipeline_mode = #tpu.pipeline_mode<synchronous>, transform_indices = @transform_1, window_bounds = array<i64: 2, 128, 128>}, {pipeline_mode = #tpu.pipeline_mode<synchronous>, transform_indices = @transform_2, window_bounds = array<i64: 2, 1, 128>}, {pipeline_mode = #tpu.pipeline_mode<synchronous>, transform_indices = @transform_3, window_bounds = array<i64: 2, 1, 128>}, {transform_indices = @transform_4, window_bounds = array<i64: 2, 128, 128>}, {transform_indices = @transform_5, window_bounds = array<i64: 2, 128, 1>}, {transform_indices = @transform_6, window_bounds = array<i64: 2, 128, 1>}]} {
    %c0 = arith.constant 0 : index
    %c0_0 = arith.constant 0 : index
    %0 = vector.load %arg1[%c0, %c0_0] : memref<128x128xbf16, #tpu.memory_space<vmem>>, vector<128x128xbf16>
    %c0_1 = arith.constant 0 : index
    %c0_2 = arith.constant 0 : index
    %c0_3 = arith.constant 0 : index
    %1 = vector.load %arg2[%c0_1, %c0_2, %c0_3] : memref<2x128x128xbf16, #tpu.memory_space<vmem>>, vector<1x128x128xbf16>
    %2 = vector.shape_cast %1 : vector<1x128x128xbf16> to vector<128x128xbf16>
    %cst = arith.constant dense<0.000000e+00> : vector<128x128xf32>
    %3 = tpu.matmul %0, %2, %cst {dimension_numbers = #tpu.dot_dimension_numbers<[1], [0], [0], [1], [0, 0, 1, 1], [], []>} : vector<128x128xbf16>, vector<128x128xbf16>, vector<128x128xf32> -> vector<128x128xf32>
    %4 = arith.truncf %3 : vector<128x128xf32> to vector<128x128xbf16>
    %c0_4 = arith.constant 0 : index
    %c0_5 = arith.constant 0 : index
    %c0_6 = arith.constant 0 : index
    %5 = vector.load %arg5[%c0_4, %c0_5, %c0_6] : memref<2x128x128xbf16, #tpu.memory_space<vmem>>, vector<1x128x128xbf16>
    %6 = vector.shape_cast %5 : vector<1x128x128xbf16> to vector<128x128xbf16>
    %7 = vector.shape_cast %4 : vector<128x128xbf16> to vector<1x128x128xbf16>
    tpu.vector_store %arg5[%c0_4, %c0_5, %c0_6], %7 {strides = array<i32>} : memref<2x128x128xbf16, #tpu.memory_space<vmem>>, vector<1x128x128xbf16>,
    %8 = arith.extf %4 : vector<128x128xbf16> to vector<128x128xf32>
    %c0_7 = arith.constant 0 : index
    %c0_8 = arith.constant 0 : index
    %c0_9 = arith.constant 0 : index
    %9 = vector.load %arg3[%c0_7, %c0_8, %c0_9] : memref<2x1x128xf32, #tpu.memory_space<vmem>>, vector<1x1x128xf32>
    %10 = vector.shape_cast %9 : vector<1x1x128xf32> to vector<1x128xf32>
    %11 = vector.broadcast %10 : vector<1x128xf32> to vector<128x128xf32>
    %12 = arith.mulf %8, %11 : vector<128x128xf32>
    %cst_10 = arith.constant dense<0.000000e+00> : vector<128xf32>
    %13 = vector.multi_reduction <add>, %12, %cst_10 [1] : vector<128x128xf32> to vector<128xf32>
    %14 = vector.shape_cast %13 : vector<128xf32> to vector<128x1xf32>
    %c0_11 = arith.constant 0 : index
    %c0_12 = arith.constant 0 : index
    %c0_13 = arith.constant 0 : index
    %15 = vector.load %arg6[%c0_11, %c0_12, %c0_13] : memref<2x128x1xf32, #tpu.memory_space<vmem>>, vector<1x128x1xf32>
    %16 = vector.shape_cast %15 : vector<1x128x1xf32> to vector<128x1xf32>
    %17 = vector.shape_cast %14 : vector<128x1xf32> to vector<1x128x1xf32>
    tpu.vector_store %arg6[%c0_11, %c0_12, %c0_13], %17 {strides = array<i32>} : memref<2x128x1xf32, #tpu.memory_space<vmem>>, vector<1x128x1xf32>,
    %c0_14 = arith.constant 0 : index
    %c0_15 = arith.constant 0 : index
    %c0_16 = arith.constant 0 : index
    %18 = vector.load %arg4[%c0_14, %c0_15, %c0_16] : memref<2x1x128xf32, #tpu.memory_space<vmem>>, vector<1x1x128xf32>
    %19 = vector.shape_cast %18 : vector<1x1x128xf32> to vector<1x128xf32>
    %20 = vector.broadcast %19 : vector<1x128xf32> to vector<128x128xf32>
    %21 = arith.mulf %8, %20 : vector<128x128xf32>
    %cst_17 = arith.constant dense<0.000000e+00> : vector<128xf32>
    %22 = vector.multi_reduction <add>, %21, %cst_17 [1] : vector<128x128xf32> to vector<128xf32>
    %23 = vector.shape_cast %22 : vector<128xf32> to vector<128x1xf32>
    %c0_18 = arith.constant 0 : index
    %c0_19 = arith.constant 0 : index
    %c0_20 = arith.constant 0 : index
    %24 = vector.load %arg7[%c0_18, %c0_19, %c0_20] : memref<2x128x1xf32, #tpu.memory_space<vmem>>, vector<1x128x1xf32>
    %25 = vector.shape_cast %24 : vector<1x128x1xf32> to vector<128x1xf32>
    %26 = vector.shape_cast %23 : vector<128x1xf32> to vector<1x128x1xf32>
    tpu.vector_store %arg7[%c0_18, %c0_19, %c0_20], %26 {strides = array<i32>} : memref<2x128x1xf32, #tpu.memory_space<vmem>>, vector<1x128x1xf32>,
    %c1 = arith.constant 1 : index
    %c0_21 = arith.constant 0 : index
    %c0_22 = arith.constant 0 : index
    %27 = vector.load %arg2[%c1, %c0_21, %c0_22] : memref<2x128x128xbf16, #tpu.memory_space<vmem>>, vector<1x128x128xbf16>
    %28 = vector.shape_cast %27 : vector<1x128x128xbf16> to vector<128x128xbf16>
    %cst_23 = arith.constant dense<0.000000e+00> : vector<128x128xf32>
    %29 = tpu.matmul %0, %28, %cst_23 {dimension_numbers = #tpu.dot_dimension_numbers<[1], [0], [0], [1], [0, 0, 1, 1], [], []>} : vector<128x128xbf16>, vector<128x128xbf16>, vector<128x128xf32> -> vector<128x128xf32>
    %30 = arith.truncf %29 : vector<128x128xf32> to vector<128x128xbf16>
    %c1_24 = arith.constant 1 : index
    %c0_25 = arith.constant 0 : index
    %c0_26 = arith.constant 0 : index
    %31 = vector.load %arg5[%c1_24, %c0_25, %c0_26] : memref<2x128x128xbf16, #tpu.memory_space<vmem>>, vector<1x128x128xbf16>
    %32 = vector.shape_cast %31 : vector<1x128x128xbf16> to vector<128x128xbf16>
    %33 = vector.shape_cast %30 : vector<128x128xbf16> to vector<1x128x128xbf16>
    tpu.vector_store %arg5[%c1_24, %c0_25, %c0_26], %33 {strides = array<i32>} : memref<2x128x128xbf16, #tpu.memory_space<vmem>>, vector<1x128x128xbf16>,
    %34 = arith.extf %30 : vector<128x128xbf16> to vector<128x128xf32>
    %c1_27 = arith.constant 1 : index
    %c0_28 = arith.constant 0 : index
    %c0_29 = arith.constant 0 : index
    %35 = vector.load %arg3[%c1_27, %c0_28, %c0_29] : memref<2x1x128xf32, #tpu.memory_space<vmem>>, vector<1x1x128xf32>
    %36 = vector.shape_cast %35 : vector<1x1x128xf32> to vector<1x128xf32>
    %37 = vector.broadcast %36 : vector<1x128xf32> to vector<128x128xf32>
    %38 = arith.mulf %34, %37 : vector<128x128xf32>
    %cst_30 = arith.constant dense<0.000000e+00> : vector<128xf32>
    %39 = vector.multi_reduction <add>, %38, %cst_30 [1] : vector<128x128xf32> to vector<128xf32>
    %40 = vector.shape_cast %39 : vector<128xf32> to vector<128x1xf32>
    %c1_31 = arith.constant 1 : index
    %c0_32 = arith.constant 0 : index
    %c0_33 = arith.constant 0 : index
    %41 = vector.load %arg6[%c1_31, %c0_32, %c0_33] : memref<2x128x1xf32, #tpu.memory_space<vmem>>, vector<1x128x1xf32>
    %42 = vector.shape_cast %41 : vector<1x128x1xf32> to vector<128x1xf32>
    %43 = vector.shape_cast %40 : vector<128x1xf32> to vector<1x128x1xf32>
    tpu.vector_store %arg6[%c1_31, %c0_32, %c0_33], %43 {strides = array<i32>} : memref<2x128x1xf32, #tpu.memory_space<vmem>>, vector<1x128x1xf32>,
    %c1_34 = arith.constant 1 : index
    %c0_35 = arith.constant 0 : index
    %c0_36 = arith.constant 0 : index
    %44 = vector.load %arg4[%c1_34, %c0_35, %c0_36] : memref<2x1x128xf32, #tpu.memory_space<vmem>>, vector<1x1x128xf32>
    %45 = vector.shape_cast %44 : vector<1x1x128xf32> to vector<1x128xf32>
    %46 = vector.broadcast %45 : vector<1x128xf32> to vector<128x128xf32>
    %47 = arith.mulf %34, %46 : vector<128x128xf32>
    %cst_37 = arith.constant dense<0.000000e+00> : vector<128xf32>
    %48 = vector.multi_reduction <add>, %47, %cst_37 [1] : vector<128x128xf32> to vector<128xf32>
    %49 = vector.shape_cast %48 : vector<128xf32> to vector<128x1xf32>
    %c1_38 = arith.constant 1 : index
    %c0_39 = arith.constant 0 : index
    %c0_40 = arith.constant 0 : index
    %50 = vector.load %arg7[%c1_38, %c0_39, %c0_40] : memref<2x128x1xf32, #tpu.memory_space<vmem>>, vector<1x128x1xf32>
    %51 = vector.shape_cast %50 : vector<1x128x1xf32> to vector<128x1xf32>
    %52 = vector.shape_cast %49 : vector<128x1xf32> to vector<1x128x1xf32>
    tpu.vector_store %arg7[%c1_38, %c0_39, %c0_40], %52 {strides = array<i32>} : memref<2x128x1xf32, #tpu.memory_space<vmem>>, vector<1x128x1xf32>,
    return
  }
  func.func @transform_0(%arg0: i32) -> (i32, i32) {
    %c0_i32 = arith.constant 0 : i32
    %c0_i32_0 = arith.constant 0 : i32
    return %arg0, %c0_i32 : i32, i32
  }
  func.func @transform_1(%arg0: i32) -> (i32, i32, i32) {
    %c0_i32 = arith.constant 0 : i32
    %c0_i32_0 = arith.constant 0 : i32
    %c0_i32_1 = arith.constant 0 : i32
    %c0_i32_2 = arith.constant 0 : i32
    return %c0_i32, %c0_i32_0, %c0_i32_1 : i32, i32, i32
  }
  func.func @transform_2(%arg0: i32) -> (i32, i32, i32) {
    %c0_i32 = arith.constant 0 : i32
    %c0_i32_0 = arith.constant 0 : i32
    %c0_i32_1 = arith.constant 0 : i32
    %c0_i32_2 = arith.constant 0 : i32
    return %c0_i32, %c0_i32_0, %c0_i32_1 : i32, i32, i32
  }
  func.func @transform_3(%arg0: i32) -> (i32, i32, i32) {
    %c0_i32 = arith.constant 0 : i32
    %c0_i32_0 = arith.constant 0 : i32
    %c0_i32_1 = arith.constant 0 : i32
    %c0_i32_2 = arith.constant 0 : i32
    return %c0_i32, %c0_i32_0, %c0_i32_1 : i32, i32, i32
  }
  func.func @transform_4(%arg0: i32) -> (i32, i32, i32) {
    %c0_i32 = arith.constant 0 : i32
    %c0_i32_0 = arith.constant 0 : i32
    %c0_i32_1 = arith.constant 0 : i32
    return %c0_i32, %arg0, %c0_i32_0 : i32, i32, i32
  }
  func.func @transform_5(%arg0: i32) -> (i32, i32, i32) {
    %c0_i32 = arith.constant 0 : i32
    %c0_i32_0 = arith.constant 0 : i32
    %c0_i32_1 = arith.constant 0 : i32
    return %c0_i32, %arg0, %c0_i32_0 : i32, i32, i32
  }
  func.func @transform_6(%arg0: i32) -> (i32, i32, i32) {
    %c0_i32 = arith.constant 0 : i32
    %c0_i32_0 = arith.constant 0 : i32
    %c0_i32_1 = arith.constant 0 : i32
    return %c0_i32, %arg0, %c0_i32_0 : i32, i32, i32
  }
}

module attributes {stable_mosaic.version = 11 : i64} {
  func.func @_attn_kernel(%arg0: i32, %arg1: i32, %arg2: memref<2x128x128xbf16, #tpu.memory_space<vmem>>, %arg3: memref<2x128x1xf32, #tpu.memory_space<vmem>>, %arg4: memref<2x1x128xf32, #tpu.memory_space<vmem>>, %arg5: memref<128x128xbf16, #tpu.memory_space<vmem>>, %arg6: memref<1x128xf32, #tpu.memory_space<vmem>>, %arg7: memref<1x128xf32, #tpu.memory_space<vmem>>, %arg8: memref<128x128xf32, #tpu.memory_space<vmem>>, %arg9: memref<2x128x1xf32, #tpu.memory_space<vmem>>, %arg10: memref<2x128x1xf32, #tpu.memory_space<vmem>>, %arg11: memref<2x128x128xf32, #tpu.memory_space<vmem>>) attributes {dimension_semantics = [#tpu.dimension_semantics<parallel>, #tpu.dimension_semantics<arbitrary>], iteration_bounds = array<i64: 2, 2>, scalar_prefetch = 0 : i64, scratch_operands = 3 : i64, tpu.core_type = #tpu.core_type<tc>, window_params = [{transform_indices = @transform_0, window_bounds = array<i64: 2, 128, 128>}, {transform_indices = @transform_1, window_bounds = array<i64: 2, 128, 1>}, {transform_indices = @transform_2, window_bounds = array<i64: 2, 1, 128>}, {transform_indices = @transform_3, window_bounds = array<i64: 128, 128>}, {pipeline_mode = #tpu.pipeline_mode<synchronous>, transform_indices = @transform_4, window_bounds = array<i64: 1, 128>}, {pipeline_mode = #tpu.pipeline_mode<synchronous>, transform_indices = @transform_5, window_bounds = array<i64: 1, 128>}, {transform_indices = @transform_6, window_bounds = array<i64: 128, 128>}]} {
    %c0_i32 = arith.constant 0 : i32
    %0 = arith.cmpi eq, %arg1, %c0_i32 : i32
    %1 = arith.extui %0 : i1 to i32
    %c0_i32_0 = arith.constant 0 : i32
    %2 = arith.cmpi ne, %1, %c0_i32_0 : i32
    scf.if %2 {
      %cst_63 = arith.constant -1.000000e+30 : f32
      %98 = vector.broadcast %cst_63 : f32 to vector<2x128x1xf32>
      %c0_64 = arith.constant 0 : index
      %c0_65 = arith.constant 0 : index
      %c0_66 = arith.constant 0 : index
      %99 = vector.load %arg9[%c0_64, %c0_65, %c0_66] : memref<2x128x1xf32, #tpu.memory_space<vmem>>, vector<2x128x1xf32>
      tpu.vector_store %arg9[%c0_64, %c0_65, %c0_66], %98 {strides = array<i32>} : memref<2x128x1xf32, #tpu.memory_space<vmem>>, vector<2x128x1xf32>,
      %cst_67 = arith.constant 0.000000e+00 : f32
      %100 = vector.broadcast %cst_67 : f32 to vector<2x128x1xf32>
      %c0_68 = arith.constant 0 : index
      %c0_69 = arith.constant 0 : index
      %c0_70 = arith.constant 0 : index
      %101 = vector.load %arg10[%c0_68, %c0_69, %c0_70] : memref<2x128x1xf32, #tpu.memory_space<vmem>>, vector<2x128x1xf32>
      tpu.vector_store %arg10[%c0_68, %c0_69, %c0_70], %100 {strides = array<i32>} : memref<2x128x1xf32, #tpu.memory_space<vmem>>, vector<2x128x1xf32>,
      %cst_71 = arith.constant 0.000000e+00 : f32
      %102 = vector.broadcast %cst_71 : f32 to vector<2x128x128xf32>
      %c0_72 = arith.constant 0 : index
      %c0_73 = arith.constant 0 : index
      %c0_74 = arith.constant 0 : index
      %103 = vector.load %arg11[%c0_72, %c0_73, %c0_74] : memref<2x128x128xf32, #tpu.memory_space<vmem>>, vector<2x128x128xf32>
      tpu.vector_store %arg11[%c0_72, %c0_73, %c0_74], %102 {strides = array<i32>} : memref<2x128x128xf32, #tpu.memory_space<vmem>>, vector<2x128x128xf32>,
    } else {
    }
    %c0 = arith.constant 0 : index
    %c0_1 = arith.constant 0 : index
    %3 = vector.load %arg5[%c0, %c0_1] : memref<128x128xbf16, #tpu.memory_space<vmem>>, vector<128x128xbf16>
    %4 = arith.extf %3 : vector<128x128xbf16> to vector<128x128xf32>
    %c0_2 = arith.constant 0 : index
    %c0_3 = arith.constant 0 : index
    %c0_4 = arith.constant 0 : index
    %5 = vector.load %arg3[%c0_2, %c0_3, %c0_4] : memref<2x128x1xf32, #tpu.memory_space<vmem>>, vector<1x128x1xf32>
    %6 = vector.shape_cast %5 : vector<1x128x1xf32> to vector<128x1xf32>
    %c0_5 = arith.constant 0 : index
    %c0_6 = arith.constant 0 : index
    %c0_7 = arith.constant 0 : index
    %7 = vector.load %arg4[%c0_5, %c0_6, %c0_7] : memref<2x1x128xf32, #tpu.memory_space<vmem>>, vector<1x1x128xf32>
    %8 = vector.shape_cast %7 : vector<1x1x128xf32> to vector<1x128xf32>
    %9 = vector.broadcast %6 : vector<128x1xf32> to vector<128x128xf32>
    %10 = vector.broadcast %8 : vector<1x128xf32> to vector<128x128xf32>
    %11 = arith.addf %9, %10 : vector<128x128xf32>
    %cst = arith.constant 2.000000e-01 : f32
    %12 = vector.broadcast %cst : f32 to vector<128x128xf32>
    %13 = arith.mulf %12, %11 : vector<128x128xf32>
    %14 = arith.maximumf %11, %13 : vector<128x128xf32>
    %c0_8 = arith.constant 0 : index
    %c0_9 = arith.constant 0 : index
    %c0_10 = arith.constant 0 : index
    %15 = vector.load %arg9[%c0_8, %c0_9, %c0_10] : memref<2x128x1xf32, #tpu.memory_space<vmem>>, vector<1x128x1xf32>
    %16 = vector.shape_cast %15 : vector<1x128x1xf32> to vector<128x1xf32>
    %cst_11 = arith.constant dense<0xFF800000> : vector<128xf32>
    %17 = vector.multi_reduction <maximumf>, %14, %cst_11 [1] : vector<128x128xf32> to vector<128xf32>
    %18 = vector.shape_cast %17 : vector<128xf32> to vector<128x1xf32>
    %19 = arith.maximumf %16, %18 : vector<128x1xf32>
    %20 = arith.subf %16, %19 : vector<128x1xf32>
    %21 = math.exp %20 : vector<128x1xf32>
    %22 = vector.broadcast %19 : vector<128x1xf32> to vector<128x128xf32>
    %23 = arith.subf %14, %22 : vector<128x128xf32>
    %24 = math.exp %23 : vector<128x128xf32>
    %25 = arith.mulf %24, %4 : vector<128x128xf32>
    %c0_12 = arith.constant 0 : index
    %c0_13 = arith.constant 0 : index
    %c0_14 = arith.constant 0 : index
    %26 = vector.load %arg10[%c0_12, %c0_13, %c0_14] : memref<2x128x1xf32, #tpu.memory_space<vmem>>, vector<1x128x1xf32>
    %27 = vector.shape_cast %26 : vector<1x128x1xf32> to vector<128x1xf32>
    %28 = arith.mulf %21, %27 : vector<128x1xf32>
    %cst_15 = arith.constant dense<0.000000e+00> : vector<128xf32>
    %29 = vector.multi_reduction <add>, %25, %cst_15 [1] : vector<128x128xf32> to vector<128xf32>
    %30 = vector.shape_cast %29 : vector<128xf32> to vector<128x1xf32>
    %31 = arith.addf %28, %30 : vector<128x1xf32>
    %c0_16 = arith.constant 0 : index
    %c0_17 = arith.constant 0 : index
    %c0_18 = arith.constant 0 : index
    %32 = vector.load %arg10[%c0_16, %c0_17, %c0_18] : memref<2x128x1xf32, #tpu.memory_space<vmem>>, vector<1x128x1xf32>
    %33 = vector.shape_cast %32 : vector<1x128x1xf32> to vector<128x1xf32>
    %34 = vector.shape_cast %31 : vector<128x1xf32> to vector<1x128x1xf32>
    tpu.vector_store %arg10[%c0_16, %c0_17, %c0_18], %34 {strides = array<i32>} : memref<2x128x1xf32, #tpu.memory_space<vmem>>, vector<1x128x1xf32>,
    %c0_19 = arith.constant 0 : index
    %c0_20 = arith.constant 0 : index
    %c0_21 = arith.constant 0 : index
    %35 = vector.load %arg11[%c0_19, %c0_20, %c0_21] : memref<2x128x128xf32, #tpu.memory_space<vmem>>, vector<1x128x128xf32>
    %36 = vector.shape_cast %35 : vector<1x128x128xf32> to vector<128x128xf32>
    %37 = vector.broadcast %21 : vector<128x1xf32> to vector<128x128xf32>
    %38 = arith.mulf %37, %36 : vector<128x128xf32>
    %39 = arith.truncf %25 : vector<128x128xf32> to vector<128x128xbf16>
    %c0_22 = arith.constant 0 : index
    %c0_23 = arith.constant 0 : index
    %c0_24 = arith.constant 0 : index
    %40 = vector.load %arg2[%c0_22, %c0_23, %c0_24] : memref<2x128x128xbf16, #tpu.memory_space<vmem>>, vector<1x128x128xbf16>
    %41 = vector.shape_cast %40 : vector<1x128x128xbf16> to vector<128x128xbf16>
    %cst_25 = arith.constant dense<0.000000e+00> : vector<128x128xf32>
    %42 = tpu.matmul %39, %41, %cst_25 {dimension_numbers = #tpu.dot_dimension_numbers<[1], [0], [0], [1], [0, 0, 1, 1], [], []>} : vector<128x128xbf16>, vector<128x128xbf16>, vector<128x128xf32> -> vector<128x128xf32>
    %43 = arith.addf %38, %42 : vector<128x128xf32>
    %c0_26 = arith.constant 0 : index
    %c0_27 = arith.constant 0 : index
    %c0_28 = arith.constant 0 : index
    %44 = vector.load %arg11[%c0_26, %c0_27, %c0_28] : memref<2x128x128xf32, #tpu.memory_space<vmem>>, vector<1x128x128xf32>
    %45 = vector.shape_cast %44 : vector<1x128x128xf32> to vector<128x128xf32>
    %46 = vector.shape_cast %43 : vector<128x128xf32> to vector<1x128x128xf32>
    tpu.vector_store %arg11[%c0_26, %c0_27, %c0_28], %46 {strides = array<i32>} : memref<2x128x128xf32, #tpu.memory_space<vmem>>, vector<1x128x128xf32>,
    %c0_29 = arith.constant 0 : index
    %c0_30 = arith.constant 0 : index
    %c0_31 = arith.constant 0 : index
    %47 = vector.load %arg9[%c0_29, %c0_30, %c0_31] : memref<2x128x1xf32, #tpu.memory_space<vmem>>, vector<1x128x1xf32>
    %48 = vector.shape_cast %47 : vector<1x128x1xf32> to vector<128x1xf32>
    %49 = vector.shape_cast %19 : vector<128x1xf32> to vector<1x128x1xf32>
    tpu.vector_store %arg9[%c0_29, %c0_30, %c0_31], %49 {strides = array<i32>} : memref<2x128x1xf32, #tpu.memory_space<vmem>>, vector<1x128x1xf32>,
    %c1 = arith.constant 1 : index
    %c0_32 = arith.constant 0 : index
    %c0_33 = arith.constant 0 : index
    %50 = vector.load %arg3[%c1, %c0_32, %c0_33] : memref<2x128x1xf32, #tpu.memory_space<vmem>>, vector<1x128x1xf32>
    %51 = vector.shape_cast %50 : vector<1x128x1xf32> to vector<128x1xf32>
    %c1_34 = arith.constant 1 : index
    %c0_35 = arith.constant 0 : index
    %c0_36 = arith.constant 0 : index
    %52 = vector.load %arg4[%c1_34, %c0_35, %c0_36] : memref<2x1x128xf32, #tpu.memory_space<vmem>>, vector<1x1x128xf32>
    %53 = vector.shape_cast %52 : vector<1x1x128xf32> to vector<1x128xf32>
    %54 = vector.broadcast %51 : vector<128x1xf32> to vector<128x128xf32>
    %55 = vector.broadcast %53 : vector<1x128xf32> to vector<128x128xf32>
    %56 = arith.addf %54, %55 : vector<128x128xf32>
    %cst_37 = arith.constant 2.000000e-01 : f32
    %57 = vector.broadcast %cst_37 : f32 to vector<128x128xf32>
    %58 = arith.mulf %57, %56 : vector<128x128xf32>
    %59 = arith.maximumf %56, %58 : vector<128x128xf32>
    %c1_38 = arith.constant 1 : index
    %c0_39 = arith.constant 0 : index
    %c0_40 = arith.constant 0 : index
    %60 = vector.load %arg9[%c1_38, %c0_39, %c0_40] : memref<2x128x1xf32, #tpu.memory_space<vmem>>, vector<1x128x1xf32>
    %61 = vector.shape_cast %60 : vector<1x128x1xf32> to vector<128x1xf32>
    %cst_41 = arith.constant dense<0xFF800000> : vector<128xf32>
    %62 = vector.multi_reduction <maximumf>, %59, %cst_41 [1] : vector<128x128xf32> to vector<128xf32>
    %63 = vector.shape_cast %62 : vector<128xf32> to vector<128x1xf32>
    %64 = arith.maximumf %61, %63 : vector<128x1xf32>
    %65 = arith.subf %61, %64 : vector<128x1xf32>
    %66 = math.exp %65 : vector<128x1xf32>
    %67 = vector.broadcast %64 : vector<128x1xf32> to vector<128x128xf32>
    %68 = arith.subf %59, %67 : vector<128x128xf32>
    %69 = math.exp %68 : vector<128x128xf32>
    %70 = arith.mulf %69, %4 : vector<128x128xf32>
    %c1_42 = arith.constant 1 : index
    %c0_43 = arith.constant 0 : index
    %c0_44 = arith.constant 0 : index
    %71 = vector.load %arg10[%c1_42, %c0_43, %c0_44] : memref<2x128x1xf32, #tpu.memory_space<vmem>>, vector<1x128x1xf32>
    %72 = vector.shape_cast %71 : vector<1x128x1xf32> to vector<128x1xf32>
    %73 = arith.mulf %66, %72 : vector<128x1xf32>
    %cst_45 = arith.constant dense<0.000000e+00> : vector<128xf32>
    %74 = vector.multi_reduction <add>, %70, %cst_45 [1] : vector<128x128xf32> to vector<128xf32>
    %75 = vector.shape_cast %74 : vector<128xf32> to vector<128x1xf32>
    %76 = arith.addf %73, %75 : vector<128x1xf32>
    %c1_46 = arith.constant 1 : index
    %c0_47 = arith.constant 0 : index
    %c0_48 = arith.constant 0 : index
    %77 = vector.load %arg10[%c1_46, %c0_47, %c0_48] : memref<2x128x1xf32, #tpu.memory_space<vmem>>, vector<1x128x1xf32>
    %78 = vector.shape_cast %77 : vector<1x128x1xf32> to vector<128x1xf32>
    %79 = vector.shape_cast %76 : vector<128x1xf32> to vector<1x128x1xf32>
    tpu.vector_store %arg10[%c1_46, %c0_47, %c0_48], %79 {strides = array<i32>} : memref<2x128x1xf32, #tpu.memory_space<vmem>>, vector<1x128x1xf32>,
    %c1_49 = arith.constant 1 : index
    %c0_50 = arith.constant 0 : index
    %c0_51 = arith.constant 0 : index
    %80 = vector.load %arg11[%c1_49, %c0_50, %c0_51] : memref<2x128x128xf32, #tpu.memory_space<vmem>>, vector<1x128x128xf32>
    %81 = vector.shape_cast %80 : vector<1x128x128xf32> to vector<128x128xf32>
    %82 = vector.broadcast %66 : vector<128x1xf32> to vector<128x128xf32>
    %83 = arith.mulf %82, %81 : vector<128x128xf32>
    %84 = arith.truncf %70 : vector<128x128xf32> to vector<128x128xbf16>
    %c1_52 = arith.constant 1 : index
    %c0_53 = arith.constant 0 : index
    %c0_54 = arith.constant 0 : index
    %85 = vector.load %arg2[%c1_52, %c0_53, %c0_54] : memref<2x128x128xbf16, #tpu.memory_space<vmem>>, vector<1x128x128xbf16>
    %86 = vector.shape_cast %85 : vector<1x128x128xbf16> to vector<128x128xbf16>
    %cst_55 = arith.constant dense<0.000000e+00> : vector<128x128xf32>
    %87 = tpu.matmul %84, %86, %cst_55 {dimension_numbers = #tpu.dot_dimension_numbers<[1], [0], [0], [1], [0, 0, 1, 1], [], []>} : vector<128x128xbf16>, vector<128x128xbf16>, vector<128x128xf32> -> vector<128x128xf32>
    %88 = arith.addf %83, %87 : vector<128x128xf32>
    %c1_56 = arith.constant 1 : index
    %c0_57 = arith.constant 0 : index
    %c0_58 = arith.constant 0 : index
    %89 = vector.load %arg11[%c1_56, %c0_57, %c0_58] : memref<2x128x128xf32, #tpu.memory_space<vmem>>, vector<1x128x128xf32>
    %90 = vector.shape_cast %89 : vector<1x128x128xf32> to vector<128x128xf32>
    %91 = vector.shape_cast %88 : vector<128x128xf32> to vector<1x128x128xf32>
    tpu.vector_store %arg11[%c1_56, %c0_57, %c0_58], %91 {strides = array<i32>} : memref<2x128x128xf32, #tpu.memory_space<vmem>>, vector<1x128x128xf32>,
    %c1_59 = arith.constant 1 : index
    %c0_60 = arith.constant 0 : index
    %c0_61 = arith.constant 0 : index
    %92 = vector.load %arg9[%c1_59, %c0_60, %c0_61] : memref<2x128x1xf32, #tpu.memory_space<vmem>>, vector<1x128x1xf32>
    %93 = vector.shape_cast %92 : vector<1x128x1xf32> to vector<128x1xf32>
    %94 = vector.shape_cast %64 : vector<128x1xf32> to vector<1x128x1xf32>
    tpu.vector_store %arg9[%c1_59, %c0_60, %c0_61], %94 {strides = array<i32>} : memref<2x128x1xf32, #tpu.memory_space<vmem>>, vector<1x128x1xf32>,
    %c1_i32 = arith.constant 1 : i32
    %95 = arith.cmpi eq, %arg1, %c1_i32 : i32
    %96 = arith.extui %95 : i1 to i32
    %c0_i32_62 = arith.constant 0 : i32
    %97 = arith.cmpi ne, %96, %c0_i32_62 : i32
    scf.if %97 {
      %cst_63 = arith.constant 0.000000e+00 : f32
      %98 = vector.broadcast %cst_63 : f32 to vector<128x128xf32>
      %c0_64 = arith.constant 0 : index
      %c0_65 = arith.constant 0 : index
      %c0_66 = arith.constant 0 : index
      %99 = vector.load %arg10[%c0_64, %c0_65, %c0_66] : memref<2x128x1xf32, #tpu.memory_space<vmem>>, vector<1x128x1xf32>
      %100 = vector.shape_cast %99 : vector<1x128x1xf32> to vector<128x1xf32>
      %cst_67 = arith.constant 0.000000e+00 : f32
      %101 = vector.broadcast %cst_67 : f32 to vector<128x1xf32>
      %102 = arith.cmpf ogt, %100, %101 : vector<128x1xf32>
      %cst_68 = arith.constant 1.000000e+00 : f32
      %103 = vector.broadcast %cst_68 : f32 to vector<128x1xf32>
      %104 = arith.select %102, %100, %103 : vector<128x1xi1>, vector<128x1xf32>
      %c0_69 = arith.constant 0 : index
      %c0_70 = arith.constant 0 : index
      %c0_71 = arith.constant 0 : index
      %105 = vector.load %arg11[%c0_69, %c0_70, %c0_71] : memref<2x128x128xf32, #tpu.memory_space<vmem>>, vector<1x128x128xf32>
      %106 = vector.shape_cast %105 : vector<1x128x128xf32> to vector<128x128xf32>
      %107 = vector.broadcast %104 : vector<128x1xf32> to vector<128x128xf32>
      %108 = arith.divf %106, %107 : vector<128x128xf32>
      %109 = arith.addf %98, %108 : vector<128x128xf32>
      %c1_72 = arith.constant 1 : index
      %c0_73 = arith.constant 0 : index
      %c0_74 = arith.constant 0 : index
      %110 = vector.load %arg10[%c1_72, %c0_73, %c0_74] : memref<2x128x1xf32, #tpu.memory_space<vmem>>, vector<1x128x1xf32>
      %111 = vector.shape_cast %110 : vector<1x128x1xf32> to vector<128x1xf32>
      %cst_75 = arith.constant 0.000000e+00 : f32
      %112 = vector.broadcast %cst_75 : f32 to vector<128x1xf32>
      %113 = arith.cmpf ogt, %111, %112 : vector<128x1xf32>
      %cst_76 = arith.constant 1.000000e+00 : f32
      %114 = vector.broadcast %cst_76 : f32 to vector<128x1xf32>
      %115 = arith.select %113, %111, %114 : vector<128x1xi1>, vector<128x1xf32>
      %c1_77 = arith.constant 1 : index
      %c0_78 = arith.constant 0 : index
      %c0_79 = arith.constant 0 : index
      %116 = vector.load %arg11[%c1_77, %c0_78, %c0_79] : memref<2x128x128xf32, #tpu.memory_space<vmem>>, vector<1x128x128xf32>
      %117 = vector.shape_cast %116 : vector<1x128x128xf32> to vector<128x128xf32>
      %118 = vector.broadcast %115 : vector<128x1xf32> to vector<128x128xf32>
      %119 = arith.divf %117, %118 : vector<128x128xf32>
      %120 = arith.addf %109, %119 : vector<128x128xf32>
      %cst_80 = arith.constant 5.000000e-01 : f32
      %121 = vector.broadcast %cst_80 : f32 to vector<128x128xf32>
      %122 = arith.mulf %120, %121 : vector<128x128xf32>
      %123 = tpu.iota {dimensions = array<i32: 1>} : vector<128x128xi32>
      %c64_i32 = arith.constant 64 : i32
      %124 = vector.broadcast %c64_i32 : i32 to vector<128x128xi32>
      %125 = arith.cmpi slt, %123, %124 : vector<128x128xi32>
      %126 = arith.extui %125 : vector<128x128xi1> to vector<128x128xi32>
      %127 = arith.sitofp %126 : vector<128x128xi32> to vector<128x128xf32>
      %128 = arith.mulf %122, %127 : vector<128x128xf32>
      %cst_81 = arith.constant dense<0.000000e+00> : vector<128xf32>
      %129 = vector.multi_reduction <add>, %128, %cst_81 [1] : vector<128x128xf32> to vector<128xf32>
      %130 = vector.shape_cast %129 : vector<128xf32> to vector<128x1xf32>
      %cst_82 = arith.constant 1.562500e-02 : f32
      %131 = vector.broadcast %cst_82 : f32 to vector<128x1xf32>
      %132 = arith.mulf %130, %131 : vector<128x1xf32>
      %133 = vector.broadcast %132 : vector<128x1xf32> to vector<128x128xf32>
      %134 = arith.subf %122, %133 : vector<128x128xf32>
      %135 = arith.mulf %134, %127 : vector<128x128xf32>
      %136 = arith.mulf %135, %135 : vector<128x128xf32>
      %cst_83 = arith.constant dense<0.000000e+00> : vector<128xf32>
      %137 = vector.multi_reduction <add>, %136, %cst_83 [1] : vector<128x128xf32> to vector<128xf32>
      %138 = vector.shape_cast %137 : vector<128xf32> to vector<128x1xf32>
      %cst_84 = arith.constant 1.562500e-02 : f32
      %139 = vector.broadcast %cst_84 : f32 to vector<128x1xf32>
      %140 = arith.mulf %138, %139 : vector<128x1xf32>
      %cst_85 = arith.constant 9.99999974E-6 : f32
      %141 = vector.broadcast %cst_85 : f32 to vector<128x1xf32>
      %142 = arith.addf %140, %141 : vector<128x1xf32>
      %143 = math.rsqrt %142 : vector<128x1xf32>
      %144 = vector.broadcast %143 : vector<128x1xf32> to vector<128x128xf32>
      %145 = arith.mulf %135, %144 : vector<128x128xf32>
      %c0_86 = arith.constant 0 : index
      %c0_87 = arith.constant 0 : index
      %146 = vector.load %arg6[%c0_86, %c0_87] : memref<1x128xf32, #tpu.memory_space<vmem>>, vector<1x128xf32>
      %147 = vector.broadcast %146 : vector<1x128xf32> to vector<128x128xf32>
      %148 = arith.mulf %145, %147 : vector<128x128xf32>
      %c0_88 = arith.constant 0 : index
      %c0_89 = arith.constant 0 : index
      %149 = vector.load %arg7[%c0_88, %c0_89] : memref<1x128xf32, #tpu.memory_space<vmem>>, vector<1x128xf32>
      %150 = vector.broadcast %149 : vector<1x128xf32> to vector<128x128xf32>
      %151 = arith.mulf %150, %127 : vector<128x128xf32>
      %152 = arith.addf %148, %151 : vector<128x128xf32>
      %cst_90 = arith.constant 0.000000e+00 : f32
      %153 = vector.broadcast %cst_90 : f32 to vector<128x128xf32>
      %154 = arith.maximumf %152, %153 : vector<128x128xf32>
      %c0_91 = arith.constant 0 : index
      %c0_92 = arith.constant 0 : index
      %155 = vector.load %arg8[%c0_91, %c0_92] : memref<128x128xf32, #tpu.memory_space<vmem>>, vector<128x128xf32>
      tpu.vector_store %arg8[%c0_91, %c0_92], %154 {strides = array<i32>} : memref<128x128xf32, #tpu.memory_space<vmem>>, vector<128x128xf32>,
    } else {
    }
    return
  }
  func.func @transform_0(%arg0: i32, %arg1: i32) -> (i32, i32, i32) {
    %c0_i32 = arith.constant 0 : i32
    %c0_i32_0 = arith.constant 0 : i32
    %c0_i32_1 = arith.constant 0 : i32
    return %c0_i32, %arg1, %c0_i32_0 : i32, i32, i32
  }
  func.func @transform_1(%arg0: i32, %arg1: i32) -> (i32, i32, i32) {
    %c0_i32 = arith.constant 0 : i32
    %c0_i32_0 = arith.constant 0 : i32
    %c0_i32_1 = arith.constant 0 : i32
    return %c0_i32, %arg0, %c0_i32_0 : i32, i32, i32
  }
  func.func @transform_2(%arg0: i32, %arg1: i32) -> (i32, i32, i32) {
    %c0_i32 = arith.constant 0 : i32
    %c0_i32_0 = arith.constant 0 : i32
    %c0_i32_1 = arith.constant 0 : i32
    return %c0_i32, %c0_i32_0, %arg1 : i32, i32, i32
  }
  func.func @transform_3(%arg0: i32, %arg1: i32) -> (i32, i32) {
    %c0_i32 = arith.constant 0 : i32
    return %arg0, %arg1 : i32, i32
  }
  func.func @transform_4(%arg0: i32, %arg1: i32) -> (i32, i32) {
    %c0_i32 = arith.constant 0 : i32
    %c0_i32_0 = arith.constant 0 : i32
    %c0_i32_1 = arith.constant 0 : i32
    return %c0_i32, %c0_i32_0 : i32, i32
  }
  func.func @transform_5(%arg0: i32, %arg1: i32) -> (i32, i32) {
    %c0_i32 = arith.constant 0 : i32
    %c0_i32_0 = arith.constant 0 : i32
    %c0_i32_1 = arith.constant 0 : i32
    return %c0_i32, %c0_i32_0 : i32, i32
  }
  func.func @transform_6(%arg0: i32, %arg1: i32) -> (i32, i32) {
    %c0_i32 = arith.constant 0 : i32
    %c0_i32_0 = arith.constant 0 : i32
    return %arg0, %c0_i32 : i32, i32
  }
}

module attributes {stable_mosaic.version = 11 : i64} {
  func.func @_proj_kernel(%arg0: i32, %arg1: memref<128x128xbf16, #tpu.memory_space<vmem>>, %arg2: memref<1x128x128xbf16, #tpu.memory_space<vmem>>, %arg3: memref<1x1x128xf32, #tpu.memory_space<vmem>>, %arg4: memref<1x1x128xf32, #tpu.memory_space<vmem>>, %arg5: memref<1x128x128xbf16, #tpu.memory_space<vmem>>, %arg6: memref<1x128x1xf32, #tpu.memory_space<vmem>>, %arg7: memref<1x128x1xf32, #tpu.memory_space<vmem>>) attributes {dimension_semantics = [#tpu.dimension_semantics<parallel>], iteration_bounds = array<i64: 2>, scalar_prefetch = 0 : i64, scratch_operands = 0 : i64, tpu.core_type = #tpu.core_type<tc>, window_params = [{transform_indices = @transform_0, window_bounds = array<i64: 128, 128>}, {pipeline_mode = #tpu.pipeline_mode<synchronous>, transform_indices = @transform_1, window_bounds = array<i64: 1, 128, 128>}, {pipeline_mode = #tpu.pipeline_mode<synchronous>, transform_indices = @transform_2, window_bounds = array<i64: 1, 1, 128>}, {pipeline_mode = #tpu.pipeline_mode<synchronous>, transform_indices = @transform_3, window_bounds = array<i64: 1, 1, 128>}, {transform_indices = @transform_4, window_bounds = array<i64: 1, 128, 128>}, {transform_indices = @transform_5, window_bounds = array<i64: 1, 128, 1>}, {transform_indices = @transform_6, window_bounds = array<i64: 1, 128, 1>}]} {
    %c0 = arith.constant 0 : index
    %c0_0 = arith.constant 0 : index
    %0 = vector.load %arg1[%c0, %c0_0] : memref<128x128xbf16, #tpu.memory_space<vmem>>, vector<128x128xbf16>
    %c0_1 = arith.constant 0 : index
    %c0_2 = arith.constant 0 : index
    %c0_3 = arith.constant 0 : index
    %1 = vector.load %arg2[%c0_1, %c0_2, %c0_3] : memref<1x128x128xbf16, #tpu.memory_space<vmem>>, vector<1x128x128xbf16>
    %2 = vector.shape_cast %1 : vector<1x128x128xbf16> to vector<128x128xbf16>
    %cst = arith.constant dense<0.000000e+00> : vector<128x128xf32>
    %3 = tpu.matmul %0, %2, %cst {dimension_numbers = #tpu.dot_dimension_numbers<[1], [0], [0], [1], [0, 0, 1, 1], [], []>} : vector<128x128xbf16>, vector<128x128xbf16>, vector<128x128xf32> -> vector<128x128xf32>
    %4 = arith.truncf %3 : vector<128x128xf32> to vector<128x128xbf16>
    %c0_4 = arith.constant 0 : index
    %c0_5 = arith.constant 0 : index
    %c0_6 = arith.constant 0 : index
    %5 = vector.load %arg5[%c0_4, %c0_5, %c0_6] : memref<1x128x128xbf16, #tpu.memory_space<vmem>>, vector<1x128x128xbf16>
    %6 = vector.shape_cast %5 : vector<1x128x128xbf16> to vector<128x128xbf16>
    %7 = vector.shape_cast %4 : vector<128x128xbf16> to vector<1x128x128xbf16>
    tpu.vector_store %arg5[%c0_4, %c0_5, %c0_6], %7 {strides = array<i32>} : memref<1x128x128xbf16, #tpu.memory_space<vmem>>, vector<1x128x128xbf16>,
    %8 = arith.extf %4 : vector<128x128xbf16> to vector<128x128xf32>
    %c0_7 = arith.constant 0 : index
    %c0_8 = arith.constant 0 : index
    %c0_9 = arith.constant 0 : index
    %9 = vector.load %arg3[%c0_7, %c0_8, %c0_9] : memref<1x1x128xf32, #tpu.memory_space<vmem>>, vector<1x1x128xf32>
    %10 = vector.shape_cast %9 : vector<1x1x128xf32> to vector<1x128xf32>
    %11 = vector.broadcast %10 : vector<1x128xf32> to vector<128x128xf32>
    %12 = arith.mulf %8, %11 : vector<128x128xf32>
    %cst_10 = arith.constant dense<0.000000e+00> : vector<128xf32>
    %13 = vector.multi_reduction <add>, %12, %cst_10 [1] : vector<128x128xf32> to vector<128xf32>
    %14 = vector.shape_cast %13 : vector<128xf32> to vector<128x1xf32>
    %c0_11 = arith.constant 0 : index
    %c0_12 = arith.constant 0 : index
    %c0_13 = arith.constant 0 : index
    %15 = vector.load %arg6[%c0_11, %c0_12, %c0_13] : memref<1x128x1xf32, #tpu.memory_space<vmem>>, vector<1x128x1xf32>
    %16 = vector.shape_cast %15 : vector<1x128x1xf32> to vector<128x1xf32>
    %17 = vector.shape_cast %14 : vector<128x1xf32> to vector<1x128x1xf32>
    tpu.vector_store %arg6[%c0_11, %c0_12, %c0_13], %17 {strides = array<i32>} : memref<1x128x1xf32, #tpu.memory_space<vmem>>, vector<1x128x1xf32>,
    %c0_14 = arith.constant 0 : index
    %c0_15 = arith.constant 0 : index
    %c0_16 = arith.constant 0 : index
    %18 = vector.load %arg4[%c0_14, %c0_15, %c0_16] : memref<1x1x128xf32, #tpu.memory_space<vmem>>, vector<1x1x128xf32>
    %19 = vector.shape_cast %18 : vector<1x1x128xf32> to vector<1x128xf32>
    %20 = vector.broadcast %19 : vector<1x128xf32> to vector<128x128xf32>
    %21 = arith.mulf %8, %20 : vector<128x128xf32>
    %cst_17 = arith.constant dense<0.000000e+00> : vector<128xf32>
    %22 = vector.multi_reduction <add>, %21, %cst_17 [1] : vector<128x128xf32> to vector<128xf32>
    %23 = vector.shape_cast %22 : vector<128xf32> to vector<128x1xf32>
    %c0_18 = arith.constant 0 : index
    %c0_19 = arith.constant 0 : index
    %c0_20 = arith.constant 0 : index
    %24 = vector.load %arg7[%c0_18, %c0_19, %c0_20] : memref<1x128x1xf32, #tpu.memory_space<vmem>>, vector<1x128x1xf32>
    %25 = vector.shape_cast %24 : vector<1x128x1xf32> to vector<128x1xf32>
    %26 = vector.shape_cast %23 : vector<128x1xf32> to vector<1x128x1xf32>
    tpu.vector_store %arg7[%c0_18, %c0_19, %c0_20], %26 {strides = array<i32>} : memref<1x128x1xf32, #tpu.memory_space<vmem>>, vector<1x128x1xf32>,
    return
  }
  func.func @transform_0(%arg0: i32) -> (i32, i32) {
    %c0_i32 = arith.constant 0 : i32
    %c0_i32_0 = arith.constant 0 : i32
    return %arg0, %c0_i32 : i32, i32
  }
  func.func @transform_1(%arg0: i32) -> (i32, i32, i32) {
    %c0_i32 = arith.constant 0 : i32
    %c0_i32_0 = arith.constant 0 : i32
    %c0_i32_1 = arith.constant 0 : i32
    %c0_i32_2 = arith.constant 0 : i32
    return %c0_i32, %c0_i32_0, %c0_i32_1 : i32, i32, i32
  }
  func.func @transform_2(%arg0: i32) -> (i32, i32, i32) {
    %c0_i32 = arith.constant 0 : i32
    %c0_i32_0 = arith.constant 0 : i32
    %c0_i32_1 = arith.constant 0 : i32
    %c0_i32_2 = arith.constant 0 : i32
    return %c0_i32, %c0_i32_0, %c0_i32_1 : i32, i32, i32
  }
  func.func @transform_3(%arg0: i32) -> (i32, i32, i32) {
    %c0_i32 = arith.constant 0 : i32
    %c0_i32_0 = arith.constant 0 : i32
    %c0_i32_1 = arith.constant 0 : i32
    %c0_i32_2 = arith.constant 0 : i32
    return %c0_i32, %c0_i32_0, %c0_i32_1 : i32, i32, i32
  }
  func.func @transform_4(%arg0: i32) -> (i32, i32, i32) {
    %c0_i32 = arith.constant 0 : i32
    %c0_i32_0 = arith.constant 0 : i32
    %c0_i32_1 = arith.constant 0 : i32
    return %c0_i32, %arg0, %c0_i32_0 : i32, i32, i32
  }
  func.func @transform_5(%arg0: i32) -> (i32, i32, i32) {
    %c0_i32 = arith.constant 0 : i32
    %c0_i32_0 = arith.constant 0 : i32
    %c0_i32_1 = arith.constant 0 : i32
    return %c0_i32, %arg0, %c0_i32_0 : i32, i32, i32
  }
  func.func @transform_6(%arg0: i32) -> (i32, i32, i32) {
    %c0_i32 = arith.constant 0 : i32
    %c0_i32_0 = arith.constant 0 : i32
    %c0_i32_1 = arith.constant 0 : i32
    return %c0_i32, %arg0, %c0_i32_0 : i32, i32, i32
  }
}

module attributes {stable_mosaic.version = 11 : i64} {
  func.func @_attn_kernel(%arg0: i32, %arg1: i32, %arg2: memref<1x128x128xbf16, #tpu.memory_space<vmem>>, %arg3: memref<1x128x1xf32, #tpu.memory_space<vmem>>, %arg4: memref<1x1x128xf32, #tpu.memory_space<vmem>>, %arg5: memref<128x128xbf16, #tpu.memory_space<vmem>>, %arg6: memref<1x128xf32, #tpu.memory_space<vmem>>, %arg7: memref<1x128xf32, #tpu.memory_space<vmem>>, %arg8: memref<128x128xf32, #tpu.memory_space<vmem>>, %arg9: memref<1x128x1xf32, #tpu.memory_space<vmem>>, %arg10: memref<1x128x1xf32, #tpu.memory_space<vmem>>, %arg11: memref<1x128x128xf32, #tpu.memory_space<vmem>>) attributes {dimension_semantics = [#tpu.dimension_semantics<parallel>, #tpu.dimension_semantics<arbitrary>], iteration_bounds = array<i64: 2, 2>, scalar_prefetch = 0 : i64, scratch_operands = 3 : i64, tpu.core_type = #tpu.core_type<tc>, window_params = [{transform_indices = @transform_0, window_bounds = array<i64: 1, 128, 128>}, {transform_indices = @transform_1, window_bounds = array<i64: 1, 128, 1>}, {transform_indices = @transform_2, window_bounds = array<i64: 1, 1, 128>}, {transform_indices = @transform_3, window_bounds = array<i64: 128, 128>}, {pipeline_mode = #tpu.pipeline_mode<synchronous>, transform_indices = @transform_4, window_bounds = array<i64: 1, 128>}, {pipeline_mode = #tpu.pipeline_mode<synchronous>, transform_indices = @transform_5, window_bounds = array<i64: 1, 128>}, {transform_indices = @transform_6, window_bounds = array<i64: 128, 128>}]} {
    %c0_i32 = arith.constant 0 : i32
    %0 = arith.cmpi eq, %arg1, %c0_i32 : i32
    %1 = arith.extui %0 : i1 to i32
    %c0_i32_0 = arith.constant 0 : i32
    %2 = arith.cmpi ne, %1, %c0_i32_0 : i32
    scf.if %2 {
      %cst_33 = arith.constant -1.000000e+30 : f32
      %53 = vector.broadcast %cst_33 : f32 to vector<1x128x1xf32>
      %c0_34 = arith.constant 0 : index
      %c0_35 = arith.constant 0 : index
      %c0_36 = arith.constant 0 : index
      %54 = vector.load %arg9[%c0_34, %c0_35, %c0_36] : memref<1x128x1xf32, #tpu.memory_space<vmem>>, vector<1x128x1xf32>
      tpu.vector_store %arg9[%c0_34, %c0_35, %c0_36], %53 {strides = array<i32>} : memref<1x128x1xf32, #tpu.memory_space<vmem>>, vector<1x128x1xf32>,
      %cst_37 = arith.constant 0.000000e+00 : f32
      %55 = vector.broadcast %cst_37 : f32 to vector<1x128x1xf32>
      %c0_38 = arith.constant 0 : index
      %c0_39 = arith.constant 0 : index
      %c0_40 = arith.constant 0 : index
      %56 = vector.load %arg10[%c0_38, %c0_39, %c0_40] : memref<1x128x1xf32, #tpu.memory_space<vmem>>, vector<1x128x1xf32>
      tpu.vector_store %arg10[%c0_38, %c0_39, %c0_40], %55 {strides = array<i32>} : memref<1x128x1xf32, #tpu.memory_space<vmem>>, vector<1x128x1xf32>,
      %cst_41 = arith.constant 0.000000e+00 : f32
      %57 = vector.broadcast %cst_41 : f32 to vector<1x128x128xf32>
      %c0_42 = arith.constant 0 : index
      %c0_43 = arith.constant 0 : index
      %c0_44 = arith.constant 0 : index
      %58 = vector.load %arg11[%c0_42, %c0_43, %c0_44] : memref<1x128x128xf32, #tpu.memory_space<vmem>>, vector<1x128x128xf32>
      tpu.vector_store %arg11[%c0_42, %c0_43, %c0_44], %57 {strides = array<i32>} : memref<1x128x128xf32, #tpu.memory_space<vmem>>, vector<1x128x128xf32>,
    } else {
    }
    %c0 = arith.constant 0 : index
    %c0_1 = arith.constant 0 : index
    %3 = vector.load %arg5[%c0, %c0_1] : memref<128x128xbf16, #tpu.memory_space<vmem>>, vector<128x128xbf16>
    %4 = arith.extf %3 : vector<128x128xbf16> to vector<128x128xf32>
    %c0_2 = arith.constant 0 : index
    %c0_3 = arith.constant 0 : index
    %c0_4 = arith.constant 0 : index
    %5 = vector.load %arg3[%c0_2, %c0_3, %c0_4] : memref<1x128x1xf32, #tpu.memory_space<vmem>>, vector<1x128x1xf32>
    %6 = vector.shape_cast %5 : vector<1x128x1xf32> to vector<128x1xf32>
    %c0_5 = arith.constant 0 : index
    %c0_6 = arith.constant 0 : index
    %c0_7 = arith.constant 0 : index
    %7 = vector.load %arg4[%c0_5, %c0_6, %c0_7] : memref<1x1x128xf32, #tpu.memory_space<vmem>>, vector<1x1x128xf32>
    %8 = vector.shape_cast %7 : vector<1x1x128xf32> to vector<1x128xf32>
    %9 = vector.broadcast %6 : vector<128x1xf32> to vector<128x128xf32>
    %10 = vector.broadcast %8 : vector<1x128xf32> to vector<128x128xf32>
    %11 = arith.addf %9, %10 : vector<128x128xf32>
    %cst = arith.constant 2.000000e-01 : f32
    %12 = vector.broadcast %cst : f32 to vector<128x128xf32>
    %13 = arith.mulf %12, %11 : vector<128x128xf32>
    %14 = arith.maximumf %11, %13 : vector<128x128xf32>
    %c0_8 = arith.constant 0 : index
    %c0_9 = arith.constant 0 : index
    %c0_10 = arith.constant 0 : index
    %15 = vector.load %arg9[%c0_8, %c0_9, %c0_10] : memref<1x128x1xf32, #tpu.memory_space<vmem>>, vector<1x128x1xf32>
    %16 = vector.shape_cast %15 : vector<1x128x1xf32> to vector<128x1xf32>
    %cst_11 = arith.constant dense<0xFF800000> : vector<128xf32>
    %17 = vector.multi_reduction <maximumf>, %14, %cst_11 [1] : vector<128x128xf32> to vector<128xf32>
    %18 = vector.shape_cast %17 : vector<128xf32> to vector<128x1xf32>
    %19 = arith.maximumf %16, %18 : vector<128x1xf32>
    %20 = arith.subf %16, %19 : vector<128x1xf32>
    %21 = math.exp %20 : vector<128x1xf32>
    %22 = vector.broadcast %19 : vector<128x1xf32> to vector<128x128xf32>
    %23 = arith.subf %14, %22 : vector<128x128xf32>
    %24 = math.exp %23 : vector<128x128xf32>
    %25 = arith.mulf %24, %4 : vector<128x128xf32>
    %c0_12 = arith.constant 0 : index
    %c0_13 = arith.constant 0 : index
    %c0_14 = arith.constant 0 : index
    %26 = vector.load %arg10[%c0_12, %c0_13, %c0_14] : memref<1x128x1xf32, #tpu.memory_space<vmem>>, vector<1x128x1xf32>
    %27 = vector.shape_cast %26 : vector<1x128x1xf32> to vector<128x1xf32>
    %28 = arith.mulf %21, %27 : vector<128x1xf32>
    %cst_15 = arith.constant dense<0.000000e+00> : vector<128xf32>
    %29 = vector.multi_reduction <add>, %25, %cst_15 [1] : vector<128x128xf32> to vector<128xf32>
    %30 = vector.shape_cast %29 : vector<128xf32> to vector<128x1xf32>
    %31 = arith.addf %28, %30 : vector<128x1xf32>
    %c0_16 = arith.constant 0 : index
    %c0_17 = arith.constant 0 : index
    %c0_18 = arith.constant 0 : index
    %32 = vector.load %arg10[%c0_16, %c0_17, %c0_18] : memref<1x128x1xf32, #tpu.memory_space<vmem>>, vector<1x128x1xf32>
    %33 = vector.shape_cast %32 : vector<1x128x1xf32> to vector<128x1xf32>
    %34 = vector.shape_cast %31 : vector<128x1xf32> to vector<1x128x1xf32>
    tpu.vector_store %arg10[%c0_16, %c0_17, %c0_18], %34 {strides = array<i32>} : memref<1x128x1xf32, #tpu.memory_space<vmem>>, vector<1x128x1xf32>,
    %c0_19 = arith.constant 0 : index
    %c0_20 = arith.constant 0 : index
    %c0_21 = arith.constant 0 : index
    %35 = vector.load %arg11[%c0_19, %c0_20, %c0_21] : memref<1x128x128xf32, #tpu.memory_space<vmem>>, vector<1x128x128xf32>
    %36 = vector.shape_cast %35 : vector<1x128x128xf32> to vector<128x128xf32>
    %37 = vector.broadcast %21 : vector<128x1xf32> to vector<128x128xf32>
    %38 = arith.mulf %37, %36 : vector<128x128xf32>
    %39 = arith.truncf %25 : vector<128x128xf32> to vector<128x128xbf16>
    %c0_22 = arith.constant 0 : index
    %c0_23 = arith.constant 0 : index
    %c0_24 = arith.constant 0 : index
    %40 = vector.load %arg2[%c0_22, %c0_23, %c0_24] : memref<1x128x128xbf16, #tpu.memory_space<vmem>>, vector<1x128x128xbf16>
    %41 = vector.shape_cast %40 : vector<1x128x128xbf16> to vector<128x128xbf16>
    %cst_25 = arith.constant dense<0.000000e+00> : vector<128x128xf32>
    %42 = tpu.matmul %39, %41, %cst_25 {dimension_numbers = #tpu.dot_dimension_numbers<[1], [0], [0], [1], [0, 0, 1, 1], [], []>} : vector<128x128xbf16>, vector<128x128xbf16>, vector<128x128xf32> -> vector<128x128xf32>
    %43 = arith.addf %38, %42 : vector<128x128xf32>
    %c0_26 = arith.constant 0 : index
    %c0_27 = arith.constant 0 : index
    %c0_28 = arith.constant 0 : index
    %44 = vector.load %arg11[%c0_26, %c0_27, %c0_28] : memref<1x128x128xf32, #tpu.memory_space<vmem>>, vector<1x128x128xf32>
    %45 = vector.shape_cast %44 : vector<1x128x128xf32> to vector<128x128xf32>
    %46 = vector.shape_cast %43 : vector<128x128xf32> to vector<1x128x128xf32>
    tpu.vector_store %arg11[%c0_26, %c0_27, %c0_28], %46 {strides = array<i32>} : memref<1x128x128xf32, #tpu.memory_space<vmem>>, vector<1x128x128xf32>,
    %c0_29 = arith.constant 0 : index
    %c0_30 = arith.constant 0 : index
    %c0_31 = arith.constant 0 : index
    %47 = vector.load %arg9[%c0_29, %c0_30, %c0_31] : memref<1x128x1xf32, #tpu.memory_space<vmem>>, vector<1x128x1xf32>
    %48 = vector.shape_cast %47 : vector<1x128x1xf32> to vector<128x1xf32>
    %49 = vector.shape_cast %19 : vector<128x1xf32> to vector<1x128x1xf32>
    tpu.vector_store %arg9[%c0_29, %c0_30, %c0_31], %49 {strides = array<i32>} : memref<1x128x1xf32, #tpu.memory_space<vmem>>, vector<1x128x1xf32>,
    %c1_i32 = arith.constant 1 : i32
    %50 = arith.cmpi eq, %arg1, %c1_i32 : i32
    %51 = arith.extui %50 : i1 to i32
    %c0_i32_32 = arith.constant 0 : i32
    %52 = arith.cmpi ne, %51, %c0_i32_32 : i32
    scf.if %52 {
      %cst_33 = arith.constant 0.000000e+00 : f32
      %53 = vector.broadcast %cst_33 : f32 to vector<128x128xf32>
      %c0_34 = arith.constant 0 : index
      %c0_35 = arith.constant 0 : index
      %c0_36 = arith.constant 0 : index
      %54 = vector.load %arg10[%c0_34, %c0_35, %c0_36] : memref<1x128x1xf32, #tpu.memory_space<vmem>>, vector<1x128x1xf32>
      %55 = vector.shape_cast %54 : vector<1x128x1xf32> to vector<128x1xf32>
      %cst_37 = arith.constant 0.000000e+00 : f32
      %56 = vector.broadcast %cst_37 : f32 to vector<128x1xf32>
      %57 = arith.cmpf ogt, %55, %56 : vector<128x1xf32>
      %cst_38 = arith.constant 1.000000e+00 : f32
      %58 = vector.broadcast %cst_38 : f32 to vector<128x1xf32>
      %59 = arith.select %57, %55, %58 : vector<128x1xi1>, vector<128x1xf32>
      %c0_39 = arith.constant 0 : index
      %c0_40 = arith.constant 0 : index
      %c0_41 = arith.constant 0 : index
      %60 = vector.load %arg11[%c0_39, %c0_40, %c0_41] : memref<1x128x128xf32, #tpu.memory_space<vmem>>, vector<1x128x128xf32>
      %61 = vector.shape_cast %60 : vector<1x128x128xf32> to vector<128x128xf32>
      %62 = vector.broadcast %59 : vector<128x1xf32> to vector<128x128xf32>
      %63 = arith.divf %61, %62 : vector<128x128xf32>
      %64 = arith.addf %53, %63 : vector<128x128xf32>
      %cst_42 = arith.constant 1.000000e+00 : f32
      %65 = vector.broadcast %cst_42 : f32 to vector<128x128xf32>
      %66 = arith.mulf %64, %65 : vector<128x128xf32>
      %67 = tpu.iota {dimensions = array<i32: 1>} : vector<128x128xi32>
      %c32_i32 = arith.constant 32 : i32
      %68 = vector.broadcast %c32_i32 : i32 to vector<128x128xi32>
      %69 = arith.cmpi slt, %67, %68 : vector<128x128xi32>
      %70 = arith.extui %69 : vector<128x128xi1> to vector<128x128xi32>
      %71 = arith.sitofp %70 : vector<128x128xi32> to vector<128x128xf32>
      %72 = arith.mulf %66, %71 : vector<128x128xf32>
      %cst_43 = arith.constant dense<0.000000e+00> : vector<128xf32>
      %73 = vector.multi_reduction <add>, %72, %cst_43 [1] : vector<128x128xf32> to vector<128xf32>
      %74 = vector.shape_cast %73 : vector<128xf32> to vector<128x1xf32>
      %cst_44 = arith.constant 3.125000e-02 : f32
      %75 = vector.broadcast %cst_44 : f32 to vector<128x1xf32>
      %76 = arith.mulf %74, %75 : vector<128x1xf32>
      %77 = vector.broadcast %76 : vector<128x1xf32> to vector<128x128xf32>
      %78 = arith.subf %66, %77 : vector<128x128xf32>
      %79 = arith.mulf %78, %71 : vector<128x128xf32>
      %80 = arith.mulf %79, %79 : vector<128x128xf32>
      %cst_45 = arith.constant dense<0.000000e+00> : vector<128xf32>
      %81 = vector.multi_reduction <add>, %80, %cst_45 [1] : vector<128x128xf32> to vector<128xf32>
      %82 = vector.shape_cast %81 : vector<128xf32> to vector<128x1xf32>
      %cst_46 = arith.constant 3.125000e-02 : f32
      %83 = vector.broadcast %cst_46 : f32 to vector<128x1xf32>
      %84 = arith.mulf %82, %83 : vector<128x1xf32>
      %cst_47 = arith.constant 9.99999974E-6 : f32
      %85 = vector.broadcast %cst_47 : f32 to vector<128x1xf32>
      %86 = arith.addf %84, %85 : vector<128x1xf32>
      %87 = math.rsqrt %86 : vector<128x1xf32>
      %88 = vector.broadcast %87 : vector<128x1xf32> to vector<128x128xf32>
      %89 = arith.mulf %79, %88 : vector<128x128xf32>
      %c0_48 = arith.constant 0 : index
      %c0_49 = arith.constant 0 : index
      %90 = vector.load %arg6[%c0_48, %c0_49] : memref<1x128xf32, #tpu.memory_space<vmem>>, vector<1x128xf32>
      %91 = vector.broadcast %90 : vector<1x128xf32> to vector<128x128xf32>
      %92 = arith.mulf %89, %91 : vector<128x128xf32>
      %c0_50 = arith.constant 0 : index
      %c0_51 = arith.constant 0 : index
      %93 = vector.load %arg7[%c0_50, %c0_51] : memref<1x128xf32, #tpu.memory_space<vmem>>, vector<1x128xf32>
      %94 = vector.broadcast %93 : vector<1x128xf32> to vector<128x128xf32>
      %95 = arith.mulf %94, %71 : vector<128x128xf32>
      %96 = arith.addf %92, %95 : vector<128x128xf32>
      %c0_52 = arith.constant 0 : index
      %c0_53 = arith.constant 0 : index
      %97 = vector.load %arg8[%c0_52, %c0_53] : memref<128x128xf32, #tpu.memory_space<vmem>>, vector<128x128xf32>
      tpu.vector_store %arg8[%c0_52, %c0_53], %96 {strides = array<i32>} : memref<128x128xf32, #tpu.memory_space<vmem>>, vector<128x128xf32>,
    } else {
    }
    return
  }
  func.func @transform_0(%arg0: i32, %arg1: i32) -> (i32, i32, i32) {
    %c0_i32 = arith.constant 0 : i32
    %c0_i32_0 = arith.constant 0 : i32
    %c0_i32_1 = arith.constant 0 : i32
    return %c0_i32, %arg1, %c0_i32_0 : i32, i32, i32
  }
  func.func @transform_1(%arg0: i32, %arg1: i32) -> (i32, i32, i32) {
    %c0_i32 = arith.constant 0 : i32
    %c0_i32_0 = arith.constant 0 : i32
    %c0_i32_1 = arith.constant 0 : i32
    return %c0_i32, %arg0, %c0_i32_0 : i32, i32, i32
  }
  func.func @transform_2(%arg0: i32, %arg1: i32) -> (i32, i32, i32) {
    %c0_i32 = arith.constant 0 : i32
    %c0_i32_0 = arith.constant 0 : i32
    %c0_i32_1 = arith.constant 0 : i32
    return %c0_i32, %c0_i32_0, %arg1 : i32, i32, i32
  }
  func.func @transform_3(%arg0: i32, %arg1: i32) -> (i32, i32) {
    %c0_i32 = arith.constant 0 : i32
    return %arg0, %arg1 : i32, i32
  }
  func.func @transform_4(%arg0: i32, %arg1: i32) -> (i32, i32) {
    %c0_i32 = arith.constant 0 : i32
    %c0_i32_0 = arith.constant 0 : i32
    %c0_i32_1 = arith.constant 0 : i32
    return %c0_i32, %c0_i32_0 : i32, i32
  }
  func.func @transform_5(%arg0: i32, %arg1: i32) -> (i32, i32) {
    %c0_i32 = arith.constant 0 : i32
    %c0_i32_0 = arith.constant 0 : i32
    %c0_i32_1 = arith.constant 0 : i32
    return %c0_i32, %c0_i32_0 : i32, i32
  }
  func.func @transform_6(%arg0: i32, %arg1: i32) -> (i32, i32) {
    %c0_i32 = arith.constant 0 : i32
    %c0_i32_0 = arith.constant 0 : i32
    return %arg0, %c0_i32 : i32, i32
  }
}

</mosaic_0001>

<bundles_post_ra>
// kernel: simple_gat_forward.6
= control target key start
LH: loop header
LB: loop body
LE: loop exit
PB: predicated region body
PF: predicated region fallthrough
CT: control target
= control target key end

     0   :  { %s1114_s21 = smov 0   ;;  %s1314_s0 = inlined_call_operand.vmem [shape: bf16[256,128], index: 0, kind: input, shape index: {}]   ;;  %s1315_s1 = inlined_call_operand.vmem [shape: bf16[1,128,128], index: 1, kind: input, shape index: {}]   ;;  %s1316_s2 = inlined_call_operand.vmem [shape: f32[1,1,128], index: 2, kind: input, shape index: {}]   ;;  %s1317_s3 = inlined_call_operand.vmem [shape: f32[1,1,128], index: 3, kind: input, shape index: {}]   ;;  %s1318_s4 = inlined_call_operand.vmem [shape: bf16[1,256,128], index: 4, kind: output, shape index: {0}]   ;;  %s1319_s5 = inlined_call_operand.vmem [shape: f32[1,256,1], index: 5, kind: output, shape index: {1}]   ;;  %s1320_s6 = inlined_call_operand.vmem [shape: f32[1,256,1], index: 6, kind: output, shape index: {2}]  }
   0x1 LB: > { %s871_s22 = sadd.s32 4294967295, %s1077_s21   ;;  %p875_p0 = scmp.ge.s32.totalorder %s1077_s21, 1  ;;  %s1077_s21 = sphi %s1114_s21, %s17_s21  }
   0x2   : > { %p218_p1 = scmp.lt.s32.totalorder %s1077_s21, 3 }
   0x4   : > { %p219_p2 = pnand %p875_p0, %p218_p1 }
   0x5   : > { %s876_s25 = sshll.u32 (!%p219_p2), %s871_s22, 4 }
   0x6   : > { %222 = sbr.rel (%p219_p2) target bundleno = 446 (0x1be), region = 36  ;;  %p259_p3 = scmp.lt.s32.totalorder (!%p219_p2), %s876_s25, 31 }
   0xb   : > { %v1055_v0 = vld [vmem:[%s1315_s1 + $0x38] sm:$0xff]   ;;  %v1056_v1 = vld [vmem:[%s1315_s1 + $0x30] sm:$0xff]   ;;  %s1322_s25 = smov (!%p259_p3, %s876_s25), 31  ;;  %v1057_v2 = vld [vmem:[%s1315_s1 + $0x28] sm:$0xff]   ;;  %vm659_vm0 = vcmask 7168  }
   0xc   : > { %999 = vmatprep.subr.bf16.mxu0 %v1055_v0  ;;  %1031 = vmatprep.subr.bf16.mxu1 %v1055_v0  ;;  %s877_s30 = sshll.u32 %s1322_s25, 2  ;;  %v1058_v3 = vld [vmem:[%s1315_s1 + $0x20] sm:$0xff]   ;;  %v1059_v6 = vld [vmem:[%s1315_s1 + $0x18] sm:$0xff]   ;;  %v1060_v7 = vld [vmem:[%s1315_s1 + $0x10] sm:$0xff]   ;;  %s881_s29 = sshll.u32 %s1322_s25, 3 }
   0xd   : > { %1000 = vmatpush3.bf16.msra.mxu0 %v1055_v0  ;;  %1039 = vmatpush3.bf16.msra.mxu1 %v1055_v0  ;;  %s1139_s9 = scalar_lea.vmem %s1314_s0, %s877_s30  ;;  %v1061_v8 = vld [vmem:[%s1315_s1 + $0x8] sm:$0xff]   ;;  %v1062_v9 = vld [vmem:[%s1315_s1] sm:$0xff]   ;;  %s1169_s23 = scalar_lea.vmem %s1318_s4, %s877_s30 }
   0xe   : > { %1001 = vmatprep.subr.bf16.mxu0 %v1056_v1  ;;  %1032 = vmatprep.subr.bf16.mxu1 %v1056_v1  ;;  %v1063_v4 = vld [vmem:[%s1139_s9] sm:$0xff]   ;;  %v1065_v10 = vld [vmem:[%s1139_s9 + $0x8] sm:$0xff]   ;;  %v1067_v12 = vld [vmem:[%s1139_s9 + $0x10] sm:$0xff]   ;;  %s1240_s8 = scalar_lea.vmem %s1319_s5, %s881_s29  ;;  %s1249_s25 = scalar_lea.vmem %s1320_s6, %s881_s29 }
   0xf   : > { %v1064_v5 = vld [vmem:[%s1139_s9 + $0x20] sm:$0xff]   ;;  %1015 = vmatprep.mubr.bf16.mxu0 %v1063_v4  ;;  %v1066_v11 = vld [vmem:[%s1139_s9 + $0x28] sm:$0xff]   ;;  %v1069_v13 = vld [vmem:[%s1139_s9 + $0x30] sm:$0xff]  }
  0x10   : > { %1023 = vmatprep.mubr.bf16.mxu1 %v1064_v5  ;;  %v1068_v14 = vld [vmem:[%s1139_s9 + $0x18] sm:$0xff]   ;;  %v1174_v26 = vld [vmem:[%s1316_s2] ss:$0 sm:$0xff] }
  0x11   : > { %1002 = vmatpush3.bf16.msra.mxu0 %v1056_v1  ;;  %1040 = vmatpush3.bf16.msra.mxu1 %v1056_v1  ;;  %v1070_v15 = vld [vmem:[%s1139_s9 + $0x38] sm:$0xff]   ;;  %v1185_v36 = vld [vmem:[%s1317_s3] ss:$0 sm:$0xff] }
  0x12   : > { %1003 = vmatprep.subr.bf16.mxu0 %v1057_v2  ;;  %1033 = vmatprep.subr.bf16.mxu1 %v1057_v2 }
  0x15   : > { %1004 = vmatpush3.bf16.msra.mxu0 %v1057_v2  ;;  %1041 = vmatpush3.bf16.msra.mxu1 %v1057_v2 }
  0x16   : > { %1005 = vmatprep.subr.bf16.mxu0 %v1058_v3  ;;  %1034 = vmatprep.subr.bf16.mxu1 %v1058_v3 }
  0x19   : > { %1006 = vmatpush3.bf16.msra.mxu0 %v1058_v3  ;;  %1042 = vmatpush3.bf16.msra.mxu1 %v1058_v3 }
  0x1a   : > { %1007 = vmatprep.subr.bf16.mxu0 %v1059_v6  ;;  %1035 = vmatprep.subr.bf16.mxu1 %v1059_v6 }
  0x1d   : > { %1008 = vmatpush3.bf16.msra.mxu0 %v1059_v6  ;;  %1043 = vmatpush3.bf16.msra.mxu1 %v1059_v6 }
  0x1e   : > { %1009 = vmatprep.subr.bf16.mxu0 %v1060_v7  ;;  %1036 = vmatprep.subr.bf16.mxu1 %v1060_v7 }
  0x21   : > { %1010 = vmatpush3.bf16.msra.mxu0 %v1060_v7  ;;  %1044 = vmatpush3.bf16.msra.mxu1 %v1060_v7 }
  0x22   : > { %1011 = vmatprep.subr.bf16.mxu0 %v1061_v8  ;;  %1037 = vmatprep.subr.bf16.mxu1 %v1061_v8 }
  0x25   : > { %1012 = vmatpush3.bf16.msra.mxu0 %v1061_v8  ;;  %1045 = vmatpush3.bf16.msra.mxu1 %v1061_v8 }
  0x26   : > { %1013 = vmatprep.subr.bf16.mxu0 %v1062_v9  ;;  %1038 = vmatprep.subr.bf16.mxu1 %v1062_v9 }
  0x29   : > { %1014 = vmatpush3.bf16.msra.mxu0 %v1062_v9  ;;  %1046 = vmatpush3.bf16.msra.mxu1 %v1062_v9 }
  0x2c   : > { %1016 = vmatmul.mubr.bf16.vlgmr.msra.gmra.mxu0 %v1065_v10  ;;  %1024 = vmatmul.mubr.bf16.vlgmr.msra.gmra.mxu1 %v1066_v11 }
  0x2d   : > { %1019 = vmatprep.mubr.bf16.mxu0 %v1067_v12  ;;  %1027 = vmatprep.mubr.bf16.mxu1 %v1069_v13 }
  0x34   : > { %1020 = vmatmul.mubr.bf16.gmra.mxu0 %v1068_v14  ;;  %1028 = vmatmul.mubr.bf16.gmra.mxu1 %v1070_v15 }
  0xec   : > { %v1017_v16 = vpop.f32.mrf.mxu0  ;;  %v1025_v17 = vpop.f32.mrf.mxu1 }
  0xee   : > { %v445_v18 = vpop.f32.mrf.mxu0  ;;  %v477_v19 = vpop.f32.mrf.mxu1 }
  0xf0   : > { %v1018_v20 = vpop.f32.mrf.mxu0  ;;  %v1026_v21 = vpop.f32.mrf.mxu1 }
  0xf1   : > { %v509_v22 = vpack.c.bf16 %v1018_v20, %v1017_v16  ;;  %v513_v23 = vpack.c.bf16 %v1026_v21, %v1025_v17 }
  0xf2   : > { %v448_v24 = vpop.f32.mrf.mxu0  ;;  %v480_v25 = vpop.f32.mrf.mxu1 }
  0xf3   : > { %976 = vst [vmem:[%s1169_s23 + $0x8] sm:$0xff] %v509_v22   ;;  %980 = vst [vmem:[%s1169_s23 + $0x28] sm:$0xff] %v513_v23   ;;  %v508_v27 = vpack.c.bf16 %v448_v24, %v445_v18  ;;  %v512_v28 = vpack.c.bf16 %v480_v25, %v477_v19  ;;  %v598_v29 = vunpack.c.l.bf16 %v513_v23  ;;  %v590_v30 = vunpack.c.l.bf16 %v509_v22 }
  0xf4   : > { %v1021_v31 = vpop.f32.mrf.mxu0  ;;  %v1029_v32 = vpop.f32.mrf.mxu1  ;;  %v591_v35 = vunpack.c.h.bf16 %v509_v22  ;;  %v599_v43 = vunpack.c.h.bf16 %v513_v23 }
  0xf5   : > { %940 = vst [vmem:[%s1169_s23] sm:$0xff] %v508_v27   ;;  %979 = vst [vmem:[%s1169_s23 + $0x20] sm:$0xff] %v512_v28   ;;  %v621_v33 = vmul.f32 %v1174_v26, %v598_v29  ;;  %v613_v34 = vmul.f32 %v1174_v26, %v590_v30  ;;  %v685_v41 = vmul.f32 %v1185_v36, %v590_v30  ;;  %v588_v52 = vunpack.c.l.bf16 %v508_v27 }
  0xf6   : > { %v461_v37 = vpop.f32.mrf.mxu0  ;;  %v493_v38 = vpop.f32.mrf.mxu1  ;;  %v614_v42 = vmul.f32 %v1174_v26, %v591_v35  ;;  %v693_v50 = vmul.f32 %v1185_v36, %v598_v29  ;;  %v622_v51 = vmul.f32 %v1174_v26, %v599_v43  ;;  %v686_v53 = vmul.f32 %v1185_v36, %v591_v35 }
  0xf7   : > { %647 = vadd.xlane.f32.xlu0 %v621_v33  ;;  %631 = vadd.xlane.f32.xlu1 %v613_v34  ;;  %v611_v54 = vmul.f32 %v1174_v26, %v588_v52  ;;  %v589_v55 = vunpack.c.h.bf16 %v508_v27  ;;  %v694_v56 = vmul.f32 %v1185_v36, %v599_v43  ;;  %v597_v58 = vunpack.c.h.bf16 %v512_v28 }
  0xf8   : > { %v1022_v39 = vpop.f32.mrf.mxu0  ;;  %v1030_v40 = vpop.f32.mrf.mxu1  ;;  %v596_v59 = vunpack.c.l.bf16 %v512_v28  ;;  %v683_v63 = vmul.f32 %v1185_v36, %v588_v52 }
  0xf9   : > { %v511_v44 = vpack.c.bf16 %v1022_v39, %v1021_v31  ;;  %v1189_v46 = vpack.c.bf16 %v1030_v40, %v1029_v32  ;;  %v612_v57 = vmul.f32 %v1174_v26, %v589_v55  ;;  %v620_v60 = vmul.f32 %v1174_v26, %v597_v58 }
  0xfa   : > { %v464_v45 = vpop.f32.mrf.mxu0  ;;  %v496_v47 = vpop.f32.mrf.mxu1  ;;  %v619_v61 = vmul.f32 %v1174_v26, %v596_v59  ;;  %v684_v62 = vmul.f32 %v1185_v36, %v589_v55  ;;  %v692_v0 = vmul.f32 %v1185_v36, %v597_v58  ;;  %v691_v1 = vmul.f32 %v1185_v36, %v596_v59 }
  0xfb   : > { %703 = vadd.xlane.f32.xlu0 %v685_v41  ;;  %633 = vadd.xlane.f32.xlu1 %v614_v42  ;;  %978 = vst [vmem:[%s1169_s23 + $0x18] sm:$0xff] %v511_v44   ;;  %v1192_v48 = vpack.c.bf16 %v464_v45, %v461_v37  ;;  %v1194_v49 = vpack.c.bf16 %v496_v47, %v493_v38  ;;  %982 = vst [vmem:[%s1169_s23 + $0x38] sm:$0xff] %v1189_v46   ;;  %v595_v2 = vunpack.c.h.bf16 %v511_v44 }
  0xfc   : > { %v594_v3 = vunpack.c.l.bf16 %v511_v44  ;;  %v603_v6 = vunpack.c.h.bf16 %v1189_v46  ;;  %v602_v7 = vunpack.c.l.bf16 %v1189_v46 }
  0xfd   : > { %977 = vst [vmem:[%s1169_s23 + $0x10] sm:$0xff] %v1192_v48   ;;  %981 = vst [vmem:[%s1169_s23 + $0x30] sm:$0xff] %v1194_v49   ;;  %v618_v4 = vmul.f32 %v1174_v26, %v595_v2  ;;  %v690_v10 = vmul.f32 %v1185_v36, %v595_v2  ;;  %v593_v12 = vunpack.c.h.bf16 %v1192_v48  ;;  %v592_v13 = vunpack.c.l.bf16 %v1192_v48 }
  0xfe   : > { %v617_v5 = vmul.f32 %v1174_v26, %v594_v3  ;;  %v626_v8 = vmul.f32 %v1174_v26, %v603_v6  ;;  %v625_v9 = vmul.f32 %v1174_v26, %v602_v7  ;;  %v689_v11 = vmul.f32 %v1185_v36, %v594_v3 }
  0xff   : > { %719 = vadd.xlane.f32.xlu0 %v693_v50  ;;  %649 = vadd.xlane.f32.xlu1 %v622_v51  ;;  %v616_v14 = vmul.f32 %v1174_v26, %v593_v12  ;;  %v615_v15 = vmul.f32 %v1174_v26, %v592_v13  ;;  %v601_v16 = vunpack.c.h.bf16 %v1194_v49  ;;  %v600_v17 = vunpack.c.l.bf16 %v1194_v49 }
 0x100   : > { %v688_v20 = vmul.f32 %v1185_v36, %v593_v12  ;;  %v687_v21 = vmul.f32 %v1185_v36, %v592_v13  ;;  %v698_v24 = vmul.f32 %v1185_v36, %v603_v6  ;;  %v697_v25 = vmul.f32 %v1185_v36, %v602_v7 }
 0x101   : > { %v624_v18 = vmul.f32 %v1174_v26, %v601_v16  ;;  %v623_v19 = vmul.f32 %v1174_v26, %v600_v17  ;;  %v696_v22 = vmul.f32 %v1185_v36, %v601_v16  ;;  %v695_v23 = vmul.f32 %v1185_v36, %v600_v17 }
 0x103   : > { %705 = vadd.xlane.f32.xlu1 %v686_v53  ;;  %627 = vadd.xlane.f32.xlu0 %v611_v54 }
 0x107   : > { %721 = vadd.xlane.f32.xlu1 %v694_v56  ;;  %629 = vadd.xlane.f32.xlu0 %v612_v57 }
 0x10b   : > { %645 = vadd.xlane.f32.xlu1 %v620_v60  ;;  %643 = vadd.xlane.f32.xlu0 %v619_v61 }
 0x10f   : > { %701 = vadd.xlane.f32.xlu1 %v684_v62  ;;  %699 = vadd.xlane.f32.xlu0 %v683_v63 }
 0x113   : > { %717 = vadd.xlane.f32.xlu1 %v692_v0  ;;  %715 = vadd.xlane.f32.xlu0 %v691_v1 }
 0x117   : > { %641 = vadd.xlane.f32.xlu1 %v618_v4  ;;  %639 = vadd.xlane.f32.xlu0 %v617_v5 }
 0x11b   : > { %657 = vadd.xlane.f32.xlu1 %v626_v8  ;;  %655 = vadd.xlane.f32.xlu0 %v625_v9 }
 0x11f   : > { %713 = vadd.xlane.f32.xlu1 %v690_v10  ;;  %711 = vadd.xlane.f32.xlu0 %v689_v11 }
 0x123   : > { %637 = vadd.xlane.f32.xlu1 %v616_v14  ;;  %635 = vadd.xlane.f32.xlu0 %v615_v15 }
 0x127   : > { %653 = vadd.xlane.f32.xlu1 %v624_v18  ;;  %651 = vadd.xlane.f32.xlu0 %v623_v19 }
 0x12b   : > { %709 = vadd.xlane.f32.xlu1 %v688_v20  ;;  %707 = vadd.xlane.f32.xlu0 %v687_v21 }
 0x12f   : > { %725 = vadd.xlane.f32.xlu1 %v696_v22  ;;  %723 = vadd.xlane.f32.xlu0 %v695_v23 }
 0x133   : > { %729 = vadd.xlane.f32.xlu1 %v698_v24  ;;  %727 = vadd.xlane.f32.xlu0 %v697_v25 }
 0x180   : > { %v648_v26 = vpop.xlane.xlu0 %647  ;;  %v632_v27 = vpop.xlane.xlu1 %631 }
 0x181   : > { %670 = vst.msk [vmem:[%s1240_s8 + $0x50] sm:$0xff] %vm659_vm0, %v648_v26  ;;  %662 = vst.msk [vmem:[%s1240_s8 + $0x10] sm:$0xff] %vm659_vm0, %v632_v27 }
 0x184   : > { %v704_v28 = vpop.xlane.xlu0 %703  ;;  %v634_v29 = vpop.xlane.xlu1 %633 }
 0x185   : > { %733 = vst.msk [vmem:[%s1249_s25 + $0x10] sm:$0xff] %vm659_vm0, %v704_v28  ;;  %663 = vst.msk [vmem:[%s1240_s8 + $0x18] sm:$0xff] %vm659_vm0, %v634_v29 }
 0x188   : > { %v720_v30 = vpop.xlane.xlu0 %719  ;;  %v650_v31 = vpop.xlane.xlu1 %649 }
 0x189   : > { %741 = vst.msk [vmem:[%s1249_s25 + $0x50] sm:$0xff] %vm659_vm0, %v720_v30  ;;  %671 = vst.msk [vmem:[%s1240_s8 + $0x58] sm:$0xff] %vm659_vm0, %v650_v31 }
 0x18c   : > { %v706_v32 = vpop.xlane.xlu1 %705  ;;  %v628_v33 = vpop.xlane.xlu0 %627 }
 0x18d   : > { %734 = vst.msk [vmem:[%s1249_s25 + $0x18] sm:$0xff] %vm659_vm0, %v706_v32  ;;  %660 = vst.msk [vmem:[%s1240_s8] sm:$0xff] %vm659_vm0, %v628_v33 }
 0x190   : > { %v722_v34 = vpop.xlane.xlu1 %721  ;;  %v630_v35 = vpop.xlane.xlu0 %629 }
 0x191   : > { %742 = vst.msk [vmem:[%s1249_s25 + $0x58] sm:$0xff] %vm659_vm0, %v722_v34  ;;  %661 = vst.msk [vmem:[%s1240_s8 + $0x8] sm:$0xff] %vm659_vm0, %v630_v35 }
 0x194   : > { %v646_v36 = vpop.xlane.xlu1 %645  ;;  %v644_v37 = vpop.xlane.xlu0 %643 }
 0x195   : > { %669 = vst.msk [vmem:[%s1240_s8 + $0x48] sm:$0xff] %vm659_vm0, %v646_v36  ;;  %668 = vst.msk [vmem:[%s1240_s8 + $0x40] sm:$0xff] %vm659_vm0, %v644_v37 }
 0x198   : > { %v702_v38 = vpop.xlane.xlu1 %701  ;;  %v700_v39 = vpop.xlane.xlu0 %699 }
 0x199   : > { %732 = vst.msk [vmem:[%s1249_s25 + $0x8] sm:$0xff] %vm659_vm0, %v702_v38  ;;  %731 = vst.msk [vmem:[%s1249_s25] sm:$0xff] %vm659_vm0, %v700_v39 }
 0x19c   : > { %v718_v40 = vpop.xlane.xlu1 %717  ;;  %v716_v41 = vpop.xlane.xlu0 %715 }
 0x19d   : > { %740 = vst.msk [vmem:[%s1249_s25 + $0x48] sm:$0xff] %vm659_vm0, %v718_v40  ;;  %739 = vst.msk [vmem:[%s1249_s25 + $0x40] sm:$0xff] %vm659_vm0, %v716_v41 }
 0x1a0   : > { %v642_v42 = vpop.xlane.xlu1 %641  ;;  %v640_v43 = vpop.xlane.xlu0 %639 }
 0x1a1   : > { %667 = vst.msk [vmem:[%s1240_s8 + $0x38] sm:$0xff] %vm659_vm0, %v642_v42  ;;  %666 = vst.msk [vmem:[%s1240_s8 + $0x30] sm:$0xff] %vm659_vm0, %v640_v43 }
 0x1a4   : > { %v658_v44 = vpop.xlane.xlu1 %657  ;;  %v656_v45 = vpop.xlane.xlu0 %655 }
 0x1a5   : > { %675 = vst.msk [vmem:[%s1240_s8 + $0x78] sm:$0xff] %vm659_vm0, %v658_v44  ;;  %674 = vst.msk [vmem:[%s1240_s8 + $0x70] sm:$0xff] %vm659_vm0, %v656_v45 }
 0x1a8   : > { %v714_v46 = vpop.xlane.xlu1 %713  ;;  %v712_v47 = vpop.xlane.xlu0 %711 }
 0x1a9   : > { %738 = vst.msk [vmem:[%s1249_s25 + $0x38] sm:$0xff] %vm659_vm0, %v714_v46  ;;  %737 = vst.msk [vmem:[%s1249_s25 + $0x30] sm:$0xff] %vm659_vm0, %v712_v47 }
 0x1ac   : > { %v638_v48 = vpop.xlane.xlu1 %637  ;;  %v636_v49 = vpop.xlane.xlu0 %635 }
 0x1ad   : > { %665 = vst.msk [vmem:[%s1240_s8 + $0x28] sm:$0xff] %vm659_vm0, %v638_v48  ;;  %664 = vst.msk [vmem:[%s1240_s8 + $0x20] sm:$0xff] %vm659_vm0, %v636_v49 }
 0x1b0   : > { %v654_v50 = vpop.xlane.xlu1 %653  ;;  %v652_v51 = vpop.xlane.xlu0 %651 }
 0x1b1   : > { %673 = vst.msk [vmem:[%s1240_s8 + $0x68] sm:$0xff] %vm659_vm0, %v654_v50  ;;  %672 = vst.msk [vmem:[%s1240_s8 + $0x60] sm:$0xff] %vm659_vm0, %v652_v51 }
 0x1b4   : > { %v710_v52 = vpop.xlane.xlu1 %709  ;;  %v708_v53 = vpop.xlane.xlu0 %707 }
 0x1b5   : > { %736 = vst.msk [vmem:[%s1249_s25 + $0x28] sm:$0xff] %vm659_vm0, %v710_v52  ;;  %735 = vst.msk [vmem:[%s1249_s25 + $0x20] sm:$0xff] %vm659_vm0, %v708_v53 }
 0x1b8   : > { %v726_v54 = vpop.xlane.xlu1 %725  ;;  %v724_v55 = vpop.xlane.xlu0 %723 }
 0x1b9   : > { %744 = vst.msk [vmem:[%s1249_s25 + $0x68] sm:$0xff] %vm659_vm0, %v726_v54  ;;  %743 = vst.msk [vmem:[%s1249_s25 + $0x60] sm:$0xff] %vm659_vm0, %v724_v55 }
 0x1bc   : > { %v730_v56 = vpop.xlane.xlu1 %729  ;;  %v728_v57 = vpop.xlane.xlu0 %727 }
 0x1bd   : > { %746 = vst.msk [vmem:[%s1249_s25 + $0x78] sm:$0xff] %vm659_vm0, %v730_v56  ;;  %745 = vst.msk [vmem:[%s1249_s25 + $0x70] sm:$0xff] %vm659_vm0, %v728_v57 }
 0x1be PF: > { %s17_s21 = sadd.s32 1, %s1077_s21  }
 0x1bf   : > { %p14_p4 = scmp.ge.s32.totalorder %s17_s21, 4  }
 0x1c1   :  { %16 = sbr.rel (!%p14_p4) target bundleno = 1 (0x1), region = 90 }

// kernel: simple_gat_forward.4
= control target key start
LH: loop header
LB: loop body
LE: loop exit
PB: predicated region body
PF: predicated region fallthrough
CT: control target
= control target key end

     0   :  { %s2229_s21 = smov 0   ;;  %s2231_s22 = smov 0   ;;  %s2845_s0 = inlined_call_operand.vmem [shape: bf16[256,128], index: 0, kind: input, shape index: {}]   ;;  %s2846_s1 = inlined_call_operand.vmem [shape: bf16[2,128,128], index: 1, kind: input, shape index: {}]   ;;  %s2847_s2 = inlined_call_operand.vmem [shape: f32[2,1,128], index: 2, kind: input, shape index: {}]   ;;  %s2848_s3 = inlined_call_operand.vmem [shape: f32[2,1,128], index: 3, kind: input, shape index: {}]   ;;  %s2849_s4 = inlined_call_operand.vmem [shape: bf16[2,256,128], index: 4, kind: output, shape index: {0}]   ;;  %s2850_s5 = inlined_call_operand.vmem [shape: f32[2,256,1], index: 5, kind: output, shape index: {1}]   ;;  %s2851_s6 = inlined_call_operand.vmem [shape: f32[2,256,1], index: 6, kind: output, shape index: {2}]  }
   0x1   :  { %s2233_s23 = smov 0  }
   0x2 LB: > { %s2242_s24 = sadd.s32 4294967295, %s2192_s23   ;;  %s2244_s25 = sadd.s32 1, %s2192_s23   ;;  %s2192_s23 = sphi %s2233_s23, %s2855_s23   ;;  %s2188_s22 = sphi %s2231_s22, %s2854_s22   ;;  %s2184_s21 = sphi %s2229_s21, %s2853_s21  }
   0x3   : > { %s110_s26 = ssub.s32 %s2192_s23, %s2244_s25  ;;  %s113_s27 = sadd.s32 1, %s2188_s22 }
   0x4   : > { %p111_p0 = scmp.eq.s32.totalorder %s110_s26, 0  ;;  %p123_p1 = scmp.ne.s32.totalorder %s2188_s22, %s2184_s21 }
   0x5   : > { %p124_p2 = scmp.eq.s32.totalorder %s2242_s24, 1  ;;  %p1753_p3 = scmp.ge.s32.totalorder %s2192_s23, 1 }
   0x6   : > { %s2252_s28 = scalar_select %p111_p0, %s2188_s22, %s113_s27  }
   0x7   : > { %p2254_p4 = por %p124_p2, %p123_p1  ;;  %p218_p5 = scmp.lt.s32.totalorder %s2192_s23, 3 }
   0x9   : > { %p219_p6 = pnand %p1753_p3, %p218_p5 }
   0xa   : > { %s1757_s8 = sshll.u32 (!%p219_p6), %s2242_s24, 4  ;;  %s240_s7 = sand.u32 (!%p219_p6), 1, %s2184_s21  }
   0xb   : > { %222 = sbr.rel (%p219_p6) target bundleno = 551 (0x227), region = 36  ;;  %p256_p7 = scmp.lt.s32.totalorder (!%p219_p6), %s1757_s8, 31 }
   0xc   : > { %s1754_s9 = sshll.u32 (!%p219_p6), %s240_s7, 7  ;;  %s1755_s18 = sshll.u32 (!%p219_p6), %s240_s7, 8 }
   0xd   : > { %s2537_s19 = scalar_lea.vmem (!%p219_p6), [#allocation4], %s1755_s18  ;;  %s2541_s20 = scalar_lea.vmem (!%p219_p6), [#allocation3], %s1755_s18 }
  0x10   : > { %v2146_v0 = vld [vmem:[%s2846_s1 + $0x38] sm:$0xff]   ;;  %v2148_v2 = vld [vmem:[%s2846_s1 + $0x30] sm:$0xff]   ;;  %v2150_v4 = vld [vmem:[%s2846_s1 + $0x28] sm:$0xff]   ;;  %s2857_s8 = smov (!%p256_p7, %s1757_s8), 31  ;;  %vm641_vm0 = vcmask 7168   ;;  %s1928_s21 = sshll.u32 (%p2254_p4), %s2242_s24, 6 }
  0x11   : > { %v2147_v1 = vld [vmem:[%s2846_s1 + $0x78] sm:$0xff]   ;;  %2058 = vmatprep.subr.bf16.mxu0 %v2146_v0  ;;  %v2149_v3 = vld [vmem:[%s2846_s1 + $0x70] sm:$0xff]   ;;  %v2151_v5 = vld [vmem:[%s2846_s1 + $0x68] sm:$0xff]   ;;  %s1758_s27 = sshll.u32 %s2857_s8, 2  ;;  %s2335_s8 = scalar_lea.vmem [#allocation2], %s1754_s9 }
  0x12   : > { %2090 = vmatprep.subr.bf16.mxu1 %v2147_v1  ;;  %2059 = vmatpush3.bf16.msra.mxu0 %v2146_v0  ;;  %v2152_v6 = vld [vmem:[%s2846_s1 + $0x20] sm:$0xff]   ;;  %v2154_v8 = vld [vmem:[%s2846_s1 + $0x18] sm:$0xff]   ;;  %s2292_s13 = scalar_lea.vmem %s2845_s0, %s1758_s27  ;;  %v2156_v10 = vld [vmem:[%s2846_s1 + $0x10] sm:$0xff]   ;;  %s1151_s27 = scalar_lea.vmem (%p2254_p4), %s2849_s4, %s1928_s21 }
  0x13   : > { %2091 = vmatpush3.bf16.msra.mxu1 %v2147_v1  ;;  %2060 = vmatprep.subr.bf16.mxu0 %v2148_v2  ;;  %v2153_v7 = vld [vmem:[%s2846_s1 + $0x60] sm:$0xff]   ;;  %v2155_v9 = vld [vmem:[%s2846_s1 + $0x58] sm:$0xff]   ;;  %v2157_v12 = vld [vmem:[%s2846_s1 + $0x50] sm:$0xff]  }
  0x14   : > { %2092 = vmatprep.subr.bf16.mxu1 %v2149_v3  ;;  %v2162_v11 = vld [vmem:[%s2292_s13] sm:$0xff]   ;;  %v2158_v13 = vld [vmem:[%s2846_s1 + $0x8] sm:$0xff]   ;;  %v2164_v18 = vld [vmem:[%s2292_s13 + $0x10] sm:$0xff]  }
  0x15   : > { %2074 = vmatprep.mubr.bf16.mxu0 %v2162_v11  ;;  %2106 = vmatprep.mubr.bf16.mxu1 %v2162_v11  ;;  %v2159_v14 = vld [vmem:[%s2846_s1 + $0x48] sm:$0xff]   ;;  %v2160_v15 = vld [vmem:[%s2846_s1] sm:$0xff]   ;;  %v2165_v19 = vld [vmem:[%s2292_s13 + $0x18] sm:$0xff]  }
  0x16   : > { %2061 = vmatpush3.bf16.msra.mxu0 %v2148_v2  ;;  %v2161_v16 = vld [vmem:[%s2846_s1 + $0x40] sm:$0xff]   ;;  %v2163_v17 = vld [vmem:[%s2292_s13 + $0x8] sm:$0xff]   ;;  %v2168_v22 = vld [vmem:[%s2292_s13 + $0x30] sm:$0xff]  }
  0x17   : > { %2093 = vmatpush3.bf16.msra.mxu1 %v2149_v3  ;;  %2062 = vmatprep.subr.bf16.mxu0 %v2150_v4  ;;  %v2166_v20 = vld [vmem:[%s2292_s13 + $0x20] sm:$0xff]   ;;  %v2167_v21 = vld [vmem:[%s2292_s13 + $0x28] sm:$0xff]   ;;  %v2169_v23 = vld [vmem:[%s2292_s13 + $0x38] sm:$0xff]  }
  0x18   : > { %2094 = vmatprep.subr.bf16.mxu1 %v2151_v5  ;;  %v2328_v33 = vld [vmem:[%s2848_s3] ss:$0 sm:$0xff]  ;;  %v2354_v45 = vld [vmem:[%s2847_s2 + $0x1] ss:$0 sm:$0xff] }
  0x19   : > { %v2333_v34 = vld [vmem:[%s2847_s2] ss:$0 sm:$0xff]  ;;  %v2363_v53 = vld [vmem:[%s2848_s3 + $0x1] ss:$0 sm:$0xff] }
  0x1a   : > { %2063 = vmatpush3.bf16.msra.mxu0 %v2150_v4 }
  0x1b   : > { %2095 = vmatpush3.bf16.msra.mxu1 %v2151_v5  ;;  %2064 = vmatprep.subr.bf16.mxu0 %v2152_v6 }
  0x1c   : > { %2096 = vmatprep.subr.bf16.mxu1 %v2153_v7 }
  0x1e   : > { %2065 = vmatpush3.bf16.msra.mxu0 %v2152_v6 }
  0x1f   : > { %2097 = vmatpush3.bf16.msra.mxu1 %v2153_v7  ;;  %2066 = vmatprep.subr.bf16.mxu0 %v2154_v8 }
  0x20   : > { %2098 = vmatprep.subr.bf16.mxu1 %v2155_v9 }
  0x22   : > { %2067 = vmatpush3.bf16.msra.mxu0 %v2154_v8 }
  0x23   : > { %2099 = vmatpush3.bf16.msra.mxu1 %v2155_v9  ;;  %2068 = vmatprep.subr.bf16.mxu0 %v2156_v10 }
  0x24   : > { %2100 = vmatprep.subr.bf16.mxu1 %v2157_v12 }
  0x26   : > { %2069 = vmatpush3.bf16.msra.mxu0 %v2156_v10 }
  0x27   : > { %2101 = vmatpush3.bf16.msra.mxu1 %v2157_v12  ;;  %2070 = vmatprep.subr.bf16.mxu0 %v2158_v13 }
  0x28   : > { %2102 = vmatprep.subr.bf16.mxu1 %v2159_v14 }
  0x2a   : > { %2071 = vmatpush3.bf16.msra.mxu0 %v2158_v13 }
  0x2b   : > { %2103 = vmatpush3.bf16.msra.mxu1 %v2159_v14  ;;  %2072 = vmatprep.subr.bf16.mxu0 %v2160_v15 }
  0x2c   : > { %2104 = vmatprep.subr.bf16.mxu1 %v2161_v16 }
  0x2e   : > { %2073 = vmatpush3.bf16.msra.mxu0 %v2160_v15 }
  0x2f   : > { %2105 = vmatpush3.bf16.msra.mxu1 %v2161_v16 }
  0x31   : > { %2075 = vmatmul.mubr.bf16.vlgmr.msra.gmra.mxu0 %v2163_v17 }
  0x32   : > { %2107 = vmatmul.mubr.bf16.vlgmr.msra.gmra.mxu1 %v2163_v17  ;;  %2078 = vmatprep.mubr.bf16.mxu0 %v2164_v18 }
  0x33   : > { %2110 = vmatprep.mubr.bf16.mxu1 %v2164_v18 }
  0x39   : > { %2079 = vmatmul.mubr.bf16.gmra.mxu0 %v2165_v19 }
  0x3a   : > { %2111 = vmatmul.mubr.bf16.gmra.mxu1 %v2165_v19  ;;  %2082 = vmatprep.mubr.bf16.mxu0 %v2166_v20 }
  0x3b   : > { %2114 = vmatprep.mubr.bf16.mxu1 %v2166_v20 }
  0x41   : > { %2083 = vmatmul.mubr.bf16.gmra.mxu0 %v2167_v21 }
  0x42   : > { %2115 = vmatmul.mubr.bf16.gmra.mxu1 %v2167_v21  ;;  %2086 = vmatprep.mubr.bf16.mxu0 %v2168_v22 }
  0x43   : > { %2118 = vmatprep.mubr.bf16.mxu1 %v2168_v22 }
  0x49   : > { %2087 = vmatmul.mubr.bf16.gmra.mxu0 %v2169_v23 }
  0x4a   : > { %2119 = vmatmul.mubr.bf16.gmra.mxu1 %v2169_v23 }
  0xf1   : > { %v2076_v24 = vpop.f32.mrf.mxu0 }
  0xf2   : > { %v2108_v25 = vpop.f32.mrf.mxu1 }
  0xf3   : > { %v427_v26 = vpop.f32.mrf.mxu0 }
  0xf4   : > { %v828_v27 = vpop.f32.mrf.mxu1 }
  0xf5   : > { %v2077_v28 = vpop.f32.mrf.mxu0 }
  0xf6   : > { %v491_v29 = vpack.c.bf16 %v2077_v28, %v2076_v24  ;;  %v2109_v30 = vpop.f32.mrf.mxu1 }
  0xf7   : > { %v2323_v31 = vpack.c.bf16 %v2109_v30, %v2108_v25  ;;  %v430_v32 = vpop.f32.mrf.mxu0 }
  0xf8   : > { %2011 = vst [vmem:[%s2335_s8 + $0x8] sm:$0xff] %v491_v29   ;;  %v2338_v35 = vpack.c.bf16 %v430_v32, %v427_v26  ;;  %v831_v36 = vpop.f32.mrf.mxu1  ;;  %v572_v37 = vunpack.c.l.bf16 %v491_v29  ;;  %v573_v43 = vunpack.c.h.bf16 %v491_v29 }
  0xf9   : > { %2019 = vst [vmem:[%s2335_s8 + $0x48] sm:$0xff] %v2323_v31   ;;  %v2342_v38 = vpack.c.bf16 %v831_v36, %v828_v27  ;;  %v2080_v39 = vpop.f32.mrf.mxu0  ;;  %v974_v42 = vunpack.c.l.bf16 %v2323_v31  ;;  %v975_v62 = vunpack.c.h.bf16 %v2323_v31 }
  0xfa   : > { %1935 = vst [vmem:[%s2335_s8] sm:$0xff] %v2338_v35   ;;  %v667_v40 = vmul.f32 %v2328_v33, %v572_v37  ;;  %v595_v41 = vmul.f32 %v2333_v34, %v572_v37  ;;  %v2112_v44 = vpop.f32.mrf.mxu1  ;;  %v596_v50 = vmul.f32 %v2333_v34, %v573_v43  ;;  %v668_v61 = vmul.f32 %v2328_v33, %v573_v43 }
  0xfb   : > { %2018 = vst [vmem:[%s2335_s8 + $0x40] sm:$0xff] %v2342_v38   ;;  %v443_v46 = vpop.f32.mrf.mxu0  ;;  %v998_v49 = vmul.f32 %v2354_v45, %v974_v42  ;;  %v1071_v60 = vmul.f32 %v2363_v53, %v974_v42  ;;  %v570_v63 = vunpack.c.l.bf16 %v2338_v35  ;;  %v999_v4 = vmul.f32 %v2354_v45, %v975_v62 }
  0xfc   : > { %685 = vadd.xlane.f32.xlu0 %v667_v40  ;;  %613 = vadd.xlane.f32.xlu1 %v595_v41  ;;  %v844_v47 = vpop.f32.mrf.mxu1  ;;  %v571_v6 = vunpack.c.h.bf16 %v2338_v35  ;;  %v973_v13 = vunpack.c.h.bf16 %v2342_v38  ;;  %v972_v14 = vunpack.c.l.bf16 %v2342_v38  ;;  %v1072_v17 = vmul.f32 %v2363_v53, %v975_v62 }
  0xfd   : > { %v2081_v48 = vpop.f32.mrf.mxu0  ;;  %v593_v5 = vmul.f32 %v2333_v34, %v570_v63  ;;  %v665_v21 = vmul.f32 %v2328_v33, %v570_v63 }
  0xfe   : > { %v2358_v51 = vpack.c.bf16 %v2081_v48, %v2080_v39  ;;  %v2113_v52 = vpop.f32.mrf.mxu1  ;;  %v594_v18 = vmul.f32 %v2333_v34, %v571_v6  ;;  %v666_v24 = vmul.f32 %v2328_v33, %v571_v6  ;;  %v997_v25 = vmul.f32 %v2354_v45, %v973_v13 }
  0xff   : > { %v446_v54 = vpop.f32.mrf.mxu0  ;;  %v2365_v55 = vpack.c.bf16 %v2113_v52, %v2112_v44  ;;  %v996_v26 = vmul.f32 %v2354_v45, %v972_v14  ;;  %v1070_v29 = vmul.f32 %v2363_v53, %v973_v13  ;;  %v1069_v36 = vmul.f32 %v2363_v53, %v972_v14 }
 0x100   : > { %1016 = vadd.xlane.f32.xlu0 %v998_v49  ;;  %615 = vadd.xlane.f32.xlu1 %v596_v50  ;;  %2013 = vst [vmem:[%s2335_s8 + $0x18] sm:$0xff] %v2358_v51   ;;  %v2369_v56 = vpack.c.bf16 %v446_v54, %v443_v46  ;;  %v847_v57 = vpop.f32.mrf.mxu1  ;;  %v577_v41 = vunpack.c.h.bf16 %v2358_v51 }
 0x101   : > { %2021 = vst [vmem:[%s2335_s8 + $0x58] sm:$0xff] %v2365_v55   ;;  %v2373_v58 = vpack.c.bf16 %v847_v57, %v844_v47  ;;  %v2084_v59 = vpop.f32.mrf.mxu0  ;;  %v576_v47 = vunpack.c.l.bf16 %v2358_v51 }
 0x102   : > { %2012 = vst [vmem:[%s2335_s8 + $0x10] sm:$0xff] %v2369_v56   ;;  %v2116_v0 = vpop.f32.mrf.mxu1  ;;  %v600_v14 = vmul.f32 %v2333_v34, %v577_v41 }
 0x103   : > { %2020 = vst [vmem:[%s2335_s8 + $0x50] sm:$0xff] %v2373_v58   ;;  %v459_v1 = vpop.f32.mrf.mxu0 }
 0x104   : > { %1089 = vadd.xlane.f32.xlu0 %v1071_v60  ;;  %687 = vadd.xlane.f32.xlu1 %v668_v61  ;;  %v860_v2 = vpop.f32.mrf.mxu1 }
 0x105   : > { %v2085_v3 = vpop.f32.mrf.mxu0 }
 0x106   : > { %v2386_v7 = vpack.c.bf16 %v2085_v3, %v2084_v59  ;;  %v2117_v8 = vpop.f32.mrf.mxu1 }
 0x107   : > { %v462_v9 = vpop.f32.mrf.mxu0  ;;  %v2388_v10 = vpack.c.bf16 %v2117_v8, %v2116_v0 }
 0x108   : > { %1018 = vadd.xlane.f32.xlu1 %v999_v4  ;;  %609 = vadd.xlane.f32.xlu0 %v593_v5  ;;  %2015 = vst [vmem:[%s2335_s8 + $0x28] sm:$0xff] %v2386_v7   ;;  %v2392_v11 = vpack.c.bf16 %v462_v9, %v459_v1  ;;  %v863_v12 = vpop.f32.mrf.mxu1 }
 0x109   : > { %2023 = vst [vmem:[%s2335_s8 + $0x68] sm:$0xff] %v2388_v10   ;;  %v895_v15 = vpack.c.bf16 %v863_v12, %v860_v2  ;;  %v2088_v16 = vpop.f32.mrf.mxu0 }
 0x10a   : > { %2014 = vst [vmem:[%s2335_s8 + $0x20] sm:$0xff] %v2392_v11   ;;  %v2120_v19 = vpop.f32.mrf.mxu1 }
 0x10b   : > { %2022 = vst [vmem:[%s2335_s8 + $0x60] sm:$0xff] %v895_v15   ;;  %v475_v20 = vpop.f32.mrf.mxu0  ;;  %v981_v22 = vunpack.c.h.bf16 %v895_v15  ;;  %v980_v28 = vunpack.c.l.bf16 %v895_v15  ;;  %v599_v15 = vmul.f32 %v2333_v34, %v576_v47 }
 0x10c   : > { %1091 = vadd.xlane.f32.xlu1 %v1072_v17  ;;  %611 = vadd.xlane.f32.xlu0 %v594_v18  ;;  %v876_v23 = vpop.f32.mrf.mxu1  ;;  %v671_v17 = vmul.f32 %v2328_v33, %v576_v47  ;;  %v979_v18 = vunpack.c.h.bf16 %v2365_v55  ;;  %v982_v47 = vunpack.c.l.bf16 %v2388_v10 }
 0x10d   : > { %v2089_v27 = vpop.f32.mrf.mxu0  ;;  %v2409_v31 = vmul.f32 %v2354_v45, %v981_v22  ;;  %v2412_v35 = vmul.f32 %v2363_v53, %v981_v22  ;;  %v2416_v38 = vmul.f32 %v2354_v45, %v980_v28  ;;  %v2419_v40 = vmul.f32 %v2363_v53, %v980_v28 }
 0x10e   : > { %v497_v30 = vpack.c.bf16 %v2089_v27, %v2088_v16  ;;  %v2121_v32 = vpop.f32.mrf.mxu1  ;;  %v672_v16 = vmul.f32 %v2328_v33, %v577_v41  ;;  %v1076_v22 = vmul.f32 %v2363_v53, %v979_v18  ;;  %v580_v41 = vunpack.c.l.bf16 %v2386_v7 }
 0x10f   : > { %v478_v37 = vpop.f32.mrf.mxu0  ;;  %v898_v39 = vpack.c.bf16 %v2121_v32, %v2120_v19  ;;  %v978_v19 = vunpack.c.l.bf16 %v2365_v55 }
 0x110   : > { %683 = vadd.xlane.f32.xlu1 %v666_v24  ;;  %681 = vadd.xlane.f32.xlu0 %v665_v21  ;;  %2017 = vst [vmem:[%s2335_s8 + $0x38] sm:$0xff] %v497_v30   ;;  %v496_v42 = vpack.c.bf16 %v478_v37, %v475_v20  ;;  %v879_v43 = vpop.f32.mrf.mxu1  ;;  %v585_v44 = vunpack.c.h.bf16 %v497_v30  ;;  %v584_v46 = vunpack.c.l.bf16 %v497_v30  ;;  %v1003_v20 = vmul.f32 %v2354_v45, %v979_v18 }
 0x111   : > { %2025 = vst [vmem:[%s2335_s8 + $0x78] sm:$0xff] %v898_v39   ;;  %v897_v48 = vpack.c.bf16 %v879_v43, %v876_v23  ;;  %v987_v49 = vunpack.c.h.bf16 %v898_v39  ;;  %v986_v50 = vunpack.c.l.bf16 %v898_v39  ;;  %v1002_v21 = vmul.f32 %v2354_v45, %v978_v19 }
 0x112   : > { %2016 = vst [vmem:[%s2335_s8 + $0x30] sm:$0xff] %v496_v42   ;;  %v2427_v52 = vmul.f32 %v2333_v34, %v585_v44  ;;  %v2430_v54 = vmul.f32 %v2333_v34, %v584_v46  ;;  %v2433_v57 = vmul.f32 %v2328_v33, %v585_v44  ;;  %v2436_v59 = vmul.f32 %v2328_v33, %v584_v46 }
 0x113   : > { %2024 = vst [vmem:[%s2335_s8 + $0x70] sm:$0xff] %v897_v48   ;;  %v2440_v51 = vmul.f32 %v2354_v45, %v987_v49  ;;  %v2443_v60 = vmul.f32 %v2354_v45, %v986_v50  ;;  %v583_v61 = vunpack.c.h.bf16 %v496_v42  ;;  %v582_v62 = vunpack.c.l.bf16 %v496_v42 }
 0x114   : > { %1014 = vadd.xlane.f32.xlu1 %v997_v25  ;;  %1012 = vadd.xlane.f32.xlu0 %v996_v26  ;;  %v985_v63 = vunpack.c.h.bf16 %v897_v48  ;;  %v984_v0 = vunpack.c.l.bf16 %v897_v48  ;;  %v2446_v1 = vmul.f32 %v2363_v53, %v987_v49  ;;  %v2449_v2 = vmul.f32 %v2363_v53, %v986_v50 }
 0x115   : > { %v2452_v3 = vmul.f32 %v2333_v34, %v583_v61  ;;  %v2455_v4 = vmul.f32 %v2333_v34, %v582_v62  ;;  %v2458_v5 = vmul.f32 %v2328_v33, %v583_v61  ;;  %v2461_v6 = vmul.f32 %v2328_v33, %v582_v62 }
 0x116   : > { %v2464_v8 = vmul.f32 %v2354_v45, %v985_v63  ;;  %v2467_v9 = vmul.f32 %v2354_v45, %v984_v0  ;;  %v2470_v12 = vmul.f32 %v2363_v53, %v985_v63  ;;  %v2473_v13 = vmul.f32 %v2363_v53, %v984_v0 }
 0x117   : > { %v1075_v23 = vmul.f32 %v2363_v53, %v978_v19  ;;  %v575_v24 = vunpack.c.h.bf16 %v2369_v56  ;;  %v574_v25 = vunpack.c.l.bf16 %v2369_v56  ;;  %v976_v30 = vunpack.c.l.bf16 %v2373_v58 }
 0x118   : > { %1087 = vadd.xlane.f32.xlu1 %v1070_v29  ;;  %1085 = vadd.xlane.f32.xlu0 %v1069_v36  ;;  %v977_v29 = vunpack.c.h.bf16 %v2373_v58  ;;  %v581_v39 = vunpack.c.h.bf16 %v2386_v7  ;;  %v603_v42 = vmul.f32 %v2333_v34, %v580_v41  ;;  %v675_v44 = vmul.f32 %v2328_v33, %v580_v41 }
 0x119   : > { %v598_v55 = vmul.f32 %v2333_v34, %v575_v24  ;;  %v597_v26 = vmul.f32 %v2333_v34, %v574_v25  ;;  %v670_v27 = vmul.f32 %v2328_v33, %v575_v24  ;;  %v669_v28 = vmul.f32 %v2328_v33, %v574_v25 }
 0x11a   : > { %v1001_v56 = vmul.f32 %v2354_v45, %v977_v29  ;;  %v1000_v32 = vmul.f32 %v2354_v45, %v976_v30  ;;  %v1074_v36 = vmul.f32 %v2363_v53, %v977_v29  ;;  %v1073_v37 = vmul.f32 %v2363_v53, %v976_v30 }
 0x11b   : > { %v604_v58 = vmul.f32 %v2333_v34, %v581_v39  ;;  %v676_v43 = vmul.f32 %v2328_v33, %v581_v39  ;;  %v983_v46 = vunpack.c.h.bf16 %v2388_v10  ;;  %v1006_v48 = vmul.f32 %v2354_v45, %v982_v47 }
 0x11c   : > { %623 = vadd.xlane.f32.xlu1 %v600_v14  ;;  %621 = vadd.xlane.f32.xlu0 %v599_v15  ;;  %v1079_v50 = vmul.f32 %v2363_v53, %v982_v47  ;;  %v579_v61 = vunpack.c.h.bf16 %v2392_v11  ;;  %v578_v62 = vunpack.c.l.bf16 %v2392_v11 }
 0x11d   : > { %v1007_v7 = vmul.f32 %v2354_v45, %v983_v46  ;;  %v1080_v49 = vmul.f32 %v2363_v53, %v983_v46 }
 0x11e   : > { %v602_v10 = vmul.f32 %v2333_v34, %v579_v61  ;;  %v601_v63 = vmul.f32 %v2333_v34, %v578_v62  ;;  %v674_v45 = vmul.f32 %v2328_v33, %v579_v61  ;;  %v673_v0 = vmul.f32 %v2328_v33, %v578_v62 }
 0x120   : > { %695 = vadd.xlane.f32.xlu1 %v672_v16  ;;  %693 = vadd.xlane.f32.xlu0 %v671_v17 }
 0x124   : > { %1026 = vadd.xlane.f32.xlu1 %v1003_v20  ;;  %1024 = vadd.xlane.f32.xlu0 %v1002_v21 }
 0x128   : > { %1099 = vadd.xlane.f32.xlu1 %v1076_v22  ;;  %1097 = vadd.xlane.f32.xlu0 %v1075_v23 }
 0x12c   : > { %619 = vadd.xlane.f32.xlu1 %v598_v55  ;;  %617 = vadd.xlane.f32.xlu0 %v597_v26 }
 0x130   : > { %691 = vadd.xlane.f32.xlu1 %v670_v27  ;;  %689 = vadd.xlane.f32.xlu0 %v669_v28 }
 0x134   : > { %1022 = vadd.xlane.f32.xlu1 %v1001_v56  ;;  %1020 = vadd.xlane.f32.xlu0 %v1000_v32 }
 0x138   : > { %1095 = vadd.xlane.f32.xlu1 %v1074_v36  ;;  %1093 = vadd.xlane.f32.xlu0 %v1073_v37 }
 0x13c   : > { %631 = vadd.xlane.f32.xlu1 %v604_v58  ;;  %629 = vadd.xlane.f32.xlu0 %v603_v42 }
 0x140   : > { %703 = vadd.xlane.f32.xlu1 %v676_v43  ;;  %701 = vadd.xlane.f32.xlu0 %v675_v44 }
 0x144   : > { %1034 = vadd.xlane.f32.xlu1 %v1007_v7  ;;  %1032 = vadd.xlane.f32.xlu0 %v1006_v48 }
 0x148   : > { %1107 = vadd.xlane.f32.xlu1 %v1080_v49  ;;  %1105 = vadd.xlane.f32.xlu0 %v1079_v50 }
 0x14c   : > { %627 = vadd.xlane.f32.xlu1 %v602_v10  ;;  %625 = vadd.xlane.f32.xlu0 %v601_v63 }
 0x150   : > { %699 = vadd.xlane.f32.xlu1 %v674_v45  ;;  %697 = vadd.xlane.f32.xlu0 %v673_v0 }
 0x154   : > { %1030 = vadd.xlane.f32.xlu1 %v2409_v31  ;;  %1028 = vadd.xlane.f32.xlu0 %v2416_v38 }
 0x158   : > { %1103 = vadd.xlane.f32.xlu1 %v2412_v35  ;;  %1101 = vadd.xlane.f32.xlu0 %v2419_v40 }
 0x15c   : > { %639 = vadd.xlane.f32.xlu1 %v2427_v52  ;;  %637 = vadd.xlane.f32.xlu0 %v2430_v54 }
 0x160   : > { %711 = vadd.xlane.f32.xlu1 %v2433_v57  ;;  %709 = vadd.xlane.f32.xlu0 %v2436_v59 }
 0x164   : > { %1042 = vadd.xlane.f32.xlu1 %v2440_v51  ;;  %1040 = vadd.xlane.f32.xlu0 %v2443_v60 }
 0x168   : > { %635 = vadd.xlane.f32.xlu1 %v2452_v3  ;;  %633 = vadd.xlane.f32.xlu0 %v2455_v4 }
 0x16c   : > { %707 = vadd.xlane.f32.xlu1 %v2458_v5  ;;  %705 = vadd.xlane.f32.xlu0 %v2461_v6 }
 0x170   : > { %1038 = vadd.xlane.f32.xlu1 %v2464_v8  ;;  %1036 = vadd.xlane.f32.xlu0 %v2467_v9 }
 0x174   : > { %1111 = vadd.xlane.f32.xlu1 %v2470_v12  ;;  %1109 = vadd.xlane.f32.xlu0 %v2473_v13 }
 0x178   : > { %1115 = vadd.xlane.f32.xlu1 %v2446_v1  ;;  %1113 = vadd.xlane.f32.xlu0 %v2449_v2 }
 0x185   : > { %v686_v33 = vpop.xlane.xlu0 %685  ;;  %v614_v34 = vpop.xlane.xlu1 %613 }
 0x186   : > { %715 = vst.msk [vmem:[%s2537_s19 + $0x10] sm:$0xff] %vm641_vm0, %v686_v33  ;;  %644 = vst.msk [vmem:[%s2541_s20 + $0x10] sm:$0xff] %vm641_vm0, %v614_v34  ;;  %v1168_v33 = vld [vmem:[%s2335_s8] sm:$0xff] (%p2254_p4)   ;;  %v1172_v34 = vld [vmem:[%s2335_s8 + $0x8] sm:$0xff] (%p2254_p4)  }
 0x187   : > { %1169 = vst [vmem:[%s1151_s27] sm:$0xff] (%p2254_p4), %v1168_v33   ;;  %1173 = vst [vmem:[%s1151_s27 + $0x8] sm:$0xff] (%p2254_p4), %v1172_v34  }
 0x189   : > { %v1017_v53 = vpop.xlane.xlu0 %1016  ;;  %v616_v11 = vpop.xlane.xlu1 %615 }
 0x18a   : > { %1853 = vst.msk [vmem:[%s2541_s20 + $0x90] sm:$0xff] %vm641_vm0, %v1017_v53  ;;  %645 = vst.msk [vmem:[%s2541_s20 + $0x18] sm:$0xff] %vm641_vm0, %v616_v11  ;;  %v1176_v53 = vld [vmem:[%s2335_s8 + $0x10] sm:$0xff] (%p2254_p4)   ;;  %v1180_v11 = vld [vmem:[%s2335_s8 + $0x18] sm:$0xff] (%p2254_p4)  }
 0x18b   : > { %1177 = vst [vmem:[%s1151_s27 + $0x10] sm:$0xff] (%p2254_p4), %v1176_v53   ;;  %1181 = vst [vmem:[%s1151_s27 + $0x18] sm:$0xff] (%p2254_p4), %v1180_v11  }
 0x18d   : > { %v1090_v31 = vpop.xlane.xlu0 %1089  ;;  %v688_v35 = vpop.xlane.xlu1 %687 }
 0x18e   : > { %1871 = vst.msk [vmem:[%s2537_s19 + $0x90] sm:$0xff] %vm641_vm0, %v1090_v31  ;;  %716 = vst.msk [vmem:[%s2537_s19 + $0x18] sm:$0xff] %vm641_vm0, %v688_v35  ;;  %v1184_v31 = vld [vmem:[%s2335_s8 + $0x20] sm:$0xff] (%p2254_p4)   ;;  %v1188_v35 = vld [vmem:[%s2335_s8 + $0x28] sm:$0xff] (%p2254_p4)  }
 0x18f   : > { %1185 = vst [vmem:[%s1151_s27 + $0x20] sm:$0xff] (%p2254_p4), %v1184_v31   ;;  %1189 = vst [vmem:[%s1151_s27 + $0x28] sm:$0xff] (%p2254_p4), %v1188_v35  }
 0x191   : > { %v1019_v38 = vpop.xlane.xlu1 %1018  ;;  %v610_v40 = vpop.xlane.xlu0 %609 }
 0x192   : > { %1854 = vst.msk [vmem:[%s2541_s20 + $0x98] sm:$0xff] %vm641_vm0, %v1019_v38  ;;  %642 = vst.msk [vmem:[%s2541_s20] sm:$0xff] %vm641_vm0, %v610_v40  ;;  %v1192_v38 = vld [vmem:[%s2335_s8 + $0x30] sm:$0xff] (%p2254_p4)   ;;  %v1196_v40 = vld [vmem:[%s2335_s8 + $0x38] sm:$0xff] (%p2254_p4)  }
 0x193   : > { %1193 = vst [vmem:[%s1151_s27 + $0x30] sm:$0xff] (%p2254_p4), %v1192_v38   ;;  %1197 = vst [vmem:[%s1151_s27 + $0x38] sm:$0xff] (%p2254_p4), %v1196_v40  }
 0x195   : > { %v1092_v52 = vpop.xlane.xlu1 %1091  ;;  %v612_v54 = vpop.xlane.xlu0 %611 }
 0x196   : > { %1872 = vst.msk [vmem:[%s2537_s19 + $0x98] sm:$0xff] %vm641_vm0, %v1092_v52  ;;  %643 = vst.msk [vmem:[%s2541_s20 + $0x8] sm:$0xff] %vm641_vm0, %v612_v54  ;;  %v1200_v52 = vld [vmem:[%s2335_s8 + $0x40] sm:$0xff] (%p2254_p4)   ;;  %v1204_v54 = vld [vmem:[%s2335_s8 + $0x48] sm:$0xff] (%p2254_p4)  }
 0x197   : > { %1201 = vst [vmem:[%s1151_s27 + $0x80] sm:$0xff] (%p2254_p4), %v1200_v52   ;;  %1205 = vst [vmem:[%s1151_s27 + $0x88] sm:$0xff] (%p2254_p4), %v1204_v54  }
 0x199   : > { %v684_v57 = vpop.xlane.xlu1 %683  ;;  %v682_v59 = vpop.xlane.xlu0 %681 }
 0x19a   : > { %714 = vst.msk [vmem:[%s2537_s19 + $0x8] sm:$0xff] %vm641_vm0, %v684_v57  ;;  %713 = vst.msk [vmem:[%s2537_s19] sm:$0xff] %vm641_vm0, %v682_v59  ;;  %v1208_v57 = vld [vmem:[%s2335_s8 + $0x50] sm:$0xff] (%p2254_p4)   ;;  %v1212_v59 = vld [vmem:[%s2335_s8 + $0x58] sm:$0xff] (%p2254_p4)  }
 0x19b   : > { %1209 = vst [vmem:[%s1151_s27 + $0x90] sm:$0xff] (%p2254_p4), %v1208_v57   ;;  %1213 = vst [vmem:[%s1151_s27 + $0x98] sm:$0xff] (%p2254_p4), %v1212_v59  }
 0x19d   : > { %v1015_v51 = vpop.xlane.xlu1 %1014  ;;  %v1013_v60 = vpop.xlane.xlu0 %1012 }
 0x19e   : > { %1852 = vst.msk [vmem:[%s2541_s20 + $0x88] sm:$0xff] %vm641_vm0, %v1015_v51  ;;  %1851 = vst.msk [vmem:[%s2541_s20 + $0x80] sm:$0xff] %vm641_vm0, %v1013_v60  ;;  %v1216_v51 = vld [vmem:[%s2335_s8 + $0x60] sm:$0xff] (%p2254_p4)   ;;  %v1220_v60 = vld [vmem:[%s2335_s8 + $0x68] sm:$0xff] (%p2254_p4)  }
 0x19f   : > { %1217 = vst [vmem:[%s1151_s27 + $0xa0] sm:$0xff] (%p2254_p4), %v1216_v51   ;;  %1221 = vst [vmem:[%s1151_s27 + $0xa8] sm:$0xff] (%p2254_p4), %v1220_v60  }
 0x1a1   : > { %v1088_v1 = vpop.xlane.xlu1 %1087  ;;  %v1086_v2 = vpop.xlane.xlu0 %1085 }
 0x1a2   : > { %1870 = vst.msk [vmem:[%s2537_s19 + $0x88] sm:$0xff] %vm641_vm0, %v1088_v1  ;;  %1869 = vst.msk [vmem:[%s2537_s19 + $0x80] sm:$0xff] %vm641_vm0, %v1086_v2  ;;  %v1224_v1 = vld [vmem:[%s2335_s8 + $0x70] sm:$0xff] (%p2254_p4)   ;;  %v1228_v2 = vld [vmem:[%s2335_s8 + $0x78] sm:$0xff] (%p2254_p4)  }
 0x1a3   : > { %1225 = vst [vmem:[%s1151_s27 + $0xb0] sm:$0xff] (%p2254_p4), %v1224_v1   ;;  %1229 = vst [vmem:[%s1151_s27 + $0xb8] sm:$0xff] (%p2254_p4), %v1228_v2  }
 0x1a5   : > { %v624_v3 = vpop.xlane.xlu1 %623  ;;  %v622_v4 = vpop.xlane.xlu0 %621 }
 0x1a6   : > { %649 = vst.msk [vmem:[%s2541_s20 + $0x38] sm:$0xff] %vm641_vm0, %v624_v3  ;;  %648 = vst.msk [vmem:[%s2541_s20 + $0x30] sm:$0xff] %vm641_vm0, %v622_v4 }
 0x1a9   : > { %v696_v5 = vpop.xlane.xlu1 %695  ;;  %v694_v6 = vpop.xlane.xlu0 %693 }
 0x1aa   : > { %720 = vst.msk [vmem:[%s2537_s19 + $0x38] sm:$0xff] %vm641_vm0, %v696_v5  ;;  %719 = vst.msk [vmem:[%s2537_s19 + $0x30] sm:$0xff] %vm641_vm0, %v694_v6 }
 0x1ad   : > { %v1027_v8 = vpop.xlane.xlu1 %1026  ;;  %v1025_v9 = vpop.xlane.xlu0 %1024 }
 0x1ae   : > { %1858 = vst.msk [vmem:[%s2541_s20 + $0xb8] sm:$0xff] %vm641_vm0, %v1027_v8  ;;  %1857 = vst.msk [vmem:[%s2541_s20 + $0xb0] sm:$0xff] %vm641_vm0, %v1025_v9 }
 0x1b1   : > { %v1100_v12 = vpop.xlane.xlu1 %1099  ;;  %v1098_v13 = vpop.xlane.xlu0 %1097 }
 0x1b2   : > { %1876 = vst.msk [vmem:[%s2537_s19 + $0xb8] sm:$0xff] %vm641_vm0, %v1100_v12  ;;  %1875 = vst.msk [vmem:[%s2537_s19 + $0xb0] sm:$0xff] %vm641_vm0, %v1098_v13 }
 0x1b5   : > { %v620_v14 = vpop.xlane.xlu1 %619  ;;  %v618_v15 = vpop.xlane.xlu0 %617 }
 0x1b6   : > { %647 = vst.msk [vmem:[%s2541_s20 + $0x28] sm:$0xff] %vm641_vm0, %v620_v14  ;;  %646 = vst.msk [vmem:[%s2541_s20 + $0x20] sm:$0xff] %vm641_vm0, %v618_v15 }
 0x1b9   : > { %v692_v16 = vpop.xlane.xlu1 %691  ;;  %v690_v17 = vpop.xlane.xlu0 %689 }
 0x1ba   : > { %718 = vst.msk [vmem:[%s2537_s19 + $0x28] sm:$0xff] %vm641_vm0, %v692_v16  ;;  %717 = vst.msk [vmem:[%s2537_s19 + $0x20] sm:$0xff] %vm641_vm0, %v690_v17 }
 0x1bd   : > { %v1023_v18 = vpop.xlane.xlu1 %1022  ;;  %v1021_v19 = vpop.xlane.xlu0 %1020 }
 0x1be   : > { %1856 = vst.msk [vmem:[%s2541_s20 + $0xa8] sm:$0xff] %vm641_vm0, %v1023_v18  ;;  %1855 = vst.msk [vmem:[%s2541_s20 + $0xa0] sm:$0xff] %vm641_vm0, %v1021_v19 }
 0x1c1   : > { %v1096_v20 = vpop.xlane.xlu1 %1095  ;;  %v1094_v21 = vpop.xlane.xlu0 %1093 }
 0x1c2   : > { %1874 = vst.msk [vmem:[%s2537_s19 + $0xa8] sm:$0xff] %vm641_vm0, %v1096_v20  ;;  %1873 = vst.msk [vmem:[%s2537_s19 + $0xa0] sm:$0xff] %vm641_vm0, %v1094_v21 }
 0x1c5   : > { %v632_v22 = vpop.xlane.xlu1 %631  ;;  %v630_v23 = vpop.xlane.xlu0 %629 }
 0x1c6   : > { %653 = vst.msk [vmem:[%s2541_s20 + $0x58] sm:$0xff] %vm641_vm0, %v632_v22  ;;  %652 = vst.msk [vmem:[%s2541_s20 + $0x50] sm:$0xff] %vm641_vm0, %v630_v23 }
 0x1c9   : > { %v704_v24 = vpop.xlane.xlu1 %703  ;;  %v702_v25 = vpop.xlane.xlu0 %701 }
 0x1ca   : > { %724 = vst.msk [vmem:[%s2537_s19 + $0x58] sm:$0xff] %vm641_vm0, %v704_v24  ;;  %723 = vst.msk [vmem:[%s2537_s19 + $0x50] sm:$0xff] %vm641_vm0, %v702_v25 }
 0x1cd   : > { %v1035_v55 = vpop.xlane.xlu1 %1034  ;;  %v1033_v26 = vpop.xlane.xlu0 %1032 }
 0x1ce   : > { %1862 = vst.msk [vmem:[%s2541_s20 + $0xd8] sm:$0xff] %vm641_vm0, %v1035_v55  ;;  %1861 = vst.msk [vmem:[%s2541_s20 + $0xd0] sm:$0xff] %vm641_vm0, %v1033_v26 }
 0x1d1   : > { %v1108_v27 = vpop.xlane.xlu1 %1107  ;;  %v1106_v28 = vpop.xlane.xlu0 %1105 }
 0x1d2   : > { %1880 = vst.msk [vmem:[%s2537_s19 + $0xd8] sm:$0xff] %vm641_vm0, %v1108_v27  ;;  %1879 = vst.msk [vmem:[%s2537_s19 + $0xd0] sm:$0xff] %vm641_vm0, %v1106_v28 }
 0x1d5   : > { %v628_v29 = vpop.xlane.xlu1 %627  ;;  %v626_v30 = vpop.xlane.xlu0 %625 }
 0x1d6   : > { %651 = vst.msk [vmem:[%s2541_s20 + $0x48] sm:$0xff] %vm641_vm0, %v628_v29  ;;  %650 = vst.msk [vmem:[%s2541_s20 + $0x40] sm:$0xff] %vm641_vm0, %v626_v30 }
 0x1d9   : > { %v700_v56 = vpop.xlane.xlu1 %699  ;;  %v698_v32 = vpop.xlane.xlu0 %697 }
 0x1da   : > { %722 = vst.msk [vmem:[%s2537_s19 + $0x48] sm:$0xff] %vm641_vm0, %v700_v56  ;;  %721 = vst.msk [vmem:[%s2537_s19 + $0x40] sm:$0xff] %vm641_vm0, %v698_v32 }
 0x1dd   : > { %v1031_v36 = vpop.xlane.xlu1 %1030  ;;  %v1029_v37 = vpop.xlane.xlu0 %1028 }
 0x1de   : > { %1860 = vst.msk [vmem:[%s2541_s20 + $0xc8] sm:$0xff] %vm641_vm0, %v1031_v36  ;;  %1859 = vst.msk [vmem:[%s2541_s20 + $0xc0] sm:$0xff] %vm641_vm0, %v1029_v37 }
 0x1e1   : > { %v1104_v39 = vpop.xlane.xlu1 %1103  ;;  %v1102_v41 = vpop.xlane.xlu0 %1101 }
 0x1e2   : > { %1878 = vst.msk [vmem:[%s2537_s19 + $0xc8] sm:$0xff] %vm641_vm0, %v1104_v39  ;;  %1877 = vst.msk [vmem:[%s2537_s19 + $0xc0] sm:$0xff] %vm641_vm0, %v1102_v41 }
 0x1e5   : > { %v640_v58 = vpop.xlane.xlu1 %639  ;;  %v638_v42 = vpop.xlane.xlu0 %637 }
 0x1e6   : > { %657 = vst.msk [vmem:[%s2541_s20 + $0x78] sm:$0xff] %vm641_vm0, %v640_v58  ;;  %656 = vst.msk [vmem:[%s2541_s20 + $0x70] sm:$0xff] %vm641_vm0, %v638_v42 }
 0x1e9   : > { %v712_v43 = vpop.xlane.xlu1 %711  ;;  %v710_v44 = vpop.xlane.xlu0 %709 }
 0x1ea   : > { %728 = vst.msk [vmem:[%s2537_s19 + $0x78] sm:$0xff] %vm641_vm0, %v712_v43  ;;  %727 = vst.msk [vmem:[%s2537_s19 + $0x70] sm:$0xff] %vm641_vm0, %v710_v44 }
 0x1ed   : > { %v1043_v46 = vpop.xlane.xlu1 %1042  ;;  %v1041_v47 = vpop.xlane.xlu0 %1040 }
 0x1ee   : > { %1866 = vst.msk [vmem:[%s2541_s20 + $0xf8] sm:$0xff] %vm641_vm0, %v1043_v46  ;;  %1865 = vst.msk [vmem:[%s2541_s20 + $0xf0] sm:$0xff] %vm641_vm0, %v1041_v47 }
 0x1f1   : > { %v636_v7 = vpop.xlane.xlu1 %635  ;;  %v634_v48 = vpop.xlane.xlu0 %633 }
 0x1f2   : > { %655 = vst.msk [vmem:[%s2541_s20 + $0x68] sm:$0xff] %vm641_vm0, %v636_v7  ;;  %654 = vst.msk [vmem:[%s2541_s20 + $0x60] sm:$0xff] %vm641_vm0, %v634_v48 }
 0x1f5   : > { %v708_v49 = vpop.xlane.xlu1 %707  ;;  %v706_v50 = vpop.xlane.xlu0 %705 }
 0x1f6   : > { %726 = vst.msk [vmem:[%s2537_s19 + $0x68] sm:$0xff] %vm641_vm0, %v708_v49  ;;  %725 = vst.msk [vmem:[%s2537_s19 + $0x60] sm:$0xff] %vm641_vm0, %v706_v50 }
 0x1f9   : > { %v1039_v61 = vpop.xlane.xlu1 %1038  ;;  %v1037_v62 = vpop.xlane.xlu0 %1036 }
 0x1fa   : > { %1864 = vst.msk [vmem:[%s2541_s20 + $0xe8] sm:$0xff] %vm641_vm0, %v1039_v61  ;;  %1863 = vst.msk [vmem:[%s2541_s20 + $0xe0] sm:$0xff] %vm641_vm0, %v1037_v62 }
 0x1fd   : > { %v1112_v10 = vpop.xlane.xlu1 %1111  ;;  %v1110_v63 = vpop.xlane.xlu0 %1109 }
 0x1fe   : > { %1882 = vst.msk [vmem:[%s2537_s19 + $0xe8] sm:$0xff] %vm641_vm0, %v1112_v10  ;;  %1881 = vst.msk [vmem:[%s2537_s19 + $0xe0] sm:$0xff] %vm641_vm0, %v1110_v63  ;;  %1148 = sbr.rel (!%p2254_p4) target bundleno = 515 (0x203), region = 40 }
 0x201   : > { %v1116_v45 = vpop.xlane.xlu1 %1115  ;;  %v1114_v0 = vpop.xlane.xlu0 %1113 }
 0x202   : > { %1884 = vst.msk [vmem:[%s2537_s19 + $0xf8] sm:$0xff] %vm641_vm0, %v1116_v45  ;;  %1883 = vst.msk [vmem:[%s2537_s19 + $0xf0] sm:$0xff] %vm641_vm0, %v1114_v0 }
 0x203 PF: > { %1319 = sbr.rel (!%p2254_p4) target bundleno = 533 (0x215), region = 81  ;;  %s1929_s30 = sshll.u32 (%p2254_p4), %s2242_s24, 7  ;;  %v1413_v3 = vld [vmem:[%s2541_s20] sm:$0xff] (%p2254_p4)  ;;  %v1415_v4 = vld [vmem:[%s2541_s20 + $0x8] sm:$0xff] (%p2254_p4)  ;;  %v1417_v5 = vld [vmem:[%s2541_s20 + $0x10] sm:$0xff] (%p2254_p4) }
 0x204   : > { %s2700_s10 = scalar_lea.vmem (%p2254_p4), %s2850_s5, %s1929_s30  ;;  %v1419_v6 = vld [vmem:[%s2541_s20 + $0x18] sm:$0xff] (%p2254_p4)  ;;  %v1421_v8 = vld [vmem:[%s2541_s20 + $0x20] sm:$0xff] (%p2254_p4)  ;;  %v1423_v9 = vld [vmem:[%s2541_s20 + $0x28] sm:$0xff] (%p2254_p4) }
 0x205   : > { %1414 = vst [vmem:[%s2700_s10] sm:$0xff] (%p2254_p4), %v1413_v3  ;;  %1416 = vst [vmem:[%s2700_s10 + $0x8] sm:$0xff] (%p2254_p4), %v1415_v4  ;;  %v1425_v12 = vld [vmem:[%s2541_s20 + $0x30] sm:$0xff] (%p2254_p4)  ;;  %v1427_v13 = vld [vmem:[%s2541_s20 + $0x38] sm:$0xff] (%p2254_p4) }
 0x206   : > { %1418 = vst [vmem:[%s2700_s10 + $0x10] sm:$0xff] (%p2254_p4), %v1417_v5  ;;  %1420 = vst [vmem:[%s2700_s10 + $0x18] sm:$0xff] (%p2254_p4), %v1419_v6  ;;  %v1429_v14 = vld [vmem:[%s2541_s20 + $0x40] sm:$0xff] (%p2254_p4)  ;;  %v1431_v15 = vld [vmem:[%s2541_s20 + $0x48] sm:$0xff] (%p2254_p4) }
 0x207   : > { %1422 = vst [vmem:[%s2700_s10 + $0x20] sm:$0xff] (%p2254_p4), %v1421_v8  ;;  %1424 = vst [vmem:[%s2700_s10 + $0x28] sm:$0xff] (%p2254_p4), %v1423_v9  ;;  %v1433_v16 = vld [vmem:[%s2541_s20 + $0x50] sm:$0xff] (%p2254_p4)  ;;  %v1435_v17 = vld [vmem:[%s2541_s20 + $0x58] sm:$0xff] (%p2254_p4) }
 0x208   : > { %1426 = vst [vmem:[%s2700_s10 + $0x30] sm:$0xff] %v1425_v12  ;;  %1428 = vst [vmem:[%s2700_s10 + $0x38] sm:$0xff] %v1427_v13  ;;  %v1437_v18 = vld [vmem:[%s2541_s20 + $0x60] sm:$0xff]  ;;  %v1439_v19 = vld [vmem:[%s2541_s20 + $0x68] sm:$0xff] }
 0x209   : > { %1430 = vst [vmem:[%s2700_s10 + $0x40] sm:$0xff] %v1429_v14  ;;  %1432 = vst [vmem:[%s2700_s10 + $0x48] sm:$0xff] %v1431_v15  ;;  %v1441_v20 = vld [vmem:[%s2541_s20 + $0x70] sm:$0xff]  ;;  %v1443_v21 = vld [vmem:[%s2541_s20 + $0x78] sm:$0xff] }
 0x20a   : > { %1434 = vst [vmem:[%s2700_s10 + $0x50] sm:$0xff] %v1433_v16  ;;  %1436 = vst [vmem:[%s2700_s10 + $0x58] sm:$0xff] %v1435_v17  ;;  %v1445_v22 = vld [vmem:[%s2541_s20 + $0x80] sm:$0xff]  ;;  %v1447_v23 = vld [vmem:[%s2541_s20 + $0x88] sm:$0xff] }
 0x20b   : > { %1438 = vst [vmem:[%s2700_s10 + $0x60] sm:$0xff] %v1437_v18  ;;  %1440 = vst [vmem:[%s2700_s10 + $0x68] sm:$0xff] %v1439_v19  ;;  %v1449_v24 = vld [vmem:[%s2541_s20 + $0x90] sm:$0xff]  ;;  %v1451_v25 = vld [vmem:[%s2541_s20 + $0x98] sm:$0xff] }
 0x20c   : > { %1442 = vst [vmem:[%s2700_s10 + $0x70] sm:$0xff] %v1441_v20  ;;  %1444 = vst [vmem:[%s2700_s10 + $0x78] sm:$0xff] %v1443_v21  ;;  %v1453_v55 = vld [vmem:[%s2541_s20 + $0xa0] sm:$0xff]  ;;  %v1455_v26 = vld [vmem:[%s2541_s20 + $0xa8] sm:$0xff] }
 0x20d   : > { %1446 = vst [vmem:[%s2700_s10 + $0x100] sm:$0xff] %v1445_v22  ;;  %1448 = vst [vmem:[%s2700_s10 + $0x108] sm:$0xff] %v1447_v23  ;;  %v1457_v27 = vld [vmem:[%s2541_s20 + $0xb0] sm:$0xff]  ;;  %v1459_v28 = vld [vmem:[%s2541_s20 + $0xb8] sm:$0xff] }
 0x20e   : > { %1450 = vst [vmem:[%s2700_s10 + $0x110] sm:$0xff] %v1449_v24  ;;  %1452 = vst [vmem:[%s2700_s10 + $0x118] sm:$0xff] %v1451_v25  ;;  %v1461_v29 = vld [vmem:[%s2541_s20 + $0xc0] sm:$0xff]  ;;  %v1463_v30 = vld [vmem:[%s2541_s20 + $0xc8] sm:$0xff] }
 0x20f   : > { %1454 = vst [vmem:[%s2700_s10 + $0x120] sm:$0xff] %v1453_v55  ;;  %1456 = vst [vmem:[%s2700_s10 + $0x128] sm:$0xff] %v1455_v26  ;;  %v1465_v56 = vld [vmem:[%s2541_s20 + $0xd0] sm:$0xff]  ;;  %v1467_v32 = vld [vmem:[%s2541_s20 + $0xd8] sm:$0xff] }
 0x210   : > { %1458 = vst [vmem:[%s2700_s10 + $0x130] sm:$0xff] %v1457_v27  ;;  %1460 = vst [vmem:[%s2700_s10 + $0x138] sm:$0xff] %v1459_v28  ;;  %v1469_v36 = vld [vmem:[%s2541_s20 + $0xe0] sm:$0xff]  ;;  %v1471_v37 = vld [vmem:[%s2541_s20 + $0xe8] sm:$0xff] }
 0x211   : > { %1462 = vst [vmem:[%s2700_s10 + $0x140] sm:$0xff] %v1461_v29  ;;  %1464 = vst [vmem:[%s2700_s10 + $0x148] sm:$0xff] %v1463_v30  ;;  %v1473_v39 = vld [vmem:[%s2541_s20 + $0xf0] sm:$0xff]  ;;  %v1475_v41 = vld [vmem:[%s2541_s20 + $0xf8] sm:$0xff] }
 0x212   : > { %1466 = vst [vmem:[%s2700_s10 + $0x150] sm:$0xff] %v1465_v56  ;;  %1468 = vst [vmem:[%s2700_s10 + $0x158] sm:$0xff] %v1467_v32 }
 0x213   : > { %1470 = vst [vmem:[%s2700_s10 + $0x160] sm:$0xff] %v1469_v36  ;;  %1472 = vst [vmem:[%s2700_s10 + $0x168] sm:$0xff] %v1471_v37 }
 0x214   : > { %1474 = vst [vmem:[%s2700_s10 + $0x170] sm:$0xff] %v1473_v39  ;;  %1476 = vst [vmem:[%s2700_s10 + $0x178] sm:$0xff] %v1475_v41 }
 0x215 PF: > { %1482 = sbr.rel (!%p2254_p4) target bundleno = 551 (0x227), region = 119  ;;  %s1930_s11 = sshll.u32 (%p2254_p4), %s2242_s24, 7  ;;  %v1576_v58 = vld [vmem:[%s2537_s19] sm:$0xff] (%p2254_p4)  ;;  %v1578_v42 = vld [vmem:[%s2537_s19 + $0x8] sm:$0xff] (%p2254_p4)  ;;  %v1580_v43 = vld [vmem:[%s2537_s19 + $0x10] sm:$0xff] (%p2254_p4) }
 0x216   : > { %s2772_s8 = scalar_lea.vmem (%p2254_p4), %s2851_s6, %s1930_s11  ;;  %v1582_v44 = vld [vmem:[%s2537_s19 + $0x18] sm:$0xff] (%p2254_p4)  ;;  %v1584_v46 = vld [vmem:[%s2537_s19 + $0x20] sm:$0xff] (%p2254_p4)  ;;  %v1586_v47 = vld [vmem:[%s2537_s19 + $0x28] sm:$0xff] (%p2254_p4) }
 0x217   : > { %1577 = vst [vmem:[%s2772_s8] sm:$0xff] (%p2254_p4), %v1576_v58  ;;  %1579 = vst [vmem:[%s2772_s8 + $0x8] sm:$0xff] (%p2254_p4), %v1578_v42  ;;  %v1588_v7 = vld [vmem:[%s2537_s19 + $0x30] sm:$0xff] (%p2254_p4)  ;;  %v1590_v48 = vld [vmem:[%s2537_s19 + $0x38] sm:$0xff] (%p2254_p4) }
 0x218   : > { %1581 = vst [vmem:[%s2772_s8 + $0x10] sm:$0xff] (%p2254_p4), %v1580_v43  ;;  %1583 = vst [vmem:[%s2772_s8 + $0x18] sm:$0xff] (%p2254_p4), %v1582_v44  ;;  %v1592_v49 = vld [vmem:[%s2537_s19 + $0x40] sm:$0xff] (%p2254_p4)  ;;  %v1594_v50 = vld [vmem:[%s2537_s19 + $0x48] sm:$0xff] (%p2254_p4) }
 0x219   : > { %1585 = vst [vmem:[%s2772_s8 + $0x20] sm:$0xff] (%p2254_p4), %v1584_v46  ;;  %1587 = vst [vmem:[%s2772_s8 + $0x28] sm:$0xff] (%p2254_p4), %v1586_v47  ;;  %v1596_v61 = vld [vmem:[%s2537_s19 + $0x50] sm:$0xff] (%p2254_p4)  ;;  %v1598_v62 = vld [vmem:[%s2537_s19 + $0x58] sm:$0xff] (%p2254_p4) }
 0x21a   : > { %1589 = vst [vmem:[%s2772_s8 + $0x30] sm:$0xff] %v1588_v7  ;;  %1591 = vst [vmem:[%s2772_s8 + $0x38] sm:$0xff] %v1590_v48  ;;  %v1600_v10 = vld [vmem:[%s2537_s19 + $0x60] sm:$0xff]  ;;  %v1602_v63 = vld [vmem:[%s2537_s19 + $0x68] sm:$0xff] }
 0x21b   : > { %1593 = vst [vmem:[%s2772_s8 + $0x40] sm:$0xff] %v1592_v49  ;;  %1595 = vst [vmem:[%s2772_s8 + $0x48] sm:$0xff] %v1594_v50  ;;  %v1604_v45 = vld [vmem:[%s2537_s19 + $0x70] sm:$0xff]  ;;  %v1606_v0 = vld [vmem:[%s2537_s19 + $0x78] sm:$0xff] }
 0x21c   : > { %1597 = vst [vmem:[%s2772_s8 + $0x50] sm:$0xff] %v1596_v61  ;;  %1599 = vst [vmem:[%s2772_s8 + $0x58] sm:$0xff] %v1598_v62  ;;  %v1608_v33 = vld [vmem:[%s2537_s19 + $0x80] sm:$0xff]  ;;  %v1610_v34 = vld [vmem:[%s2537_s19 + $0x88] sm:$0xff] }
 0x21d   : > { %1601 = vst [vmem:[%s2772_s8 + $0x60] sm:$0xff] %v1600_v10  ;;  %1603 = vst [vmem:[%s2772_s8 + $0x68] sm:$0xff] %v1602_v63  ;;  %v1612_v53 = vld [vmem:[%s2537_s19 + $0x90] sm:$0xff]  ;;  %v1614_v11 = vld [vmem:[%s2537_s19 + $0x98] sm:$0xff] }
 0x21e   : > { %1605 = vst [vmem:[%s2772_s8 + $0x70] sm:$0xff] %v1604_v45  ;;  %1607 = vst [vmem:[%s2772_s8 + $0x78] sm:$0xff] %v1606_v0  ;;  %v1616_v31 = vld [vmem:[%s2537_s19 + $0xa0] sm:$0xff]  ;;  %v1618_v35 = vld [vmem:[%s2537_s19 + $0xa8] sm:$0xff] }
 0x21f   : > { %1609 = vst [vmem:[%s2772_s8 + $0x100] sm:$0xff] %v1608_v33  ;;  %1611 = vst [vmem:[%s2772_s8 + $0x108] sm:$0xff] %v1610_v34  ;;  %v1620_v38 = vld [vmem:[%s2537_s19 + $0xb0] sm:$0xff]  ;;  %v1622_v40 = vld [vmem:[%s2537_s19 + $0xb8] sm:$0xff] }
 0x220   : > { %1613 = vst [vmem:[%s2772_s8 + $0x110] sm:$0xff] %v1612_v53  ;;  %1615 = vst [vmem:[%s2772_s8 + $0x118] sm:$0xff] %v1614_v11  ;;  %v1624_v52 = vld [vmem:[%s2537_s19 + $0xc0] sm:$0xff]  ;;  %v1626_v54 = vld [vmem:[%s2537_s19 + $0xc8] sm:$0xff] }
 0x221   : > { %1617 = vst [vmem:[%s2772_s8 + $0x120] sm:$0xff] %v1616_v31  ;;  %1619 = vst [vmem:[%s2772_s8 + $0x128] sm:$0xff] %v1618_v35  ;;  %v1628_v57 = vld [vmem:[%s2537_s19 + $0xd0] sm:$0xff]  ;;  %v1630_v59 = vld [vmem:[%s2537_s19 + $0xd8] sm:$0xff] }
 0x222   : > { %1621 = vst [vmem:[%s2772_s8 + $0x130] sm:$0xff] %v1620_v38  ;;  %1623 = vst [vmem:[%s2772_s8 + $0x138] sm:$0xff] %v1622_v40  ;;  %v1632_v51 = vld [vmem:[%s2537_s19 + $0xe0] sm:$0xff]  ;;  %v1634_v60 = vld [vmem:[%s2537_s19 + $0xe8] sm:$0xff] }
 0x223   : > { %1625 = vst [vmem:[%s2772_s8 + $0x140] sm:$0xff] %v1624_v52  ;;  %1627 = vst [vmem:[%s2772_s8 + $0x148] sm:$0xff] %v1626_v54  ;;  %v1636_v1 = vld [vmem:[%s2537_s19 + $0xf0] sm:$0xff]  ;;  %v1638_v2 = vld [vmem:[%s2537_s19 + $0xf8] sm:$0xff] }
 0x224   : > { %1629 = vst [vmem:[%s2772_s8 + $0x150] sm:$0xff] %v1628_v57  ;;  %1631 = vst [vmem:[%s2772_s8 + $0x158] sm:$0xff] %v1630_v59 }
 0x225   : > { %1633 = vst [vmem:[%s2772_s8 + $0x160] sm:$0xff] %v1632_v51  ;;  %1635 = vst [vmem:[%s2772_s8 + $0x168] sm:$0xff] %v1634_v60 }
 0x226   : > { %1637 = vst [vmem:[%s2772_s8 + $0x170] sm:$0xff] %v1636_v1  ;;  %1639 = vst [vmem:[%s2772_s8 + $0x178] sm:$0xff] %v1638_v2 }
 0x227 PF: > { %p14_p8 = scmp.ge.s32.totalorder %s2244_s25, 4   ;;  %s2853_s21 = smov %s2188_s22 }
 0x228   : > { %s2854_s22 = smov %s2252_s28  ;;  %s2855_s23 = smov %s2244_s25 }
 0x229   :  { %16 = sbr.rel (!%p14_p8) target bundleno = 2 (0x2), region = 213 }

// kernel: simple_gat_forward.7
= control target key start
LH: loop header
LB: loop body
LE: loop exit
PB: predicated region body
PF: predicated region fallthrough
CT: control target
= control target key end

     0   :  { %s2365_s21 = smov 0   ;;  %s2367_s22 = smov 0   ;;  %s3139_s0 = inlined_call_operand.vmem [shape: bf16[1,256,128], index: 0, kind: input, shape index: {}]   ;;  %s3140_s1 = inlined_call_operand.vmem [shape: f32[1,256,1], index: 1, kind: input, shape index: {}]   ;;  %s3141_s2 = inlined_call_operand.vmem [shape: f32[1,1,256], index: 2, kind: input, shape index: {}]   ;;  %s3142_s3 = inlined_call_operand.vmem [shape: bf16[256,256], index: 3, kind: input, shape index: {}]   ;;  %s3143_s4 = inlined_call_operand.vmem [shape: f32[1,128], index: 4, kind: input, shape index: {}]   ;;  %s3144_s5 = inlined_call_operand.vmem [shape: f32[1,128], index: 5, kind: input, shape index: {}]   ;;  %s3145_s6 = inlined_call_operand.vmem [shape: f32[256,128], index: 6, kind: output, shape index: {}]  }
   0x1   :  { %s2369_s23 = smov 0   ;;  %s2371_s24 = smov 0  }
   0x2   :  { %s2373_s25 = smov 0   ;;  %s2375_s26 = smov 0  }
   0x3   :  { %s2377_s27 = smov 0  }
   0x4 LB: > { %s25_s28 = sadd.s32 1, %s2315_s25  ;;  %s28_s29 = sadd.s32 1, %s2319_s26  ;;  %s2323_s27 = sphi %s2377_s27, %s16_s27   ;;  %s2319_s26 = sphi %s2375_s26, %s3151_s26   ;;  %s2315_s25 = sphi %s2373_s25, %s3150_s25   ;;  %s2311_s24 = sphi %s2371_s24, %s3149_s24   ;;  %s2307_s23 = sphi %s2369_s23, %s3148_s23   ;;  %s2303_s22 = sphi %s2367_s22, %s3147_s22   ;;  %s2299_s21 = sphi %s2365_s21, %s3146_s21  }
   0x5   : > { %p26_p0 = scmp.ge.s32.totalorder %s25_s28, 2  ;;  %p122_p1 = scmp.ne.s32.totalorder %s2303_s22, %s2299_s21 }
   0x6   : > { %p123_p2 = scmp.eq.s32.totalorder %s2323_s27, 0  ;;  %s115_s9 = sadd.s32 1, %s2303_s22 }
   0x7   : > { %s3153_s28 = smov (%p26_p0, %s25_s28), 0  ;;  %s3155_s29 = smov (!%p26_p0, %s28_s29), %s2319_s26 }
   0x8   : > { %p124_p3 = por %p123_p2, %p122_p1  ;;  %p30_p4 = scmp.ge.s32.totalorder %s3155_s29, 2 }
   0x9   : > { %s111_s30 = ssub.s32 %s2315_s25, %s3153_s28  ;;  %p1935_p6 = scmp.ge.s32.totalorder %s2323_s27, 4 }
   0xa   : > { %s3157_s29 = smov (%p30_p4, %s3155_s29), 0 }
   0xb   : > { %s110_s7 = ssub.s32 %s2319_s26, %s3157_s29  ;;  %222 = sbr.rel (%p1935_p6) target bundleno = 32 (0x20), region = 24 }
   0xc   : > { %s112_s8 = sor.u32 %s111_s30, %s110_s7 }
   0xd   : > { %p113_p5 = scmp.eq.s32.totalorder %s112_s8, 0 }
   0xf   : > { %s2416_s10 = scalar_select %p113_p5, %s2303_s22, %s115_s9  }
  0x10   : > { %249 = sbr.rel (!%p124_p3) target bundleno = 32 (0x20), region = 40  ;;  %s251_s11 = sand.u32 (%p124_p3), 1, %s2303_s22  }
  0x11   : > { %s1964_s12 = sshll.u32 (%p124_p3), %s2319_s26, 5  ;;  %s1936_s13 = sshll.u32 (%p124_p3), %s251_s11, 6 }
  0x12   : > { %s256_s14 = sadd.s32 (%p124_p3), %s2315_s25, %s1964_s12  ;;  %s253_s19 = scalar_lea.vmem (%p124_p3), [#allocation5], %s1936_s13 }
  0x13   : > { %s1939_s15 = sshll.u32 (%p124_p3), %s256_s14, 2 }
  0x14   : > { %s2425_s18 = scalar_lea.vmem (%p124_p3), %s3142_s3, %s1939_s15 }
  0x15   : > { %v275_v0 = vld [vmem:[%s2425_s18] sm:$0xf]  ;;  %v277_v1 = vld [vmem:[%s2425_s18 + $0x8] sm:$0xf]  ;;  %v279_v2 = vld [vmem:[%s2425_s18 + $0x10] sm:$0xf] }
  0x16   : > { %276 = vst [vmem:[%s253_s19] sm:$0xf] %v275_v0  ;;  %278 = vst [vmem:[%s253_s19 + $0x4] sm:$0xf] %v277_v1  ;;  %v281_v3 = vld [vmem:[%s2425_s18 + $0x18] sm:$0xf] }
  0x17   : > { %280 = vst [vmem:[%s253_s19 + $0x8] sm:$0xf] %v279_v2  ;;  %v283_v4 = vld [vmem:[%s2425_s18 + $0x20] sm:$0xf]  ;;  %v285_v5 = vld [vmem:[%s2425_s18 + $0x28] sm:$0xf] }
  0x18   : > { %282 = vst [vmem:[%s253_s19 + $0xc] sm:$0xf] %v281_v3  ;;  %284 = vst [vmem:[%s253_s19 + $0x10] sm:$0xf] %v283_v4  ;;  %v287_v6 = vld [vmem:[%s2425_s18 + $0x30] sm:$0xf] }
  0x19   : > { %286 = vst [vmem:[%s253_s19 + $0x14] sm:$0xf] %v285_v5  ;;  %v289_v7 = vld [vmem:[%s2425_s18 + $0x38] sm:$0xf]  ;;  %v291_v8 = vld [vmem:[%s2425_s18 + $0x40] sm:$0xf] }
  0x1a   : > { %288 = vst [vmem:[%s253_s19 + $0x18] sm:$0xf] %v287_v6  ;;  %290 = vst [vmem:[%s253_s19 + $0x1c] sm:$0xf] %v289_v7  ;;  %v293_v9 = vld [vmem:[%s2425_s18 + $0x48] sm:$0xf] }
  0x1b   : > { %292 = vst [vmem:[%s253_s19 + $0x20] sm:$0xf] %v291_v8  ;;  %v295_v10 = vld [vmem:[%s2425_s18 + $0x50] sm:$0xf]  ;;  %v297_v11 = vld [vmem:[%s2425_s18 + $0x58] sm:$0xf] }
  0x1c   : > { %294 = vst [vmem:[%s253_s19 + $0x24] sm:$0xf] %v293_v9  ;;  %296 = vst [vmem:[%s253_s19 + $0x28] sm:$0xf] %v295_v10  ;;  %v299_v12 = vld [vmem:[%s2425_s18 + $0x60] sm:$0xf] }
  0x1d   : > { %298 = vst [vmem:[%s253_s19 + $0x2c] sm:$0xf] %v297_v11  ;;  %v301_v13 = vld [vmem:[%s2425_s18 + $0x68] sm:$0xf]  ;;  %v303_v14 = vld [vmem:[%s2425_s18 + $0x70] sm:$0xf] }
  0x1e   : > { %300 = vst [vmem:[%s253_s19 + $0x30] sm:$0xf] %v299_v12  ;;  %302 = vst [vmem:[%s253_s19 + $0x34] sm:$0xf] %v301_v13  ;;  %v305_v15 = vld [vmem:[%s2425_s18 + $0x78] sm:$0xf] }
  0x1f   : > { %304 = vst [vmem:[%s253_s19 + $0x38] sm:$0xf] %v303_v14  ;;  %306 = vst [vmem:[%s253_s19 + $0x3c] sm:$0xf] %v305_v15 }
  0x20 PF: > { %p1940_p7 = scmp.ge.s32.totalorder %s2323_s27, 1  ;;  %p361_p8 = scmp.lt.s32.totalorder %s2323_s27, 5 }
  0x22   : > { %p362_p9 = pnand %p1940_p7, %p361_p8 }
  0x23   : > { %s368_s20 = sand.u32 (!%p362_p9), 1, %s2299_s21   ;;  %s1942_s30 = sshll.u32 (!%p362_p9), %s2307_s23, 4 }
  0x24   : > { %365 = sbr.rel (%p362_p9) target bundleno = 1215 (0x4bf), region = 81  ;;  %s1941_s7 = sshll.u32 (!%p362_p9), %s368_s20, 6 }
  0x25   : > { %p411_p10 = scmp.lt.s32.totalorder (!%p362_p9), %s1942_s30, 31  ;;  %s1944_s8 = sshll.u32 (!%p362_p9), %s2311_s24, 4 }
  0x26   : > { %p417_p11 = scmp.lt.s32.totalorder (!%p362_p9), %s1944_s8, 31  ;;  %p422_p12 = scmp.lt.s32.totalorder (!%p362_p9), %s2307_s23, 1 }
  0x27   : > { %p1948_p13 = scmp.ne.s32.totalorder (!%p362_p9), %s2307_s23, 0 }
  0x29   : > { %s3159_s30 = smov (!%p411_p10, %s1942_s30), 31  ;;  %s3161_s8 = smov (!%p417_p11, %s1944_s8), 31 }
  0x2a   : > { %s1943_s9 = sshll.u32 %s3159_s30, 2  ;;  %s1945_s15 = sshll.u32 %s3161_s8, 3 }
  0x2b   : > { %s2452_s13 = scalar_lea.vmem %s3139_s0, %s1943_s9  ;;  %s2460_s17 = scalar_lea.vmem %s3140_s1, %s1945_s15 }
  0x2c   : > { %s2455_s14 = scalar_select %p422_p12, %s2307_s23, 1 }
  0x2d   : > { %s2469_s11 = scalar_lea.vmem %s3145_s6, %s1945_s15  ;;  %s2471_s9 = scalar_lea.vmem [#allocation5], %s1941_s7 }
  0x2e   : > { %s424_s19 = scalar_lea.vmem %s3141_s2, %s2455_s14  ;;  %436 = sbr.rel (%p1948_p13) target bundleno = 76 (0x4c), region = 89 }
  0x33   : > { %vm437_vm0 = vcmask 7168   ;;  %v2325_v16 = vmov -1e+30   ;;  %v2326_v17 = vmov 0.0  }
  0x34   : > { %438 = vst.msk [vmem:[#allocation2] sm:$0xff] %vm437_vm0, %v2325_v16  ;;  %439 = vst.msk [vmem:[#allocation2 + $0x8] sm:$0xff] %vm437_vm0, %v2325_v16 }
  0x35   : > { %440 = vst.msk [vmem:[#allocation2 + $0x10] sm:$0xff] %vm437_vm0, %v2325_v16  ;;  %441 = vst.msk [vmem:[#allocation2 + $0x18] sm:$0xff] %vm437_vm0, %v2325_v16 }
  0x36   : > { %442 = vst.msk [vmem:[#allocation2 + $0x20] sm:$0xff] %vm437_vm0, %v2325_v16  ;;  %443 = vst.msk [vmem:[#allocation2 + $0x28] sm:$0xff] %vm437_vm0, %v2325_v16 }
  0x37   : > { %444 = vst.msk [vmem:[#allocation2 + $0x30] sm:$0xff] %vm437_vm0, %v2325_v16  ;;  %445 = vst.msk [vmem:[#allocation2 + $0x38] sm:$0xff] %vm437_vm0, %v2325_v16 }
  0x38   : > { %446 = vst.msk [vmem:[#allocation2 + $0x40] sm:$0xff] %vm437_vm0, %v2325_v16  ;;  %447 = vst.msk [vmem:[#allocation2 + $0x48] sm:$0xff] %vm437_vm0, %v2325_v16 }
  0x39   : > { %448 = vst.msk [vmem:[#allocation2 + $0x50] sm:$0xff] %vm437_vm0, %v2325_v16  ;;  %449 = vst.msk [vmem:[#allocation2 + $0x58] sm:$0xff] %vm437_vm0, %v2325_v16 }
  0x3a   : > { %450 = vst.msk [vmem:[#allocation2 + $0x60] sm:$0xff] %vm437_vm0, %v2325_v16  ;;  %451 = vst.msk [vmem:[#allocation2 + $0x68] sm:$0xff] %vm437_vm0, %v2325_v16 }
  0x3b   : > { %452 = vst.msk [vmem:[#allocation2 + $0x70] sm:$0xff] %vm437_vm0, %v2325_v16  ;;  %453 = vst.msk [vmem:[#allocation2 + $0x78] sm:$0xff] %vm437_vm0, %v2325_v16 }
  0x3c   : > { %454 = vst.msk [vmem:[#allocation3] sm:$0xff] %vm437_vm0, %v2326_v17  ;;  %455 = vst.msk [vmem:[#allocation3 + $0x8] sm:$0xff] %vm437_vm0, %v2326_v17 }
  0x3d   : > { %456 = vst.msk [vmem:[#allocation3 + $0x10] sm:$0xff] %vm437_vm0, %v2326_v17  ;;  %457 = vst.msk [vmem:[#allocation3 + $0x18] sm:$0xff] %vm437_vm0, %v2326_v17 }
  0x3e   : > { %458 = vst.msk [vmem:[#allocation3 + $0x20] sm:$0xff] %vm437_vm0, %v2326_v17  ;;  %459 = vst.msk [vmem:[#allocation3 + $0x28] sm:$0xff] %vm437_vm0, %v2326_v17 }
  0x3f   : > { %460 = vst.msk [vmem:[#allocation3 + $0x30] sm:$0xff] %vm437_vm0, %v2326_v17  ;;  %461 = vst.msk [vmem:[#allocation3 + $0x38] sm:$0xff] %vm437_vm0, %v2326_v17 }
  0x40   : > { %462 = vst.msk [vmem:[#allocation3 + $0x40] sm:$0xff] %vm437_vm0, %v2326_v17  ;;  %463 = vst.msk [vmem:[#allocation3 + $0x48] sm:$0xff] %vm437_vm0, %v2326_v17 }
  0x41   : > { %464 = vst.msk [vmem:[#allocation3 + $0x50] sm:$0xff] %vm437_vm0, %v2326_v17  ;;  %465 = vst.msk [vmem:[#allocation3 + $0x58] sm:$0xff] %vm437_vm0, %v2326_v17 }
  0x42   : > { %466 = vst.msk [vmem:[#allocation3 + $0x60] sm:$0xff] %vm437_vm0, %v2326_v17  ;;  %467 = vst.msk [vmem:[#allocation3 + $0x68] sm:$0xff] %vm437_vm0, %v2326_v17 }
  0x43   : > { %468 = vst.msk [vmem:[#allocation3 + $0x70] sm:$0xff] %vm437_vm0, %v2326_v17  ;;  %469 = vst.msk [vmem:[#allocation3 + $0x78] sm:$0xff] %vm437_vm0, %v2326_v17 }
  0x44   : > { %470 = vst [vmem:[#allocation4 + $0x30] sm:$0xff] %v2326_v17  ;;  %471 = vst [vmem:[#allocation4] sm:$0xff] %v2326_v17 }
  0x45   : > { %472 = vst [vmem:[#allocation4 + $0x58] sm:$0xff] %v2326_v17  ;;  %473 = vst [vmem:[#allocation4 + $0x18] sm:$0xff] %v2326_v17 }
  0x46   : > { %474 = vst [vmem:[#allocation4 + $0x50] sm:$0xff] %v2326_v17  ;;  %475 = vst [vmem:[#allocation4 + $0x68] sm:$0xff] %v2326_v17 }
  0x47   : > { %476 = vst [vmem:[#allocation4 + $0x8] sm:$0xff] %v2326_v17  ;;  %477 = vst [vmem:[#allocation4 + $0x48] sm:$0xff] %v2326_v17 }
  0x48   : > { %478 = vst [vmem:[#allocation4 + $0x40] sm:$0xff] %v2326_v17  ;;  %479 = vst [vmem:[#allocation4 + $0x20] sm:$0xff] %v2326_v17 }
  0x49   : > { %480 = vst [vmem:[#allocation4 + $0x10] sm:$0xff] %v2326_v17  ;;  %481 = vst [vmem:[#allocation4 + $0x38] sm:$0xff] %v2326_v17 }
  0x4a   : > { %482 = vst [vmem:[#allocation4 + $0x60] sm:$0xff] %v2326_v17  ;;  %483 = vst [vmem:[#allocation4 + $0x70] sm:$0xff] %v2326_v17 }
  0x4b   : > { %484 = vst [vmem:[#allocation4 + $0x78] sm:$0xff] %v2326_v17  ;;  %485 = vst [vmem:[#allocation4 + $0x28] sm:$0xff] %v2326_v17 }
  0x4c PF: > { %v526_v18 = vld [vmem:[%s2460_s17 + $0x40] sm:$0xff]  ;;  %v2327_v20 = vmov 0   ;;  %v527_v21 = vld [vmem:[%s2460_s17 + $0x48] sm:$0xff]  ;;  %v521_v23 = vld [vmem:[%s2460_s17 + $0x18] sm:$0xff]  ;;  %vm1005_vm1 = vcmask 7168   ;;  %p1958_p0 = scmp.ne.s32.totalorder %s2307_s23, 1 }
  0x4d   : > { %v518_v19 = vld [vmem:[%s2460_s17] sm:$0xff]  ;;  %2130 = vset.pattern.permute.xlu1 %v2327_v20  ;;  %2129 = vset.pattern.permute.xlu0 %v2327_v20  ;;  %v519_v22 = vld [vmem:[%s2460_s17 + $0x8] sm:$0xff]  ;;  %v520_v24 = vld [vmem:[%s2460_s17 + $0x10] sm:$0xff] }
  0x4e   : > { %577 = vperm.xlu1 %2130, %v526_v18   ;;  %537 = vperm.xlu0 %2129, %v518_v19   ;;  %v529_v25 = vld [vmem:[%s2460_s17 + $0x58] sm:$0xff]  ;;  %v528_v26 = vld [vmem:[%s2460_s17 + $0x50] sm:$0xff]  ;;  %v523_v27 = vld [vmem:[%s2460_s17 + $0x28] sm:$0xff] }
  0x4f   : > { %v522_v28 = vld [vmem:[%s2460_s17 + $0x20] sm:$0xff]  ;;  %v531_v29 = vld [vmem:[%s2460_s17 + $0x68] sm:$0xff]  ;;  %v525_v31 = vld [vmem:[%s2460_s17 + $0x38] sm:$0xff] }
  0x50   : > { %v530_v30 = vld [vmem:[%s2460_s17 + $0x60] sm:$0xff]  ;;  %v524_v32 = vld [vmem:[%s2460_s17 + $0x30] sm:$0xff]  ;;  %v533_v33 = vld [vmem:[%s2460_s17 + $0x78] sm:$0xff] }
  0x51   : > { %v532_v34 = vld [vmem:[%s2460_s17 + $0x70] sm:$0xff]  ;;  %v2527_v35 = vld [vmem:[%s424_s19] ss:$0 sm:$0xff] }
  0x52   : > { %582 = vperm.xlu1 %2130, %v527_v21   ;;  %542 = vperm.xlu0 %2129, %v519_v22  }
  0x56   : > { %552 = vperm.xlu1 %2130, %v521_v23   ;;  %547 = vperm.xlu0 %2129, %v520_v24  }
  0x5a   : > { %592 = vperm.xlu1 %2130, %v529_v25   ;;  %587 = vperm.xlu0 %2129, %v528_v26  }
  0x5e   : > { %562 = vperm.xlu1 %2130, %v523_v27   ;;  %557 = vperm.xlu0 %2129, %v522_v28  }
  0x62   : > { %602 = vperm.xlu1 %2130, %v531_v29   ;;  %597 = vperm.xlu0 %2129, %v530_v30  }
  0x66   : > { %572 = vperm.xlu1 %2130, %v525_v31   ;;  %567 = vperm.xlu0 %2129, %v524_v32  }
  0x6a   : > { %612 = vperm.xlu1 %2130, %v533_v33   ;;  %607 = vperm.xlu0 %2129, %v532_v34  }
  0xc9   : > { %v578_v36 = vpop.permute.xlu1 %577  ;;  %v538_v37 = vpop.permute.xlu0 %537 }
  0xca   : > { %v629_v38 = vadd.f32 %v2527_v35, %v578_v36  ;;  %v621_v39 = vadd.f32 %v2527_v35, %v538_v37 }
  0xcc   : > { %v637_v40 = vmul.f32 0.2, %v621_v39  ;;  %v645_v43 = vmul.f32 0.2, %v629_v38 }
  0xcd   : > { %v583_v41 = vpop.permute.xlu1 %582  ;;  %v543_v42 = vpop.permute.xlu0 %542 }
  0xce   : > { %v630_v44 = vadd.f32 %v2527_v35, %v583_v41  ;;  %v622_v45 = vadd.f32 %v2527_v35, %v543_v42  ;;  %v2533_v46 = vmax.f32 %v621_v39, %v637_v40  ;;  %v2538_v53 = vmax.f32 %v629_v38, %v645_v43  ;;  %v2131_v38 = vld [vmem:[%s2452_s13 + $0x38] sm:$0xff]   ;;  %v670_v40 = vld [vmem:[#allocation2 + $0x8] sm:$0xff]  ;;  %v2599_v41 = vld [vmem:[#allocation2 + $0x40] sm:$0xff] }
  0xcf   : > { %2020 = vmatprep.subr.bf16.mxu0 %v2131_v38  ;;  %2052 = vmatprep.subr.bf16.mxu1 %v2131_v38 }
  0xd0   : > { %v638_v47 = vmul.f32 0.2, %v622_v45  ;;  %685 = vmax.xlane.f32.xlu0 %v2533_v46  ;;  %v646_v48 = vmul.f32 0.2, %v630_v44  ;;  %2021 = vmatpush3.bf16.msra.mxu0 %v2131_v38 }
  0xd1   : > { %v553_v49 = vpop.permute.xlu1 %552  ;;  %v548_v50 = vpop.permute.xlu0 %547  ;;  %2060 = vmatpush3.bf16.msra.mxu1 %v2131_v38 }
  0xd2   : > { %v624_v51 = vadd.f32 %v2527_v35, %v553_v49  ;;  %v623_v52 = vadd.f32 %v2527_v35, %v548_v50  ;;  %v2540_v54 = vmax.f32 %v622_v45, %v638_v47  ;;  %v2544_v58 = vmax.f32 %v630_v44, %v646_v48  ;;  %v2132_v44 = vld [vmem:[%s2452_s13 + $0x30] sm:$0xff]   ;;  %v2610_v49 = vld [vmem:[#allocation2 + $0x48] sm:$0xff] }
  0xd3   : > { %v2608_v48 = vld [vmem:[#allocation2 + $0x10] sm:$0xff]  ;;  %2022 = vmatprep.subr.bf16.mxu0 %v2132_v44  ;;  %2053 = vmatprep.subr.bf16.mxu1 %v2132_v44 }
  0xd4   : > { %v639_v55 = vmul.f32 0.2, %v623_v52  ;;  %701 = vmax.xlane.f32.xlu0 %v2538_v53  ;;  %687 = vmax.xlane.f32.xlu1 %v2540_v54  ;;  %v640_v59 = vmul.f32 0.2, %v624_v51 }
  0xd5   : > { %v593_v56 = vpop.permute.xlu1 %592  ;;  %v588_v57 = vpop.permute.xlu0 %587  ;;  %2023 = vmatpush3.bf16.msra.mxu0 %v2132_v44  ;;  %2061 = vmatpush3.bf16.msra.mxu1 %v2132_v44  ;;  %v2681_v44 = vld [vmem:[#allocation2 + $0x70] sm:$0xff] }
  0xd6   : > { %v632_v60 = vadd.f32 %v2527_v35, %v593_v56  ;;  %v631_v61 = vadd.f32 %v2527_v35, %v588_v57  ;;  %v2548_v62 = vmax.f32 %v623_v52, %v639_v55  ;;  %v2554_v5 = vmax.f32 %v624_v51, %v640_v59  ;;  %v2133_v52 = vld [vmem:[%s2452_s13 + $0x28] sm:$0xff]   ;;  %v2623_v57 = vld [vmem:[#allocation2 + $0x50] sm:$0xff]  ;;  %v2625_v59 = vld [vmem:[#allocation2 + $0x18] sm:$0xff] }
  0xd7   : > { %2024 = vmatprep.subr.bf16.mxu0 %v2133_v52  ;;  %2054 = vmatprep.subr.bf16.mxu1 %v2133_v52 }
  0xd8   : > { %v647_v63 = vmul.f32 0.2, %v631_v61  ;;  %703 = vmax.xlane.f32.xlu0 %v2544_v58  ;;  %689 = vmax.xlane.f32.xlu1 %v2548_v62  ;;  %v648_v0 = vmul.f32 0.2, %v632_v60 }
  0xd9   : > { %v563_v1 = vpop.permute.xlu1 %562  ;;  %v558_v2 = vpop.permute.xlu0 %557  ;;  %2025 = vmatpush3.bf16.msra.mxu0 %v2133_v52  ;;  %2062 = vmatpush3.bf16.msra.mxu1 %v2133_v52 }
  0xda   : > { %v626_v3 = vadd.f32 %v2527_v35, %v563_v1  ;;  %v625_v4 = vadd.f32 %v2527_v35, %v558_v2  ;;  %v2556_v6 = vmax.f32 %v631_v61, %v647_v63  ;;  %v2560_v10 = vmax.f32 %v632_v60, %v648_v0  ;;  %v2134_v63 = vld [vmem:[%s2452_s13 + $0x20] sm:$0xff]  }
  0xdb   : > { %2026 = vmatprep.subr.bf16.mxu0 %v2134_v63  ;;  %2055 = vmatprep.subr.bf16.mxu1 %v2134_v63 }
  0xdc   : > { %v641_v7 = vmul.f32 0.2, %v625_v4  ;;  %691 = vmax.xlane.f32.xlu0 %v2554_v5  ;;  %705 = vmax.xlane.f32.xlu1 %v2556_v6  ;;  %v642_v11 = vmul.f32 0.2, %v626_v3 }
  0xdd   : > { %v603_v8 = vpop.permute.xlu1 %602  ;;  %v598_v9 = vpop.permute.xlu0 %597  ;;  %2027 = vmatpush3.bf16.msra.mxu0 %v2134_v63  ;;  %2063 = vmatpush3.bf16.msra.mxu1 %v2134_v63  ;;  %v2694_v63 = vld [vmem:[#allocation2 + $0x78] sm:$0xff] }
  0xde   : > { %v634_v12 = vadd.f32 %v2527_v35, %v603_v8  ;;  %v633_v13 = vadd.f32 %v2527_v35, %v598_v9  ;;  %v2564_v14 = vmax.f32 %v625_v4, %v641_v7  ;;  %v2570_v21 = vmax.f32 %v626_v3, %v642_v11  ;;  %v673_v3 = vld [vmem:[#allocation2 + $0x20] sm:$0xff]  ;;  %v2640_v4 = vld [vmem:[#allocation2 + $0x58] sm:$0xff] }
  0xdf   : > { %v2135_v11 = vld [vmem:[%s2452_s13 + $0x18] sm:$0xff]  }
  0xe0   : > { %v649_v15 = vmul.f32 0.2, %v633_v13  ;;  %707 = vmax.xlane.f32.xlu0 %v2560_v10  ;;  %693 = vmax.xlane.f32.xlu1 %v2564_v14  ;;  %v650_v16 = vmul.f32 0.2, %v634_v12 }
  0xe1   : > { %v573_v17 = vpop.permute.xlu1 %572  ;;  %v568_v18 = vpop.permute.xlu0 %567  ;;  %2028 = vmatprep.subr.bf16.mxu0 %v2135_v11  ;;  %2056 = vmatprep.subr.bf16.mxu1 %v2135_v11 }
  0xe2   : > { %v628_v19 = vadd.f32 %v2527_v35, %v573_v17  ;;  %v627_v20 = vadd.f32 %v2527_v35, %v568_v18  ;;  %v2572_v22 = vmax.f32 %v633_v13, %v649_v15  ;;  %v2576_v26 = vmax.f32 %v634_v12, %v650_v16  ;;  %v2654_v16 = vld [vmem:[#allocation2 + $0x60] sm:$0xff]  ;;  %v2656_v17 = vld [vmem:[#allocation2 + $0x28] sm:$0xff]  ;;  %2029 = vmatpush3.bf16.msra.mxu0 %v2135_v11 }
  0xe3   : > { %2064 = vmatpush3.bf16.msra.mxu1 %v2135_v11 }
  0xe4   : > { %v643_v23 = vmul.f32 0.2, %v627_v20  ;;  %695 = vmax.xlane.f32.xlu0 %v2570_v21  ;;  %709 = vmax.xlane.f32.xlu1 %v2572_v22  ;;  %v644_v27 = vmul.f32 0.2, %v628_v19 }
  0xe5   : > { %v613_v24 = vpop.permute.xlu1 %612  ;;  %v608_v25 = vpop.permute.xlu0 %607 }
  0xe6   : > { %v636_v28 = vadd.f32 %v2527_v35, %v613_v24  ;;  %v635_v29 = vadd.f32 %v2527_v35, %v608_v25  ;;  %v2580_v30 = vmax.f32 %v627_v20, %v643_v23  ;;  %v2584_v33 = vmax.f32 %v628_v19, %v644_v27  ;;  %v2593_v35 = vld [vmem:[#allocation2] sm:$0xff]  ;;  %v2136_v25 = vld [vmem:[%s2452_s13 + $0x10] sm:$0xff]  }
  0xe7   : > { %2030 = vmatprep.subr.bf16.mxu0 %v2136_v25  ;;  %2057 = vmatprep.subr.bf16.mxu1 %v2136_v25 }
  0xe8   : > { %v651_v31 = vmul.f32 0.2, %v635_v29  ;;  %711 = vmax.xlane.f32.xlu0 %v2576_v26  ;;  %697 = vmax.xlane.f32.xlu1 %v2580_v30  ;;  %v652_v32 = vmul.f32 0.2, %v636_v28 }
  0xe9   : > { %2031 = vmatpush3.bf16.msra.mxu0 %v2136_v25  ;;  %2065 = vmatpush3.bf16.msra.mxu1 %v2136_v25 }
  0xea   : > { %v2586_v34 = vmax.f32 %v635_v29, %v651_v31  ;;  %v2590_v36 = vmax.f32 %v636_v28, %v652_v32  ;;  %v675_v31 = vld [vmem:[#allocation2 + $0x30] sm:$0xff]  ;;  %v2669_v32 = vld [vmem:[#allocation2 + $0x68] sm:$0xff] }
  0xec   : > { %699 = vmax.xlane.f32.xlu0 %v2584_v33  ;;  %713 = vmax.xlane.f32.xlu1 %v2586_v34 }
  0xf0   : > { %715 = vmax.xlane.f32.xlu0 %v2590_v36 }
 0x159   : > { %v686_v37 = vpop.xlane.xlu0 %685 }
 0x15a   : > { %v2597_v39 = vmax.f32 %v2593_v35, %v686_v37 }
 0x15c   : > { %1335 = vst.msk [vmem:[#allocation2] sm:$0xff] %vm1005_vm1, %v2597_v39  ;;  %783 = vperm.xlu1 %2130, %v2597_v39   ;;  %v733_v7 = vsub.f32 %v2593_v35, %v2597_v39 }
 0x15d   : > { %v688_v42 = vpop.xlane.xlu1 %687  ;;  %v702_v43 = vpop.xlane.xlu0 %701 }
 0x15e   : > { %v718_v45 = vmax.f32 %v670_v40, %v688_v42  ;;  %v2606_v47 = vmax.f32 %v2599_v41, %v702_v43  ;;  %v749_v19 = vmul.f32 1.442695, %v733_v7 }
 0x160   : > { %1336 = vst.msk [vmem:[#allocation2 + $0x8] sm:$0xff] %vm1005_vm1, %v718_v45  ;;  %1343 = vst.msk [vmem:[#allocation2 + $0x40] sm:$0xff] %vm1005_vm1, %v2606_v47  ;;  %788 = vperm.xlu0 %2129, %v718_v45   ;;  %823 = vperm.xlu1 %2130, %v2606_v47   ;;  %v734_v0 = vsub.f32 %v670_v40, %v718_v45  ;;  %v2137_v40 = vld [vmem:[%s2452_s13 + $0x8] sm:$0xff]   ;;  %v676_v45 = vld [vmem:[#allocation2 + $0x38] sm:$0xff] }
 0x161   : > { %v690_v50 = vpop.xlane.xlu1 %689  ;;  %v704_v51 = vpop.xlane.xlu0 %703  ;;  %2032 = vmatprep.subr.bf16.mxu0 %v2137_v40  ;;  %2058 = vmatprep.subr.bf16.mxu1 %v2137_v40 }
 0x162   : > { %v2618_v55 = vmax.f32 %v2608_v48, %v690_v50  ;;  %v2621_v56 = vmax.f32 %v2610_v49, %v704_v51  ;;  %v751_v12 = vmul.f32 1.442695, %v734_v0  ;;  %2033 = vmatpush3.bf16.msra.mxu0 %v2137_v40  ;;  %2066 = vmatpush3.bf16.msra.mxu1 %v2137_v40 }
 0x164   : > { %1337 = vst.msk [vmem:[#allocation2 + $0x10] sm:$0xff] %vm1005_vm1, %v2618_v55  ;;  %1344 = vst.msk [vmem:[#allocation2 + $0x48] sm:$0xff] %vm1005_vm1, %v2621_v56  ;;  %793 = vperm.xlu0 %2129, %v2618_v55   ;;  %828 = vperm.xlu1 %2130, %v2621_v56   ;;  %v735_v20 = vsub.f32 %v2608_v48, %v2618_v55  ;;  %2139 = vpow2.f32 %v751_v12  ;;  %v741_v48 = vsub.f32 %v2599_v41, %v2606_v47 }
 0x165   : > { %v706_v60 = vpop.xlane.xlu1 %705  ;;  %v692_v61 = vpop.xlane.xlu0 %691  ;;  %2141 = vpow2.f32 %v749_v19 }
 0x166   : > { %v2635_v1 = vmax.f32 %v2623_v57, %v706_v60  ;;  %v2638_v2 = vmax.f32 %v2625_v59, %v692_v61  ;;  %v753_v35 = vmul.f32 1.442695, %v735_v20  ;;  %v765_v0 = vmul.f32 1.442695, %v741_v48 }
 0x168   : > { %1345 = vst.msk [vmem:[#allocation2 + $0x50] sm:$0xff] %vm1005_vm1, %v2635_v1  ;;  %1338 = vst.msk [vmem:[#allocation2 + $0x18] sm:$0xff] %vm1005_vm1, %v2638_v2  ;;  %833 = vperm.xlu0 %2129, %v2635_v1   ;;  %798 = vperm.xlu1 %2130, %v2638_v2   ;;  %v736_v37 = vsub.f32 %v2625_v59, %v2638_v2  ;;  %v2138_v59 = vld [vmem:[%s2452_s13] sm:$0xff]   ;;  %v743_v2 = vsub.f32 %v2623_v57, %v2635_v1 }
 0x169   : > { %v694_v8 = vpop.xlane.xlu1 %693  ;;  %v708_v9 = vpop.xlane.xlu0 %707  ;;  %2034 = vmatprep.subr.bf16.mxu0 %v2138_v59  ;;  %2059 = vmatprep.subr.bf16.mxu1 %v2138_v59 }
 0x16a   : > { %v721_v13 = vmax.f32 %v673_v3, %v694_v8  ;;  %v2652_v15 = vmax.f32 %v2640_v4, %v708_v9  ;;  %v755_v51 = vmul.f32 1.442695, %v736_v37  ;;  %2035 = vmatpush3.bf16.msra.mxu0 %v2138_v59  ;;  %2067 = vmatpush3.bf16.msra.mxu1 %v2138_v59  ;;  %v769_v11 = vmul.f32 1.442695, %v743_v2 }
 0x16c   : > { %v737_v18 = vsub.f32 %v673_v3, %v721_v13  ;;  %1339 = vst.msk [vmem:[#allocation2 + $0x20] sm:$0xff] %vm1005_vm1, %v721_v13  ;;  %1346 = vst.msk [vmem:[#allocation2 + $0x58] sm:$0xff] %vm1005_vm1, %v2652_v15  ;;  %803 = vperm.xlu0 %2129, %v721_v13   ;;  %838 = vperm.xlu1 %2130, %v2652_v15   ;;  %v744_v25 = vsub.f32 %v2640_v4, %v2652_v15 }
 0x16d   : > { %v710_v23 = vpop.xlane.xlu1 %709  ;;  %v696_v24 = vpop.xlane.xlu0 %695 }
 0x16e   : > { %v757_v27 = vmul.f32 1.442695, %v737_v18  ;;  %v2666_v28 = vmax.f32 %v2654_v16, %v710_v23  ;;  %v722_v29 = vmax.f32 %v2656_v17, %v696_v24  ;;  %v742_v18 = vsub.f32 %v2610_v49, %v2621_v56 }
 0x16f   : > { %v771_v56 = vmul.f32 1.442695, %v744_v25 }
 0x170   : > { %1347 = vst.msk [vmem:[#allocation2 + $0x60] sm:$0xff] %vm1005_vm1, %v2666_v28  ;;  %1340 = vst.msk [vmem:[#allocation2 + $0x28] sm:$0xff] %vm1005_vm1, %v722_v29  ;;  %843 = vperm.xlu0 %2129, %v2666_v28   ;;  %808 = vperm.xlu1 %2130, %v722_v29   ;;  %2143 = vpow2.f32 %v757_v27  ;;  %v738_v60 = vsub.f32 %v2656_v17, %v722_v29  ;;  %v745_v12 = vsub.f32 %v2654_v16, %v2666_v28 }
 0x171   : > { %v698_v38 = vpop.xlane.xlu1 %697  ;;  %v712_v39 = vpop.xlane.xlu0 %711  ;;  %2145 = vpow2.f32 %v753_v35  ;;  %v767_v24 = vmul.f32 1.442695, %v742_v18 }
 0x172   : > { %v723_v42 = vmax.f32 %v675_v31, %v698_v38  ;;  %v2679_v43 = vmax.f32 %v2669_v32, %v712_v39  ;;  %v759_v8 = vmul.f32 1.442695, %v738_v60  ;;  %v2707_v1 = vpop.eup %2139  ;;  %v773_v16 = vmul.f32 1.442695, %v745_v12 }
 0x173   : > { %v2717_v17 = vpop.eup %2141 }
 0x174   : > { %v739_v50 = vsub.f32 %v675_v31, %v723_v42  ;;  %1341 = vst.msk [vmem:[#allocation2 + $0x30] sm:$0xff] %vm1005_vm1, %v723_v42  ;;  %1348 = vst.msk [vmem:[#allocation2 + $0x68] sm:$0xff] %vm1005_vm1, %v2679_v43  ;;  %813 = vperm.xlu0 %2129, %v723_v42   ;;  %848 = vperm.xlu1 %2130, %v2679_v43   ;;  %v746_v27 = vsub.f32 %v2669_v32, %v2679_v43 }
 0x175   : > { %v714_v52 = vpop.xlane.xlu1 %713  ;;  %v700_v55 = vpop.xlane.xlu0 %699 }
 0x176   : > { %v761_v61 = vmul.f32 1.442695, %v739_v50  ;;  %v2692_v41 = vmax.f32 %v2681_v44, %v714_v52  ;;  %v724_v47 = vmax.f32 %v676_v45, %v700_v55  ;;  %v775_v4 = vmul.f32 1.442695, %v746_v27 }
 0x178   : > { %2147 = vpow2.f32 %v761_v61  ;;  %v747_v3 = vsub.f32 %v2681_v44, %v2692_v41  ;;  %1349 = vst.msk [vmem:[#allocation2 + $0x70] sm:$0xff] %vm1005_vm1, %v2692_v41  ;;  %1342 = vst.msk [vmem:[#allocation2 + $0x38] sm:$0xff] %vm1005_vm1, %v724_v47  ;;  %853 = vperm.xlu0 %2129, %v2692_v41   ;;  %818 = vperm.xlu1 %2130, %v724_v47   ;;  %v740_v9 = vsub.f32 %v676_v45, %v724_v47 }
 0x179   : > { %v716_v7 = vpop.xlane.xlu0 %715  ;;  %2149 = vpow2.f32 %v755_v51 }
 0x17a   : > { %v2705_v57 = vmax.f32 %v2694_v63, %v716_v7  ;;  %2151 = vpow2.f32 %v765_v0  ;;  %v763_v19 = vmul.f32 1.442695, %v740_v9 }
 0x17b   : > { %2153 = vpow2.f32 %v759_v8  ;;  %v1966_v8 = vld [vmem:[%s2471_s9] sm:$0xff]  }
 0x17c   : > { %v748_v13 = vsub.f32 %v2694_v63, %v2705_v57  ;;  %1350 = vst.msk [vmem:[#allocation2 + $0x78] sm:$0xff] %vm1005_vm1, %v2705_v57  ;;  %1045 = vperm.xlu0 %2129, %v2707_v1   ;;  %858 = vperm.xlu1 %2130, %v2705_v57   ;;  %2155 = vpow2.f32 %v769_v11  ;;  %v1967_v12 = vunpack.c.l.bf16 %v1966_v8 }
 0x17d   : > { %v2721_v20 = vpop.eup %2143  ;;  %2157 = vpow2.f32 %v763_v19 }
 0x17e   : > { %v2725_v23 = vpop.eup %2145  ;;  %2159 = vpow2.f32 %v773_v16 }
 0x17f   : > { %2161 = vpow2.f32 %v767_v24 }
 0x180   : > { %1060 = vperm.xlu0 %2129, %v2721_v20   ;;  %1040 = vperm.xlu1 %2130, %v2717_v17   ;;  %2163 = vpow2.f32 %v771_v56  ;;  %v2000_v56 = vld [vmem:[%s2471_s9 + $0x20] sm:$0xff]  }
 0x181   : > { %2165 = vpow2.f32 %v775_v4  ;;  %v1968_v4 = vunpack.c.h.bf16 %v1966_v8 }
 0x184   : > { %1050 = vperm.xlu1 %2130, %v2725_v23  }
 0x185   : > { %v2730_v49 = vpop.eup %2147 }
 0x186   : > { %1070 = vperm.xlu0 %2129, %v2730_v49   ;;  %v2735_v28 = vpop.eup %2149 }
 0x187   : > { %v2738_v29 = vpop.eup %2151 }
 0x188   : > { %1055 = vperm.xlu1 %2130, %v2735_v28   ;;  %v2741_v15 = vpop.eup %2153 }
 0x189   : > { %v2744_v31 = vpop.eup %2155 }
 0x18a   : > { %1080 = vperm.xlu0 %2129, %v2738_v29   ;;  %v2747_v32 = vpop.eup %2157 }
 0x18b   : > { %v2750_v35 = vpop.eup %2159 }
 0x18c   : > { %1065 = vperm.xlu1 %2130, %v2741_v15   ;;  %v2753_v37 = vpop.eup %2161 }
 0x18d   : > { %v2756_v38 = vpop.eup %2163 }
 0x18e   : > { %1090 = vperm.xlu0 %2129, %v2744_v31   ;;  %v2759_v39 = vpop.eup %2165 }
 0x190   : > { %1075 = vperm.xlu1 %2130, %v2747_v32  }
 0x192   : > { %1100 = vperm.xlu0 %2129, %v2750_v35  }
 0x194   : > { %1085 = vperm.xlu1 %2130, %v2753_v37  }
 0x198   : > { %1095 = vperm.xlu1 %2130, %v2756_v38  }
 0x19c   : > { %1105 = vperm.xlu1 %2130, %v2759_v39  }
 0x1d7   : > { %v784_v40 = vpop.permute.xlu1 %783 }
 0x1d8   : > { %v861_v42 = vsub.f32 %v2533_v46, %v784_v40 }
 0x1da   : > { %v877_v43 = vmul.f32 1.442695, %v861_v42 }
 0x1db   : > { %v824_v45 = vpop.permute.xlu1 %823  ;;  %v789_v48 = vpop.permute.xlu0 %788 }
 0x1dc   : > { %2167 = vpow2.f32 %v877_v43  ;;  %v869_v50 = vsub.f32 %v2538_v53, %v824_v45  ;;  %v862_v51 = vsub.f32 %v2540_v54, %v789_v48  ;;  %v1997_v43 = vld [vmem:[%s2471_s9 + $0x8] sm:$0xff]  }
 0x1de   : > { %v893_v52 = vmul.f32 1.442695, %v869_v50  ;;  %v879_v55 = vmul.f32 1.442695, %v862_v51  ;;  %v1984_v51 = vunpack.c.h.bf16 %v2000_v56 }
 0x1df   : > { %v829_v59 = vpop.permute.xlu1 %828  ;;  %v794_v60 = vpop.permute.xlu0 %793 }
 0x1e0   : > { %2169 = vpow2.f32 %v893_v52  ;;  %v870_v61 = vsub.f32 %v2544_v58, %v829_v59  ;;  %v863_v47 = vsub.f32 %v2548_v62, %v794_v60  ;;  %v1971_v60 = vunpack.c.l.bf16 %v1997_v43 }
 0x1e1   : > { %2171 = vpow2.f32 %v879_v55 }
 0x1e2   : > { %v895_v46 = vmul.f32 1.442695, %v870_v61  ;;  %v881_v0 = vmul.f32 1.442695, %v863_v47 }
 0x1e3   : > { %v799_v2 = vpop.permute.xlu1 %798  ;;  %v834_v7 = vpop.permute.xlu0 %833 }
 0x1e4   : > { %2173 = vpow2.f32 %v895_v46  ;;  %v864_v53 = vsub.f32 %v2554_v5, %v799_v2  ;;  %v871_v54 = vsub.f32 %v2556_v6, %v834_v7 }
 0x1e5   : > { %2175 = vpow2.f32 %v881_v0  ;;  %v1972_v0 = vunpack.c.h.bf16 %v1997_v43 }
 0x1e6   : > { %v883_v9 = vmul.f32 1.442695, %v864_v53  ;;  %v897_v11 = vmul.f32 1.442695, %v871_v54  ;;  %v2001_v54 = vld [vmem:[%s2471_s9 + $0x28] sm:$0xff]  }
 0x1e7   : > { %v839_v18 = vpop.permute.xlu1 %838  ;;  %v804_v58 = vpop.permute.xlu0 %803 }
 0x1e8   : > { %2177 = vpow2.f32 %v883_v9  ;;  %v872_v62 = vsub.f32 %v2560_v10, %v839_v18  ;;  %v865_v19 = vsub.f32 %v2564_v14, %v804_v58  ;;  %v1983_v10 = vunpack.c.l.bf16 %v2000_v56  ;;  %v1998_v58 = vld [vmem:[%s2471_s9 + $0x10] sm:$0xff]  }
 0x1e9   : > { %v2168_v16 = vpop.eup %2167  ;;  %2179 = vpow2.f32 %v897_v11 }
 0x1ea   : > { %v899_v24 = vmul.f32 1.442695, %v872_v62  ;;  %v885_v25 = vmul.f32 1.442695, %v865_v19  ;;  %v909_v5 = vmul.f32 %v2168_v16, %v1967_v12  ;;  %v1987_v19 = vunpack.c.l.bf16 %v2001_v54 }
 0x1eb   : > { %v809_v27 = vpop.permute.xlu1 %808  ;;  %v844_v6 = vpop.permute.xlu0 %843 }
 0x1ec   : > { %2181 = vpow2.f32 %v899_v24  ;;  %v866_v40 = vsub.f32 %v2570_v21, %v809_v27  ;;  %v873_v42 = vsub.f32 %v2572_v22, %v844_v6  ;;  %957 = vadd.xlane.f32.xlu0 %v909_v5  ;;  %v1975_v6 = vunpack.c.l.bf16 %v1998_v58 }
 0x1ed   : > { %v2170_v45 = vpop.eup %2169  ;;  %2183 = vpow2.f32 %v885_v25 }
 0x1ee   : > { %v2172_v14 = vpop.eup %2171  ;;  %v887_v48 = vmul.f32 1.442695, %v866_v40  ;;  %v901_v50 = vmul.f32 1.442695, %v873_v42  ;;  %v2778_v46 = vmul.f32 %v2170_v45, %v1983_v10  ;;  %v1976_v40 = vunpack.c.h.bf16 %v1998_v58 }
 0x1ef   : > { %v849_v52 = vpop.permute.xlu1 %848  ;;  %v814_v55 = vpop.permute.xlu0 %813  ;;  %v910_v59 = vmul.f32 %v2172_v14, %v1968_v4 }
 0x1f0   : > { %2185 = vpow2.f32 %v887_v48  ;;  %v874_v61 = vsub.f32 %v2576_v26, %v849_v52  ;;  %v867_v21 = vsub.f32 %v2580_v30, %v814_v55  ;;  %v2002_v48 = vld [vmem:[%s2471_s9 + $0x30] sm:$0xff]  }
 0x1f1   : > { %v2174_v22 = vpop.eup %2173  ;;  %959 = vadd.xlane.f32.xlu1 %v910_v59  ;;  %v1134_v47 = vpack.c.bf16 %v910_v59, %v909_v5  ;;  %2187 = vpow2.f32 %v901_v50  ;;  %v1988_v5 = vunpack.c.h.bf16 %v2001_v54  ;;  %v1991_v55 = vunpack.c.l.bf16 %v2002_v48  ;;  %v2003_v54 = vld [vmem:[%s2471_s9 + $0x38] sm:$0xff]  }
 0x1f2   : > { %v2176_v2 = vpop.eup %2175  ;;  %v903_v7 = vmul.f32 1.442695, %v874_v61  ;;  %v889_v8 = vmul.f32 1.442695, %v867_v21  ;;  %v2780_v53 = vmul.f32 %v2174_v22, %v1984_v51  ;;  %v1999_v51 = vld [vmem:[%s2471_s9 + $0x18] sm:$0xff]   ;;  %v1992_v59 = vunpack.c.h.bf16 %v2002_v48  ;;  %v926_v48 = vld [vmem:[#allocation3 + $0x8] sm:$0xff] }
 0x1f3   : > { %2036 = vmatprep.mubr.bf16.mxu0 %v1134_v47  ;;  %v819_v9 = vpop.permute.xlu1 %818  ;;  %v854_v11 = vpop.permute.xlu0 %853  ;;  %v911_v26 = vmul.f32 %v2176_v2, %v1971_v60  ;;  %v1979_v61 = vunpack.c.l.bf16 %v1999_v51 }
 0x1f4   : > { %2189 = vpow2.f32 %v903_v7  ;;  %v868_v30 = vsub.f32 %v2584_v33, %v819_v9  ;;  %v875_v12 = vsub.f32 %v2586_v34, %v854_v11  ;;  %v1138_v18 = vpack.c.bf16 %v2780_v53, %v2778_v46 }
 0x1f5   : > { %v2178_v62 = vpop.eup %2177  ;;  %2191 = vpow2.f32 %v889_v8  ;;  %961 = vadd.xlane.f32.xlu0 %v911_v26  ;;  %v1980_v7 = vunpack.c.h.bf16 %v1999_v51 }
 0x1f6   : > { %v891_v16 = vmul.f32 1.442695, %v868_v30  ;;  %v905_v24 = vmul.f32 1.442695, %v875_v12  ;;  %2044 = vmatprep.mubr.bf16.mxu1 %v1138_v18  ;;  %v912_v25 = vmul.f32 %v2178_v62, %v1972_v0  ;;  %v2180_v56 = vpop.eup %2179  ;;  %v1995_v30 = vunpack.c.l.bf16 %v2003_v54 }
 0x1f7   : > { %v859_v27 = vpop.permute.xlu1 %858  ;;  %v919_v45 = vmul.f32 %v2180_v56, %v1987_v19  ;;  %v1996_v12 = vunpack.c.h.bf16 %v2003_v54  ;;  %v2810_v57 = vpop.permute.xlu0 %1045 }
 0x1f8   : > { %2193 = vpow2.f32 %v891_v16  ;;  %v876_v33 = vsub.f32 %v2590_v36, %v859_v27  ;;  %v1135_v34 = vpack.c.bf16 %v912_v25, %v911_v26 }
 0x1f9   : > { %v2182_v4 = vpop.eup %2181  ;;  %963 = vadd.xlane.f32.xlu0 %v912_v25  ;;  %2195 = vpow2.f32 %v905_v24  ;;  %v779_v25 = vmul.f32 1.442695, %v748_v13 }
 0x1fa   : > { %v2184_v42 = vpop.eup %2183  ;;  %v907_v43 = vmul.f32 1.442695, %v876_v33  ;;  %2037 = vmatmul.mubr.bf16.vlgmr.msra.gmra.mxu0 %v1135_v34  ;;  %v920_v10 = vmul.f32 %v2182_v4, %v1988_v5 }
 0x1fb   : > { %v913_v14 = vmul.f32 %v2184_v42, %v1975_v6  ;;  %v2806_v56 = vpop.permute.xlu1 %1040  ;;  %v2814_v27 = vpop.permute.xlu0 %1060  ;;  %v925_v42 = vld [vmem:[#allocation3] sm:$0xff] }
 0x1fc   : > { %2197 = vpow2.f32 %v907_v43  ;;  %v1139_v50 = vpack.c.bf16 %v920_v10, %v919_v45  ;;  %v941_v43 = vmul.f32 %v2717_v17, %v925_v42 }
 0x1fd   : > { %v2186_v52 = vpop.eup %2185  ;;  %965 = vadd.xlane.f32.xlu1 %v913_v14  ;;  %2199 = vpow2.f32 %v779_v25 }
 0x1fe   : > { %2045 = vmatmul.mubr.bf16.vlgmr.msra.gmra.mxu1 %v1139_v50  ;;  %v914_v36 = vmul.f32 %v2186_v52, %v1976_v40  ;;  %v2188_v60 = vpop.eup %2187  ;;  %v942_v50 = vmul.f32 %v2707_v1, %v926_v48  ;;  %v927_v52 = vld [vmem:[#allocation3 + $0x10] sm:$0xff] }
 0x1ff   : > { %v921_v0 = vmul.f32 %v2188_v60, %v1991_v55  ;;  %v2808_v63 = vpop.permute.xlu1 %1050  ;;  %v943_v55 = vmul.f32 %v2725_v23, %v927_v52  ;;  %v928_v60 = vld [vmem:[#allocation3 + $0x18] sm:$0xff] }
 0x200   : > { %v1136_v21 = vpack.c.bf16 %v914_v36, %v913_v14  ;;  %967 = vadd.xlane.f32.xlu0 %v914_v36  ;;  %v944_v17 = vmul.f32 %v2735_v28, %v928_v60 }
 0x201   : > { %v2190_v22 = vpop.eup %2189  ;;  %v2818_v41 = vpop.permute.xlu0 %1070 }
 0x202   : > { %v2192_v47 = vpop.eup %2191  ;;  %2040 = vmatprep.mubr.bf16.mxu0 %v1136_v21  ;;  %v922_v2 = vmul.f32 %v2190_v22, %v1992_v59  ;;  %v929_v22 = vld [vmem:[#allocation3 + $0x20] sm:$0xff] }
 0x203   : > { %v915_v8 = vmul.f32 %v2192_v47, %v1979_v61  ;;  %v2812_v13 = vpop.permute.xlu1 %1055  ;;  %v945_v1 = vmul.f32 %v2721_v20, %v929_v22 }
 0x204   : > { %v1140_v9 = vpack.c.bf16 %v922_v2, %v921_v0 }
 0x205   : > { %v2194_v11 = vpop.eup %2193  ;;  %969 = vadd.xlane.f32.xlu1 %v915_v8  ;;  %v2822_v6 = vpop.permute.xlu0 %1080 }
 0x206   : > { %2048 = vmatprep.mubr.bf16.mxu1 %v1140_v9  ;;  %v916_v26 = vmul.f32 %v2194_v11, %v1980_v7  ;;  %v2196_v18 = vpop.eup %2195  ;;  %v931_v9 = vld [vmem:[#allocation3 + $0x30] sm:$0xff]  ;;  %v932_v11 = vld [vmem:[#allocation3 + $0x38] sm:$0xff] }
 0x207   : > { %v923_v19 = vmul.f32 %v2196_v18, %v1995_v30  ;;  %v2816_v44 = vpop.permute.xlu1 %1065  ;;  %v947_v28 = vmul.f32 %v2730_v49, %v931_v9  ;;  %v933_v30 = vld [vmem:[#allocation3 + $0x40] sm:$0xff]  ;;  %v948_v20 = vmul.f32 %v2747_v32, %v932_v11  ;;  %v936_v32 = vld [vmem:[#allocation3 + $0x58] sm:$0xff] }
 0x208   : > { %v1137_v58 = vpack.c.bf16 %v916_v26, %v915_v8  ;;  %971 = vadd.xlane.f32.xlu0 %v916_v26  ;;  %v949_v18 = vmul.f32 %v2738_v29, %v933_v30  ;;  %v1030_v9 = vld [vmem:[#allocation4 + $0x40] sm:$0xff]  ;;  %v1033_v30 = vld [vmem:[#allocation4 + $0x38] sm:$0xff] }
 0x209   : > { %v2198_v62 = vpop.eup %2197  ;;  %973 = vadd.xlane.f32.xlu1 %v2778_v46  ;;  %v777_v46 = vmul.f32 1.442695, %v747_v3  ;;  %v2826_v34 = vpop.permute.xlu0 %1090 }
 0x20a   : > { %2041 = vmatmul.mubr.bf16.gmra.mxu0 %v1137_v58  ;;  %v924_v16 = vmul.f32 %v2198_v62, %v1996_v12  ;;  %v2800_v5 = vpop.eup %2199  ;;  %v934_v58 = vld [vmem:[#allocation3 + $0x48] sm:$0xff] }
 0x20b   : > { %2201 = vpow2.f32 %v777_v46  ;;  %v2820_v3 = vpop.permute.xlu1 %1075  ;;  %v950_v49 = vmul.f32 %v2753_v37, %v934_v58  ;;  %v938_v37 = vld [vmem:[#allocation3 + $0x68] sm:$0xff]  ;;  %v1031_v58 = vld [vmem:[#allocation4 + $0x20] sm:$0xff] }
 0x20c   : > { %975 = vadd.xlane.f32.xlu0 %v2780_v53  ;;  %v1141_v24 = vpack.c.bf16 %v924_v16, %v923_v19 }
 0x20d   : > { %977 = vadd.xlane.f32.xlu1 %v919_v45  ;;  %v2830_v40 = vpop.permute.xlu0 %1100 }
 0x20e   : > { %2049 = vmatmul.mubr.bf16.gmra.mxu1 %v1141_v24 }
 0x20f   : > { %v2824_v33 = vpop.permute.xlu1 %1085 }
 0x210   : > { %979 = vadd.xlane.f32.xlu0 %v920_v10 }
 0x211   : > { %981 = vadd.xlane.f32.xlu1 %v921_v0  ;;  %v930_v0 = vld [vmem:[#allocation3 + $0x28] sm:$0xff] }
 0x212   : > { %v946_v8 = vmul.f32 %v2741_v15, %v930_v0 }
 0x213   : > { %v2828_v4 = vpop.permute.xlu1 %1095 }
 0x214   : > { %983 = vadd.xlane.f32.xlu0 %v922_v2 }
 0x215   : > { %985 = vadd.xlane.f32.xlu1 %v923_v19 }
 0x217   : > { %v2833_v10 = vpop.permute.xlu1 %1105 }
 0x218   : > { %987 = vadd.xlane.f32.xlu0 %v924_v16  ;;  %v2803_v53 = vpop.eup %2201  ;;  %v935_v16 = vld [vmem:[#allocation3 + $0x50] sm:$0xff] }
 0x219   : > { %v951_v25 = vmul.f32 %v2744_v31, %v935_v16  ;;  %v1129_v16 = vmul.f32 %v2828_v4, %v1033_v30  ;;  %v1036_v4 = vld [vmem:[#allocation4 + $0x78] sm:$0xff] }
 0x226   : > { %1115 = vperm.xlu1 %2130, %v2800_v5  }
 0x22e   : > { %1110 = vperm.xlu0 %2129, %v2803_v53  }
 0x275   : > { %v958_v45 = vpop.xlane.xlu0 %957 }
 0x276   : > { %v989_v14 = vadd.f32 %v958_v45, %v941_v43  ;;  %v937_v45 = vld [vmem:[#allocation3 + $0x60] sm:$0xff] }
 0x277   : > { %v953_v48 = vmul.f32 %v2750_v35, %v937_v45 }
 0x278   : > { %1006 = vst.msk [vmem:[#allocation3] sm:$0xff] %vm1005_vm1, %v989_v14  ;;  %v952_v14 = vmul.f32 %v2756_v38, %v936_v32  ;;  %v940_v38 = vld [vmem:[#allocation3 + $0x78] sm:$0xff]  ;;  %v1026_v32 = vld [vmem:[#allocation4 + $0x50] sm:$0xff] }
 0x279   : > { %v956_v35 = vmul.f32 %v2800_v5, %v940_v38 }
 0x27a   : > { %v960_v51 = vpop.xlane.xlu1 %959 }
 0x27b   : > { %v990_v36 = vadd.f32 %v960_v51, %v942_v50 }
 0x27d   : > { %1007 = vst.msk [vmem:[#allocation3 + $0x8] sm:$0xff] %vm1005_vm1, %v990_v36  ;;  %v939_v36 = vld [vmem:[#allocation3 + $0x70] sm:$0xff] }
 0x27e   : > { %v962_v59 = vpop.xlane.xlu0 %961 }
 0x27f   : > { %v991_v61 = vadd.f32 %v962_v59, %v943_v55  ;;  %v954_v55 = vmul.f32 %v2759_v39, %v938_v37  ;;  %v955_v59 = vmul.f32 %v2803_v53, %v939_v36  ;;  %v1024_v39 = vld [vmem:[#allocation4 + $0x58] sm:$0xff] }
 0x280   : > { %v1120_v0 = vmul.f32 %v2808_v63, %v1024_v39  ;;  %v1025_v53 = vld [vmem:[#allocation4 + $0x18] sm:$0xff] }
 0x281   : > { %1008 = vst.msk [vmem:[#allocation3 + $0x10] sm:$0xff] %vm1005_vm1, %v991_v61  ;;  %v1121_v5 = vmul.f32 %v2812_v13, %v1025_v53 }
 0x282   : > { %v964_v21 = vpop.xlane.xlu0 %963 }
 0x283   : > { %v992_v47 = vadd.f32 %v964_v21, %v944_v17 }
 0x285   : > { %1009 = vst.msk [vmem:[#allocation3 + $0x18] sm:$0xff] %vm1005_vm1, %v992_v47 }
 0x286   : > { %v966_v2 = vpop.xlane.xlu1 %965 }
 0x287   : > { %v993_v7 = vadd.f32 %v966_v2, %v945_v1  ;;  %v1022_v1 = vld [vmem:[#allocation4 + $0x30] sm:$0xff] }
 0x288   : > { %v1032_v2 = vld [vmem:[#allocation4 + $0x10] sm:$0xff] }
 0x289   : > { %1010 = vst.msk [vmem:[#allocation3 + $0x20] sm:$0xff] %vm1005_vm1, %v993_v7  ;;  %v968_v23 = vpop.xlane.xlu0 %967  ;;  %v1128_v11 = vmul.f32 %v2826_v34, %v1032_v2 }
 0x28a   : > { %v994_v54 = vadd.f32 %v968_v23, %v946_v8  ;;  %v1118_v8 = vmul.f32 %v2806_v56, %v1022_v1 }
 0x28c   : > { %1011 = vst.msk [vmem:[#allocation3 + $0x28] sm:$0xff] %vm1005_vm1, %v994_v54  ;;  %v1023_v54 = vld [vmem:[#allocation4] sm:$0xff] }
 0x28d   : > { %v1119_v63 = vmul.f32 %v2810_v57, %v1023_v54 }
 0x28e   : > { %v970_v26 = vpop.xlane.xlu1 %969 }
 0x28f   : > { %v995_v12 = vadd.f32 %v970_v26, %v947_v28 }
 0x291   : > { %1012 = vst.msk [vmem:[#allocation3 + $0x30] sm:$0xff] %vm1005_vm1, %v995_v12  ;;  %v972_v15 = vpop.xlane.xlu0 %971 }
 0x292   : > { %v974_v62 = vpop.xlane.xlu1 %973  ;;  %v996_v19 = vadd.f32 %v972_v15, %v948_v20 }
 0x293   : > { %v997_v24 = vadd.f32 %v974_v62, %v949_v18  ;;  %v1126_v18 = vmul.f32 %v2822_v6, %v1030_v9 }
 0x294   : > { %1013 = vst.msk [vmem:[#allocation3 + $0x38] sm:$0xff] %vm1005_vm1, %v996_v19 }
 0x295   : > { %1014 = vst.msk [vmem:[#allocation3 + $0x40] sm:$0xff] %vm1005_vm1, %v997_v24  ;;  %v976_v46 = vpop.xlane.xlu0 %975 }
 0x296   : > { %v978_v42 = vpop.xlane.xlu1 %977  ;;  %v998_v43 = vadd.f32 %v976_v46, %v950_v49  ;;  %v1127_v49 = vmul.f32 %v2824_v33, %v1031_v58  ;;  %v1028_v46 = vld [vmem:[#allocation4 + $0x8] sm:$0xff]  ;;  %v1034_v33 = vld [vmem:[#allocation4 + $0x60] sm:$0xff] }
 0x297   : > { %v999_v29 = vadd.f32 %v978_v42, %v951_v25  ;;  %v1124_v42 = vmul.f32 %v2818_v41, %v1028_v46  ;;  %v1130_v38 = vmul.f32 %v2830_v40, %v1034_v33 }
 0x298   : > { %1015 = vst.msk [vmem:[#allocation3 + $0x48] sm:$0xff] %vm1005_vm1, %v998_v43  ;;  %v1029_v43 = vld [vmem:[#allocation4 + $0x48] sm:$0xff] }
 0x299   : > { %1016 = vst.msk [vmem:[#allocation3 + $0x50] sm:$0xff] %vm1005_vm1, %v999_v29  ;;  %v980_v50 = vpop.xlane.xlu0 %979 }
 0x29a   : > { %v982_v51 = vpop.xlane.xlu1 %981  ;;  %v1000_v52 = vadd.f32 %v980_v50, %v952_v14  ;;  %v1122_v14 = vmul.f32 %v2814_v27, %v1026_v32  ;;  %v1027_v50 = vld [vmem:[#allocation4 + $0x68] sm:$0xff] }
 0x29b   : > { %v1001_v31 = vadd.f32 %v982_v51, %v953_v48  ;;  %v1125_v51 = vmul.f32 %v2820_v3, %v1029_v43  ;;  %v1123_v41 = vmul.f32 %v2816_v44, %v1027_v50 }
 0x29c   : > { %1017 = vst.msk [vmem:[#allocation3 + $0x58] sm:$0xff] %vm1005_vm1, %v1000_v52 }
 0x29d   : > { %1018 = vst.msk [vmem:[#allocation3 + $0x60] sm:$0xff] %vm1005_vm1, %v1001_v31  ;;  %v984_v60 = vpop.xlane.xlu0 %983 }
 0x29e   : > { %v986_v61 = vpop.xlane.xlu1 %985  ;;  %v1002_v17 = vadd.f32 %v984_v60, %v954_v55  ;;  %v1037_v55 = vld [vmem:[#allocation4 + $0x28] sm:$0xff] }
 0x29f   : > { %v1003_v21 = vadd.f32 %v986_v61, %v955_v59 }
 0x2a0   : > { %1019 = vst.msk [vmem:[#allocation3 + $0x68] sm:$0xff] %vm1005_vm1, %v1002_v17  ;;  %v1035_v17 = vld [vmem:[#allocation4 + $0x70] sm:$0xff] }
 0x2a1   : > { %1020 = vst.msk [vmem:[#allocation3 + $0x70] sm:$0xff] %vm1005_vm1, %v1003_v21  ;;  %v988_v22 = vpop.xlane.xlu0 %987  ;;  %v1131_v1 = vmul.f32 %v2833_v10, %v1035_v17 }
 0x2a2   : > { %v1004_v47 = vadd.f32 %v988_v22, %v956_v35  ;;  %v1116_v52 = vpop.permute.xlu1 %1115 }
 0x2a3   : > { %v1133_v22 = vmul.f32 %v1116_v52, %v1037_v55 }
 0x2a4   : > { %1021 = vst.msk [vmem:[#allocation3 + $0x78] sm:$0xff] %vm1005_vm1, %v1004_v47 }
 0x2a9   : > { %v1111_v45 = vpop.permute.xlu0 %1110 }
 0x2aa   : > { %v1132_v36 = vmul.f32 %v1111_v45, %v1036_v4 }
 0x2ba   : > { %v2038_v7 = vpop.f32.mrf.mxu0 }
 0x2bb   : > { %v1305_v23 = vadd.f32 %v2038_v7, %v1120_v0 }
 0x2bc   : > { %v1240_v28 = vpop.f32.mrf.mxu0 }
 0x2bd   : > { %1321 = vst [vmem:[#allocation4 + $0x58] sm:$0xff] %v1305_v23  ;;  %v1303_v26 = vadd.f32 %v1240_v28, %v1118_v8 }
 0x2be   : > { %v2039_v12 = vpop.f32.mrf.mxu0  ;;  %v2046_v20 = vpop.f32.mrf.mxu1 }
 0x2bf   : > { %1319 = vst [vmem:[#allocation4 + $0x30] sm:$0xff] %v1303_v26  ;;  %v1306_v15 = vadd.f32 %v2039_v12, %v1121_v5  ;;  %v1313_v56 = vadd.f32 %v2046_v20, %v1128_v11 }
 0x2c0   : > { %v1243_v62 = vpop.f32.mrf.mxu0  ;;  %v1272_v19 = vpop.f32.mrf.mxu1 }
 0x2c1   : > { %1322 = vst [vmem:[#allocation4 + $0x18] sm:$0xff] %v1306_v15  ;;  %1329 = vst [vmem:[#allocation4 + $0x10] sm:$0xff] %v1313_v56  ;;  %v1304_v13 = vadd.f32 %v1243_v62, %v1119_v63  ;;  %v1311_v34 = vadd.f32 %v1272_v19, %v1126_v18 }
 0x2c2   : > { %v2047_v24 = vpop.f32.mrf.mxu1 }
 0x2c3   : > { %1320 = vst [vmem:[#allocation4] sm:$0xff] %v1304_v13  ;;  %1327 = vst [vmem:[#allocation4 + $0x40] sm:$0xff] %v1311_v34  ;;  %v1314_v57 = vadd.f32 %v2047_v24, %v1129_v16 }
 0x2c4   : > { %v1275_v25 = vpop.f32.mrf.mxu1 }
 0x2c5   : > { %1330 = vst [vmem:[#allocation4 + $0x38] sm:$0xff] %v1314_v57  ;;  %v1312_v6 = vadd.f32 %v1275_v25, %v1127_v49 }
 0x2c7   : > { %1328 = vst [vmem:[#allocation4 + $0x20] sm:$0xff] %v1312_v6 }
 0x2ca   : > { %v2042_v29 = vpop.f32.mrf.mxu0 }
 0x2cb   : > { %v1309_v48 = vadd.f32 %v2042_v29, %v1124_v42 }
 0x2cc   : > { %v1256_v37 = vpop.f32.mrf.mxu0 }
 0x2cd   : > { %1325 = vst [vmem:[#allocation4 + $0x8] sm:$0xff] %v1309_v48  ;;  %v1307_v31 = vadd.f32 %v1256_v37, %v1122_v14 }
 0x2ce   : > { %v2043_v59 = vpop.f32.mrf.mxu0  ;;  %v2050_v60 = vpop.f32.mrf.mxu1 }
 0x2cf   : > { %1323 = vst [vmem:[#allocation4 + $0x50] sm:$0xff] %v1307_v31  ;;  %v1310_v61 = vadd.f32 %v2043_v59, %v1125_v51  ;;  %v1317_v27 = vadd.f32 %v2050_v60, %v1132_v36 }
 0x2d0   : > { %v1259_v21 = vpop.f32.mrf.mxu0  ;;  %v1288_v35 = vpop.f32.mrf.mxu1 }
 0x2d1   : > { %1326 = vst [vmem:[#allocation4 + $0x48] sm:$0xff] %v1310_v61  ;;  %1333 = vst [vmem:[#allocation4 + $0x78] sm:$0xff] %v1317_v27  ;;  %v1308_v3 = vadd.f32 %v1259_v21, %v1123_v41  ;;  %v1315_v47 = vadd.f32 %v1288_v35, %v1130_v38 }
 0x2d2   : > { %v2051_v39 = vpop.f32.mrf.mxu1 }
 0x2d3   : > { %1324 = vst [vmem:[#allocation4 + $0x68] sm:$0xff] %v1308_v3  ;;  %1331 = vst [vmem:[#allocation4 + $0x60] sm:$0xff] %v1315_v47  ;;  %v1318_v0 = vadd.f32 %v2051_v39, %v1133_v22  ;;  %1354 = sbr.rel (%p1958_p0) target bundleno = 1215 (0x4bf), region = 93 }
 0x2d4   : > { %v1291_v44 = vpop.f32.mrf.mxu1 }
 0x2d5   : > { %1334 = vst [vmem:[#allocation4 + $0x28] sm:$0xff] %v1318_v0  ;;  %v1316_v40 = vadd.f32 %v1291_v44, %v1131_v1 }
 0x2d7   : > { %1332 = vst [vmem:[#allocation4 + $0x70] sm:$0xff] %v1316_v40 }
 0x2d8   : > { %v1357_v53 = vld [vmem:[#allocation3 + $0x10] sm:$0xff]  ;;  %v1355_v2 = vld [vmem:[#allocation3] sm:$0xff]  ;;  %v1358_v7 = vld [vmem:[#allocation3 + $0x18] sm:$0xff]  ;;  %v2328_v8 = vmov 0   ;;  %v1547_v14 = vlaneseq  ;;  %v2329_v59 = vmov 0.0  }
 0x2d9   : > { %2204 = vset.pattern.permute.xlu1 %v2328_v8  ;;  %2203 = vset.pattern.permute.xlu0 %v2328_v8  ;;  %vm1373_vm2 = vcmp.gt.f32.partialorder %v1357_v53, 0.0  ;;  %vm1371_vm3 = vcmp.gt.f32.partialorder %v1355_v2, 0.0  ;;  %vm1374_vm4 = vcmp.gt.f32.partialorder %v1358_v7, 0.0  ;;  %v1356_v10 = vld [vmem:[#allocation3 + $0x8] sm:$0xff]  ;;  %v1359_v28 = vld [vmem:[#allocation3 + $0x20] sm:$0xff]  ;;  %v1362_v26 = vld [vmem:[#allocation3 + $0x38] sm:$0xff] }
 0x2da   : > { %v1389_v23 = vsel %vm1373_vm2, %v1357_v53, 1.0  ;;  %v1387_v54 = vsel %vm1371_vm3, %v1355_v2, 1.0  ;;  %vm1372_vm5 = vcmp.gt.f32.partialorder %v1356_v10, 0.0  ;;  %v1360_v9 = vld [vmem:[#allocation3 + $0x28] sm:$0xff]  ;;  %v1390_v5 = vsel %vm1374_vm4, %v1358_v7, 1.0  ;;  %v1361_v30 = vld [vmem:[#allocation3 + $0x30] sm:$0xff] }
 0x2db   : > { %1431 = vperm.xlu1 %2204, %v1389_v23   ;;  %1421 = vperm.xlu0 %2203, %v1387_v54   ;;  %v1388_v11 = vsel %vm1372_vm5, %v1356_v10, 1.0  ;;  %vm1376_vm6 = vcmp.gt.f32.partialorder %v1360_v9, 0.0  ;;  %vm1375_vm7 = vcmp.gt.f32.partialorder %v1359_v28, 0.0  ;;  %vm1378_vm8 = vcmp.gt.f32.partialorder %v1362_v26, 0.0  ;;  %v1364_v63 = vld [vmem:[#allocation3 + $0x48] sm:$0xff]  ;;  %v1363_v18 = vld [vmem:[#allocation3 + $0x40] sm:$0xff] }
 0x2dc   : > { %v1392_v12 = vsel %vm1376_vm6, %v1360_v9, 1.0  ;;  %v1391_v20 = vsel %vm1375_vm7, %v1359_v28, 1.0  ;;  %vm1377_vm9 = vcmp.gt.f32.partialorder %v1361_v30, 0.0  ;;  %v1394_v15 = vsel %vm1378_vm8, %v1362_v26, 1.0  ;;  %v1366_v58 = vld [vmem:[#allocation3 + $0x58] sm:$0xff]  ;;  %v1365_v62 = vld [vmem:[#allocation3 + $0x50] sm:$0xff] }
 0x2dd   : > { %v1393_v56 = vsel %vm1377_vm9, %v1361_v30, 1.0  ;;  %vm1380_vm10 = vcmp.gt.f32.partialorder %v1364_v63, 0.0  ;;  %vm1379_vm11 = vcmp.gt.f32.partialorder %v1363_v18, 0.0  ;;  %vm1382_vm12 = vcmp.gt.f32.partialorder %v1366_v58, 0.0  ;;  %v1368_v13 = vld [vmem:[#allocation3 + $0x68] sm:$0xff]  ;;  %v1367_v34 = vld [vmem:[#allocation3 + $0x60] sm:$0xff] }
 0x2de   : > { %v1396_v19 = vsel %vm1380_vm10, %v1364_v63, 1.0  ;;  %v1395_v16 = vsel %vm1379_vm11, %v1363_v18, 1.0  ;;  %vm1381_vm13 = vcmp.gt.f32.partialorder %v1365_v62, 0.0  ;;  %v1398_v24 = vsel %vm1382_vm12, %v1366_v58, 1.0  ;;  %v1370_v57 = vld [vmem:[#allocation3 + $0x78] sm:$0xff]  ;;  %v1369_v25 = vld [vmem:[#allocation3 + $0x70] sm:$0xff] }
 0x2df   : > { %1436 = vperm.xlu1 %2204, %v1390_v5   ;;  %1426 = vperm.xlu0 %2203, %v1388_v11   ;;  %v1397_v49 = vsel %vm1381_vm13, %v1365_v62, 1.0  ;;  %vm1384_vm14 = vcmp.gt.f32.partialorder %v1368_v13, 0.0  ;;  %vm1383_vm15 = vcmp.gt.f32.partialorder %v1367_v34, 0.0  ;;  %vm1386_vm0 = vcmp.gt.f32.partialorder %v1370_v57, 0.0  ;;  %v1403_v52 = vld [vmem:[#allocation4 + $0x30] sm:$0xff]  ;;  %v1405_v36 = vld [vmem:[#allocation4 + $0x58] sm:$0xff] }
 0x2e0   : > { %v1400_v6 = vsel %vm1384_vm14, %v1368_v13, 1.0  ;;  %v1399_v46 = vsel %vm1383_vm15, %v1367_v34, 1.0  ;;  %vm1385_vm1 = vcmp.gt.f32.partialorder %v1369_v25, 0.0  ;;  %v1402_v32 = vsel %vm1386_vm0, %v1370_v57, 1.0  ;;  %v1404_v17 = vld [vmem:[#allocation4] sm:$0xff]  ;;  %v1406_v3 = vld [vmem:[#allocation4 + $0x18] sm:$0xff] }
 0x2e1   : > { %v1401_v42 = vsel %vm1385_vm1, %v1369_v25, 1.0  ;;  %v1548_v33 = vand.u32 127, %v1547_v14  ;;  %v1407_v44 = vld [vmem:[#allocation4 + $0x50] sm:$0xff]  ;;  %v1408_v8 = vld [vmem:[#allocation4 + $0x68] sm:$0xff]  ;;  %v1412_v13 = vld [vmem:[#allocation4 + $0x20] sm:$0xff] }
 0x2e2   : > { %v1409_v9 = vld [vmem:[#allocation4 + $0x8] sm:$0xff] }
 0x2e3   : > { %1446 = vperm.xlu1 %2204, %v1392_v12   ;;  %1441 = vperm.xlu0 %2203, %v1391_v20   ;;  %vm1549_vm2 = vcmp.lt.s32.totalorder %v1548_v33, 32  ;;  %v1410_v12 = vld [vmem:[#allocation4 + $0x48] sm:$0xff] }
 0x2e4   : > { %v2881_v60 = vsel %vm1549_vm2, 1.0, %v2329_v59  ;;  %v1418_v59 = vld [vmem:[#allocation4 + $0x28] sm:$0xff] }
 0x2e7   : > { %1456 = vperm.xlu1 %2204, %v1394_v15   ;;  %1451 = vperm.xlu0 %2203, %v1393_v56   ;;  %v1411_v15 = vld [vmem:[#allocation4 + $0x40] sm:$0xff] }
 0x2eb   : > { %1466 = vperm.xlu1 %2204, %v1396_v19   ;;  %1461 = vperm.xlu0 %2203, %v1395_v16  }
 0x2ef   : > { %1476 = vperm.xlu1 %2204, %v1398_v24   ;;  %1471 = vperm.xlu0 %2203, %v1397_v49   ;;  %v1413_v24 = vld [vmem:[#allocation4 + $0x10] sm:$0xff] }
 0x2f3   : > { %1486 = vperm.xlu1 %2204, %v1400_v6   ;;  %1481 = vperm.xlu0 %2203, %v1399_v46  }
 0x2f7   : > { %1496 = vperm.xlu1 %2204, %v1402_v32   ;;  %1491 = vperm.xlu0 %2203, %v1401_v42   ;;  %v1414_v32 = vld [vmem:[#allocation4 + $0x38] sm:$0xff] }
 0x356   : > { %v1432_v43 = vpop.permute.xlu1 %1431  ;;  %v1422_v4 = vpop.permute.xlu0 %1421 }
 0x357   : > { %2205 = vrcp.f32 %v1432_v43  ;;  %v1415_v43 = vld [vmem:[#allocation4 + $0x60] sm:$0xff] }
 0x358   : > { %2207 = vrcp.f32 %v1422_v4 }
 0x35a   : > { %v1437_v45 = vpop.permute.xlu1 %1436  ;;  %v1427_v29 = vpop.permute.xlu0 %1426 }
 0x35b   : > { %2209 = vrcp.f32 %v1437_v45 }
 0x35c   : > { %2211 = vrcp.f32 %v1427_v29 }
 0x35e   : > { %v1447_v48 = vpop.permute.xlu1 %1446  ;;  %v1442_v50 = vpop.permute.xlu0 %1441 }
 0x35f   : > { %2213 = vrcp.f32 %v1447_v48 }
 0x360   : > { %2215 = vrcp.f32 %v1442_v50  ;;  %v1416_v50 = vld [vmem:[#allocation4 + $0x70] sm:$0xff] }
 0x362   : > { %v1457_v37 = vpop.permute.xlu1 %1456  ;;  %v1452_v51 = vpop.permute.xlu0 %1451 }
 0x363   : > { %2217 = vrcp.f32 %v1457_v37  ;;  %v1417_v37 = vld [vmem:[#allocation4 + $0x78] sm:$0xff] }
 0x364   : > { %v2206_v31 = vpop.eup %2205  ;;  %2219 = vrcp.f32 %v1452_v51 }
 0x365   : > { %v2208_v55 = vpop.eup %2207  ;;  %v2885_v27 = vmul.f32 %v2206_v31, %v1405_v36 }
 0x366   : > { %v1467_v41 = vpop.permute.xlu1 %1466  ;;  %v1462_v38 = vpop.permute.xlu0 %1461  ;;  %v2883_v61 = vmul.f32 %v2208_v55, %v1403_v52 }
 0x367   : > { %2221 = vrcp.f32 %v1467_v41  ;;  %v1554_v1 = vmul.f32 %v2881_v60, %v2885_v27 }
 0x368   : > { %v2210_v21 = vpop.eup %2209  ;;  %2223 = vrcp.f32 %v1462_v38  ;;  %v1552_v35 = vmul.f32 %v2881_v60, %v2883_v61 }
 0x369   : > { %v2212_v22 = vpop.eup %2211  ;;  %v2895_v2 = vmul.f32 %v2210_v21, %v1406_v3 }
 0x36a   : > { %1568 = vadd.xlane.f32.xlu0 %v1552_v35  ;;  %v1477_v47 = vpop.permute.xlu1 %1476  ;;  %v1472_v39 = vpop.permute.xlu0 %1471  ;;  %v2891_v0 = vmul.f32 %v2212_v22, %v1404_v17 }
 0x36b   : > { %2225 = vrcp.f32 %v1477_v47  ;;  %v1555_v5 = vmul.f32 %v2881_v60, %v2895_v2 }
 0x36c   : > { %v2214_v40 = vpop.eup %2213  ;;  %2227 = vrcp.f32 %v1472_v39  ;;  %v1553_v53 = vmul.f32 %v2881_v60, %v2891_v0 }
 0x36d   : > { %v2216_v7 = vpop.eup %2215  ;;  %v2903_v26 = vmul.f32 %v2214_v40, %v1408_v8 }
 0x36e   : > { %1572 = vadd.xlane.f32.xlu0 %v1554_v1  ;;  %1570 = vadd.xlane.f32.xlu1 %v1553_v53  ;;  %v1487_v10 = vpop.permute.xlu1 %1486  ;;  %v1482_v23 = vpop.permute.xlu0 %1481  ;;  %v2897_v54 = vmul.f32 %v2216_v7, %v1407_v44 }
 0x36f   : > { %2229 = vrcp.f32 %v1487_v10  ;;  %v1557_v58 = vmul.f32 %v2881_v60, %v2903_v26 }
 0x370   : > { %v2218_v28 = vpop.eup %2217  ;;  %2231 = vrcp.f32 %v1482_v23  ;;  %v1556_v11 = vmul.f32 %v2881_v60, %v2897_v54 }
 0x371   : > { %v2220_v30 = vpop.eup %2219  ;;  %v2911_v19 = vmul.f32 %v2218_v28, %v1410_v12 }
 0x372   : > { %1574 = vadd.xlane.f32.xlu0 %v1555_v5  ;;  %1576 = vadd.xlane.f32.xlu1 %v1556_v11  ;;  %v1497_v20 = vpop.permute.xlu1 %1496  ;;  %v1492_v63 = vpop.permute.xlu0 %1491  ;;  %v2905_v18 = vmul.f32 %v2220_v30, %v1409_v9 }
 0x373   : > { %2233 = vrcp.f32 %v1497_v20  ;;  %v1559_v57 = vmul.f32 %v2881_v60, %v2911_v19 }
 0x374   : > { %v2222_v56 = vpop.eup %2221  ;;  %2235 = vrcp.f32 %v1492_v63  ;;  %v1558_v62 = vmul.f32 %v2881_v60, %v2905_v18 }
 0x375   : > { %v2224_v16 = vpop.eup %2223  ;;  %v2919_v6 = vmul.f32 %v2222_v56, %v1412_v13 }
 0x376   : > { %1578 = vadd.xlane.f32.xlu0 %v1557_v58  ;;  %1580 = vadd.xlane.f32.xlu1 %v1558_v62  ;;  %v2913_v34 = vmul.f32 %v2224_v16, %v1411_v15 }
 0x377   : > { %v1561_v45 = vmul.f32 %v2881_v60, %v2919_v6 }
 0x378   : > { %v2226_v49 = vpop.eup %2225  ;;  %v1560_v25 = vmul.f32 %v2881_v60, %v2913_v34 }
 0x379   : > { %v2228_v46 = vpop.eup %2227  ;;  %v2927_v14 = vmul.f32 %v2226_v49, %v1414_v32 }
 0x37a   : > { %1582 = vadd.xlane.f32.xlu0 %v1559_v57  ;;  %1584 = vadd.xlane.f32.xlu1 %v1560_v25  ;;  %v2921_v42 = vmul.f32 %v2228_v46, %v1413_v24 }
 0x37b   : > { %v1563_v52 = vmul.f32 %v2881_v60, %v2927_v14 }
 0x37c   : > { %v2230_v4 = vpop.eup %2229  ;;  %v1562_v29 = vmul.f32 %v2881_v60, %v2921_v42 }
 0x37d   : > { %v2232_v48 = vpop.eup %2231  ;;  %v2935_v31 = vmul.f32 %v2230_v4, %v1416_v50 }
 0x37e   : > { %1586 = vadd.xlane.f32.xlu0 %v1561_v45  ;;  %1588 = vadd.xlane.f32.xlu1 %v1562_v29  ;;  %v2929_v33 = vmul.f32 %v2232_v48, %v1415_v43 }
 0x37f   : > { %v1565_v38 = vmul.f32 %v2881_v60, %v2935_v31 }
 0x380   : > { %v2234_v51 = vpop.eup %2233  ;;  %v1564_v36 = vmul.f32 %v2881_v60, %v2929_v33 }
 0x381   : > { %v2236_v55 = vpop.eup %2235  ;;  %v2943_v21 = vmul.f32 %v2234_v51, %v1418_v59 }
 0x382   : > { %1590 = vadd.xlane.f32.xlu0 %v1563_v52  ;;  %1592 = vadd.xlane.f32.xlu1 %v1564_v36  ;;  %v2937_v41 = vmul.f32 %v2236_v55, %v1417_v37 }
 0x383   : > { %v1567_v35 = vmul.f32 %v2881_v60, %v2943_v21 }
 0x384   : > { %v1566_v17 = vmul.f32 %v2881_v60, %v2937_v41 }
 0x386   : > { %1594 = vadd.xlane.f32.xlu0 %v1565_v38  ;;  %1596 = vadd.xlane.f32.xlu1 %v1566_v17 }
 0x38a   : > { %1598 = vadd.xlane.f32.xlu0 %v1567_v35 }
 0x3f3   : > { %v1569_v22 = vpop.xlane.xlu0 %1568 }
 0x3f4   : > { %v1600_v3 = vmul.f32 0.03125, %v1569_v22 }
 0x3f6   : > { %v1616_v47 = vsub.f32 %v2883_v61, %v1600_v3 }
 0x3f7   : > { %v1571_v39 = vpop.xlane.xlu1 %1570  ;;  %v1573_v1 = vpop.xlane.xlu0 %1572 }
 0x3f8   : > { %v1601_v44 = vmul.f32 0.03125, %v1571_v39  ;;  %v1602_v40 = vmul.f32 0.03125, %v1573_v1  ;;  %v2949_v53 = vmul.f32 %v2881_v60, %v1616_v47 }
 0x3fa   : > { %v1617_v7 = vsub.f32 %v2891_v0, %v1601_v44  ;;  %v1618_v8 = vsub.f32 %v2885_v27, %v1602_v40  ;;  %v1648_v10 = vmul.f32 %v2949_v53, %v2949_v53 }
 0x3fb   : > { %v1577_v23 = vpop.xlane.xlu1 %1576  ;;  %v1575_v9 = vpop.xlane.xlu0 %1574 }
 0x3fc   : > { %v1604_v28 = vmul.f32 0.03125, %v1577_v23  ;;  %v1603_v5 = vmul.f32 0.03125, %v1575_v9  ;;  %1664 = vadd.xlane.f32.xlu1 %v1648_v10  ;;  %v2956_v61 = vmul.f32 %v2881_v60, %v1617_v7  ;;  %v2959_v11 = vmul.f32 %v2881_v60, %v1618_v8 }
 0x3fe   : > { %v1620_v30 = vsub.f32 %v2897_v54, %v1604_v28  ;;  %v1619_v0 = vsub.f32 %v2895_v2, %v1603_v5  ;;  %v1649_v27 = vmul.f32 %v2956_v61, %v2956_v61  ;;  %v1650_v12 = vmul.f32 %v2959_v11, %v2959_v11 }
 0x3ff   : > { %v1581_v20 = vpop.xlane.xlu1 %1580  ;;  %v1579_v63 = vpop.xlane.xlu0 %1578 }
 0x400   : > { %v1606_v15 = vmul.f32 0.03125, %v1581_v20  ;;  %v1605_v56 = vmul.f32 0.03125, %v1579_v63  ;;  %1666 = vadd.xlane.f32.xlu0 %v1649_v27  ;;  %1668 = vadd.xlane.f32.xlu1 %v1650_v12  ;;  %v2968_v58 = vmul.f32 %v2881_v60, %v1620_v30  ;;  %v2971_v62 = vmul.f32 %v2881_v60, %v1619_v0 }
 0x402   : > { %v1622_v2 = vsub.f32 %v2905_v18, %v1606_v15  ;;  %v1621_v54 = vsub.f32 %v2903_v26, %v1605_v56  ;;  %v1652_v16 = vmul.f32 %v2968_v58, %v2968_v58  ;;  %v1651_v13 = vmul.f32 %v2971_v62, %v2971_v62 }
 0x403   : > { %v1585_v24 = vpop.xlane.xlu1 %1584  ;;  %v1583_v49 = vpop.xlane.xlu0 %1582 }
 0x404   : > { %v1608_v57 = vmul.f32 0.03125, %v1585_v24  ;;  %v1607_v25 = vmul.f32 0.03125, %v1583_v49  ;;  %1672 = vadd.xlane.f32.xlu1 %v1652_v16  ;;  %1670 = vadd.xlane.f32.xlu0 %v1651_v13  ;;  %v2980_v46 = vmul.f32 %v2881_v60, %v1622_v2  ;;  %v2983_v32 = vmul.f32 %v2881_v60, %v1621_v54 }
 0x406   : > { %v1624_v26 = vsub.f32 %v2913_v34, %v1608_v57  ;;  %v1623_v18 = vsub.f32 %v2911_v19, %v1607_v25  ;;  %v1654_v43 = vmul.f32 %v2980_v46, %v2980_v46  ;;  %v1653_v4 = vmul.f32 %v2983_v32, %v2983_v32 }
 0x407   : > { %v1589_v45 = vpop.xlane.xlu1 %1588  ;;  %v1587_v29 = vpop.xlane.xlu0 %1586 }
 0x408   : > { %v1610_v48 = vmul.f32 0.03125, %v1589_v45  ;;  %v1609_v50 = vmul.f32 0.03125, %v1587_v29  ;;  %1676 = vadd.xlane.f32.xlu1 %v1654_v43  ;;  %1674 = vadd.xlane.f32.xlu0 %v1653_v4  ;;  %v2992_v37 = vmul.f32 %v2881_v60, %v1624_v26  ;;  %v2995_v51 = vmul.f32 %v2881_v60, %v1623_v18 }
 0x40a   : > { %v1626_v19 = vsub.f32 %v2921_v42, %v1610_v48  ;;  %v1625_v34 = vsub.f32 %v2919_v6, %v1609_v50  ;;  %v1656_v52 = vmul.f32 %v2992_v37, %v2992_v37  ;;  %v1655_v36 = vmul.f32 %v2995_v51, %v2995_v51 }
 0x40b   : > { %v1593_v55 = vpop.xlane.xlu1 %1592  ;;  %v1591_v59 = vpop.xlane.xlu0 %1590 }
 0x40c   : > { %v1612_v38 = vmul.f32 0.03125, %v1593_v55  ;;  %v1611_v17 = vmul.f32 0.03125, %v1591_v59  ;;  %1680 = vadd.xlane.f32.xlu1 %v1656_v52  ;;  %1678 = vadd.xlane.f32.xlu0 %v1655_v36  ;;  %v3004_v35 = vmul.f32 %v2881_v60, %v1626_v19  ;;  %v3007_v22 = vmul.f32 %v2881_v60, %v1625_v34  ;;  %v1961_v19 = vld [vmem:[%s3144_s5] ss:$0 sm:$0xff] }
 0x40e   : > { %v1628_v6 = vsub.f32 %v2929_v33, %v1612_v38  ;;  %v1627_v42 = vsub.f32 %v2927_v14, %v1611_v17  ;;  %v1658_v3 = vmul.f32 %v3004_v35, %v3004_v35  ;;  %v1657_v47 = vmul.f32 %v3007_v22, %v3007_v22  ;;  %v3049_v38 = vld [vmem:[%s3143_s4] ss:$0 sm:$0xff] }
 0x40f   : > { %v1597_v39 = vpop.xlane.xlu1 %1596  ;;  %v1595_v1 = vpop.xlane.xlu0 %1594  ;;  %v3052_v17 = vmul.f32 %v1961_v19, %v2881_v60 }
 0x410   : > { %v1614_v44 = vmul.f32 0.03125, %v1597_v39  ;;  %v1613_v40 = vmul.f32 0.03125, %v1595_v1  ;;  %1684 = vadd.xlane.f32.xlu1 %v1658_v3  ;;  %1682 = vadd.xlane.f32.xlu0 %v1657_v47  ;;  %v3016_v7 = vmul.f32 %v2881_v60, %v1628_v6  ;;  %v3019_v8 = vmul.f32 %v2881_v60, %v1627_v42 }
 0x412   : > { %v1630_v14 = vsub.f32 %v2937_v41, %v1614_v44  ;;  %v1629_v33 = vsub.f32 %v2935_v31, %v1613_v40  ;;  %v1660_v10 = vmul.f32 %v3016_v7, %v3016_v7  ;;  %v1659_v23 = vmul.f32 %v3019_v8, %v3019_v8 }
 0x413   : > { %v1599_v9 = vpop.xlane.xlu0 %1598 }
 0x414   : > { %v1615_v28 = vmul.f32 0.03125, %v1599_v9  ;;  %1688 = vadd.xlane.f32.xlu1 %v1660_v10  ;;  %1686 = vadd.xlane.f32.xlu0 %v1659_v23  ;;  %v3028_v5 = vmul.f32 %v2881_v60, %v1630_v14  ;;  %v3031_v30 = vmul.f32 %v2881_v60, %v1629_v33 }
 0x416   : > { %v1631_v41 = vsub.f32 %v2943_v21, %v1615_v28  ;;  %v1662_v31 = vmul.f32 %v3028_v5, %v3028_v5  ;;  %v1661_v0 = vmul.f32 %v3031_v30, %v3031_v30 }
 0x418   : > { %1692 = vadd.xlane.f32.xlu1 %v1662_v31  ;;  %1690 = vadd.xlane.f32.xlu0 %v1661_v0  ;;  %v3039_v27 = vmul.f32 %v2881_v60, %v1631_v41 }
 0x41a   : > { %v1663_v12 = vmul.f32 %v3039_v27, %v3039_v27 }
 0x41c   : > { %1694 = vadd.xlane.f32.xlu0 %v1663_v12 }
 0x485   : > { %v1665_v20 = vpop.xlane.xlu1 %1664 }
 0x486   : > { %v1696_v63 = vmul.f32 0.03125, %v1665_v20 }
 0x488   : > { %v1712_v15 = vadd.f32 1e-05, %v1696_v63 }
 0x489   : > { %v1669_v56 = vpop.xlane.xlu1 %1668  ;;  %v1667_v21 = vpop.xlane.xlu0 %1666 }
 0x48a   : > { %2237 = vrsqrt.f32 %v1712_v15  ;;  %v1698_v2 = vmul.f32 0.03125, %v1669_v56  ;;  %v1697_v54 = vmul.f32 0.03125, %v1667_v21 }
 0x48c   : > { %v1714_v16 = vadd.f32 1e-05, %v1698_v2  ;;  %v1713_v13 = vadd.f32 1e-05, %v1697_v54 }
 0x48d   : > { %v1673_v24 = vpop.xlane.xlu1 %1672  ;;  %v1671_v49 = vpop.xlane.xlu0 %1670 }
 0x48e   : > { %2239 = vrsqrt.f32 %v1714_v16  ;;  %v1700_v57 = vmul.f32 0.03125, %v1673_v24  ;;  %v1699_v25 = vmul.f32 0.03125, %v1671_v49 }
 0x48f   : > { %2241 = vrsqrt.f32 %v1713_v13 }
 0x490   : > { %v1716_v26 = vadd.f32 1e-05, %v1700_v57  ;;  %v1715_v18 = vadd.f32 1e-05, %v1699_v25 }
 0x491   : > { %v1677_v43 = vpop.xlane.xlu1 %1676  ;;  %v1675_v4 = vpop.xlane.xlu0 %1674 }
 0x492   : > { %2243 = vrsqrt.f32 %v1716_v26  ;;  %v1702_v45 = vmul.f32 0.03125, %v1677_v43  ;;  %v1701_v29 = vmul.f32 0.03125, %v1675_v4 }
 0x493   : > { %2245 = vrsqrt.f32 %v1715_v18 }
 0x494   : > { %v1718_v48 = vadd.f32 1e-05, %v1702_v45  ;;  %v1717_v50 = vadd.f32 1e-05, %v1701_v29 }
 0x495   : > { %v1681_v34 = vpop.xlane.xlu1 %1680  ;;  %v1679_v52 = vpop.xlane.xlu0 %1678 }
 0x496   : > { %2247 = vrsqrt.f32 %v1718_v48  ;;  %v1704_v36 = vmul.f32 0.03125, %v1681_v34  ;;  %v1703_v55 = vmul.f32 0.03125, %v1679_v52 }
 0x497   : > { %v2238_v59 = vpop.eup %2237  ;;  %2249 = vrsqrt.f32 %v1717_v50 }
 0x498   : > { %v1744_v6 = vmul.f32 %v2238_v59, %v2949_v53  ;;  %v1720_v42 = vadd.f32 1e-05, %v1704_v36  ;;  %v1719_v3 = vadd.f32 1e-05, %v1703_v55 }
 0x499   : > { %v1685_v47 = vpop.xlane.xlu1 %1684  ;;  %v1683_v39 = vpop.xlane.xlu0 %1682 }
 0x49a   : > { %v1767_v1 = vmul.f32 %v3049_v38, %v1744_v6  ;;  %2251 = vrsqrt.f32 %v1720_v42  ;;  %v1706_v44 = vmul.f32 0.03125, %v1685_v47  ;;  %v1705_v40 = vmul.f32 0.03125, %v1683_v39 }
 0x49b   : > { %v2240_v14 = vpop.eup %2239  ;;  %2253 = vrsqrt.f32 %v1719_v3 }
 0x49c   : > { %v2242_v33 = vpop.eup %2241  ;;  %v1791_v10 = vadd.f32 %v3052_v17, %v1767_v1  ;;  %v1746_v60 = vmul.f32 %v2240_v14, %v2959_v11  ;;  %v1722_v23 = vadd.f32 1e-05, %v1706_v44  ;;  %v1721_v9 = vadd.f32 1e-05, %v1705_v40 }
 0x49d   : > { %v1745_v53 = vmul.f32 %v2242_v33, %v2956_v61  ;;  %v1689_v28 = vpop.xlane.xlu1 %1688  ;;  %v1687_v41 = vpop.xlane.xlu0 %1686 }
 0x49e   : > { %1807 = vst [vmem:[%s2469_s11] sm:$0xff] %v1791_v10  ;;  %v1769_v31 = vmul.f32 %v3049_v38, %v1746_v60  ;;  %2255 = vrsqrt.f32 %v1722_v23  ;;  %v1708_v0 = vmul.f32 0.03125, %v1689_v28  ;;  %v1707_v12 = vmul.f32 0.03125, %v1687_v41 }
 0x49f   : > { %v2244_v20 = vpop.eup %2243  ;;  %v1768_v63 = vmul.f32 %v3049_v38, %v1745_v53  ;;  %2257 = vrsqrt.f32 %v1721_v9 }
 0x4a0   : > { %v2246_v15 = vpop.eup %2245  ;;  %v1793_v11 = vadd.f32 %v3052_v17, %v1769_v31  ;;  %v1748_v56 = vmul.f32 %v2244_v20, %v2968_v58  ;;  %v1724_v61 = vadd.f32 1e-05, %v1708_v0  ;;  %v1723_v21 = vadd.f32 1e-05, %v1707_v12 }
 0x4a1   : > { %v1792_v2 = vadd.f32 %v3052_v17, %v1768_v63  ;;  %v1747_v54 = vmul.f32 %v2246_v15, %v2971_v62  ;;  %v1693_v16 = vpop.xlane.xlu1 %1692  ;;  %v1691_v13 = vpop.xlane.xlu0 %1690 }
 0x4a2   : > { %1809 = vst [vmem:[%s2469_s11 + $0x10] sm:$0xff] %v1793_v11  ;;  %v1771_v24 = vmul.f32 %v3049_v38, %v1748_v56  ;;  %2259 = vrsqrt.f32 %v1724_v61  ;;  %v1710_v49 = vmul.f32 0.03125, %v1693_v16  ;;  %v1709_v57 = vmul.f32 0.03125, %v1691_v13 }
 0x4a3   : > { %v2248_v25 = vpop.eup %2247  ;;  %1808 = vst [vmem:[%s2469_s11 + $0x8] sm:$0xff] %v1792_v2  ;;  %v1770_v58 = vmul.f32 %v3049_v38, %v1747_v54  ;;  %2261 = vrsqrt.f32 %v1723_v21 }
 0x4a4   : > { %v2250_v26 = vpop.eup %2249  ;;  %v1795_v18 = vadd.f32 %v3052_v17, %v1771_v24  ;;  %v1750_v62 = vmul.f32 %v2248_v25, %v2980_v46  ;;  %v1726_v43 = vadd.f32 1e-05, %v1710_v49  ;;  %v1725_v4 = vadd.f32 1e-05, %v1709_v57 }
 0x4a5   : > { %v1794_v45 = vadd.f32 %v3052_v17, %v1770_v58  ;;  %v1749_v29 = vmul.f32 %v2250_v26, %v2983_v32  ;;  %v1695_v48 = vpop.xlane.xlu0 %1694 }
 0x4a6   : > { %1811 = vst [vmem:[%s2469_s11 + $0x20] sm:$0xff] %v1795_v18  ;;  %v1773_v50 = vmul.f32 %v3049_v38, %v1750_v62  ;;  %2263 = vrsqrt.f32 %v1726_v43  ;;  %v1711_v19 = vmul.f32 0.03125, %v1695_v48 }
 0x4a7   : > { %v2252_v34 = vpop.eup %2251  ;;  %1810 = vst [vmem:[%s2469_s11 + $0x18] sm:$0xff] %v1794_v45  ;;  %v1772_v52 = vmul.f32 %v3049_v38, %v1749_v29  ;;  %2265 = vrsqrt.f32 %v1725_v4 }
 0x4a8   : > { %v2254_v46 = vpop.eup %2253  ;;  %v1797_v36 = vadd.f32 %v3052_v17, %v1773_v50  ;;  %v1752_v55 = vmul.f32 %v2252_v34, %v2992_v37  ;;  %v1727_v32 = vadd.f32 1e-05, %v1711_v19 }
 0x4a9   : > { %v1796_v59 = vadd.f32 %v3052_v17, %v1772_v52  ;;  %v1751_v6 = vmul.f32 %v2254_v46, %v2995_v51 }
 0x4aa   : > { %1813 = vst [vmem:[%s2469_s11 + $0x30] sm:$0xff] %v1797_v36  ;;  %v1775_v42 = vmul.f32 %v3049_v38, %v1752_v55  ;;  %2267 = vrsqrt.f32 %v1727_v32 }
 0x4ab   : > { %v2256_v3 = vpop.eup %2255  ;;  %1812 = vst [vmem:[%s2469_s11 + $0x28] sm:$0xff] %v1796_v59  ;;  %v1774_v47 = vmul.f32 %v3049_v38, %v1751_v6 }
 0x4ac   : > { %v2258_v39 = vpop.eup %2257  ;;  %v1799_v1 = vadd.f32 %v3052_v17, %v1775_v42  ;;  %v1754_v37 = vmul.f32 %v2256_v3, %v3004_v35 }
 0x4ad   : > { %v1798_v44 = vadd.f32 %v3052_v17, %v1774_v47  ;;  %v1753_v40 = vmul.f32 %v2258_v39, %v3007_v22 }
 0x4ae   : > { %1815 = vst [vmem:[%s2469_s11 + $0x40] sm:$0xff] %v1799_v1  ;;  %v1777_v51 = vmul.f32 %v3049_v38, %v1754_v37 }
 0x4af   : > { %v2260_v14 = vpop.eup %2259  ;;  %1814 = vst [vmem:[%s2469_s11 + $0x38] sm:$0xff] %v1798_v44  ;;  %v1776_v33 = vmul.f32 %v3049_v38, %v1753_v40 }
 0x4b0   : > { %v2262_v10 = vpop.eup %2261  ;;  %v1801_v60 = vadd.f32 %v3052_v17, %v1777_v51  ;;  %v1756_v23 = vmul.f32 %v2260_v14, %v3016_v7 }
 0x4b1   : > { %v1800_v35 = vadd.f32 %v3052_v17, %v1776_v33  ;;  %v1755_v9 = vmul.f32 %v2262_v10, %v3019_v8 }
 0x4b2   : > { %1817 = vst [vmem:[%s2469_s11 + $0x50] sm:$0xff] %v1801_v60  ;;  %v1779_v22 = vmul.f32 %v3049_v38, %v1756_v23 }
 0x4b3   : > { %v2264_v53 = vpop.eup %2263  ;;  %1816 = vst [vmem:[%s2469_s11 + $0x48] sm:$0xff] %v1800_v35  ;;  %v1778_v28 = vmul.f32 %v3049_v38, %v1755_v9 }
 0x4b4   : > { %v2266_v41 = vpop.eup %2265  ;;  %v1803_v31 = vadd.f32 %v3052_v17, %v1779_v22  ;;  %v1758_v7 = vmul.f32 %v2264_v53, %v3028_v5 }
 0x4b5   : > { %v1802_v0 = vadd.f32 %v3052_v17, %v1778_v28  ;;  %v1757_v12 = vmul.f32 %v2266_v41, %v3031_v30 }
 0x4b6   : > { %1819 = vst [vmem:[%s2469_s11 + $0x60] sm:$0xff] %v1803_v31  ;;  %v1781_v8 = vmul.f32 %v3049_v38, %v1758_v7 }
 0x4b7   : > { %v2268_v20 = vpop.eup %2267  ;;  %1818 = vst [vmem:[%s2469_s11 + $0x58] sm:$0xff] %v1802_v0  ;;  %v1780_v63 = vmul.f32 %v3049_v38, %v1757_v12 }
 0x4b8   : > { %v1805_v15 = vadd.f32 %v3052_v17, %v1781_v8  ;;  %v1759_v11 = vmul.f32 %v2268_v20, %v3039_v27 }
 0x4b9   : > { %v1804_v56 = vadd.f32 %v3052_v17, %v1780_v63 }
 0x4ba   : > { %1821 = vst [vmem:[%s2469_s11 + $0x70] sm:$0xff] %v1805_v15  ;;  %v1782_v5 = vmul.f32 %v3049_v38, %v1759_v11 }
 0x4bb   : > { %1820 = vst [vmem:[%s2469_s11 + $0x68] sm:$0xff] %v1804_v56 }
 0x4bc   : > { %v1806_v61 = vadd.f32 %v3052_v17, %v1782_v5 }
 0x4be   : > { %1822 = vst [vmem:[%s2469_s11 + $0x78] sm:$0xff] %v1806_v61 }
 0x4bf PF: > { %s16_s27 = sadd.s32 1, %s2323_s27   ;;  %s3146_s21 = smov %s2303_s22 }
 0x4c0   : > { %p13_p1 = scmp.ge.s32.totalorder %s16_s27, 6   ;;  %s3147_s22 = smov %s2416_s10 }
 0x4c1   : > { %s3148_s23 = smov %s2315_s25  ;;  %s3149_s24 = smov %s2319_s26 }
 0x4c2   : > { %s3150_s25 = smov %s3153_s28  ;;  %s3151_s26 = smov %s3157_s29 }
 0x4c3   :  { %15 = sbr.rel (!%p13_p1) target bundleno = 4 (0x4), region = 137 }

// kernel: simple_gat_forward.5
= control target key start
LH: loop header
LB: loop body
LE: loop exit
PB: predicated region body
PF: predicated region fallthrough
CT: control target
= control target key end

     0   :  { %s5684_s0 = inlined_call_operand.vmem [shape: bf16[2,256,128], index: 0, kind: input, shape index: {}]   ;;  %s5685_s1 = inlined_call_operand.vmem [shape: f32[2,256,1], index: 1, kind: input, shape index: {}]   ;;  %s5686_s2 = inlined_call_operand.vmem [shape: f32[2,1,256], index: 2, kind: input, shape index: {}]   ;;  %s5687_s3 = inlined_call_operand.vmem [shape: bf16[256,256], index: 3, kind: input, shape index: {}]   ;;  %s5688_s4 = inlined_call_operand.vmem [shape: f32[1,128], index: 4, kind: input, shape index: {}]   ;;  %s5689_s5 = inlined_call_operand.vmem [shape: f32[1,128], index: 5, kind: input, shape index: {}]   ;;  %s5690_s6 = inlined_call_operand.vmem [shape: f32[256,128], index: 6, kind: output, shape index: {}]  }
   0x1   :  { %5745 = sst [smem:[#allocation57_spill]] %s5684_s0 }
   0x2   :  { %5746 = sst [smem:[#allocation58_spill]] %s5685_s1 }
   0x3   :  { %5747 = sst [smem:[#allocation59_spill]] %s5686_s2 }
   0x4   :  { %s4115_s21 = smov 0   ;;  %s4117_s22 = smov 0  }
   0x5   :  { %s4119_s23 = smov 0   ;;  %s4121_s24 = smov 0  }
   0x6   :  { %s4123_s25 = smov 0   ;;  %s4125_s26 = smov 0  }
   0x7   :  { %s4127_s27 = smov 0   ;;  %s4129_s28 = smov 0  }
   0x8   :  { %s4131_s29 = smov 0   ;;  %s4133_s30 = smov 0  }
   0x9   :  { %s4135_s7 = smov 0  }
   0xa LB: > { %s25_s8 = sadd.s32 1, %s4065_s29  ;;  %s28_s9 = sadd.s32 1, %s4069_s30  ;;  %s4073_s7 = sphi %s4135_s7, %s16_s7   ;;  %s4069_s30 = sphi %s4133_s30, %s5897_s30   ;;  %s4065_s29 = sphi %s4131_s29, %s5896_s29   ;;  %s4061_s28 = sphi %s4129_s28, %s5895_s28   ;;  %s4057_s27 = sphi %s4127_s27, %s5894_s27   ;;  %s4053_s26 = sphi %s4125_s26, %s5893_s26   ;;  %s4049_s25 = sphi %s4123_s25, %s5892_s25   ;;  %s4045_s24 = sphi %s4121_s24, %s5891_s24   ;;  %s4041_s23 = sphi %s4119_s23, %s5890_s23   ;;  %s4037_s22 = sphi %s4117_s22, %s5889_s22   ;;  %s4033_s21 = sphi %s4115_s21, %s5888_s21  }
   0xb   : > { %p26_p0 = scmp.ge.s32.totalorder %s25_s8, 2  ;;  %s35_s10 = sadd.s32 1, %s4053_s26 }
   0xc   : > { %p42_p1 = scmp.ne.s32.totalorder %s4053_s26, %s4049_s25  ;;  %p43_p2 = scmp.eq.s32.totalorder %s4073_s7, 0 }
   0xd   : > { %s5899_s8 = smov (%p26_p0, %s25_s8), 0  ;;  %s5901_s9 = smov (!%p26_p0, %s28_s9), %s4069_s30 }
   0xe   : > { %5748 = sst [smem:[#allocation9_spill]] %s5899_s8  ;;  %s32_s11 = ssub.s32 %s4065_s29, %s5899_s8 }
   0xf   : > { %p4183_p3 = por %p43_p2, %p42_p1  ;;  %p30_p4 = scmp.ge.s32.totalorder %s5901_s9, 2 }
  0x10   : > { %p33_p5 = scmp.eq.s32.totalorder %s32_s11, 0  ;;  %s61_s13 = sadd.s32 1, %s4045_s24 }
  0x11   : > { %p68_p6 = scmp.ne.s32.totalorder %s4045_s24, %s4041_s23  ;;  %s5903_s9 = smov (%p30_p4, %s5901_s9), 0 }
  0x12   : > { %5750 = sst [smem:[#allocation10_spill]] %s5903_s9  ;;  %s58_s15 = ssub.s32 %s4069_s30, %s5903_s9 }
  0x13   : > { %s4193_s14 = scalar_select %p33_p5, %s4053_s26, %s35_s10  }
  0x14   : > { %p4199_p7 = por %p68_p6, %p43_p2  ;;  %p59_p8 = scmp.eq.s32.totalorder %s58_s15, 0 }
  0x15   : > { %s112_s17 = sor.u32 %s58_s15, %s32_s11  ;;  %s115_s18 = sadd.s32 1, %s4037_s22 }
  0x16   : > { %p113_p9 = scmp.eq.s32.totalorder %s112_s17, 0  ;;  %p122_p10 = scmp.ne.s32.totalorder %s4037_s22, %s4033_s21 }
  0x17   : > { %s4205_s19 = scalar_select %p59_p8, %s4045_s24, %s61_s13  }
  0x18   : > { %s4208_s20 = scalar_select %p113_p9, %s4037_s22, %s115_s18  }
  0x19   : > { %p4214_p11 = por %p122_p10, %p43_p2  ;;  %p3435_p12 = scmp.ge.s32.totalorder %s4073_s7, 4 }
  0x1b   : > { %222 = sbr.rel (%p3435_p12) target bundleno = 102 (0x66), region = 24 }
  0x20   : > { %225 = sbr.rel (!%p4183_p3) target bundleno = 50 (0x32), region = 28  ;;  %s227_s10 = sand.u32 (%p4183_p3), 1, %s4053_s26  }
  0x21   : > { %s3512_s11 = sshll.u32 (%p4183_p3), %s4065_s29, 6  ;;  %s3436_s13 = sshll.u32 (%p4183_p3), %s227_s10, 7 }
  0x22   : > { %s5753_s0 = sld [smem:[#allocation57_spill]] (%p4183_p3)  ;;  %s229_s9 = scalar_lea.vmem (%p4183_p3), [#allocation5], %s3436_s13 }
  0x28   : > { %s4226_s18 = scalar_lea.vmem %s5753_s0, %s3512_s11 }
  0x29   : > { %v249_v0 = vld [vmem:[%s4226_s18] sm:$0xff]   ;;  %v253_v1 = vld [vmem:[%s4226_s18 + $0x8] sm:$0xff]   ;;  %v257_v2 = vld [vmem:[%s4226_s18 + $0x10] sm:$0xff]  }
  0x2a   : > { %250 = vst [vmem:[%s229_s9] sm:$0xff] %v249_v0   ;;  %254 = vst [vmem:[%s229_s9 + $0x8] sm:$0xff] %v253_v1   ;;  %v261_v3 = vld [vmem:[%s4226_s18 + $0x18] sm:$0xff]   ;;  %v265_v4 = vld [vmem:[%s4226_s18 + $0x20] sm:$0xff]  }
  0x2b   : > { %258 = vst [vmem:[%s229_s9 + $0x10] sm:$0xff] %v257_v2   ;;  %v269_v5 = vld [vmem:[%s4226_s18 + $0x28] sm:$0xff]   ;;  %262 = vst [vmem:[%s229_s9 + $0x18] sm:$0xff] %v261_v3   ;;  %v273_v6 = vld [vmem:[%s4226_s18 + $0x30] sm:$0xff]  }
  0x2c   : > { %266 = vst [vmem:[%s229_s9 + $0x20] sm:$0xff] %v265_v4   ;;  %270 = vst [vmem:[%s229_s9 + $0x28] sm:$0xff] %v269_v5   ;;  %v277_v7 = vld [vmem:[%s4226_s18 + $0x38] sm:$0xff]   ;;  %v281_v8 = vld [vmem:[%s4226_s18 + $0x80] sm:$0xff]  }
  0x2d   : > { %274 = vst [vmem:[%s229_s9 + $0x30] sm:$0xff] %v273_v6   ;;  %278 = vst [vmem:[%s229_s9 + $0x38] sm:$0xff] %v277_v7   ;;  %v285_v9 = vld [vmem:[%s4226_s18 + $0x88] sm:$0xff]   ;;  %v289_v10 = vld [vmem:[%s4226_s18 + $0x90] sm:$0xff]  }
  0x2e   : > { %282 = vst [vmem:[%s229_s9 + $0x40] sm:$0xff] %v281_v8   ;;  %v293_v11 = vld [vmem:[%s4226_s18 + $0x98] sm:$0xff]   ;;  %286 = vst [vmem:[%s229_s9 + $0x48] sm:$0xff] %v285_v9   ;;  %v297_v12 = vld [vmem:[%s4226_s18 + $0xa0] sm:$0xff]  }
  0x2f   : > { %290 = vst [vmem:[%s229_s9 + $0x50] sm:$0xff] %v289_v10   ;;  %294 = vst [vmem:[%s229_s9 + $0x58] sm:$0xff] %v293_v11   ;;  %v301_v13 = vld [vmem:[%s4226_s18 + $0xa8] sm:$0xff]   ;;  %v305_v14 = vld [vmem:[%s4226_s18 + $0xb0] sm:$0xff]  }
  0x30   : > { %298 = vst [vmem:[%s229_s9 + $0x60] sm:$0xff] %v297_v12   ;;  %302 = vst [vmem:[%s229_s9 + $0x68] sm:$0xff] %v301_v13   ;;  %v309_v15 = vld [vmem:[%s4226_s18 + $0xb8] sm:$0xff]  }
  0x31   : > { %306 = vst [vmem:[%s229_s9 + $0x70] sm:$0xff] %v305_v14   ;;  %310 = vst [vmem:[%s229_s9 + $0x78] sm:$0xff] %v309_v15  }
  0x32 PF: > { %400 = sbr.rel (!%p4199_p7) target bundleno = 76 (0x4c), region = 69  ;;  %s402_s10 = sand.u32 (%p4199_p7), 1, %s4045_s24  }
  0x33   : > { %s3513_s11 = sshll.u32 (%p4199_p7), %s4069_s30, 7  ;;  %s3439_s13 = sshll.u32 (%p4199_p7), %s402_s10, 8 }
  0x34   : > { %s5754_s1 = sld [smem:[#allocation58_spill]] (%p4199_p7)  ;;  %s4256_s9 = scalar_lea.vmem (%p4199_p7), [#allocation6], %s3439_s13 }
  0x3a   : > { %s4251_s0 = scalar_lea.vmem %s5754_s1, %s3513_s11 }
  0x3b   : > { %v498_v16 = vld [vmem:[%s4251_s0] sm:$0xff]  ;;  %v500_v17 = vld [vmem:[%s4251_s0 + $0x8] sm:$0xff]  ;;  %v502_v18 = vld [vmem:[%s4251_s0 + $0x10] sm:$0xff] }
  0x3c   : > { %499 = vst [vmem:[%s4256_s9] sm:$0xff] %v498_v16  ;;  %501 = vst [vmem:[%s4256_s9 + $0x8] sm:$0xff] %v500_v17  ;;  %v504_v19 = vld [vmem:[%s4251_s0 + $0x18] sm:$0xff]  ;;  %v506_v20 = vld [vmem:[%s4251_s0 + $0x20] sm:$0xff] }
  0x3d   : > { %503 = vst [vmem:[%s4256_s9 + $0x10] sm:$0xff] %v502_v18  ;;  %v508_v21 = vld [vmem:[%s4251_s0 + $0x28] sm:$0xff]  ;;  %505 = vst [vmem:[%s4256_s9 + $0x18] sm:$0xff] %v504_v19  ;;  %v510_v22 = vld [vmem:[%s4251_s0 + $0x30] sm:$0xff] }
  0x3e   : > { %507 = vst [vmem:[%s4256_s9 + $0x20] sm:$0xff] %v506_v20  ;;  %509 = vst [vmem:[%s4256_s9 + $0x28] sm:$0xff] %v508_v21  ;;  %v512_v23 = vld [vmem:[%s4251_s0 + $0x38] sm:$0xff]  ;;  %v514_v24 = vld [vmem:[%s4251_s0 + $0x40] sm:$0xff] }
  0x3f   : > { %511 = vst [vmem:[%s4256_s9 + $0x30] sm:$0xff] %v510_v22  ;;  %513 = vst [vmem:[%s4256_s9 + $0x38] sm:$0xff] %v512_v23  ;;  %v516_v25 = vld [vmem:[%s4251_s0 + $0x48] sm:$0xff]  ;;  %v518_v26 = vld [vmem:[%s4251_s0 + $0x50] sm:$0xff] }
  0x40   : > { %515 = vst [vmem:[%s4256_s9 + $0x40] sm:$0xff] %v514_v24  ;;  %v520_v27 = vld [vmem:[%s4251_s0 + $0x58] sm:$0xff]  ;;  %517 = vst [vmem:[%s4256_s9 + $0x48] sm:$0xff] %v516_v25  ;;  %v522_v28 = vld [vmem:[%s4251_s0 + $0x60] sm:$0xff] }
  0x41   : > { %519 = vst [vmem:[%s4256_s9 + $0x50] sm:$0xff] %v518_v26  ;;  %521 = vst [vmem:[%s4256_s9 + $0x58] sm:$0xff] %v520_v27  ;;  %v524_v29 = vld [vmem:[%s4251_s0 + $0x68] sm:$0xff]  ;;  %v526_v30 = vld [vmem:[%s4251_s0 + $0x70] sm:$0xff] }
  0x42   : > { %523 = vst [vmem:[%s4256_s9 + $0x60] sm:$0xff] %v522_v28  ;;  %525 = vst [vmem:[%s4256_s9 + $0x68] sm:$0xff] %v524_v29  ;;  %v528_v31 = vld [vmem:[%s4251_s0 + $0x78] sm:$0xff]  ;;  %v530_v32 = vld [vmem:[%s4251_s0 + $0x100] sm:$0xff] }
  0x43   : > { %527 = vst [vmem:[%s4256_s9 + $0x70] sm:$0xff] %v526_v30  ;;  %v532_v33 = vld [vmem:[%s4251_s0 + $0x108] sm:$0xff]  ;;  %529 = vst [vmem:[%s4256_s9 + $0x78] sm:$0xff] %v528_v31  ;;  %v534_v34 = vld [vmem:[%s4251_s0 + $0x110] sm:$0xff] }
  0x44   : > { %531 = vst [vmem:[%s4256_s9 + $0x80] sm:$0xff] %v530_v32  ;;  %533 = vst [vmem:[%s4256_s9 + $0x88] sm:$0xff] %v532_v33  ;;  %v536_v35 = vld [vmem:[%s4251_s0 + $0x118] sm:$0xff]  ;;  %v538_v36 = vld [vmem:[%s4251_s0 + $0x120] sm:$0xff] }
  0x45   : > { %535 = vst [vmem:[%s4256_s9 + $0x90] sm:$0xff] %v534_v34  ;;  %537 = vst [vmem:[%s4256_s9 + $0x98] sm:$0xff] %v536_v35  ;;  %v540_v37 = vld [vmem:[%s4251_s0 + $0x128] sm:$0xff]  ;;  %v542_v38 = vld [vmem:[%s4251_s0 + $0x130] sm:$0xff] }
  0x46   : > { %539 = vst [vmem:[%s4256_s9 + $0xa0] sm:$0xff] %v538_v36  ;;  %v544_v39 = vld [vmem:[%s4251_s0 + $0x138] sm:$0xff]  ;;  %541 = vst [vmem:[%s4256_s9 + $0xa8] sm:$0xff] %v540_v37  ;;  %v546_v40 = vld [vmem:[%s4251_s0 + $0x140] sm:$0xff] }
  0x47   : > { %543 = vst [vmem:[%s4256_s9 + $0xb0] sm:$0xff] %v542_v38  ;;  %545 = vst [vmem:[%s4256_s9 + $0xb8] sm:$0xff] %v544_v39  ;;  %v548_v41 = vld [vmem:[%s4251_s0 + $0x148] sm:$0xff]  ;;  %v550_v42 = vld [vmem:[%s4251_s0 + $0x150] sm:$0xff] }
  0x48   : > { %547 = vst [vmem:[%s4256_s9 + $0xc0] sm:$0xff] %v546_v40  ;;  %549 = vst [vmem:[%s4256_s9 + $0xc8] sm:$0xff] %v548_v41  ;;  %v552_v43 = vld [vmem:[%s4251_s0 + $0x158] sm:$0xff]  ;;  %v554_v44 = vld [vmem:[%s4251_s0 + $0x160] sm:$0xff] }
  0x49   : > { %551 = vst [vmem:[%s4256_s9 + $0xd0] sm:$0xff] %v550_v42  ;;  %v556_v45 = vld [vmem:[%s4251_s0 + $0x168] sm:$0xff]  ;;  %553 = vst [vmem:[%s4256_s9 + $0xd8] sm:$0xff] %v552_v43  ;;  %v558_v46 = vld [vmem:[%s4251_s0 + $0x170] sm:$0xff] }
  0x4a   : > { %555 = vst [vmem:[%s4256_s9 + $0xe0] sm:$0xff] %v554_v44  ;;  %557 = vst [vmem:[%s4256_s9 + $0xe8] sm:$0xff] %v556_v45  ;;  %v560_v47 = vld [vmem:[%s4251_s0 + $0x178] sm:$0xff] }
  0x4b   : > { %559 = vst [vmem:[%s4256_s9 + $0xf0] sm:$0xff] %v558_v46  ;;  %561 = vst [vmem:[%s4256_s9 + $0xf8] sm:$0xff] %v560_v47 }
  0x4c PF: > { %567 = sbr.rel (!%p4183_p3) target bundleno = 86 (0x56), region = 107  ;;  %s569_s16 = sand.u32 (%p4183_p3), 1, %s4053_s26  }
  0x4d   : > { %s5755_s2 = sld [smem:[#allocation59_spill]] (%p4183_p3)  ;;  %s3442_s13 = sshll.u32 (%p4183_p3), %s569_s16, 1 }
  0x4e   : > { %s571_s15 = scalar_lea.vmem (%p4183_p3), [#allocation7], %s3442_s13 }
  0x53   : > { %s572_s11 = scalar_lea.vmem %s5755_s2, %s4065_s29 }
  0x54   : > { %v589_v48 = vld [vmem:[%s572_s11] sm:$0x1]  ;;  %v591_v49 = vld [vmem:[%s572_s11 + $0x2] sm:$0x1] }
  0x55   : > { %590 = vst [vmem:[%s571_s15] sm:$0x1] %v589_v48  ;;  %592 = vst [vmem:[%s571_s15 + $0x1] sm:$0x1] %v591_v49 }
  0x56 PF: > { %612 = sbr.rel (!%p4214_p11) target bundleno = 102 (0x66), region = 141  ;;  %s614_s0 = sand.u32 (%p4214_p11), 1, %s4037_s22  }
  0x57   : > { %s3514_s12 = sshll.u32 (%p4214_p11), %s4069_s30, 5  ;;  %s3443_s17 = sshll.u32 (%p4214_p11), %s614_s0, 6 }
  0x58   : > { %s619_s9 = sadd.s32 (%p4214_p11), %s4065_s29, %s3514_s12  ;;  %s616_s8 = scalar_lea.vmem (%p4214_p11), [#allocation8], %s3443_s17 }
  0x59   : > { %s3446_s1 = sshll.u32 (%p4214_p11), %s619_s9, 2 }
  0x5a   : > { %s4334_s16 = scalar_lea.vmem (%p4214_p11), %s5687_s3, %s3446_s1 }
  0x5b   : > { %v638_v50 = vld [vmem:[%s4334_s16] sm:$0xf]  ;;  %v640_v51 = vld [vmem:[%s4334_s16 + $0x8] sm:$0xf]  ;;  %v642_v52 = vld [vmem:[%s4334_s16 + $0x10] sm:$0xf] }
  0x5c   : > { %639 = vst [vmem:[%s616_s8] sm:$0xf] %v638_v50  ;;  %641 = vst [vmem:[%s616_s8 + $0x4] sm:$0xf] %v640_v51  ;;  %v644_v53 = vld [vmem:[%s4334_s16 + $0x18] sm:$0xf] }
  0x5d   : > { %643 = vst [vmem:[%s616_s8 + $0x8] sm:$0xf] %v642_v52  ;;  %v646_v54 = vld [vmem:[%s4334_s16 + $0x20] sm:$0xf]  ;;  %v648_v55 = vld [vmem:[%s4334_s16 + $0x28] sm:$0xf] }
  0x5e   : > { %645 = vst [vmem:[%s616_s8 + $0xc] sm:$0xf] %v644_v53  ;;  %647 = vst [vmem:[%s616_s8 + $0x10] sm:$0xf] %v646_v54  ;;  %v650_v56 = vld [vmem:[%s4334_s16 + $0x30] sm:$0xf] }
  0x5f   : > { %649 = vst [vmem:[%s616_s8 + $0x14] sm:$0xf] %v648_v55  ;;  %v652_v57 = vld [vmem:[%s4334_s16 + $0x38] sm:$0xf]  ;;  %v654_v58 = vld [vmem:[%s4334_s16 + $0x40] sm:$0xf] }
  0x60   : > { %651 = vst [vmem:[%s616_s8 + $0x18] sm:$0xf] %v650_v56  ;;  %653 = vst [vmem:[%s616_s8 + $0x1c] sm:$0xf] %v652_v57  ;;  %v656_v59 = vld [vmem:[%s4334_s16 + $0x48] sm:$0xf] }
  0x61   : > { %655 = vst [vmem:[%s616_s8 + $0x20] sm:$0xf] %v654_v58  ;;  %v658_v60 = vld [vmem:[%s4334_s16 + $0x50] sm:$0xf]  ;;  %v660_v61 = vld [vmem:[%s4334_s16 + $0x58] sm:$0xf] }
  0x62   : > { %657 = vst [vmem:[%s616_s8 + $0x24] sm:$0xf] %v656_v59  ;;  %659 = vst [vmem:[%s616_s8 + $0x28] sm:$0xf] %v658_v60  ;;  %v662_v62 = vld [vmem:[%s4334_s16 + $0x60] sm:$0xf] }
  0x63   : > { %661 = vst [vmem:[%s616_s8 + $0x2c] sm:$0xf] %v660_v61  ;;  %v664_v63 = vld [vmem:[%s4334_s16 + $0x68] sm:$0xf]  ;;  %v666_v0 = vld [vmem:[%s4334_s16 + $0x70] sm:$0xf] }
  0x64   : > { %663 = vst [vmem:[%s616_s8 + $0x30] sm:$0xf] %v662_v62  ;;  %665 = vst [vmem:[%s616_s8 + $0x34] sm:$0xf] %v664_v63  ;;  %v668_v1 = vld [vmem:[%s4334_s16 + $0x78] sm:$0xf] }
  0x65   : > { %667 = vst [vmem:[%s616_s8 + $0x38] sm:$0xf] %v666_v0  ;;  %669 = vst [vmem:[%s616_s8 + $0x3c] sm:$0xf] %v668_v1 }
  0x66 PF: > { %p3447_p13 = scmp.ge.s32.totalorder %s4073_s7, 1  ;;  %p724_p0 = scmp.lt.s32.totalorder %s4073_s7, 5 }
  0x68   : > { %p725_p1 = pnand %p3447_p13, %p724_p0 }
  0x6a   : > { %728 = sbr.rel (%p725_p1) target bundleno = 1391 (0x56f), region = 182 }
  0x6f   : > { %s731_s1 = sand.u32 1, %s4049_s25   ;;  %s738_s11 = sand.u32 1, %s4041_s23  }
  0x70   : > { %s3448_s13 = sshll.u32 %s731_s1, 7  ;;  %s3449_s15 = sshll.u32 %s738_s11, 8 }
  0x71   : > { %s4356_s0 = sshll.u32 %s731_s1, 1  ;;  %s752_s12 = sand.u32 1, %s4033_s21  }
  0x72   : > { %s3451_s17 = sshll.u32 %s752_s12, 6  ;;  %s3452_s9 = sshll.u32 %s4061_s28, 4 }
  0x73   : > { %p797_p2 = scmp.lt.s32.totalorder %s3452_s9, 31  ;;  %s4365_s2 = scalar_lea.vmem [#allocation5], %s3448_s13 }
  0x74   : > { %s4367_s25 = scalar_lea.vmem [#allocation6], %s3449_s15  ;;  %s747_s23 = scalar_lea.vmem [#allocation7], %s4356_s0 }
  0x75   : > { %s5905_s9 = smov (!%p797_p2, %s3452_s9), 31  ;;  %s4370_s11 = scalar_lea.vmem [#allocation8], %s3451_s17 }
  0x76   : > { %s3453_s18 = sshll.u32 %s5905_s9, 3  ;;  %p3454_p3 = scmp.ne.s32.totalorder %s4057_s27, 0 }
  0x77   : > { %s4363_s8 = scalar_lea.vmem %s5690_s6, %s3453_s18 }
  0x78   : > { %806 = sbr.rel (%p3454_p3) target bundleno = 174 (0xae), region = 202 }
  0x7d   : > { %vm807_vm0 = vcmask 7168   ;;  %v4075_v2 = vmov -1e+30   ;;  %v4076_v3 = vmov 0.0  }
  0x7e   : > { %808 = vst.msk [vmem:[#allocation2] sm:$0xff] %vm807_vm0, %v4075_v2  ;;  %809 = vst.msk [vmem:[#allocation2 + $0x8] sm:$0xff] %vm807_vm0, %v4075_v2 }
  0x7f   : > { %810 = vst.msk [vmem:[#allocation2 + $0x10] sm:$0xff] %vm807_vm0, %v4075_v2  ;;  %811 = vst.msk [vmem:[#allocation2 + $0x18] sm:$0xff] %vm807_vm0, %v4075_v2 }
  0x80   : > { %812 = vst.msk [vmem:[#allocation2 + $0x20] sm:$0xff] %vm807_vm0, %v4075_v2  ;;  %813 = vst.msk [vmem:[#allocation2 + $0x28] sm:$0xff] %vm807_vm0, %v4075_v2 }
  0x81   : > { %814 = vst.msk [vmem:[#allocation2 + $0x30] sm:$0xff] %vm807_vm0, %v4075_v2  ;;  %815 = vst.msk [vmem:[#allocation2 + $0x38] sm:$0xff] %vm807_vm0, %v4075_v2 }
  0x82   : > { %816 = vst.msk [vmem:[#allocation2 + $0x40] sm:$0xff] %vm807_vm0, %v4075_v2  ;;  %817 = vst.msk [vmem:[#allocation2 + $0x48] sm:$0xff] %vm807_vm0, %v4075_v2 }
  0x83   : > { %818 = vst.msk [vmem:[#allocation2 + $0x50] sm:$0xff] %vm807_vm0, %v4075_v2  ;;  %819 = vst.msk [vmem:[#allocation2 + $0x58] sm:$0xff] %vm807_vm0, %v4075_v2 }
  0x84   : > { %820 = vst.msk [vmem:[#allocation2 + $0x60] sm:$0xff] %vm807_vm0, %v4075_v2  ;;  %821 = vst.msk [vmem:[#allocation2 + $0x68] sm:$0xff] %vm807_vm0, %v4075_v2 }
  0x85   : > { %822 = vst.msk [vmem:[#allocation2 + $0x70] sm:$0xff] %vm807_vm0, %v4075_v2  ;;  %823 = vst.msk [vmem:[#allocation2 + $0x78] sm:$0xff] %vm807_vm0, %v4075_v2 }
  0x86   : > { %824 = vst.msk [vmem:[#allocation2 + $0x80] sm:$0xff] %vm807_vm0, %v4075_v2  ;;  %825 = vst.msk [vmem:[#allocation2 + $0x88] sm:$0xff] %vm807_vm0, %v4075_v2 }
  0x87   : > { %826 = vst.msk [vmem:[#allocation2 + $0x90] sm:$0xff] %vm807_vm0, %v4075_v2  ;;  %827 = vst.msk [vmem:[#allocation2 + $0x98] sm:$0xff] %vm807_vm0, %v4075_v2 }
  0x88   : > { %828 = vst.msk [vmem:[#allocation2 + $0xa0] sm:$0xff] %vm807_vm0, %v4075_v2  ;;  %829 = vst.msk [vmem:[#allocation2 + $0xa8] sm:$0xff] %vm807_vm0, %v4075_v2 }
  0x89   : > { %830 = vst.msk [vmem:[#allocation2 + $0xb0] sm:$0xff] %vm807_vm0, %v4075_v2  ;;  %831 = vst.msk [vmem:[#allocation2 + $0xb8] sm:$0xff] %vm807_vm0, %v4075_v2 }
  0x8a   : > { %832 = vst.msk [vmem:[#allocation2 + $0xc0] sm:$0xff] %vm807_vm0, %v4075_v2  ;;  %833 = vst.msk [vmem:[#allocation2 + $0xc8] sm:$0xff] %vm807_vm0, %v4075_v2 }
  0x8b   : > { %834 = vst.msk [vmem:[#allocation2 + $0xd0] sm:$0xff] %vm807_vm0, %v4075_v2  ;;  %835 = vst.msk [vmem:[#allocation2 + $0xd8] sm:$0xff] %vm807_vm0, %v4075_v2 }
  0x8c   : > { %836 = vst.msk [vmem:[#allocation2 + $0xe0] sm:$0xff] %vm807_vm0, %v4075_v2  ;;  %837 = vst.msk [vmem:[#allocation2 + $0xe8] sm:$0xff] %vm807_vm0, %v4075_v2 }
  0x8d   : > { %838 = vst.msk [vmem:[#allocation2 + $0xf0] sm:$0xff] %vm807_vm0, %v4075_v2  ;;  %839 = vst.msk [vmem:[#allocation2 + $0xf8] sm:$0xff] %vm807_vm0, %v4075_v2 }
  0x8e   : > { %840 = vst.msk [vmem:[#allocation3] sm:$0xff] %vm807_vm0, %v4076_v3  ;;  %841 = vst.msk [vmem:[#allocation3 + $0x8] sm:$0xff] %vm807_vm0, %v4076_v3 }
  0x8f   : > { %842 = vst.msk [vmem:[#allocation3 + $0x10] sm:$0xff] %vm807_vm0, %v4076_v3  ;;  %843 = vst.msk [vmem:[#allocation3 + $0x18] sm:$0xff] %vm807_vm0, %v4076_v3 }
  0x90   : > { %844 = vst.msk [vmem:[#allocation3 + $0x20] sm:$0xff] %vm807_vm0, %v4076_v3  ;;  %845 = vst.msk [vmem:[#allocation3 + $0x28] sm:$0xff] %vm807_vm0, %v4076_v3 }
  0x91   : > { %846 = vst.msk [vmem:[#allocation3 + $0x30] sm:$0xff] %vm807_vm0, %v4076_v3  ;;  %847 = vst.msk [vmem:[#allocation3 + $0x38] sm:$0xff] %vm807_vm0, %v4076_v3 }
  0x92   : > { %848 = vst.msk [vmem:[#allocation3 + $0x40] sm:$0xff] %vm807_vm0, %v4076_v3  ;;  %849 = vst.msk [vmem:[#allocation3 + $0x48] sm:$0xff] %vm807_vm0, %v4076_v3 }
  0x93   : > { %850 = vst.msk [vmem:[#allocation3 + $0x50] sm:$0xff] %vm807_vm0, %v4076_v3  ;;  %851 = vst.msk [vmem:[#allocation3 + $0x58] sm:$0xff] %vm807_vm0, %v4076_v3 }
  0x94   : > { %852 = vst.msk [vmem:[#allocation3 + $0x60] sm:$0xff] %vm807_vm0, %v4076_v3  ;;  %853 = vst.msk [vmem:[#allocation3 + $0x68] sm:$0xff] %vm807_vm0, %v4076_v3 }
  0x95   : > { %854 = vst.msk [vmem:[#allocation3 + $0x70] sm:$0xff] %vm807_vm0, %v4076_v3  ;;  %855 = vst.msk [vmem:[#allocation3 + $0x78] sm:$0xff] %vm807_vm0, %v4076_v3 }
  0x96   : > { %856 = vst.msk [vmem:[#allocation3 + $0x80] sm:$0xff] %vm807_vm0, %v4076_v3  ;;  %857 = vst.msk [vmem:[#allocation3 + $0x88] sm:$0xff] %vm807_vm0, %v4076_v3 }
  0x97   : > { %858 = vst.msk [vmem:[#allocation3 + $0x90] sm:$0xff] %vm807_vm0, %v4076_v3  ;;  %859 = vst.msk [vmem:[#allocation3 + $0x98] sm:$0xff] %vm807_vm0, %v4076_v3 }
  0x98   : > { %860 = vst.msk [vmem:[#allocation3 + $0xa0] sm:$0xff] %vm807_vm0, %v4076_v3  ;;  %861 = vst.msk [vmem:[#allocation3 + $0xa8] sm:$0xff] %vm807_vm0, %v4076_v3 }
  0x99   : > { %862 = vst.msk [vmem:[#allocation3 + $0xb0] sm:$0xff] %vm807_vm0, %v4076_v3  ;;  %863 = vst.msk [vmem:[#allocation3 + $0xb8] sm:$0xff] %vm807_vm0, %v4076_v3 }
  0x9a   : > { %864 = vst.msk [vmem:[#allocation3 + $0xc0] sm:$0xff] %vm807_vm0, %v4076_v3  ;;  %865 = vst.msk [vmem:[#allocation3 + $0xc8] sm:$0xff] %vm807_vm0, %v4076_v3 }
  0x9b   : > { %866 = vst.msk [vmem:[#allocation3 + $0xd0] sm:$0xff] %vm807_vm0, %v4076_v3  ;;  %867 = vst.msk [vmem:[#allocation3 + $0xd8] sm:$0xff] %vm807_vm0, %v4076_v3 }
  0x9c   : > { %868 = vst.msk [vmem:[#allocation3 + $0xe0] sm:$0xff] %vm807_vm0, %v4076_v3  ;;  %869 = vst.msk [vmem:[#allocation3 + $0xe8] sm:$0xff] %vm807_vm0, %v4076_v3 }
  0x9d   : > { %870 = vst.msk [vmem:[#allocation3 + $0xf0] sm:$0xff] %vm807_vm0, %v4076_v3  ;;  %871 = vst.msk [vmem:[#allocation3 + $0xf8] sm:$0xff] %vm807_vm0, %v4076_v3 }
  0x9e   : > { %872 = vst [vmem:[#allocation4 + $0xb0] sm:$0xff] %v4076_v3  ;;  %873 = vst [vmem:[#allocation4] sm:$0xff] %v4076_v3 }
  0x9f   : > { %874 = vst [vmem:[#allocation4 + $0xd8] sm:$0xff] %v4076_v3  ;;  %875 = vst [vmem:[#allocation4 + $0x18] sm:$0xff] %v4076_v3 }
  0xa0   : > { %876 = vst [vmem:[#allocation4 + $0x50] sm:$0xff] %v4076_v3  ;;  %877 = vst [vmem:[#allocation4 + $0x68] sm:$0xff] %v4076_v3 }
  0xa1   : > { %878 = vst [vmem:[#allocation4 + $0x30] sm:$0xff] %v4076_v3  ;;  %879 = vst [vmem:[#allocation4 + $0x48] sm:$0xff] %v4076_v3 }
  0xa2   : > { %880 = vst [vmem:[#allocation4 + $0x80] sm:$0xff] %v4076_v3  ;;  %881 = vst [vmem:[#allocation4 + $0x88] sm:$0xff] %v4076_v3 }
  0xa3   : > { %882 = vst [vmem:[#allocation4 + $0xe8] sm:$0xff] %v4076_v3  ;;  %883 = vst [vmem:[#allocation4 + $0xb8] sm:$0xff] %v4076_v3 }
  0xa4   : > { %884 = vst [vmem:[#allocation4 + $0x60] sm:$0xff] %v4076_v3  ;;  %885 = vst [vmem:[#allocation4 + $0xf0] sm:$0xff] %v4076_v3 }
  0xa5   : > { %886 = vst [vmem:[#allocation4 + $0x8] sm:$0xff] %v4076_v3  ;;  %887 = vst [vmem:[#allocation4 + $0x78] sm:$0xff] %v4076_v3 }
  0xa6   : > { %888 = vst [vmem:[#allocation4 + $0x38] sm:$0xff] %v4076_v3  ;;  %889 = vst [vmem:[#allocation4 + $0x58] sm:$0xff] %v4076_v3 }
  0xa7   : > { %890 = vst [vmem:[#allocation4 + $0x40] sm:$0xff] %v4076_v3  ;;  %891 = vst [vmem:[#allocation4 + $0xc8] sm:$0xff] %v4076_v3 }
  0xa8   : > { %892 = vst [vmem:[#allocation4 + $0xe0] sm:$0xff] %v4076_v3  ;;  %893 = vst [vmem:[#allocation4 + $0x90] sm:$0xff] %v4076_v3 }
  0xa9   : > { %894 = vst [vmem:[#allocation4 + $0x70] sm:$0xff] %v4076_v3  ;;  %895 = vst [vmem:[#allocation4 + $0xc0] sm:$0xff] %v4076_v3 }
  0xaa   : > { %896 = vst [vmem:[#allocation4 + $0xa8] sm:$0xff] %v4076_v3  ;;  %897 = vst [vmem:[#allocation4 + $0xd0] sm:$0xff] %v4076_v3 }
  0xab   : > { %898 = vst [vmem:[#allocation4 + $0x10] sm:$0xff] %v4076_v3  ;;  %899 = vst [vmem:[#allocation4 + $0x28] sm:$0xff] %v4076_v3 }
  0xac   : > { %900 = vst [vmem:[#allocation4 + $0xa0] sm:$0xff] %v4076_v3  ;;  %901 = vst [vmem:[#allocation4 + $0xf8] sm:$0xff] %v4076_v3 }
  0xad   : > { %902 = vst [vmem:[#allocation4 + $0x20] sm:$0xff] %v4076_v3  ;;  %903 = vst [vmem:[#allocation4 + $0x98] sm:$0xff] %v4076_v3 }
  0xae PF: > { %v938_v4 = vld [vmem:[%s4367_s25 + $0x10] sm:$0xff]  ;;  %v936_v5 = vld [vmem:[%s4367_s25] sm:$0xff]  ;;  %v4077_v6 = vmov 0   ;;  %v939_v7 = vld [vmem:[%s4367_s25 + $0x18] sm:$0xff]  ;;  %vm1423_vm1 = vcmask 7168   ;;  %p3506_p4 = scmp.ne.s32.totalorder %s4057_s27, 1 }
  0xaf   : > { %3744 = vset.pattern.permute.xlu1 %v4077_v6  ;;  %3743 = vset.pattern.permute.xlu0 %v4077_v6  ;;  %v937_v8 = vld [vmem:[%s4367_s25 + $0x8] sm:$0xff]  ;;  %v940_v10 = vld [vmem:[%s4367_s25 + $0x20] sm:$0xff]  ;;  %v943_v11 = vld [vmem:[%s4367_s25 + $0x38] sm:$0xff] }
  0xb0   : > { %965 = vperm.xlu1 %3744, %v938_v4   ;;  %955 = vperm.xlu0 %3743, %v936_v5   ;;  %v941_v9 = vld [vmem:[%s4367_s25 + $0x28] sm:$0xff]  ;;  %v942_v12 = vld [vmem:[%s4367_s25 + $0x30] sm:$0xff]  ;;  %v944_v14 = vld [vmem:[%s4367_s25 + $0x40] sm:$0xff] }
  0xb1   : > { %v945_v13 = vld [vmem:[%s4367_s25 + $0x48] sm:$0xff]  ;;  %v947_v15 = vld [vmem:[%s4367_s25 + $0x58] sm:$0xff]  ;;  %v946_v16 = vld [vmem:[%s4367_s25 + $0x50] sm:$0xff] }
  0xb2   : > { %v949_v17 = vld [vmem:[%s4367_s25 + $0x68] sm:$0xff]  ;;  %v948_v18 = vld [vmem:[%s4367_s25 + $0x60] sm:$0xff]  ;;  %v951_v19 = vld [vmem:[%s4367_s25 + $0x78] sm:$0xff] }
  0xb3   : > { %v950_v20 = vld [vmem:[%s4367_s25 + $0x70] sm:$0xff]  ;;  %v3464_v21 = vld [vmem:[%s4367_s25 + $0x80] sm:$0xff]  ;;  %v3465_v22 = vld [vmem:[%s4367_s25 + $0x88] sm:$0xff] }
  0xb4   : > { %970 = vperm.xlu1 %3744, %v939_v7   ;;  %960 = vperm.xlu0 %3743, %v937_v8   ;;  %v3466_v23 = vld [vmem:[%s4367_s25 + $0x90] sm:$0xff]  ;;  %v3467_v24 = vld [vmem:[%s4367_s25 + $0x98] sm:$0xff]  ;;  %v3468_v25 = vld [vmem:[%s4367_s25 + $0xa0] sm:$0xff] }
  0xb5   : > { %v3469_v26 = vld [vmem:[%s4367_s25 + $0xa8] sm:$0xff]  ;;  %v3470_v27 = vld [vmem:[%s4367_s25 + $0xb0] sm:$0xff]  ;;  %v3471_v28 = vld [vmem:[%s4367_s25 + $0xb8] sm:$0xff] }
  0xb6   : > { %v3472_v29 = vld [vmem:[%s4367_s25 + $0xc0] sm:$0xff]  ;;  %v3473_v30 = vld [vmem:[%s4367_s25 + $0xc8] sm:$0xff]  ;;  %v3474_v31 = vld [vmem:[%s4367_s25 + $0xd0] sm:$0xff] }
  0xb7   : > { %v3475_v32 = vld [vmem:[%s4367_s25 + $0xd8] sm:$0xff]  ;;  %v3476_v33 = vld [vmem:[%s4367_s25 + $0xe0] sm:$0xff]  ;;  %v3477_v34 = vld [vmem:[%s4367_s25 + $0xe8] sm:$0xff] }
  0xb8   : > { %980 = vperm.xlu1 %3744, %v941_v9   ;;  %975 = vperm.xlu0 %3743, %v940_v10   ;;  %v3478_v35 = vld [vmem:[%s4367_s25 + $0xf0] sm:$0xff]  ;;  %v3479_v36 = vld [vmem:[%s4367_s25 + $0xf8] sm:$0xff]  ;;  %v4535_v37 = vld [vmem:[%s747_s23] ss:$0 sm:$0xff] }
  0xbc   : > { %990 = vperm.xlu1 %3744, %v943_v11   ;;  %985 = vperm.xlu0 %3743, %v942_v12  }
  0xc0   : > { %1000 = vperm.xlu1 %3744, %v945_v13   ;;  %995 = vperm.xlu0 %3743, %v944_v14  }
  0xc4   : > { %1010 = vperm.xlu1 %3744, %v947_v15   ;;  %1005 = vperm.xlu0 %3743, %v946_v16  }
  0xc8   : > { %1020 = vperm.xlu1 %3744, %v949_v17   ;;  %1015 = vperm.xlu0 %3743, %v948_v18  }
  0xcc   : > { %1030 = vperm.xlu1 %3744, %v951_v19   ;;  %1025 = vperm.xlu0 %3743, %v950_v20  }
  0xd0   : > { %1790 = vperm.xlu1 %3744, %v3464_v21   ;;  %1795 = vperm.xlu0 %3743, %v3465_v22  }
  0xd4   : > { %1800 = vperm.xlu1 %3744, %v3466_v23   ;;  %1805 = vperm.xlu0 %3743, %v3467_v24  }
  0xd8   : > { %1810 = vperm.xlu1 %3744, %v3468_v25   ;;  %1815 = vperm.xlu0 %3743, %v3469_v26  }
  0xdc   : > { %1820 = vperm.xlu1 %3744, %v3470_v27   ;;  %1825 = vperm.xlu0 %3743, %v3471_v28  }
  0xe0   : > { %1830 = vperm.xlu1 %3744, %v3472_v29   ;;  %1835 = vperm.xlu0 %3743, %v3473_v30  }
  0xe4   : > { %1840 = vperm.xlu1 %3744, %v3474_v31   ;;  %1845 = vperm.xlu0 %3743, %v3475_v32  }
  0xe8   : > { %1850 = vperm.xlu1 %3744, %v3476_v33   ;;  %1855 = vperm.xlu0 %3743, %v3477_v34   ;;  %v4592_v33 = vld [vmem:[%s747_s23 + $0x1] ss:$0 sm:$0xff] }
  0xec   : > { %1860 = vperm.xlu1 %3744, %v3478_v35   ;;  %1865 = vperm.xlu0 %3743, %v3479_v36  }
 0x12b   : > { %v966_v38 = vpop.permute.xlu1 %965  ;;  %v956_v39 = vpop.permute.xlu0 %955 }
 0x12c   : > { %v1041_v40 = vadd.f32 %v4535_v37, %v966_v38  ;;  %v1039_v41 = vadd.f32 %v4535_v37, %v956_v39 }
 0x12e   : > { %v1055_v42 = vmul.f32 0.2, %v1039_v41  ;;  %v1057_v48 = vmul.f32 0.2, %v1041_v40 }
 0x12f   : > { %v971_v43 = vpop.permute.xlu1 %970  ;;  %v961_v44 = vpop.permute.xlu0 %960 }
 0x130   : > { %v1042_v45 = vadd.f32 %v4535_v37, %v971_v43  ;;  %v1040_v46 = vadd.f32 %v4535_v37, %v961_v44  ;;  %v4541_v47 = vmax.f32 %v1039_v41, %v1055_v42  ;;  %v4546_v55 = vmax.f32 %v1041_v40, %v1057_v48 }
 0x132   : > { %1103 = vmax.xlane.f32.xlu0 %v4541_v47  ;;  %v1056_v49 = vmul.f32 0.2, %v1040_v46  ;;  %v1058_v52 = vmul.f32 0.2, %v1042_v45 }
 0x133   : > { %v981_v50 = vpop.permute.xlu1 %980  ;;  %v976_v51 = vpop.permute.xlu0 %975 }
 0x134   : > { %v1044_v53 = vadd.f32 %v4535_v37, %v981_v50  ;;  %v1043_v54 = vadd.f32 %v4535_v37, %v976_v51  ;;  %v4548_v56 = vmax.f32 %v1040_v46, %v1056_v49  ;;  %v4552_v60 = vmax.f32 %v1042_v45, %v1058_v52 }
 0x136   : > { %1107 = vmax.xlane.f32.xlu0 %v4546_v55  ;;  %1105 = vmax.xlane.f32.xlu1 %v4548_v56  ;;  %v1059_v57 = vmul.f32 0.2, %v1043_v54  ;;  %v1060_v0 = vmul.f32 0.2, %v1044_v53 }
 0x137   : > { %v991_v58 = vpop.permute.xlu1 %990  ;;  %v986_v59 = vpop.permute.xlu0 %985 }
 0x138   : > { %v1046_v61 = vadd.f32 %v4535_v37, %v991_v58  ;;  %v1045_v62 = vadd.f32 %v4535_v37, %v986_v59  ;;  %v4556_v63 = vmax.f32 %v1043_v54, %v1059_v57  ;;  %v4562_v7 = vmax.f32 %v1044_v53, %v1060_v0 }
 0x13a   : > { %1109 = vmax.xlane.f32.xlu0 %v4552_v60  ;;  %1111 = vmax.xlane.f32.xlu1 %v4556_v63  ;;  %v1061_v1 = vmul.f32 0.2, %v1045_v62  ;;  %v1062_v4 = vmul.f32 0.2, %v1046_v61 }
 0x13b   : > { %v1001_v2 = vpop.permute.xlu1 %1000  ;;  %v996_v3 = vpop.permute.xlu0 %995 }
 0x13c   : > { %v1048_v5 = vadd.f32 %v4535_v37, %v1001_v2  ;;  %v1047_v6 = vadd.f32 %v4535_v37, %v996_v3  ;;  %v4564_v8 = vmax.f32 %v1045_v62, %v1061_v1  ;;  %v4568_v12 = vmax.f32 %v1046_v61, %v1062_v4 }
 0x13e   : > { %1113 = vmax.xlane.f32.xlu0 %v4562_v7  ;;  %1115 = vmax.xlane.f32.xlu1 %v4564_v8  ;;  %v1063_v9 = vmul.f32 0.2, %v1047_v6  ;;  %v1064_v16 = vmul.f32 0.2, %v1048_v5 }
 0x13f   : > { %v1011_v10 = vpop.permute.xlu1 %1010  ;;  %v1006_v11 = vpop.permute.xlu0 %1005 }
 0x140   : > { %v1050_v13 = vadd.f32 %v4535_v37, %v1011_v10  ;;  %v1049_v14 = vadd.f32 %v4535_v37, %v1006_v11  ;;  %v4572_v15 = vmax.f32 %v1047_v6, %v1063_v9  ;;  %v4578_v23 = vmax.f32 %v1048_v5, %v1064_v16 }
 0x142   : > { %1117 = vmax.xlane.f32.xlu0 %v4568_v12  ;;  %1119 = vmax.xlane.f32.xlu1 %v4572_v15  ;;  %v1065_v17 = vmul.f32 0.2, %v1049_v14  ;;  %v1066_v20 = vmul.f32 0.2, %v1050_v13 }
 0x143   : > { %v1021_v18 = vpop.permute.xlu1 %1020  ;;  %v1016_v19 = vpop.permute.xlu0 %1015 }
 0x144   : > { %v1052_v21 = vadd.f32 %v4535_v37, %v1021_v18  ;;  %v1051_v22 = vadd.f32 %v4535_v37, %v1016_v19  ;;  %v4580_v24 = vmax.f32 %v1049_v14, %v1065_v17  ;;  %v4584_v28 = vmax.f32 %v1050_v13, %v1066_v20 }
 0x146   : > { %1121 = vmax.xlane.f32.xlu0 %v4578_v23  ;;  %1123 = vmax.xlane.f32.xlu1 %v4580_v24  ;;  %v1067_v25 = vmul.f32 0.2, %v1051_v22  ;;  %v1068_v32 = vmul.f32 0.2, %v1052_v21 }
 0x147   : > { %v1031_v26 = vpop.permute.xlu1 %1030  ;;  %v1026_v27 = vpop.permute.xlu0 %1025 }
 0x148   : > { %v1054_v29 = vadd.f32 %v4535_v37, %v1031_v26  ;;  %v1053_v30 = vadd.f32 %v4535_v37, %v1026_v27  ;;  %v4588_v31 = vmax.f32 %v1051_v22, %v1067_v25  ;;  %v4598_v41 = vmax.f32 %v1052_v21, %v1068_v32 }
 0x14a   : > { %1125 = vmax.xlane.f32.xlu0 %v4584_v28  ;;  %1127 = vmax.xlane.f32.xlu1 %v4588_v31  ;;  %v1069_v34 = vmul.f32 0.2, %v1053_v30  ;;  %v1070_v38 = vmul.f32 0.2, %v1054_v29 }
 0x14b   : > { %v1791_v35 = vpop.permute.xlu1 %1790  ;;  %v1796_v36 = vpop.permute.xlu0 %1795 }
 0x14c   : > { %v1874_v39 = vadd.f32 %v4592_v33, %v1791_v35  ;;  %v1875_v40 = vadd.f32 %v4592_v33, %v1796_v36  ;;  %v4600_v37 = vmax.f32 %v1053_v30, %v1069_v34  ;;  %v4604_v45 = vmax.f32 %v1054_v29, %v1070_v38 }
 0x14e   : > { %1129 = vmax.xlane.f32.xlu0 %v4598_v41  ;;  %1131 = vmax.xlane.f32.xlu1 %v4600_v37  ;;  %v1890_v42 = vmul.f32 0.2, %v1874_v39  ;;  %v1891_v50 = vmul.f32 0.2, %v1875_v40 }
 0x14f   : > { %v1801_v43 = vpop.permute.xlu1 %1800  ;;  %v1806_v44 = vpop.permute.xlu0 %1805 }
 0x150   : > { %v1876_v46 = vadd.f32 %v4592_v33, %v1801_v43  ;;  %v1877_v48 = vadd.f32 %v4592_v33, %v1806_v44  ;;  %v4608_v49 = vmax.f32 %v1874_v39, %v1890_v42  ;;  %v4614_v59 = vmax.f32 %v1875_v40, %v1891_v50 }
 0x152   : > { %1133 = vmax.xlane.f32.xlu0 %v4604_v45  ;;  %1939 = vmax.xlane.f32.xlu1 %v4608_v49  ;;  %v1893_v51 = vmul.f32 0.2, %v1877_v48  ;;  %v1892_v54 = vmul.f32 0.2, %v1876_v46 }
 0x153   : > { %v1811_v52 = vpop.permute.xlu1 %1810  ;;  %v1816_v53 = vpop.permute.xlu0 %1815 }
 0x154   : > { %v1878_v57 = vadd.f32 %v4592_v33, %v1811_v52  ;;  %v1879_v58 = vadd.f32 %v4592_v33, %v1816_v53  ;;  %v4616_v61 = vmax.f32 %v1877_v48, %v1893_v51  ;;  %v4620_v2 = vmax.f32 %v1876_v46, %v1892_v54 }
 0x156   : > { %1941 = vmax.xlane.f32.xlu0 %v4614_v59  ;;  %1945 = vmax.xlane.f32.xlu1 %v4616_v61  ;;  %v1895_v62 = vmul.f32 0.2, %v1879_v58  ;;  %v1894_v6 = vmul.f32 0.2, %v1878_v57 }
 0x157   : > { %v1821_v0 = vpop.permute.xlu1 %1820  ;;  %v1826_v1 = vpop.permute.xlu0 %1825 }
 0x158   : > { %v1880_v3 = vadd.f32 %v4592_v33, %v1821_v0  ;;  %v1881_v4 = vadd.f32 %v4592_v33, %v1826_v1  ;;  %v4624_v5 = vmax.f32 %v1879_v58, %v1895_v62  ;;  %v4630_v17 = vmax.f32 %v1878_v57, %v1894_v6  ;;  %v4670_v0 = vld [vmem:[#allocation2] sm:$0xff]  ;;  %v4676_v6 = vld [vmem:[#allocation2 + $0x8] sm:$0xff] }
 0x15a   : > { %1943 = vmax.xlane.f32.xlu0 %v4620_v2  ;;  %1949 = vmax.xlane.f32.xlu1 %v4624_v5  ;;  %v1897_v9 = vmul.f32 0.2, %v1881_v4  ;;  %v1896_v13 = vmul.f32 0.2, %v1880_v3 }
 0x15b   : > { %v1831_v10 = vpop.permute.xlu1 %1830  ;;  %v1836_v11 = vpop.permute.xlu0 %1835 }
 0x15c   : > { %v1882_v14 = vadd.f32 %v4592_v33, %v1831_v10  ;;  %v1883_v16 = vadd.f32 %v4592_v33, %v1836_v11  ;;  %v4632_v18 = vmax.f32 %v1881_v4, %v1897_v9  ;;  %v4636_v22 = vmax.f32 %v1880_v3, %v1896_v13  ;;  %v3746_v3 = vld [vmem:[%s4365_s2 + $0x30] sm:$0xff]  }
 0x15d   : > { %v4678_v9 = vld [vmem:[#allocation2 + $0x10] sm:$0xff] }
 0x15e   : > { %1947 = vmax.xlane.f32.xlu0 %v4630_v17  ;;  %1953 = vmax.xlane.f32.xlu1 %v4632_v18  ;;  %v1899_v19 = vmul.f32 0.2, %v1883_v16  ;;  %v1898_v29 = vmul.f32 0.2, %v1882_v14 }
 0x15f   : > { %v1841_v20 = vpop.permute.xlu1 %1840  ;;  %v1846_v21 = vpop.permute.xlu0 %1845 }
 0x160   : > { %v1884_v25 = vadd.f32 %v4592_v33, %v1841_v20  ;;  %v1885_v26 = vadd.f32 %v4592_v33, %v1846_v21  ;;  %v4640_v27 = vmax.f32 %v1883_v16, %v1899_v19  ;;  %v4646_v39 = vmax.f32 %v1882_v14, %v1898_v29  ;;  %v3747_v14 = vld [vmem:[%s4365_s2 + $0x28] sm:$0xff]   ;;  %v4692_v20 = vld [vmem:[#allocation2 + $0x20] sm:$0xff]  ;;  %v4694_v21 = vld [vmem:[#allocation2 + $0x18] sm:$0xff] }
 0x162   : > { %1951 = vmax.xlane.f32.xlu0 %v4636_v22  ;;  %1957 = vmax.xlane.f32.xlu1 %v4640_v27  ;;  %v1901_v30 = vmul.f32 0.2, %v1885_v26  ;;  %v1900_v35 = vmul.f32 0.2, %v1884_v25 }
 0x163   : > { %v1851_v32 = vpop.permute.xlu1 %1850  ;;  %v1856_v34 = vpop.permute.xlu0 %1855 }
 0x164   : > { %v1886_v36 = vadd.f32 %v4592_v33, %v1851_v32  ;;  %v1887_v38 = vadd.f32 %v4592_v33, %v1856_v34  ;;  %v4648_v40 = vmax.f32 %v1885_v26, %v1901_v30  ;;  %v4652_v46 = vmax.f32 %v1884_v25, %v1900_v35  ;;  %v3748_v32 = vld [vmem:[%s4365_s2 + $0x20] sm:$0xff]   ;;  %v4797_v25 = vld [vmem:[#allocation2 + $0x70] sm:$0xff] }
 0x165   : > { %v4776_v26 = vld [vmem:[#allocation2 + $0x60] sm:$0xff]  ;;  %5765 = vst [vmem:[#allocation20_spill] sm:$0xff] %v4797_v25 }
 0x166   : > { %1955 = vmax.xlane.f32.xlu0 %v4646_v39  ;;  %1961 = vmax.xlane.f32.xlu1 %v4648_v40  ;;  %v1903_v42 = vmul.f32 0.2, %v1887_v38  ;;  %v1902_v52 = vmul.f32 0.2, %v1886_v36  ;;  %5762 = vst [vmem:[#allocation17_spill] sm:$0xff] %v4776_v26 }
 0x167   : > { %v1861_v43 = vpop.permute.xlu1 %1860  ;;  %v1866_v44 = vpop.permute.xlu0 %1865 }
 0x168   : > { %v1888_v48 = vadd.f32 %v4592_v33, %v1861_v43  ;;  %v1889_v50 = vadd.f32 %v4592_v33, %v1866_v44  ;;  %v4656_v51 = vmax.f32 %v1887_v38, %v1903_v42  ;;  %v4660_v54 = vmax.f32 %v1886_v36, %v1902_v52  ;;  %v3745_v33 = vld [vmem:[%s4365_s2 + $0x38] sm:$0xff]   ;;  %v4713_v36 = vld [vmem:[#allocation2 + $0x30] sm:$0xff]  ;;  %v4715_v38 = vld [vmem:[#allocation2 + $0x28] sm:$0xff] }
 0x169   : > { %3586 = vmatprep.subr.bf16.mxu0 %v3745_v33  ;;  %5756 = vst [vmem:[#allocation11_spill] sm:$0xff] %v4713_v36 }
 0x16a   : > { %1959 = vmax.xlane.f32.xlu0 %v4652_v46  ;;  %1965 = vmax.xlane.f32.xlu1 %v4656_v51  ;;  %v1905_v53 = vmul.f32 0.2, %v1889_v50  ;;  %v1904_v58 = vmul.f32 0.2, %v1888_v48 }
 0x16b   : > { %3587 = vmatpush3.bf16.msra.mxu0 %v3745_v33  ;;  %v4736_v33 = vld [vmem:[#allocation2 + $0x38] sm:$0xff] }
 0x16c   : > { %v4662_v57 = vmax.f32 %v1889_v50, %v1905_v53  ;;  %v4666_v62 = vmax.f32 %v1888_v48, %v1904_v58  ;;  %3588 = vmatprep.subr.bf16.mxu0 %v3746_v3  ;;  %v3749_v50 = vld [vmem:[%s4365_s2 + $0x18] sm:$0xff]   ;;  %v4734_v58 = vld [vmem:[#allocation2 + $0x40] sm:$0xff] }
 0x16d   : > { %5758 = vst [vmem:[#allocation13_spill] sm:$0xff] %v4734_v58 }
 0x16e   : > { %1963 = vmax.xlane.f32.xlu0 %v4660_v54  ;;  %1969 = vmax.xlane.f32.xlu1 %v4662_v57 }
 0x16f   : > { %3589 = vmatpush3.bf16.msra.mxu0 %v3746_v3  ;;  %v3752_v3 = vld [vmem:[%s4365_s2] sm:$0xff]  }
 0x170   : > { %3590 = vmatprep.subr.bf16.mxu0 %v3747_v14 }
 0x172   : > { %1967 = vmax.xlane.f32.xlu0 %v4666_v62 }
 0x173   : > { %3591 = vmatpush3.bf16.msra.mxu0 %v3747_v14  ;;  %v3750_v14 = vld [vmem:[%s4365_s2 + $0x10] sm:$0xff]  }
 0x174   : > { %3592 = vmatprep.subr.bf16.mxu0 %v3748_v32 }
 0x177   : > { %3593 = vmatpush3.bf16.msra.mxu0 %v3748_v32  ;;  %v4755_v32 = vld [vmem:[#allocation2 + $0x50] sm:$0xff] }
 0x178   : > { %3594 = vmatprep.subr.bf16.mxu0 %v3749_v50  ;;  %5760 = vst [vmem:[#allocation15_spill] sm:$0xff] %v4755_v32 }
 0x17b   : > { %3595 = vmatpush3.bf16.msra.mxu0 %v3749_v50  ;;  %v4778_v50 = vld [vmem:[#allocation2 + $0x58] sm:$0xff] }
 0x17c   : > { %3596 = vmatprep.subr.bf16.mxu0 %v3750_v14 }
 0x17f   : > { %3597 = vmatpush3.bf16.msra.mxu0 %v3750_v14  ;;  %v4799_v14 = vld [vmem:[#allocation2 + $0x68] sm:$0xff] }
 0x180   : > { %5766 = vst [vmem:[#allocation21_spill] sm:$0xff] %v4799_v14 }
 0x1bb   : > { %v1104_v1 = vpop.xlane.xlu0 %1103 }
 0x1bc   : > { %v4674_v4 = vmax.f32 %v4670_v0, %v1104_v1  ;;  %v3751_v1 = vld [vmem:[%s4365_s2 + $0x8] sm:$0xff]  }
 0x1bd   : > { %3598 = vmatprep.subr.bf16.mxu0 %v3751_v1 }
 0x1be   : > { %1753 = vst.msk [vmem:[#allocation2] sm:$0xff] %vm1423_vm1, %v4674_v4  ;;  %1201 = vperm.xlu1 %3744, %v4674_v4   ;;  %3599 = vmatpush3.bf16.msra.mxu0 %v3751_v1  ;;  %v4819_v1 = vld [vmem:[#allocation2 + $0x78] sm:$0xff] }
 0x1bf   : > { %v1106_v11 = vpop.xlane.xlu1 %1105  ;;  %v1108_v13 = vpop.xlane.xlu0 %1107  ;;  %3600 = vmatprep.subr.bf16.mxu0 %v3752_v3  ;;  %5770 = vst [vmem:[#allocation25_spill] sm:$0xff] %v4819_v1 }
 0x1c0   : > { %v4687_v16 = vmax.f32 %v4676_v6, %v1106_v11  ;;  %v4690_v19 = vmax.f32 %v4678_v9, %v1108_v13 }
 0x1c2   : > { %1754 = vst.msk [vmem:[#allocation2 + $0x8] sm:$0xff] %vm1423_vm1, %v4687_v16  ;;  %1755 = vst.msk [vmem:[#allocation2 + $0x10] sm:$0xff] %vm1423_vm1, %v4690_v19  ;;  %1206 = vperm.xlu0 %3743, %v4687_v16   ;;  %1211 = vperm.xlu1 %3744, %v4690_v19  }
 0x1c3   : > { %v1112_v29 = vpop.xlane.xlu1 %1111  ;;  %v1110_v30 = vpop.xlane.xlu0 %1109  ;;  %3601 = vmatpush3.bf16.msra.mxu0 %v3752_v3 }
 0x1c4   : > { %v4708_v34 = vmax.f32 %v4692_v20, %v1112_v29  ;;  %v4711_v35 = vmax.f32 %v4694_v21, %v1110_v30 }
 0x1c6   : > { %1757 = vst.msk [vmem:[#allocation2 + $0x20] sm:$0xff] %vm1423_vm1, %v4708_v34  ;;  %1756 = vst.msk [vmem:[#allocation2 + $0x18] sm:$0xff] %vm1423_vm1, %v4711_v35  ;;  %1221 = vperm.xlu0 %3743, %v4708_v34   ;;  %1216 = vperm.xlu1 %3744, %v4711_v35  }
 0x1c7   : > { %v1116_v44 = vpop.xlane.xlu1 %1115  ;;  %v1114_v48 = vpop.xlane.xlu0 %1113 }
 0x1c8   : > { %v4729_v52 = vmax.f32 %v4713_v36, %v1116_v44  ;;  %v4732_v53 = vmax.f32 %v4715_v38, %v1114_v48  ;;  %v4757_v44 = vld [vmem:[#allocation2 + $0x48] sm:$0xff]  ;;  %v4860_v36 = vld [vmem:[#allocation2 + $0x90] sm:$0xff] }
 0x1c9   : > { %5778 = vst [vmem:[#allocation33_spill] sm:$0xff] %v4860_v36 }
 0x1ca   : > { %5757 = vst [vmem:[#allocation12_spill] sm:$0xff] %v4729_v52  ;;  %1759 = vst.msk [vmem:[#allocation2 + $0x30] sm:$0xff] %vm1423_vm1, %v4729_v52  ;;  %1231 = vperm.xlu0 %3743, %v4729_v52   ;;  %1226 = vperm.xlu1 %3744, %v4732_v53  }
 0x1cb   : > { %1758 = vst.msk [vmem:[#allocation2 + $0x28] sm:$0xff] %vm1423_vm1, %v4732_v53  ;;  %v1120_v11 = vpop.xlane.xlu1 %1119  ;;  %v1118_v13 = vpop.xlane.xlu0 %1117 }
 0x1cc   : > { %v4750_v29 = vmax.f32 %v4734_v58, %v1120_v11  ;;  %v4753_v30 = vmax.f32 %v4736_v33, %v1118_v13 }
 0x1ce   : > { %5759 = vst [vmem:[#allocation14_spill] sm:$0xff] %v4750_v29  ;;  %1761 = vst.msk [vmem:[#allocation2 + $0x40] sm:$0xff] %vm1423_vm1, %v4750_v29  ;;  %1241 = vperm.xlu0 %3743, %v4750_v29   ;;  %1236 = vperm.xlu1 %3744, %v4753_v30  }
 0x1cf   : > { %1760 = vst.msk [vmem:[#allocation2 + $0x38] sm:$0xff] %vm1423_vm1, %v4753_v30  ;;  %v1124_v11 = vpop.xlane.xlu1 %1123  ;;  %v1122_v13 = vpop.xlane.xlu0 %1121 }
 0x1d0   : > { %v4771_v48 = vmax.f32 %v4755_v32, %v1124_v11  ;;  %v4774_v42 = vmax.f32 %v4757_v44, %v1122_v13 }
 0x1d2   : > { %5761 = vst [vmem:[#allocation16_spill] sm:$0xff] %v4771_v48  ;;  %1763 = vst.msk [vmem:[#allocation2 + $0x50] sm:$0xff] %vm1423_vm1, %v4771_v48  ;;  %1251 = vperm.xlu0 %3743, %v4771_v48   ;;  %1246 = vperm.xlu1 %3744, %v4774_v42  }
 0x1d3   : > { %1762 = vst.msk [vmem:[#allocation2 + $0x48] sm:$0xff] %vm1423_vm1, %v4774_v42  ;;  %v1128_v11 = vpop.xlane.xlu1 %1127  ;;  %v1126_v13 = vpop.xlane.xlu0 %1125 }
 0x1d4   : > { %v4792_v43 = vmax.f32 %v4776_v26, %v1128_v11  ;;  %v4795_v10 = vmax.f32 %v4778_v50, %v1126_v13  ;;  %v4817_v26 = vld [vmem:[#allocation2 + $0x80] sm:$0xff] }
 0x1d5   : > { %5769 = vst [vmem:[#allocation24_spill] sm:$0xff] %v4817_v26 }
 0x1d6   : > { %5763 = vst [vmem:[#allocation18_spill] sm:$0xff] %v4792_v43  ;;  %5764 = vst [vmem:[#allocation19_spill] sm:$0xff] %v4795_v10  ;;  %1261 = vperm.xlu0 %3743, %v4792_v43   ;;  %1256 = vperm.xlu1 %3744, %v4795_v10  }
 0x1d7   : > { %1765 = vst.msk [vmem:[#allocation2 + $0x60] sm:$0xff] %vm1423_vm1, %v4792_v43  ;;  %1764 = vst.msk [vmem:[#allocation2 + $0x58] sm:$0xff] %vm1423_vm1, %v4795_v10  ;;  %v1132_v11 = vpop.xlane.xlu1 %1131  ;;  %v1130_v13 = vpop.xlane.xlu0 %1129  ;;  %v4840_v43 = vld [vmem:[#allocation2 + $0x88] sm:$0xff]  ;;  %v4901_v10 = vld [vmem:[#allocation2 + $0xb0] sm:$0xff] }
 0x1d8   : > { %v4812_v32 = vmax.f32 %v4797_v25, %v1132_v11  ;;  %v4815_v48 = vmax.f32 %v4799_v14, %v1130_v13  ;;  %v3753_v13 = vld [vmem:[%s4365_s2 + $0x78] sm:$0xff]   ;;  %5774 = vst [vmem:[#allocation29_spill] sm:$0xff] %v4840_v43  ;;  %v3754_v14 = vld [vmem:[%s4365_s2 + $0x70] sm:$0xff]   ;;  %5786 = vst [vmem:[#allocation41_spill] sm:$0xff] %v4901_v10 }
 0x1d9   : > { %v4838_v25 = vld [vmem:[#allocation2 + $0x98] sm:$0xff]  ;;  %3618 = vmatprep.subr.bf16.mxu1 %v3753_v13 }
 0x1da   : > { %5767 = vst [vmem:[#allocation22_spill] sm:$0xff] %v4812_v32  ;;  %5768 = vst [vmem:[#allocation23_spill] sm:$0xff] %v4815_v48  ;;  %1271 = vperm.xlu0 %3743, %v4812_v32   ;;  %1266 = vperm.xlu1 %3744, %v4815_v48  }
 0x1db   : > { %1767 = vst.msk [vmem:[#allocation2 + $0x70] sm:$0xff] %vm1423_vm1, %v4812_v32  ;;  %1766 = vst.msk [vmem:[#allocation2 + $0x68] sm:$0xff] %vm1423_vm1, %v4815_v48  ;;  %v1940_v3 = vpop.xlane.xlu1 %1939  ;;  %v1134_v11 = vpop.xlane.xlu0 %1133  ;;  %3619 = vmatpush3.bf16.msra.mxu1 %v3753_v13  ;;  %v4881_v13 = vld [vmem:[#allocation2 + $0xa0] sm:$0xff] }
 0x1dc   : > { %v4833_v58 = vmax.f32 %v4817_v26, %v1940_v3  ;;  %v4836_v29 = vmax.f32 %v4819_v1, %v1134_v11  ;;  %5773 = vst [vmem:[#allocation28_spill] sm:$0xff] %v4838_v25  ;;  %v4858_v26 = vld [vmem:[#allocation2 + $0xa8] sm:$0xff]  ;;  %3620 = vmatprep.subr.bf16.mxu1 %v3754_v14  ;;  %v4879_v1 = vld [vmem:[#allocation2 + $0xb8] sm:$0xff]  ;;  %5782 = vst [vmem:[#allocation37_spill] sm:$0xff] %v4881_v13 }
 0x1dd   : > { %5777 = vst [vmem:[#allocation32_spill] sm:$0xff] %v4858_v26  ;;  %5781 = vst [vmem:[#allocation36_spill] sm:$0xff] %v4879_v1 }
 0x1de   : > { %5771 = vst [vmem:[#allocation26_spill] sm:$0xff] %v4833_v58  ;;  %5772 = vst [vmem:[#allocation27_spill] sm:$0xff] %v4836_v29  ;;  %1276 = vperm.xlu1 %3744, %v4836_v29  }
 0x1df   : > { %2591 = vst.msk [vmem:[#allocation2 + $0x80] sm:$0xff] %vm1423_vm1, %v4833_v58  ;;  %1768 = vst.msk [vmem:[#allocation2 + $0x78] sm:$0xff] %vm1423_vm1, %v4836_v29  ;;  %v1946_v3 = vpop.xlane.xlu1 %1945  ;;  %v1942_v11 = vpop.xlane.xlu0 %1941  ;;  %3621 = vmatpush3.bf16.msra.mxu1 %v3754_v14  ;;  %v3755_v29 = vld [vmem:[%s4365_s2 + $0x68] sm:$0xff]  }
 0x1e0   : > { %v4853_v52 = vmax.f32 %v4838_v25, %v1946_v3  ;;  %v4856_v32 = vmax.f32 %v4840_v43, %v1942_v11  ;;  %3622 = vmatprep.subr.bf16.mxu1 %v3755_v29 }
 0x1e2   : > { %5775 = vst [vmem:[#allocation30_spill] sm:$0xff] %v4853_v52  ;;  %5776 = vst [vmem:[#allocation31_spill] sm:$0xff] %v4856_v32  ;;  %2037 = vperm.xlu1 %3744, %v4833_v58   ;;  %2042 = vperm.xlu0 %3743, %v4856_v32  }
 0x1e3   : > { %2594 = vst.msk [vmem:[#allocation2 + $0x98] sm:$0xff] %vm1423_vm1, %v4853_v52  ;;  %2592 = vst.msk [vmem:[#allocation2 + $0x88] sm:$0xff] %vm1423_vm1, %v4856_v32  ;;  %v1950_v3 = vpop.xlane.xlu1 %1949  ;;  %v1944_v11 = vpop.xlane.xlu0 %1943  ;;  %3623 = vmatpush3.bf16.msra.mxu1 %v3755_v29  ;;  %v3756_v32 = vld [vmem:[%s4365_s2 + $0x60] sm:$0xff]  }
 0x1e4   : > { %v4874_v48 = vmax.f32 %v4858_v26, %v1950_v3  ;;  %v4877_v25 = vmax.f32 %v4860_v36, %v1944_v11  ;;  %v4899_v26 = vld [vmem:[#allocation2 + $0xc8] sm:$0xff]  ;;  %3624 = vmatprep.subr.bf16.mxu1 %v3756_v32  ;;  %v4920_v36 = vld [vmem:[#allocation2 + $0xd8] sm:$0xff]  ;;  %v4922_v29 = vld [vmem:[#allocation2 + $0xc0] sm:$0xff] }
 0x1e5   : > { %5785 = vst [vmem:[#allocation40_spill] sm:$0xff] %v4899_v26  ;;  %5788 = vst [vmem:[#allocation43_spill] sm:$0xff] %v4920_v36 }
 0x1e6   : > { %5779 = vst [vmem:[#allocation34_spill] sm:$0xff] %v4874_v48  ;;  %5780 = vst [vmem:[#allocation35_spill] sm:$0xff] %v4877_v25  ;;  %2047 = vperm.xlu1 %3744, %v4877_v25  }
 0x1e7   : > { %2596 = vst.msk [vmem:[#allocation2 + $0xa8] sm:$0xff] %vm1423_vm1, %v4874_v48  ;;  %2593 = vst.msk [vmem:[#allocation2 + $0x90] sm:$0xff] %vm1423_vm1, %v4877_v25  ;;  %v1954_v3 = vpop.xlane.xlu1 %1953  ;;  %v1948_v11 = vpop.xlane.xlu0 %1947  ;;  %3625 = vmatpush3.bf16.msra.mxu1 %v3756_v32  ;;  %v3757_v25 = vld [vmem:[%s4365_s2 + $0x58] sm:$0xff]   ;;  %v4943_v32 = vld [vmem:[#allocation2 + $0xd0] sm:$0xff] }
 0x1e8   : > { %v4894_v58 = vmax.f32 %v4879_v1, %v1954_v3  ;;  %v4897_v43 = vmax.f32 %v4881_v13, %v1948_v11  ;;  %5789 = vst [vmem:[#allocation44_spill] sm:$0xff] %v4922_v29  ;;  %3626 = vmatprep.subr.bf16.mxu1 %v3757_v25  ;;  %5793 = vst [vmem:[#allocation48_spill] sm:$0xff] %v4943_v32 }
 0x1ea   : > { %5783 = vst [vmem:[#allocation38_spill] sm:$0xff] %v4894_v58  ;;  %5784 = vst [vmem:[#allocation39_spill] sm:$0xff] %v4897_v43  ;;  %2052 = vperm.xlu1 %3744, %v4853_v52   ;;  %2057 = vperm.xlu0 %3743, %v4897_v43   ;;  %v4941_v52 = vld [vmem:[#allocation2 + $0xe8] sm:$0xff] }
 0x1eb   : > { %2598 = vst.msk [vmem:[#allocation2 + $0xb8] sm:$0xff] %vm1423_vm1, %v4894_v58  ;;  %2595 = vst.msk [vmem:[#allocation2 + $0xa0] sm:$0xff] %vm1423_vm1, %v4897_v43  ;;  %v1958_v3 = vpop.xlane.xlu1 %1957  ;;  %v1952_v11 = vpop.xlane.xlu0 %1951  ;;  %3627 = vmatpush3.bf16.msra.mxu1 %v3757_v25  ;;  %v3758_v43 = vld [vmem:[%s4365_s2 + $0x50] sm:$0xff]   ;;  %v4964_v25 = vld [vmem:[#allocation2 + $0xe0] sm:$0xff] }
 0x1ec   : > { %v4915_v14 = vmax.f32 %v4899_v26, %v1958_v3  ;;  %v4918_v1 = vmax.f32 %v4901_v10, %v1952_v11  ;;  %5792 = vst [vmem:[#allocation47_spill] sm:$0xff] %v4941_v52  ;;  %3628 = vmatprep.subr.bf16.mxu1 %v3758_v43  ;;  %5797 = vst [vmem:[#allocation52_spill] sm:$0xff] %v4964_v25 }
 0x1ee   : > { %5787 = vst [vmem:[#allocation42_spill] sm:$0xff] %v4918_v1  ;;  %2600 = vst.msk [vmem:[#allocation2 + $0xc8] sm:$0xff] %vm1423_vm1, %v4915_v14  ;;  %2062 = vperm.xlu1 %3744, %v4874_v48   ;;  %2067 = vperm.xlu0 %3743, %v4918_v1   ;;  %v4962_v48 = vld [vmem:[#allocation2 + $0xf8] sm:$0xff] }
 0x1ef   : > { %2597 = vst.msk [vmem:[#allocation2 + $0xb0] sm:$0xff] %vm1423_vm1, %v4918_v1  ;;  %v1962_v3 = vpop.xlane.xlu1 %1961  ;;  %v1956_v11 = vpop.xlane.xlu0 %1955  ;;  %3629 = vmatpush3.bf16.msra.mxu1 %v3758_v43  ;;  %v3759_v1 = vld [vmem:[%s4365_s2 + $0x48] sm:$0xff]   ;;  %5796 = vst [vmem:[#allocation51_spill] sm:$0xff] %v4962_v48 }
 0x1f0   : > { %v4936_v13 = vmax.f32 %v4920_v36, %v1962_v3  ;;  %v4939_v26 = vmax.f32 %v4922_v29, %v1956_v11  ;;  %3630 = vmatprep.subr.bf16.mxu1 %v3759_v1 }
 0x1f2   : > { %5790 = vst [vmem:[#allocation45_spill] sm:$0xff] %v4936_v13  ;;  %5791 = vst [vmem:[#allocation46_spill] sm:$0xff] %v4939_v26  ;;  %2072 = vperm.xlu1 %3744, %v4894_v58   ;;  %2077 = vperm.xlu0 %3743, %v4939_v26  }
 0x1f3   : > { %2602 = vst.msk [vmem:[#allocation2 + $0xd8] sm:$0xff] %vm1423_vm1, %v4936_v13  ;;  %2599 = vst.msk [vmem:[#allocation2 + $0xc0] sm:$0xff] %vm1423_vm1, %v4939_v26  ;;  %v1966_v3 = vpop.xlane.xlu1 %1965  ;;  %v1960_v11 = vpop.xlane.xlu0 %1959  ;;  %3631 = vmatpush3.bf16.msra.mxu1 %v3759_v1  ;;  %v3760_v26 = vld [vmem:[%s4365_s2 + $0x40] sm:$0xff]  }
 0x1f4   : > { %v4957_v10 = vmax.f32 %v4941_v52, %v1966_v3  ;;  %v4960_v36 = vmax.f32 %v4943_v32, %v1960_v11  ;;  %v4983_v52 = vld [vmem:[#allocation2 + $0xf0] sm:$0xff]  ;;  %3632 = vmatprep.subr.bf16.mxu1 %v3760_v26 }
 0x1f5   : > { %5800 = vst [vmem:[#allocation55_spill] sm:$0xff] %v4983_v52 }
 0x1f6   : > { %5794 = vst [vmem:[#allocation49_spill] sm:$0xff] %v4957_v10  ;;  %5795 = vst [vmem:[#allocation50_spill] sm:$0xff] %v4960_v36  ;;  %2082 = vperm.xlu1 %3744, %v4915_v14   ;;  %2087 = vperm.xlu0 %3743, %v4960_v36  }
 0x1f7   : > { %2604 = vst.msk [vmem:[#allocation2 + $0xe8] sm:$0xff] %vm1423_vm1, %v4957_v10  ;;  %2601 = vst.msk [vmem:[#allocation2 + $0xd0] sm:$0xff] %vm1423_vm1, %v4960_v36  ;;  %v1970_v3 = vpop.xlane.xlu1 %1969  ;;  %v1964_v11 = vpop.xlane.xlu0 %1963  ;;  %3633 = vmatpush3.bf16.msra.mxu1 %v3760_v26 }
 0x1f8   : > { %v4978_v58 = vmax.f32 %v4962_v48, %v1970_v3  ;;  %v4981_v29 = vmax.f32 %v4964_v25, %v1964_v11 }
 0x1fa   : > { %5798 = vst [vmem:[#allocation53_spill] sm:$0xff] %v4978_v58  ;;  %5799 = vst [vmem:[#allocation54_spill] sm:$0xff] %v4981_v29  ;;  %2092 = vperm.xlu1 %3744, %v4936_v13   ;;  %2097 = vperm.xlu0 %3743, %v4981_v29  }
 0x1fb   : > { %2606 = vst.msk [vmem:[#allocation2 + $0xf8] sm:$0xff] %vm1423_vm1, %v4978_v58  ;;  %2603 = vst.msk [vmem:[#allocation2 + $0xe0] sm:$0xff] %vm1423_vm1, %v4981_v29  ;;  %v1968_v1 = vpop.xlane.xlu0 %1967 }
 0x1fc   : > { %v4996_v3 = vmax.f32 %v4983_v52, %v1968_v1 }
 0x1fe   : > { %5801 = vst [vmem:[#allocation56_spill] sm:$0xff] %v4996_v3  ;;  %2605 = vst.msk [vmem:[#allocation2 + $0xf0] sm:$0xff] %vm1423_vm1, %v4996_v3  ;;  %2102 = vperm.xlu1 %3744, %v4957_v10   ;;  %2107 = vperm.xlu0 %3743, %v4996_v3  }
 0x202   : > { %2112 = vperm.xlu1 %3744, %v4978_v58  }
 0x239   : > { %v1202_v43 = vpop.permute.xlu1 %1201 }
 0x23a   : > { %v1279_v36 = vsub.f32 %v4541_v47, %v1202_v43 }
 0x23c   : > { %v1295_v48 = vmul.f32 1.442695, %v1279_v36 }
 0x23d   : > { %v1212_v26 = vpop.permute.xlu1 %1211  ;;  %v1207_v29 = vpop.permute.xlu0 %1206 }
 0x23e   : > { %3761 = vpow2.f32 %v1295_v48  ;;  %v1281_v1 = vsub.f32 %v4546_v55, %v1212_v26  ;;  %v1280_v11 = vsub.f32 %v4548_v56, %v1207_v29  ;;  %v5011_v48 = vld [vmem:[%s4370_s11] sm:$0xff]  }
 0x240   : > { %v1299_v52 = vmul.f32 1.442695, %v1281_v1  ;;  %v1297_v25 = vmul.f32 1.442695, %v1280_v11 }
 0x241   : > { %v1217_v32 = vpop.permute.xlu1 %1216  ;;  %v1222_v10 = vpop.permute.xlu0 %1221 }
 0x242   : > { %3763 = vpow2.f32 %v1299_v52  ;;  %v1282_v3 = vsub.f32 %v4552_v60, %v1217_v32  ;;  %v1283_v58 = vsub.f32 %v4556_v63, %v1222_v10  ;;  %v3517_v60 = vunpack.c.l.bf16 %v5011_v48  ;;  %v5017_v10 = vld [vmem:[%s4370_s11 + $0x8] sm:$0xff]  }
 0x243   : > { %3765 = vpow2.f32 %v1297_v25 }
 0x244   : > { %v1301_v47 = vmul.f32 1.442695, %v1282_v3  ;;  %v1303_v36 = vmul.f32 1.442695, %v1283_v58 }
 0x245   : > { %v1227_v43 = vpop.permute.xlu1 %1226  ;;  %v1232_v13 = vpop.permute.xlu0 %1231 }
 0x246   : > { %3767 = vpow2.f32 %v1301_v47  ;;  %v1284_v55 = vsub.f32 %v4562_v7, %v1227_v43  ;;  %v1285_v56 = vsub.f32 %v4564_v8, %v1232_v13  ;;  %v3521_v13 = vunpack.c.l.bf16 %v5017_v10 }
 0x247   : > { %3769 = vpow2.f32 %v1303_v36  ;;  %v3518_v47 = vunpack.c.h.bf16 %v5011_v48 }
 0x248   : > { %v1305_v29 = vmul.f32 1.442695, %v1284_v55  ;;  %v1307_v52 = vmul.f32 1.442695, %v1285_v56 }
 0x249   : > { %v1237_v32 = vpop.permute.xlu1 %1236  ;;  %v1242_v63 = vpop.permute.xlu0 %1241 }
 0x24a   : > { %3771 = vpow2.f32 %v1305_v29  ;;  %v1286_v58 = vsub.f32 %v4568_v12, %v1237_v32  ;;  %v1287_v25 = vsub.f32 %v4572_v15, %v1242_v63  ;;  %v5028_v15 = vld [vmem:[%s4370_s11 + $0x10] sm:$0xff]   ;;  %v3522_v32 = vunpack.c.h.bf16 %v5017_v10 }
 0x24b   : > { %v3762_v3 = vpop.eup %3761  ;;  %3773 = vpow2.f32 %v1307_v52 }
 0x24c   : > { %v1309_v7 = vmul.f32 1.442695, %v1286_v58  ;;  %v1311_v11 = vmul.f32 1.442695, %v1287_v25  ;;  %v1327_v8 = vmul.f32 %v3762_v3, %v3517_v60 }
 0x24d   : > { %v1247_v26 = vpop.permute.xlu1 %1246  ;;  %v1252_v1 = vpop.permute.xlu0 %1251 }
 0x24e   : > { %3775 = vpow2.f32 %v1309_v7  ;;  %v1288_v36 = vsub.f32 %v4578_v23, %v1247_v26  ;;  %v1289_v12 = vsub.f32 %v4580_v24, %v1252_v1  ;;  %1375 = vadd.xlane.f32.xlu0 %v1327_v8  ;;  %v3525_v24 = vunpack.c.l.bf16 %v5028_v15  ;;  %v5039_v7 = vld [vmem:[%s4370_s11 + $0x18] sm:$0xff]  }
 0x24f   : > { %v3764_v43 = vpop.eup %3763  ;;  %3777 = vpow2.f32 %v1311_v11 }
 0x250   : > { %v3766_v55 = vpop.eup %3765  ;;  %v1313_v56 = vmul.f32 1.442695, %v1288_v36  ;;  %v1315_v29 = vmul.f32 1.442695, %v1289_v12  ;;  %v1329_v52 = vmul.f32 %v3764_v43, %v3521_v13 }
 0x251   : > { %v1257_v63 = vpop.permute.xlu1 %1256  ;;  %v1262_v58 = vpop.permute.xlu0 %1261  ;;  %v1328_v23 = vmul.f32 %v3766_v55, %v3518_v47  ;;  %v3526_v55 = vunpack.c.h.bf16 %v5028_v15 }
 0x252   : > { %3779 = vpow2.f32 %v1313_v56  ;;  %v1290_v25 = vsub.f32 %v4584_v28, %v1257_v63  ;;  %v1291_v3 = vsub.f32 %v4588_v31, %v1262_v58  ;;  %1379 = vadd.xlane.f32.xlu1 %v1329_v52  ;;  %v5740_v63 = vunpack.c.l.bf16 %v5039_v7 }
 0x253   : > { %v3768_v11 = vpop.eup %3767  ;;  %3781 = vpow2.f32 %v1315_v29  ;;  %1377 = vadd.xlane.f32.xlu0 %v1328_v23  ;;  %v1552_v26 = vpack.c.bf16 %v1328_v23, %v1327_v8  ;;  %v5050_v23 = vld [vmem:[%s4370_s11 + $0x20] sm:$0xff]  }
 0x254   : > { %v3770_v1 = vpop.eup %3769  ;;  %v1317_v36 = vmul.f32 1.442695, %v1290_v25  ;;  %v1319_v12 = vmul.f32 1.442695, %v1291_v3  ;;  %v1330_v43 = vmul.f32 %v3768_v11, %v3522_v32  ;;  %v5804_v15 = vunpack.c.l.bf16 %v5050_v23 }
 0x255   : > { %3602 = vmatprep.mubr.bf16.mxu0 %v1552_v26  ;;  %v1267_v28 = vpop.permute.xlu1 %1266  ;;  %v1272_v56 = vpop.permute.xlu0 %1271  ;;  %v1331_v31 = vmul.f32 %v3770_v1, %v3525_v24 }
 0x256   : > { %3783 = vpow2.f32 %v1317_v36  ;;  %v1292_v29 = vsub.f32 %v4598_v41, %v1267_v28  ;;  %v1293_v8 = vsub.f32 %v4600_v37, %v1272_v56  ;;  %v1553_v58 = vpack.c.bf16 %v1330_v43, %v1329_v52 }
 0x257   : > { %v3772_v25 = vpop.eup %3771  ;;  %3785 = vpow2.f32 %v1319_v12  ;;  %1383 = vadd.xlane.f32.xlu1 %v1331_v31  ;;  %1381 = vadd.xlane.f32.xlu0 %v1330_v43  ;;  %v5739_v36 = vunpack.c.h.bf16 %v5039_v7  ;;  %v5741_v52 = vunpack.c.l.bf16 %v5050_v23  ;;  %v5060_v43 = vld [vmem:[%s4370_s11 + $0x28] sm:$0xff]  }
 0x258   : > { %v3774_v3 = vpop.eup %3773  ;;  %v1321_v11 = vmul.f32 1.442695, %v1292_v29  ;;  %v1323_v26 = vmul.f32 1.442695, %v1293_v8  ;;  %3603 = vmatmul.mubr.bf16.vlgmr.msra.gmra.mxu0 %v1553_v58  ;;  %v1332_v1 = vmul.f32 %v3772_v25, %v3526_v55  ;;  %v3534_v25 = vunpack.c.h.bf16 %v5050_v23 }
 0x259   : > { %v1277_v41 = vpop.permute.xlu1 %1276  ;;  %v1333_v37 = vmul.f32 %v3774_v3, %v5740_v63 }
 0x25a   : > { %3787 = vpow2.f32 %v1321_v11  ;;  %v1294_v12 = vsub.f32 %v4604_v45, %v1277_v41  ;;  %v1554_v28 = vpack.c.bf16 %v1332_v1, %v1331_v31  ;;  %v5742_v31 = vunpack.c.l.bf16 %v5060_v43 }
 0x25b   : > { %v3776_v56 = vpop.eup %3775  ;;  %1387 = vadd.xlane.f32.xlu1 %v1333_v37  ;;  %1385 = vadd.xlane.f32.xlu0 %v1332_v1  ;;  %3789 = vpow2.f32 %v1323_v26 }
 0x25c   : > { %v3778_v29 = vpop.eup %3777  ;;  %v1325_v8 = vmul.f32 1.442695, %v1294_v12  ;;  %3606 = vmatprep.mubr.bf16.mxu0 %v1554_v28  ;;  %v1334_v58 = vmul.f32 %v3776_v56, %v5739_v36  ;;  %v5071_v12 = vld [vmem:[%s4370_s11 + $0x30] sm:$0xff]  }
 0x25d   : > { %v2038_v3 = vpop.permute.xlu1 %2037  ;;  %v2043_v11 = vpop.permute.xlu0 %2042  ;;  %v1335_v45 = vmul.f32 %v3778_v29, %v5741_v52  ;;  %v5743_v52 = vunpack.c.h.bf16 %v5060_v43 }
 0x25e   : > { %3791 = vpow2.f32 %v1325_v8  ;;  %v2115_v41 = vsub.f32 %v4608_v49, %v2038_v3  ;;  %v2116_v1 = vsub.f32 %v4614_v59, %v2043_v11  ;;  %v1555_v26 = vpack.c.bf16 %v1334_v58, %v1333_v37 }
 0x25f   : > { %v3780_v28 = vpop.eup %3779  ;;  %1391 = vadd.xlane.f32.xlu1 %v1335_v45  ;;  %1389 = vadd.xlane.f32.xlu0 %v1334_v58  ;;  %v5744_v59 = vunpack.c.l.bf16 %v5071_v12 }
 0x260   : > { %v3782_v56 = vpop.eup %3781  ;;  %v2131_v36 = vmul.f32 1.442695, %v2115_v41  ;;  %v2133_v63 = vmul.f32 1.442695, %v2116_v1  ;;  %3607 = vmatmul.mubr.bf16.gmra.mxu0 %v1555_v26  ;;  %v1336_v29 = vmul.f32 %v3780_v28, %v3534_v25  ;;  %v3542_v26 = vunpack.c.h.bf16 %v5071_v12  ;;  %v5084_v28 = vld [vmem:[%s4370_s11 + $0x38] sm:$0xff]  }
 0x261   : > { %v2048_v8 = vpop.permute.xlu1 %2047  ;;  %v1337_v49 = vmul.f32 %v3782_v56, %v5742_v31 }
 0x262   : > { %3793 = vpow2.f32 %v2131_v36  ;;  %v2117_v37 = vsub.f32 %v4620_v2, %v2048_v8  ;;  %v1556_v58 = vpack.c.bf16 %v1336_v29, %v1335_v45  ;;  %v3545_v8 = vunpack.c.l.bf16 %v5084_v28 }
 0x263   : > { %v3784_v3 = vpop.eup %3783  ;;  %3795 = vpow2.f32 %v2133_v63  ;;  %1395 = vadd.xlane.f32.xlu1 %v1337_v49  ;;  %1393 = vadd.xlane.f32.xlu0 %v1336_v29 }
 0x264   : > { %v3786_v11 = vpop.eup %3785  ;;  %v2135_v41 = vmul.f32 1.442695, %v2117_v37  ;;  %3610 = vmatprep.mubr.bf16.mxu0 %v1556_v58  ;;  %v1338_v1 = vmul.f32 %v3784_v3, %v5743_v52  ;;  %v3546_v52 = vunpack.c.h.bf16 %v5084_v28 }
 0x265   : > { %v2053_v56 = vpop.permute.xlu1 %2052  ;;  %v2058_v31 = vpop.permute.xlu0 %2057  ;;  %v1339_v2 = vmul.f32 %v3786_v11, %v5744_v59 }
 0x266   : > { %3797 = vpow2.f32 %v2135_v41  ;;  %v2118_v63 = vsub.f32 %v4616_v61, %v2053_v56  ;;  %v2119_v36 = vsub.f32 %v4630_v17, %v2058_v31  ;;  %v1557_v45 = vpack.c.bf16 %v1338_v1, %v1337_v49 }
 0x267   : > { %v3788_v29 = vpop.eup %3787  ;;  %1399 = vadd.xlane.f32.xlu1 %v1339_v2  ;;  %1397 = vadd.xlane.f32.xlu0 %v1338_v1 }
 0x268   : > { %v2137_v37 = vmul.f32 1.442695, %v2118_v63  ;;  %v2139_v58 = vmul.f32 1.442695, %v2119_v36  ;;  %3611 = vmatmul.mubr.bf16.gmra.mxu0 %v1557_v45  ;;  %v1340_v3 = vmul.f32 %v3788_v29, %v3542_v26  ;;  %v3790_v11 = vpop.eup %3789 }
 0x269   : > { %v2063_v41 = vpop.permute.xlu1 %2062  ;;  %v2068_v59 = vpop.permute.xlu0 %2067  ;;  %v1341_v36 = vmul.f32 %v3790_v11, %v3545_v8 }
 0x26a   : > { %3799 = vpow2.f32 %v2137_v37  ;;  %v2120_v61 = vsub.f32 %v4624_v5, %v2063_v41  ;;  %v2121_v17 = vsub.f32 %v4636_v22, %v2068_v59  ;;  %v1558_v31 = vpack.c.bf16 %v1340_v3, %v1339_v2 }
 0x26b   : > { %v3792_v49 = vpop.eup %3791  ;;  %3801 = vpow2.f32 %v2139_v58  ;;  %1401 = vadd.xlane.f32.xlu0 %v1340_v3 }
 0x26c   : > { %v2141_v1 = vmul.f32 1.442695, %v2120_v61  ;;  %v2143_v56 = vmul.f32 1.442695, %v2121_v17  ;;  %3614 = vmatprep.mubr.bf16.mxu0 %v1558_v31  ;;  %v1342_v63 = vmul.f32 %v3792_v49, %v3546_v52 }
 0x26d   : > { %v2073_v45 = vpop.permute.xlu1 %2072  ;;  %v2078_v29 = vpop.permute.xlu0 %2077 }
 0x26e   : > { %3803 = vpow2.f32 %v2141_v1  ;;  %v2122_v5 = vsub.f32 %v4632_v18, %v2073_v45  ;;  %v2123_v22 = vsub.f32 %v4646_v39, %v2078_v29  ;;  %1405 = vadd.xlane.f32.xlu1 %v1342_v63  ;;  %v1559_v59 = vpack.c.bf16 %v1342_v63, %v1341_v36 }
 0x26f   : > { %v3794_v2 = vpop.eup %3793  ;;  %3805 = vpow2.f32 %v2143_v56  ;;  %1403 = vadd.xlane.f32.xlu0 %v1341_v36 }
 0x270   : > { %v3796_v37 = vpop.eup %3795  ;;  %v2145_v58 = vmul.f32 1.442695, %v2122_v5  ;;  %v2147_v3 = vmul.f32 1.442695, %v2123_v22  ;;  %3615 = vmatmul.mubr.bf16.gmra.mxu0 %v1559_v59  ;;  %v2163_v41 = vmul.f32 %v3794_v2, %v3517_v60 }
 0x271   : > { %v2083_v11 = vpop.permute.xlu1 %2082  ;;  %v2088_v61 = vpop.permute.xlu0 %2087  ;;  %v2164_v17 = vmul.f32 %v3796_v37, %v3518_v47 }
 0x272   : > { %3807 = vpow2.f32 %v2145_v58  ;;  %v2124_v18 = vsub.f32 %v4640_v27, %v2083_v11  ;;  %v2125_v39 = vsub.f32 %v4652_v46, %v2088_v61 }
 0x273   : > { %v3798_v31 = vpop.eup %3797  ;;  %3809 = vpow2.f32 %v2147_v3  ;;  %2214 = vadd.xlane.f32.xlu1 %v2164_v17  ;;  %2212 = vadd.xlane.f32.xlu0 %v2163_v41  ;;  %v2389_v49 = vpack.c.bf16 %v2164_v17, %v2163_v41 }
 0x274   : > { %v2149_v1 = vmul.f32 1.442695, %v2124_v18  ;;  %v2151_v56 = vmul.f32 1.442695, %v2125_v39  ;;  %v2165_v60 = vmul.f32 %v3798_v31, %v3521_v13  ;;  %v5803_v39 = vunpack.c.h.bf16 %v5039_v7 }
 0x275   : > { %3634 = vmatprep.mubr.bf16.mxu1 %v2389_v49  ;;  %v2093_v63 = vpop.permute.xlu1 %2092  ;;  %v2098_v36 = vpop.permute.xlu0 %2097 }
 0x276   : > { %3811 = vpow2.f32 %v2149_v1  ;;  %v2126_v48 = vsub.f32 %v4648_v40, %v2093_v63  ;;  %v2127_v27 = vsub.f32 %v4660_v54, %v2098_v36 }
 0x277   : > { %v3800_v47 = vpop.eup %3799  ;;  %3813 = vpow2.f32 %v2151_v56  ;;  %2216 = vadd.xlane.f32.xlu0 %v2165_v60 }
 0x278   : > { %v3802_v46 = vpop.eup %3801  ;;  %v2153_v45 = vmul.f32 1.442695, %v2126_v48  ;;  %v2155_v29 = vmul.f32 1.442695, %v2127_v27  ;;  %v2166_v5 = vmul.f32 %v3800_v47, %v3522_v32  ;;  %v5806_v27 = vunpack.c.h.bf16 %v5060_v43 }
 0x279   : > { %v2103_v22 = vpop.permute.xlu1 %2102  ;;  %v2108_v59 = vpop.permute.xlu0 %2107  ;;  %v2167_v13 = vmul.f32 %v3802_v46, %v3525_v24  ;;  %v5802_v24 = vunpack.c.l.bf16 %v5039_v7  ;;  %v5807_v46 = vunpack.c.l.bf16 %v5071_v12  ;;  %v5809_v12 = vsub.f32 %v4694_v21, %v4711_v35 }
 0x27a   : > { %3815 = vpow2.f32 %v2153_v45  ;;  %v2128_v2 = vsub.f32 %v4656_v51, %v2103_v22  ;;  %v2129_v40 = vsub.f32 %v4666_v62, %v2108_v59  ;;  %v2390_v54 = vpack.c.bf16 %v2166_v5, %v2165_v60 }
 0x27b   : > { %v3804_v37 = vpop.eup %3803  ;;  %3817 = vpow2.f32 %v2155_v29  ;;  %2220 = vadd.xlane.f32.xlu1 %v2167_v13  ;;  %2218 = vadd.xlane.f32.xlu0 %v2166_v5  ;;  %v5805_v60 = vunpack.c.l.bf16 %v5060_v43  ;;  %v5808_v59 = vsub.f32 %v4676_v6, %v4687_v16  ;;  %v5810_v6 = vsub.f32 %v4715_v38, %v4732_v53 }
 0x27c   : > { %v3806_v58 = vpop.eup %3805  ;;  %v2157_v3 = vmul.f32 1.442695, %v2128_v2  ;;  %v2159_v41 = vmul.f32 1.442695, %v2129_v40  ;;  %3635 = vmatmul.mubr.bf16.vlgmr.msra.gmra.mxu1 %v2390_v54  ;;  %v2168_v10 = vmul.f32 %v3804_v37, %v3526_v55  ;;  %v5813_v21 = vsub.f32 %v4678_v9, %v4690_v19 }
 0x27d   : > { %v2113_v32 = vpop.permute.xlu1 %2112  ;;  %v2169_v11 = vmul.f32 %v3806_v58, %v5802_v24  ;;  %v1169_v43 = vmul.f32 1.442695, %v5808_v59  ;;  %v1177_v16 = vmul.f32 1.442695, %v5810_v6  ;;  %v5814_v58 = vsub.f32 %v4757_v44, %v4774_v42  ;;  %v5819_v42 = vld [vmem:[#allocation12_spill] sm:$0xff] }
 0x27e   : > { %3819 = vpow2.f32 %v2157_v3  ;;  %v2130_v51 = vsub.f32 %v4662_v57, %v2113_v32  ;;  %v2391_v62 = vpack.c.bf16 %v2168_v10, %v2167_v13  ;;  %v1171_v35 = vmul.f32 1.442695, %v5813_v21  ;;  %v5818_v3 = vld [vmem:[#allocation11_spill] sm:$0xff] }
 0x27f   : > { %v3808_v61 = vpop.eup %3807  ;;  %3821 = vpow2.f32 %v2159_v41  ;;  %2224 = vadd.xlane.f32.xlu1 %v2169_v11  ;;  %2222 = vadd.xlane.f32.xlu0 %v2168_v10  ;;  %v1185_v38 = vmul.f32 1.442695, %v5814_v58  ;;  %v5820_v44 = vsub.f32 %v5818_v3, %v5819_v42  ;;  %v5821_v10 = vld [vmem:[#allocation21_spill] sm:$0xff]  ;;  %v5851_v58 = vld [vmem:[#allocation32_spill] sm:$0xff] }
 0x280   : > { %v3810_v17 = vpop.eup %3809  ;;  %v2161_v18 = vmul.f32 1.442695, %v2130_v51  ;;  %3638 = vmatprep.mubr.bf16.mxu1 %v2391_v62  ;;  %v2170_v31 = vmul.f32 %v3808_v61, %v5803_v39 }
 0x281   : > { %v2171_v55 = vmul.f32 %v3810_v17, %v5804_v15  ;;  %v1179_v41 = vmul.f32 1.442695, %v5820_v44  ;;  %v5827_v17 = vld [vmem:[#allocation25_spill] sm:$0xff] }
 0x282   : > { %3823 = vpow2.f32 %v2161_v18  ;;  %v2392_v49 = vpack.c.bf16 %v2170_v31, %v2169_v11  ;;  %v5824_v11 = vld [vmem:[#allocation13_spill] sm:$0xff]  ;;  %v5828_v18 = vld [vmem:[#allocation27_spill] sm:$0xff] }
 0x283   : > { %v3812_v1 = vpop.eup %3811  ;;  %2228 = vadd.xlane.f32.xlu1 %v2171_v55  ;;  %2226 = vadd.xlane.f32.xlu0 %v2170_v31  ;;  %3825 = vpow2.f32 %v1169_v43  ;;  %v5829_v39 = vsub.f32 %v5827_v17, %v5828_v18  ;;  %v5842_v43 = vld [vmem:[#allocation20_spill] sm:$0xff] }
 0x284   : > { %v3814_v57 = vpop.eup %3813  ;;  %3639 = vmatmul.mubr.bf16.gmra.mxu1 %v2392_v49  ;;  %v2172_v56 = vmul.f32 %v3812_v1, %v3534_v25  ;;  %v5831_v49 = vld [vmem:[#allocation16_spill] sm:$0xff] }
 0x285   : > { %v2173_v63 = vmul.f32 %v3814_v57, %v5805_v60  ;;  %v1197_v31 = vmul.f32 1.442695, %v5829_v39  ;;  %v5833_v60 = vld [vmem:[#allocation24_spill] sm:$0xff] }
 0x286   : > { %v2393_v36 = vpack.c.bf16 %v2172_v56, %v2171_v55  ;;  %v5830_v55 = vld [vmem:[#allocation15_spill] sm:$0xff]  ;;  %v5863_v18 = vld [vmem:[#allocation40_spill] sm:$0xff] }
 0x287   : > { %v3816_v48 = vpop.eup %3815  ;;  %2232 = vadd.xlane.f32.xlu1 %v2173_v63  ;;  %2230 = vadd.xlane.f32.xlu0 %v2172_v56  ;;  %v5832_v1 = vsub.f32 %v5830_v55, %v5831_v49  ;;  %v5864_v39 = vsub.f32 %v5863_v18, %v4915_v14  ;;  %v5865_v49 = vld [vmem:[#allocation44_spill] sm:$0xff] }
 0x288   : > { %v3818_v7 = vpop.eup %3817  ;;  %3642 = vmatprep.mubr.bf16.mxu1 %v2393_v36  ;;  %v2174_v47 = vmul.f32 %v3816_v48, %v5806_v27  ;;  %v5836_v27 = vld [vmem:[#allocation17_spill] sm:$0xff]  ;;  %v1344_v18 = vld [vmem:[#allocation3 + $0x8] sm:$0xff] }
 0x289   : > { %v2175_v45 = vmul.f32 %v3818_v7, %v5807_v46  ;;  %v1187_v57 = vmul.f32 1.442695, %v5832_v1  ;;  %v5866_v1 = vld [vmem:[#allocation46_spill] sm:$0xff] }
 0x28a   : > { %v2394_v29 = vpack.c.bf16 %v2174_v47, %v2173_v63  ;;  %v5834_v63 = vld [vmem:[#allocation26_spill] sm:$0xff] }
 0x28b   : > { %v3820_v5 = vpop.eup %3819  ;;  %2236 = vadd.xlane.f32.xlu1 %v2175_v45  ;;  %2234 = vadd.xlane.f32.xlu0 %v2174_v47  ;;  %v5835_v36 = vsub.f32 %v5833_v60, %v5834_v63  ;;  %v5837_v47 = vld [vmem:[#allocation18_spill] sm:$0xff] }
 0x28c   : > { %v3822_v23 = vpop.eup %3821  ;;  %3643 = vmatmul.mubr.bf16.gmra.mxu1 %v2394_v29  ;;  %v2176_v25 = vmul.f32 %v3820_v5, %v3542_v26  ;;  %v1173_v26 = vmul.f32 1.442695, %v5809_v12  ;;  %v5838_v46 = vsub.f32 %v5836_v27, %v5837_v47  ;;  %v5839_v5 = vld [vmem:[#allocation33_spill] sm:$0xff] }
 0x28d   : > { %v2177_v22 = vmul.f32 %v3822_v23, %v3545_v8  ;;  %v5811_v8 = vsub.f32 %v4670_v0, %v4674_v4  ;;  %v5815_v0 = vsub.f32 %v4692_v20, %v4708_v34  ;;  %v5822_v20 = vld [vmem:[#allocation23_spill] sm:$0xff]  ;;  %v2003_v48 = vmul.f32 1.442695, %v5835_v36 }
 0x28e   : > { %v2395_v13 = vpack.c.bf16 %v2176_v25, %v2175_v45  ;;  %3827 = vpow2.f32 %v1173_v26  ;;  %v5823_v34 = vsub.f32 %v5821_v10, %v5822_v20  ;;  %v1191_v45 = vmul.f32 1.442695, %v5838_v46  ;;  %v5840_v23 = vld [vmem:[#allocation35_spill] sm:$0xff]  ;;  %v5845_v26 = vld [vmem:[#allocation28_spill] sm:$0xff]  ;;  %v5858_v10 = vld [vmem:[#allocation38_spill] sm:$0xff] }
 0x28f   : > { %v3824_v2 = vpop.eup %3823  ;;  %2240 = vadd.xlane.f32.xlu1 %v2177_v22  ;;  %2238 = vadd.xlane.f32.xlu0 %v2176_v25  ;;  %v1167_v37 = vmul.f32 1.442695, %v5811_v8  ;;  %3829 = vpow2.f32 %v1177_v16  ;;  %v1175_v4 = vmul.f32 1.442695, %v5815_v0  ;;  %v5841_v25 = vsub.f32 %v5839_v5, %v5840_v23  ;;  %v5868_v36 = vld [vmem:[#allocation43_spill] sm:$0xff]  ;;  %v5871_v46 = vld [vmem:[#allocation48_spill] sm:$0xff] }
 0x290   : > { %3646 = vmatprep.mubr.bf16.mxu1 %v2395_v13  ;;  %v2178_v40 = vmul.f32 %v3824_v2, %v3546_v52  ;;  %v5812_v52 = vsub.f32 %v4736_v33, %v4753_v30  ;;  %v5162_v53 = vpop.eup %3825  ;;  %v5816_v33 = vld [vmem:[#allocation19_spill] sm:$0xff]  ;;  %v1193_v32 = vmul.f32 1.442695, %v5823_v34  ;;  %v5843_v13 = vld [vmem:[#allocation22_spill] sm:$0xff] }
 0x291   : > { %3831 = vpow2.f32 %v1167_v37  ;;  %v5817_v30 = vsub.f32 %v4778_v50, %v5816_v33  ;;  %v5825_v50 = vld [vmem:[#allocation14_spill] sm:$0xff]  ;;  %v5844_v2 = vsub.f32 %v5842_v43, %v5843_v13  ;;  %v5848_v37 = vld [vmem:[#allocation29_spill] sm:$0xff] }
 0x292   : > { %v2396_v54 = vpack.c.bf16 %v2178_v40, %v2177_v22  ;;  %v1181_v28 = vmul.f32 1.442695, %v5812_v52  ;;  %v5826_v51 = vsub.f32 %v5824_v11, %v5825_v50  ;;  %v2007_v22 = vmul.f32 1.442695, %v5841_v25  ;;  %v5849_v52 = vld [vmem:[#allocation31_spill] sm:$0xff]  ;;  %v5860_v11 = vld [vmem:[#allocation41_spill] sm:$0xff] }
 0x293   : > { %2242 = vadd.xlane.f32.xlu0 %v2178_v40  ;;  %v1189_v9 = vmul.f32 1.442695, %v5817_v30  ;;  %v1195_v40 = vmul.f32 1.442695, %v5844_v2  ;;  %v5854_v30 = vld [vmem:[#allocation37_spill] sm:$0xff]  ;;  %v5861_v50 = vld [vmem:[#allocation42_spill] sm:$0xff] }
 0x294   : > { %3647 = vmatmul.mubr.bf16.gmra.mxu1 %v2396_v54  ;;  %3833 = vpow2.f32 %v1181_v28  ;;  %v1183_v62 = vmul.f32 1.442695, %v5826_v51  ;;  %v5846_v54 = vld [vmem:[#allocation30_spill] sm:$0xff]  ;;  %v5850_v28 = vsub.f32 %v5848_v37, %v5849_v52  ;;  %v5862_v51 = vsub.f32 %v5860_v11, %v5861_v50  ;;  %v5875_v43 = vld [vmem:[#allocation49_spill] sm:$0xff]  ;;  %v5880_v52 = vld [vmem:[#allocation51_spill] sm:$0xff] }
 0x295   : > { %3835 = vpow2.f32 %v1171_v35  ;;  %v5847_v6 = vsub.f32 %v5845_v26, %v5846_v54  ;;  %v5877_v26 = vld [vmem:[#allocation52_spill] sm:$0xff]  ;;  %v5878_v54 = vld [vmem:[#allocation54_spill] sm:$0xff] }
 0x296   : > { %3837 = vpow2.f32 %v1185_v38  ;;  %v2005_v21 = vmul.f32 1.442695, %v5850_v28  ;;  %v5852_v38 = vld [vmem:[#allocation34_spill] sm:$0xff]  ;;  %v5881_v28 = vld [vmem:[#allocation53_spill] sm:$0xff] }
 0x297   : > { %3839 = vpow2.f32 %v1175_v4  ;;  %v2009_v16 = vmul.f32 1.442695, %v5847_v6  ;;  %v5853_v0 = vsub.f32 %v5851_v58, %v5852_v38  ;;  %v5879_v6 = vsub.f32 %v5877_v26, %v5878_v54  ;;  %v1345_v50 = vld [vmem:[#allocation3 + $0x10] sm:$0xff]  ;;  %v1351_v54 = vld [vmem:[#allocation3 + $0x40] sm:$0xff] }
 0x298   : > { %3841 = vpow2.f32 %v1189_v9  ;;  %v5855_v9 = vld [vmem:[#allocation39_spill] sm:$0xff] }
 0x299   : > { %3843 = vpow2.f32 %v1179_v41  ;;  %v2013_v4 = vmul.f32 1.442695, %v5853_v0  ;;  %v5856_v3 = vsub.f32 %v5854_v30, %v5855_v9  ;;  %v5857_v41 = vld [vmem:[#allocation36_spill] sm:$0xff]  ;;  %v5883_v0 = vld [vmem:[#allocation55_spill] sm:$0xff] }
 0x29a   : > { %3845 = vpow2.f32 %v1193_v32  ;;  %v5859_v20 = vsub.f32 %v5857_v41, %v5858_v10  ;;  %v1343_v41 = vld [vmem:[#allocation3] sm:$0xff] }
 0x29b   : > { %v5171_v19 = vpop.eup %3827  ;;  %3847 = vpow2.f32 %v1183_v62  ;;  %v2011_v42 = vmul.f32 1.442695, %v5856_v3  ;;  %v2015_v62 = vmul.f32 1.442695, %v5862_v51 }
 0x29c   : > { %v5180_v24 = vpop.eup %3829  ;;  %3849 = vpow2.f32 %v1197_v31  ;;  %v2017_v34 = vmul.f32 1.442695, %v5859_v20  ;;  %v2021_v31 = vmul.f32 1.442695, %v5864_v39 }
 0x29d   : > { %3851 = vpow2.f32 %v1187_v57  ;;  %v5867_v57 = vsub.f32 %v5865_v49, %v5866_v1 }
 0x29e   : > { %v5185_v61 = vpop.eup %3831  ;;  %3853 = vpow2.f32 %v2003_v48  ;;  %v5869_v48 = vld [vmem:[#allocation45_spill] sm:$0xff] }
 0x29f   : > { %3855 = vpow2.f32 %v1191_v45  ;;  %v2019_v60 = vmul.f32 1.442695, %v5867_v57  ;;  %v5870_v27 = vsub.f32 %v5868_v36, %v5869_v48  ;;  %v5872_v45 = vld [vmem:[#allocation50_spill] sm:$0xff]  ;;  %v1359_v20 = vmul.f32 %v5185_v61, %v1343_v41 }
 0x2a0   : > { %1463 = vperm.xlu1 %3744, %v5162_v53   ;;  %3857 = vpow2.f32 %v2007_v22  ;;  %v5873_v5 = vsub.f32 %v5871_v46, %v5872_v45  ;;  %v5874_v22 = vld [vmem:[#allocation47_spill] sm:$0xff]  ;;  %v1346_v48 = vld [vmem:[#allocation3 + $0x18] sm:$0xff] }
 0x2a1   : > { %v5192_v15 = vpop.eup %3833  ;;  %3859 = vpow2.f32 %v1195_v40  ;;  %v2025_v47 = vmul.f32 1.442695, %v5870_v27  ;;  %v5876_v13 = vsub.f32 %v5874_v22, %v5875_v43  ;;  %v1347_v36 = vld [vmem:[#allocation3 + $0x20] sm:$0xff]  ;;  %v1348_v22 = vld [vmem:[#allocation3 + $0x28] sm:$0xff] }
 0x2a2   : > { %v5197_v56 = vpop.eup %3835  ;;  %3861 = vpow2.f32 %v2009_v16  ;;  %v2023_v23 = vmul.f32 1.442695, %v5873_v5  ;;  %v2027_v16 = vmul.f32 1.442695, %v5879_v6  ;;  %v1350_v6 = vld [vmem:[#allocation3 + $0x38] sm:$0xff] }
 0x2a3   : > { %v5204_v7 = vpop.eup %3837  ;;  %3863 = vpow2.f32 %v2005_v21  ;;  %v2029_v2 = vmul.f32 1.442695, %v5876_v13  ;;  %v5882_v21 = vsub.f32 %v5880_v52, %v5881_v28  ;;  %v1361_v39 = vmul.f32 %v5197_v56, %v1345_v50  ;;  %v1355_v50 = vld [vmem:[#allocation3 + $0x60] sm:$0xff] }
 0x2a4   : > { %1473 = vperm.xlu1 %3744, %v5171_v19   ;;  %v5209_v29 = vpop.eup %3839  ;;  %3865 = vpow2.f32 %v2013_v4  ;;  %v5884_v4 = vld [vmem:[#allocation56_spill] sm:$0xff] }
 0x2a5   : > { %v5216_v59 = vpop.eup %3841  ;;  %3867 = vpow2.f32 %v2011_v42  ;;  %v2033_v58 = vmul.f32 1.442695, %v5882_v21  ;;  %v5885_v30 = vsub.f32 %v5883_v0, %v5884_v4  ;;  %v1366_v21 = vmul.f32 %v5192_v15, %v1350_v6  ;;  %v1353_v4 = vld [vmem:[#allocation3 + $0x50] sm:$0xff]  ;;  %v2184_v6 = vld [vmem:[#allocation3 + $0xa0] sm:$0xff] }
 0x2a6   : > { %v5221_v12 = vpop.eup %3843  ;;  %3869 = vpow2.f32 %v2017_v34 }
 0x2a7   : > { %v5228_v8 = vpop.eup %3845  ;;  %3871 = vpow2.f32 %v2015_v62  ;;  %v2031_v9 = vmul.f32 1.442695, %v5885_v30 }
 0x2a8   : > { %1483 = vperm.xlu1 %3744, %v5180_v24   ;;  %v5233_v35 = vpop.eup %3847  ;;  %3873 = vpow2.f32 %v2021_v31 }
 0x2a9   : > { %1458 = vperm.xlu0 %3743, %v5185_v61   ;;  %v5240_v33 = vpop.eup %3849  ;;  %3875 = vpow2.f32 %v2019_v60  ;;  %v1360_v61 = vmul.f32 %v5162_v53, %v1344_v18  ;;  %v1362_v53 = vmul.f32 %v5171_v19, %v1346_v48  ;;  %v1364_v19 = vmul.f32 %v5180_v24, %v1348_v22  ;;  %v2180_v22 = vld [vmem:[#allocation3 + $0x80] sm:$0xff] }
 0x2aa   : > { %v5245_v44 = vpop.eup %3851  ;;  %3877 = vpow2.f32 %v2025_v47  ;;  %v1367_v28 = vmul.f32 %v5233_v35, %v1351_v54 }
 0x2ab   : > { %v5252_v32 = vpop.eup %3853  ;;  %3879 = vpow2.f32 %v2023_v23  ;;  %v1349_v23 = vld [vmem:[#allocation3 + $0x30] sm:$0xff] }
 0x2ac   : > { %1493 = vperm.xlu1 %3744, %v5192_v15   ;;  %v5257_v17 = vpop.eup %3855  ;;  %3881 = vpow2.f32 %v2029_v2 }
 0x2ad   : > { %1468 = vperm.xlu0 %3743, %v5197_v56   ;;  %v5264_v55 = vpop.eup %3857  ;;  %3883 = vpow2.f32 %v2027_v16  ;;  %v1363_v56 = vmul.f32 %v5209_v29, %v1347_v36  ;;  %v1371_v18 = vmul.f32 %v5257_v17, %v1355_v50  ;;  %v1358_v36 = vld [vmem:[#allocation3 + $0x78] sm:$0xff] }
 0x2ae   : > { %v5269_v63 = vpop.eup %3859  ;;  %3885 = vpow2.f32 %v2033_v58 }
 0x2af   : > { %v5276_v14 = vpop.eup %3861  ;;  %3887 = vpow2.f32 %v2031_v9  ;;  %v1369_v9 = vmul.f32 %v5245_v44, %v1353_v4 }
 0x2b0   : > { %1503 = vperm.xlu1 %3744, %v5204_v7   ;;  %v5281_v25 = vpop.eup %3863 }
 0x2b1   : > { %1478 = vperm.xlu0 %3743, %v5209_v29   ;;  %v5288_v40 = vpop.eup %3865  ;;  %v1365_v29 = vmul.f32 %v5221_v12, %v1349_v23  ;;  %v2181_v23 = vld [vmem:[#allocation3 + $0x88] sm:$0xff] }
 0x2b2   : > { %v5293_v37 = vpop.eup %3867 }
 0x2b3   : > { %v5300_v38 = vpop.eup %3869 }
 0x2b4   : > { %1513 = vperm.xlu1 %3744, %v5216_v59   ;;  %v5305_v3 = vpop.eup %3871 }
 0x2b5   : > { %1488 = vperm.xlu0 %3743, %v5221_v12   ;;  %v5309_v42 = vpop.eup %3873  ;;  %v1352_v12 = vld [vmem:[#allocation3 + $0x48] sm:$0xff] }
 0x2b6   : > { %v5311_v10 = vpop.eup %3875  ;;  %v1368_v41 = vmul.f32 %v5204_v7, %v1352_v12 }
 0x2b7   : > { %v5316_v34 = vpop.eup %3877 }
 0x2b8   : > { %1523 = vperm.xlu1 %3744, %v5228_v8   ;;  %v5318_v51 = vpop.eup %3879 }
 0x2b9   : > { %1498 = vperm.xlu0 %3743, %v5233_v35   ;;  %v5324_v31 = vpop.eup %3881  ;;  %v1354_v35 = vld [vmem:[#allocation3 + $0x58] sm:$0xff] }
 0x2ba   : > { %v5327_v1 = vpop.eup %3883 }
 0x2bb   : > { %v5332_v47 = vpop.eup %3885 }
 0x2bc   : > { %1533 = vperm.xlu1 %3744, %v5240_v33   ;;  %v5337_v46 = vpop.eup %3887 }
 0x2bd   : > { %1508 = vperm.xlu0 %3743, %v5245_v44  }
 0x2c0   : > { %2295 = vperm.xlu1 %3744, %v5252_v32  }
 0x2c1   : > { %1518 = vperm.xlu0 %3743, %v5257_v17  }
 0x2c4   : > { %2305 = vperm.xlu1 %3744, %v5264_v55  }
 0x2c5   : > { %1528 = vperm.xlu0 %3743, %v5269_v63  }
 0x2c8   : > { %2310 = vperm.xlu1 %3744, %v5276_v14  }
 0x2c9   : > { %2300 = vperm.xlu0 %3743, %v5281_v25  }
 0x2cc   : > { %2320 = vperm.xlu1 %3744, %v5288_v40  }
 0x2cd   : > { %2315 = vperm.xlu0 %3743, %v5293_v37  }
 0x2d0   : > { %2330 = vperm.xlu1 %3744, %v5300_v38  }
 0x2d1   : > { %2325 = vperm.xlu0 %3743, %v5305_v3  }
 0x2d4   : > { %2340 = vperm.xlu1 %3744, %v5309_v42  }
 0x2d5   : > { %2335 = vperm.xlu0 %3743, %v5311_v10  }
 0x2d7   : > { %v1376_v11 = vpop.xlane.xlu0 %1375 }
 0x2d8   : > { %2350 = vperm.xlu1 %3744, %v5316_v34   ;;  %v1407_v62 = vadd.f32 %v1376_v11, %v1359_v20 }
 0x2d9   : > { %2345 = vperm.xlu0 %3743, %v5318_v51  }
 0x2da   : > { %1424 = vst.msk [vmem:[#allocation3] sm:$0xff] %vm1423_vm1, %v1407_v62 }
 0x2db   : > { %v1380_v49 = vpop.xlane.xlu1 %1379 }
 0x2dc   : > { %v1409_v57 = vadd.f32 %v1380_v49, %v1361_v39  ;;  %2360 = vperm.xlu1 %3744, %v5324_v31   ;;  %v1378_v60 = vpop.xlane.xlu0 %1377  ;;  %v1370_v39 = vmul.f32 %v5216_v59, %v1354_v35 }
 0x2dd   : > { %v1408_v27 = vadd.f32 %v1378_v60, %v1360_v61  ;;  %2355 = vperm.xlu0 %3743, %v5327_v1  }
 0x2de   : > { %1426 = vst.msk [vmem:[#allocation3 + $0x10] sm:$0xff] %vm1423_vm1, %v1409_v57  ;;  %v1356_v57 = vld [vmem:[#allocation3 + $0x68] sm:$0xff] }
 0x2df   : > { %1425 = vst.msk [vmem:[#allocation3 + $0x8] sm:$0xff] %vm1423_vm1, %v1408_v27  ;;  %v1372_v7 = vmul.f32 %v5228_v8, %v1356_v57  ;;  %v1357_v27 = vld [vmem:[#allocation3 + $0x70] sm:$0xff]  ;;  %v2197_v8 = vmul.f32 %v5281_v25, %v2181_v23  ;;  %v2200_v25 = vmul.f32 %v5293_v37, %v2184_v6  ;;  %v2187_v37 = vld [vmem:[#allocation3 + $0xb8] sm:$0xff] }
 0x2e0   : > { %v1384_v45 = vpop.xlane.xlu1 %1383  ;;  %2370 = vperm.xlu1 %3744, %v5332_v47   ;;  %v1382_v5 = vpop.xlane.xlu0 %1381  ;;  %v1373_v17 = vmul.f32 %v5269_v63, %v1357_v27  ;;  %v2203_v50 = vmul.f32 %v5300_v38, %v2187_v37  ;;  %v2195_v23 = vld [vmem:[#allocation3 + $0xf8] sm:$0xff] }
 0x2e1   : > { %v1411_v43 = vadd.f32 %v1384_v45, %v1363_v56  ;;  %v1410_v13 = vadd.f32 %v1382_v5, %v1362_v53  ;;  %2365 = vperm.xlu0 %3743, %v5337_v46   ;;  %v1374_v53 = vmul.f32 %v5240_v33, %v1358_v36 }
 0x2e3   : > { %1428 = vst.msk [vmem:[#allocation3 + $0x20] sm:$0xff] %vm1423_vm1, %v1411_v43  ;;  %1427 = vst.msk [vmem:[#allocation3 + $0x18] sm:$0xff] %vm1423_vm1, %v1410_v13  ;;  %v2196_v13 = vmul.f32 %v5252_v32, %v2180_v22 }
 0x2e4   : > { %v1388_v2 = vpop.xlane.xlu1 %1387  ;;  %v1386_v26 = vpop.xlane.xlu0 %1385 }
 0x2e5   : > { %v1413_v16 = vadd.f32 %v1388_v2, %v1365_v29  ;;  %v1412_v52 = vadd.f32 %v1386_v26, %v1364_v19  ;;  %v2182_v19 = vld [vmem:[#allocation3 + $0x90] sm:$0xff] }
 0x2e6   : > { %v2198_v63 = vmul.f32 %v5264_v55, %v2182_v19 }
 0x2e7   : > { %1430 = vst.msk [vmem:[#allocation3 + $0x30] sm:$0xff] %vm1423_vm1, %v1413_v16  ;;  %1429 = vst.msk [vmem:[#allocation3 + $0x28] sm:$0xff] %vm1423_vm1, %v1412_v52  ;;  %v2183_v16 = vld [vmem:[#allocation3 + $0x98] sm:$0xff] }
 0x2e8   : > { %v1392_v58 = vpop.xlane.xlu1 %1391  ;;  %v1390_v0 = vpop.xlane.xlu0 %1389  ;;  %v2199_v32 = vmul.f32 %v5276_v14, %v2183_v16 }
 0x2e9   : > { %v1415_v30 = vadd.f32 %v1392_v58, %v1367_v28  ;;  %v1414_v24 = vadd.f32 %v1390_v0, %v1366_v21  ;;  %v2186_v58 = vld [vmem:[#allocation3 + $0xb0] sm:$0xff]  ;;  %v2185_v0 = vld [vmem:[#allocation3 + $0xa8] sm:$0xff] }
 0x2ea   : > { %v2202_v55 = vmul.f32 %v5305_v3, %v2186_v58  ;;  %v2189_v3 = vld [vmem:[#allocation3 + $0xc8] sm:$0xff] }
 0x2eb   : > { %1432 = vst.msk [vmem:[#allocation3 + $0x40] sm:$0xff] %vm1423_vm1, %v1415_v30  ;;  %1431 = vst.msk [vmem:[#allocation3 + $0x38] sm:$0xff] %vm1423_vm1, %v1414_v24  ;;  %v2201_v30 = vmul.f32 %v5288_v40, %v2185_v0 }
 0x2ec   : > { %v1396_v20 = vpop.xlane.xlu1 %1395  ;;  %v1394_v11 = vpop.xlane.xlu0 %1393 }
 0x2ed   : > { %v1417_v62 = vadd.f32 %v1396_v20, %v1369_v9  ;;  %v1416_v15 = vadd.f32 %v1394_v11, %v1368_v41  ;;  %v2188_v41 = vld [vmem:[#allocation3 + $0xc0] sm:$0xff] }
 0x2ee   : > { %v2204_v11 = vmul.f32 %v5311_v10, %v2188_v41  ;;  %v2191_v10 = vld [vmem:[#allocation3 + $0xd8] sm:$0xff] }
 0x2ef   : > { %1434 = vst.msk [vmem:[#allocation3 + $0x50] sm:$0xff] %vm1423_vm1, %v1417_v62  ;;  %1433 = vst.msk [vmem:[#allocation3 + $0x48] sm:$0xff] %vm1423_vm1, %v1416_v15  ;;  %v2190_v15 = vld [vmem:[#allocation3 + $0xd0] sm:$0xff]  ;;  %v2207_v36 = vmul.f32 %v5316_v34, %v2191_v10 }
 0x2f0   : > { %v1400_v49 = vpop.xlane.xlu1 %1399  ;;  %v1398_v61 = vpop.xlane.xlu0 %1397 }
 0x2f1   : > { %v1419_v44 = vadd.f32 %v1400_v49, %v1371_v18  ;;  %v1418_v60 = vadd.f32 %v1398_v61, %v1370_v39  ;;  %v2206_v39 = vmul.f32 %v5318_v51, %v2190_v15  ;;  %v2205_v49 = vmul.f32 %v5309_v42, %v2189_v3  ;;  %v2193_v51 = vld [vmem:[#allocation3 + $0xe8] sm:$0xff] }
 0x2f3   : > { %1436 = vst.msk [vmem:[#allocation3 + $0x60] sm:$0xff] %vm1423_vm1, %v1419_v44  ;;  %1435 = vst.msk [vmem:[#allocation3 + $0x58] sm:$0xff] %vm1423_vm1, %v1418_v60  ;;  %v2192_v44 = vld [vmem:[#allocation3 + $0xe0] sm:$0xff] }
 0x2f4   : > { %v1402_v48 = vpop.xlane.xlu0 %1401 }
 0x2f5   : > { %v1420_v56 = vadd.f32 %v1402_v48, %v1372_v7  ;;  %v2208_v7 = vmul.f32 %v5327_v1, %v2192_v44  ;;  %v1446_v44 = vld [vmem:[#allocation4 + $0x30] sm:$0xff] }
 0x2f7   : > { %1437 = vst.msk [vmem:[#allocation3 + $0x68] sm:$0xff] %vm1423_vm1, %v1420_v56  ;;  %v1406_v59 = vpop.xlane.xlu1 %1405  ;;  %v2194_v56 = vld [vmem:[#allocation3 + $0xf0] sm:$0xff] }
 0x2f8   : > { %v1422_v45 = vadd.f32 %v1406_v59, %v1374_v53  ;;  %v1404_v5 = vpop.xlane.xlu0 %1403  ;;  %v2210_v59 = vmul.f32 %v5337_v46, %v2194_v56 }
 0x2f9   : > { %v1421_v43 = vadd.f32 %v1404_v5, %v1373_v17  ;;  %v2209_v17 = vmul.f32 %v5324_v31, %v2193_v51  ;;  %v1443_v31 = vld [vmem:[#allocation4 + $0x18] sm:$0xff]  ;;  %v1453_v51 = vld [vmem:[#allocation4 + $0xf0] sm:$0xff] }
 0x2fa   : > { %1439 = vst.msk [vmem:[#allocation3 + $0x78] sm:$0xff] %vm1423_vm1, %v1422_v45 }
 0x2fb   : > { %1438 = vst.msk [vmem:[#allocation3 + $0x70] sm:$0xff] %vm1423_vm1, %v1421_v43  ;;  %v1441_v43 = vld [vmem:[#allocation4] sm:$0xff] }
 0x2fc   : > { %v2215_v29 = vpop.xlane.xlu1 %2214  ;;  %v2213_v33 = vpop.xlane.xlu0 %2212 }
 0x2fd   : > { %v2245_v2 = vadd.f32 %v2215_v29, %v2197_v8  ;;  %v2244_v26 = vadd.f32 %v2213_v33, %v2196_v13  ;;  %v2211_v13 = vmul.f32 %v5332_v47, %v2195_v23 }
 0x2ff   : > { %2261 = vst.msk [vmem:[#allocation3 + $0x88] sm:$0xff] %vm1423_vm1, %v2245_v2  ;;  %2260 = vst.msk [vmem:[#allocation3 + $0x80] sm:$0xff] %vm1423_vm1, %v2244_v26 }
 0x300   : > { %v2217_v54 = vpop.xlane.xlu0 %2216 }
 0x301   : > { %v2246_v52 = vadd.f32 %v2217_v54, %v2198_v63 }
 0x303   : > { %2262 = vst.msk [vmem:[#allocation3 + $0x90] sm:$0xff] %vm1423_vm1, %v2246_v52  ;;  %v1445_v52 = vld [vmem:[#allocation4 + $0x68] sm:$0xff] }
 0x304   : > { %v2221_v28 = vpop.xlane.xlu1 %2220  ;;  %v2219_v21 = vpop.xlane.xlu0 %2218 }
 0x305   : > { %v2248_v4 = vadd.f32 %v2221_v28, %v2200_v25  ;;  %v2247_v12 = vadd.f32 %v2219_v21, %v2199_v32  ;;  %v1440_v25 = vld [vmem:[#allocation4 + $0xb0] sm:$0xff] }
 0x307   : > { %2264 = vst.msk [vmem:[#allocation3 + $0xa0] sm:$0xff] %vm1423_vm1, %v2248_v4  ;;  %2263 = vst.msk [vmem:[#allocation3 + $0x98] sm:$0xff] %vm1423_vm1, %v2247_v12  ;;  %v1447_v12 = vld [vmem:[#allocation4 + $0x48] sm:$0xff] }
 0x308   : > { %v2225_v24 = vpop.xlane.xlu1 %2224  ;;  %v2223_v9 = vpop.xlane.xlu0 %2222 }
 0x309   : > { %v2250_v20 = vadd.f32 %v2225_v24, %v2202_v55  ;;  %v2249_v14 = vadd.f32 %v2223_v9, %v2201_v30  ;;  %v1442_v55 = vld [vmem:[#allocation4 + $0xd8] sm:$0xff] }
 0x30b   : > { %2266 = vst.msk [vmem:[#allocation3 + $0xb0] sm:$0xff] %vm1423_vm1, %v2250_v20  ;;  %2265 = vst.msk [vmem:[#allocation3 + $0xa8] sm:$0xff] %vm1423_vm1, %v2249_v14 }
 0x30c   : > { %v2229_v35 = vpop.xlane.xlu1 %2228  ;;  %v2227_v62 = vpop.xlane.xlu0 %2226 }
 0x30d   : > { %v2252_v18 = vadd.f32 %v2229_v35, %v2204_v11  ;;  %v2251_v40 = vadd.f32 %v2227_v62, %v2203_v50  ;;  %v1449_v50 = vld [vmem:[#allocation4 + $0x88] sm:$0xff]  ;;  %v1444_v35 = vld [vmem:[#allocation4 + $0x50] sm:$0xff] }
 0x30f   : > { %2268 = vst.msk [vmem:[#allocation3 + $0xc0] sm:$0xff] %vm1423_vm1, %v2252_v18  ;;  %2267 = vst.msk [vmem:[#allocation3 + $0xb8] sm:$0xff] %vm1423_vm1, %v2251_v40 }
 0x310   : > { %v2233_v61 = vpop.xlane.xlu1 %2232  ;;  %v2231_v57 = vpop.xlane.xlu0 %2230 }
 0x311   : > { %v2254_v60 = vadd.f32 %v2233_v61, %v2206_v39  ;;  %v2253_v38 = vadd.f32 %v2231_v57, %v2205_v49  ;;  %v1451_v57 = vld [vmem:[#allocation4 + $0xb8] sm:$0xff] }
 0x313   : > { %2270 = vst.msk [vmem:[#allocation3 + $0xd0] sm:$0xff] %vm1423_vm1, %v2254_v60  ;;  %2269 = vst.msk [vmem:[#allocation3 + $0xc8] sm:$0xff] %vm1423_vm1, %v2253_v38 }
 0x314   : > { %v2237_v48 = vpop.xlane.xlu1 %2236  ;;  %v2235_v27 = vpop.xlane.xlu0 %2234 }
 0x315   : > { %v2256_v53 = vadd.f32 %v2237_v48, %v2208_v7  ;;  %v2255_v42 = vadd.f32 %v2235_v27, %v2207_v36 }
 0x317   : > { %2272 = vst.msk [vmem:[#allocation3 + $0xe0] sm:$0xff] %vm1423_vm1, %v2256_v53  ;;  %2271 = vst.msk [vmem:[#allocation3 + $0xd8] sm:$0xff] %vm1423_vm1, %v2255_v42  ;;  %v1448_v53 = vld [vmem:[#allocation4 + $0x80] sm:$0xff] }
 0x318   : > { %v2241_v45 = vpop.xlane.xlu1 %2240  ;;  %v2239_v5 = vpop.xlane.xlu0 %2238 }
 0x319   : > { %v2258_v1 = vadd.f32 %v2241_v45, %v2210_v59  ;;  %v2257_v22 = vadd.f32 %v2239_v5, %v2209_v17  ;;  %v3604_v34 = vpop.f32.mrf.mxu0 }
 0x31b   : > { %2274 = vst.msk [vmem:[#allocation3 + $0xf0] sm:$0xff] %vm1423_vm1, %v2258_v1  ;;  %2273 = vst.msk [vmem:[#allocation3 + $0xe8] sm:$0xff] %vm1423_vm1, %v2257_v22  ;;  %v1658_v8 = vpop.f32.mrf.mxu0 }
 0x31c   : > { %v1464_v29 = vpop.permute.xlu1 %1463  ;;  %v2243_v33 = vpop.xlane.xlu0 %2242 }
 0x31d   : > { %v1537_v19 = vmul.f32 %v1464_v29, %v1441_v43  ;;  %v2259_v46 = vadd.f32 %v2243_v33, %v2211_v13  ;;  %v3605_v2 = vpop.f32.mrf.mxu0  ;;  %v1450_v43 = vld [vmem:[#allocation4 + $0xe8] sm:$0xff] }
 0x31f   : > { %2275 = vst.msk [vmem:[#allocation3 + $0xf8] sm:$0xff] %vm1423_vm1, %v2259_v46  ;;  %v1661_v26 = vpop.f32.mrf.mxu0 }
 0x320   : > { %v1722_v63 = vadd.f32 %v1661_v26, %v1537_v19  ;;  %v1474_v54 = vpop.permute.xlu1 %1473  ;;  %v1452_v26 = vld [vmem:[#allocation4 + $0x60] sm:$0xff] }
 0x321   : > { %v1539_v6 = vmul.f32 %v1474_v54, %v1443_v31  ;;  %v3608_v16 = vpop.f32.mrf.mxu0  ;;  %v2277_v31 = vld [vmem:[#allocation4 + $0x38] sm:$0xff] }
 0x322   : > { %1738 = vst [vmem:[#allocation4] sm:$0xff] %v1722_v63 }
 0x323   : > { %v1724_v32 = vadd.f32 %v3605_v2, %v1539_v6  ;;  %v1674_v28 = vpop.f32.mrf.mxu0 }
 0x324   : > { %v1484_v21 = vpop.permute.xlu1 %1483  ;;  %v1459_v47 = vpop.permute.xlu0 %1458 }
 0x325   : > { %1740 = vst [vmem:[#allocation4 + $0x18] sm:$0xff] %v1724_v32  ;;  %v1541_v58 = vmul.f32 %v1484_v21, %v1445_v52  ;;  %v1536_v0 = vmul.f32 %v1459_v47, %v1440_v25  ;;  %v3609_v4 = vpop.f32.mrf.mxu0  ;;  %v1454_v21 = vld [vmem:[#allocation4 + $0x8] sm:$0xff] }
 0x327   : > { %v1721_v30 = vadd.f32 %v1658_v8, %v1536_v0  ;;  %v1677_v24 = vpop.f32.mrf.mxu0 }
 0x328   : > { %v1726_v9 = vadd.f32 %v1677_v24, %v1541_v58  ;;  %v1494_v41 = vpop.permute.xlu1 %1493  ;;  %v1469_v37 = vpop.permute.xlu0 %1468 }
 0x329   : > { %1737 = vst [vmem:[#allocation4 + $0xb0] sm:$0xff] %v1721_v30  ;;  %v1543_v20 = vmul.f32 %v1494_v41, %v1447_v12  ;;  %v1538_v14 = vmul.f32 %v1469_v37, %v1442_v55  ;;  %v3612_v11 = vpop.f32.mrf.mxu0  ;;  %v2278_v41 = vld [vmem:[#allocation4 + $0x58] sm:$0xff] }
 0x32a   : > { %1742 = vst [vmem:[#allocation4 + $0x68] sm:$0xff] %v1726_v9  ;;  %v2280_v9 = vld [vmem:[#allocation4 + $0xc8] sm:$0xff] }
 0x32b   : > { %v1728_v62 = vadd.f32 %v3609_v4, %v1543_v20  ;;  %v1723_v15 = vadd.f32 %v3604_v34, %v1538_v14  ;;  %v1690_v3 = vpop.f32.mrf.mxu0  ;;  %v1455_v34 = vld [vmem:[#allocation4 + $0x78] sm:$0xff] }
 0x32c   : > { %v1504_v18 = vpop.permute.xlu1 %1503  ;;  %v1479_v40 = vpop.permute.xlu0 %1478 }
 0x32d   : > { %1744 = vst [vmem:[#allocation4 + $0x48] sm:$0xff] %v1728_v62  ;;  %1739 = vst [vmem:[#allocation4 + $0xd8] sm:$0xff] %v1723_v15  ;;  %v1545_v39 = vmul.f32 %v1504_v18, %v1449_v50  ;;  %v1540_v49 = vmul.f32 %v1479_v40, %v1444_v35  ;;  %v3613_v61 = vpop.f32.mrf.mxu0  ;;  %v2281_v18 = vld [vmem:[#allocation4 + $0xe0] sm:$0xff] }
 0x32f   : > { %v1725_v10 = vadd.f32 %v1674_v28, %v1540_v49  ;;  %v1693_v60 = vpop.f32.mrf.mxu0  ;;  %v2279_v28 = vld [vmem:[#allocation4 + $0x40] sm:$0xff] }
 0x330   : > { %v1730_v38 = vadd.f32 %v1693_v60, %v1545_v39  ;;  %v1514_v7 = vpop.permute.xlu1 %1513  ;;  %v1489_v36 = vpop.permute.xlu0 %1488 }
 0x331   : > { %1741 = vst [vmem:[#allocation4 + $0x50] sm:$0xff] %v1725_v10  ;;  %v1547_v48 = vmul.f32 %v1514_v7, %v1451_v57  ;;  %v1542_v27 = vmul.f32 %v1489_v36, %v1446_v44  ;;  %v3616_v56 = vpop.f32.mrf.mxu0  ;;  %v2283_v7 = vld [vmem:[#allocation4 + $0x70] sm:$0xff] }
 0x332   : > { %1746 = vst [vmem:[#allocation4 + $0x88] sm:$0xff] %v1730_v38  ;;  %v2284_v38 = vld [vmem:[#allocation4 + $0xc0] sm:$0xff] }
 0x333   : > { %v1732_v42 = vadd.f32 %v3613_v61, %v1547_v48  ;;  %v1727_v59 = vadd.f32 %v3608_v16, %v1542_v27  ;;  %v1706_v17 = vpop.f32.mrf.mxu0 }
 0x334   : > { %v1524_v45 = vpop.permute.xlu1 %1523  ;;  %v1499_v5 = vpop.permute.xlu0 %1498 }
 0x335   : > { %1748 = vst [vmem:[#allocation4 + $0xb8] sm:$0xff] %v1732_v42  ;;  %1743 = vst [vmem:[#allocation4 + $0x30] sm:$0xff] %v1727_v59  ;;  %v1549_v23 = vmul.f32 %v1524_v45, %v1453_v51  ;;  %v1544_v1 = vmul.f32 %v1499_v5, %v1448_v53  ;;  %v3617_v22 = vpop.f32.mrf.mxu0  ;;  %v2285_v45 = vld [vmem:[#allocation4 + $0xa8] sm:$0xff] }
 0x337   : > { %v1729_v8 = vadd.f32 %v1690_v3, %v1544_v1  ;;  %v1709_v13 = vpop.f32.mrf.mxu0  ;;  %v2282_v3 = vld [vmem:[#allocation4 + $0x90] sm:$0xff] }
 0x338   : > { %v1734_v29 = vadd.f32 %v1709_v13, %v1549_v23  ;;  %v1534_v33 = vpop.permute.xlu1 %1533  ;;  %v1509_v19 = vpop.permute.xlu0 %1508 }
 0x339   : > { %1745 = vst [vmem:[#allocation4 + $0x80] sm:$0xff] %v1729_v8  ;;  %v1551_v46 = vmul.f32 %v1534_v33, %v1455_v34  ;;  %v1546_v2 = vmul.f32 %v1509_v19, %v1450_v43  ;;  %v2287_v33 = vld [vmem:[#allocation4 + $0x10] sm:$0xff] }
 0x33a   : > { %1750 = vst [vmem:[#allocation4 + $0xf0] sm:$0xff] %v1734_v29  ;;  %v2288_v29 = vld [vmem:[#allocation4 + $0x28] sm:$0xff] }
 0x33b   : > { %v1736_v63 = vadd.f32 %v3617_v22, %v1551_v46  ;;  %v1731_v54 = vadd.f32 %v3612_v11, %v1546_v2 }
 0x33c   : > { %v2296_v6 = vpop.permute.xlu1 %2295  ;;  %v1519_v16 = vpop.permute.xlu0 %1518 }
 0x33d   : > { %1752 = vst [vmem:[#allocation4 + $0x78] sm:$0xff] %v1736_v63  ;;  %1747 = vst [vmem:[#allocation4 + $0xe8] sm:$0xff] %v1731_v54  ;;  %v2373_v52 = vmul.f32 %v2296_v6, %v2277_v31  ;;  %v1548_v25 = vmul.f32 %v1519_v16, %v1452_v26  ;;  %v3636_v32 = vpop.f32.mrf.mxu1  ;;  %v2290_v16 = vld [vmem:[#allocation4 + $0xf8] sm:$0xff] }
 0x33f   : > { %v1733_v47 = vadd.f32 %v1706_v17, %v1548_v25  ;;  %v2496_v58 = vpop.f32.mrf.mxu1  ;;  %v2286_v17 = vld [vmem:[#allocation4 + $0xd0] sm:$0xff] }
 0x340   : > { %v2559_v0 = vadd.f32 %v2496_v58, %v2373_v52  ;;  %v2306_v4 = vpop.permute.xlu1 %2305  ;;  %v1529_v12 = vpop.permute.xlu0 %1528  ;;  %v2289_v52 = vld [vmem:[#allocation4 + $0xa0] sm:$0xff] }
 0x341   : > { %1749 = vst [vmem:[#allocation4 + $0x60] sm:$0xff] %v1733_v47  ;;  %v2375_v55 = vmul.f32 %v2306_v4, %v2279_v28  ;;  %v1550_v30 = vmul.f32 %v1529_v12, %v1454_v21  ;;  %v3637_v24 = vpop.f32.mrf.mxu1  ;;  %v2292_v12 = vld [vmem:[#allocation4 + $0x98] sm:$0xff] }
 0x342   : > { %2575 = vst [vmem:[#allocation4 + $0x38] sm:$0xff] %v2559_v0 }
 0x343   : > { %v2561_v37 = vadd.f32 %v3636_v32, %v2375_v55  ;;  %v1735_v20 = vadd.f32 %v3616_v56, %v1550_v30  ;;  %v2499_v14 = vpop.f32.mrf.mxu1  ;;  %v2291_v55 = vld [vmem:[#allocation4 + $0x20] sm:$0xff] }
 0x344   : > { %v2311_v11 = vpop.permute.xlu1 %2310  ;;  %v2301_v50 = vpop.permute.xlu0 %2300 }
 0x345   : > { %2577 = vst [vmem:[#allocation4 + $0x40] sm:$0xff] %v2561_v37  ;;  %1751 = vst [vmem:[#allocation4 + $0x8] sm:$0xff] %v1735_v20  ;;  %v2376_v35 = vmul.f32 %v2311_v11, %v2280_v9  ;;  %v2374_v62 = vmul.f32 %v2301_v50, %v2278_v41  ;;  %v3640_v15 = vpop.f32.mrf.mxu1 }
 0x347   : > { %v2562_v40 = vadd.f32 %v3637_v24, %v2376_v35  ;;  %v2560_v39 = vadd.f32 %v2499_v14, %v2374_v62  ;;  %v2512_v49 = vpop.f32.mrf.mxu1 }
 0x348   : > { %v2321_v61 = vpop.permute.xlu1 %2320  ;;  %v2316_v57 = vpop.permute.xlu0 %2315 }
 0x349   : > { %2578 = vst [vmem:[#allocation4 + $0xc8] sm:$0xff] %v2562_v40  ;;  %2576 = vst [vmem:[#allocation4 + $0x58] sm:$0xff] %v2560_v39  ;;  %v2378_v44 = vmul.f32 %v2321_v61, %v2282_v3  ;;  %v2377_v10 = vmul.f32 %v2316_v57, %v2281_v18  ;;  %v3641_v60 = vpop.f32.mrf.mxu1 }
 0x34b   : > { %v2563_v36 = vadd.f32 %v2512_v49, %v2377_v10  ;;  %v2515_v48 = vpop.f32.mrf.mxu1 }
 0x34c   : > { %v2564_v27 = vadd.f32 %v2515_v48, %v2378_v44  ;;  %v2331_v56 = vpop.permute.xlu1 %2330  ;;  %v2326_v51 = vpop.permute.xlu0 %2325 }
 0x34d   : > { %2579 = vst [vmem:[#allocation4 + $0xe0] sm:$0xff] %v2563_v36  ;;  %v2380_v53 = vmul.f32 %v2331_v56, %v2284_v38  ;;  %v2379_v42 = vmul.f32 %v2326_v51, %v2283_v7  ;;  %v3644_v59 = vpop.f32.mrf.mxu1 }
 0x34e   : > { %2580 = vst [vmem:[#allocation4 + $0x90] sm:$0xff] %v2564_v27 }
 0x34f   : > { %v2566_v5 = vadd.f32 %v3641_v60, %v2380_v53  ;;  %v2565_v23 = vadd.f32 %v3640_v15, %v2379_v42  ;;  %v2528_v1 = vpop.f32.mrf.mxu1 }
 0x350   : > { %v2341_v22 = vpop.permute.xlu1 %2340  ;;  %v2336_v34 = vpop.permute.xlu0 %2335 }
 0x351   : > { %2582 = vst [vmem:[#allocation4 + $0xc0] sm:$0xff] %v2566_v5  ;;  %2581 = vst [vmem:[#allocation4 + $0x70] sm:$0xff] %v2565_v23  ;;  %v2382_v43 = vmul.f32 %v2341_v22, %v2286_v17  ;;  %v2381_v8 = vmul.f32 %v2336_v34, %v2285_v45  ;;  %v3645_v13 = vpop.f32.mrf.mxu1 }
 0x353   : > { %v2567_v19 = vadd.f32 %v2528_v1, %v2381_v8  ;;  %v2531_v46 = vpop.f32.mrf.mxu1 }
 0x354   : > { %v2568_v2 = vadd.f32 %v2531_v46, %v2382_v43  ;;  %v2351_v31 = vpop.permute.xlu1 %2350  ;;  %v2346_v26 = vpop.permute.xlu0 %2345 }
 0x355   : > { %2583 = vst [vmem:[#allocation4 + $0xa8] sm:$0xff] %v2567_v19  ;;  %v2384_v63 = vmul.f32 %v2351_v31, %v2288_v29  ;;  %v2383_v54 = vmul.f32 %v2346_v26, %v2287_v33  ;;  %v3648_v6 = vpop.f32.mrf.mxu1 }
 0x356   : > { %2584 = vst [vmem:[#allocation4 + $0xd0] sm:$0xff] %v2568_v2 }
 0x357   : > { %v2570_v25 = vadd.f32 %v3645_v13, %v2384_v63  ;;  %v2569_v32 = vadd.f32 %v3644_v59, %v2383_v54  ;;  %v2544_v28 = vpop.f32.mrf.mxu1 }
 0x358   : > { %v2361_v21 = vpop.permute.xlu1 %2360  ;;  %v2356_v47 = vpop.permute.xlu0 %2355 }
 0x359   : > { %2586 = vst [vmem:[#allocation4 + $0x28] sm:$0xff] %v2570_v25  ;;  %2585 = vst [vmem:[#allocation4 + $0x10] sm:$0xff] %v2569_v32  ;;  %v2386_v58 = vmul.f32 %v2361_v21, %v2290_v16  ;;  %v2385_v0 = vmul.f32 %v2356_v47, %v2289_v52  ;;  %v3649_v4 = vpop.f32.mrf.mxu1 }
 0x35b   : > { %v2571_v30 = vadd.f32 %v2544_v28, %v2385_v0  ;;  %v2547_v24 = vpop.f32.mrf.mxu1 }
 0x35c   : > { %v2572_v9 = vadd.f32 %v2547_v24, %v2386_v58  ;;  %v2371_v41 = vpop.permute.xlu1 %2370  ;;  %v2366_v37 = vpop.permute.xlu0 %2365 }
 0x35d   : > { %2587 = vst [vmem:[#allocation4 + $0xa0] sm:$0xff] %v2571_v30  ;;  %v2388_v20 = vmul.f32 %v2371_v41, %v2292_v12  ;;  %v2387_v14 = vmul.f32 %v2366_v37, %v2291_v55  ;;  %2610 = sbr.rel (%p3506_p4) target bundleno = 1391 (0x56f), region = 206 }
 0x35e   : > { %2588 = vst [vmem:[#allocation4 + $0xf8] sm:$0xff] %v2572_v9 }
 0x35f   : > { %v2574_v11 = vadd.f32 %v3649_v4, %v2388_v20  ;;  %v2573_v50 = vadd.f32 %v3648_v6, %v2387_v14 }
 0x361   : > { %2590 = vst [vmem:[#allocation4 + $0x98] sm:$0xff] %v2574_v11  ;;  %2589 = vst [vmem:[#allocation4 + $0x20] sm:$0xff] %v2573_v50 }
 0x362   : > { %v2613_v35 = vld [vmem:[#allocation3 + $0x10] sm:$0xff]  ;;  %v2611_v62 = vld [vmem:[#allocation3] sm:$0xff]  ;;  %v2614_v15 = vld [vmem:[#allocation3 + $0x18] sm:$0xff]  ;;  %v4078_v3 = vmov 0  }
 0x363   : > { %3890 = vset.pattern.permute.xlu1 %v4078_v3  ;;  %3889 = vset.pattern.permute.xlu0 %v4078_v3  ;;  %vm2629_vm2 = vcmp.gt.f32.partialorder %v2613_v35, 0.0  ;;  %vm2627_vm3 = vcmp.gt.f32.partialorder %v2611_v62, 0.0  ;;  %vm2630_vm4 = vcmp.gt.f32.partialorder %v2614_v15, 0.0  ;;  %v2612_v18 = vld [vmem:[#allocation3 + $0x8] sm:$0xff]  ;;  %v2615_v61 = vld [vmem:[#allocation3 + $0x20] sm:$0xff]  ;;  %v2618_v10 = vld [vmem:[#allocation3 + $0x38] sm:$0xff] }
 0x364   : > { %v2645_v40 = vsel %vm2629_vm2, %v2613_v35, 1.0  ;;  %v2643_v39 = vsel %vm2627_vm3, %v2611_v62, 1.0  ;;  %vm2628_vm5 = vcmp.gt.f32.partialorder %v2612_v18, 0.0  ;;  %v2616_v49 = vld [vmem:[#allocation3 + $0x28] sm:$0xff]  ;;  %v2646_v57 = vsel %vm2630_vm4, %v2614_v15, 1.0  ;;  %v2617_v60 = vld [vmem:[#allocation3 + $0x30] sm:$0xff] }
 0x365   : > { %2687 = vperm.xlu1 %3890, %v2645_v40   ;;  %2677 = vperm.xlu0 %3889, %v2643_v39   ;;  %v2644_v44 = vsel %vm2628_vm5, %v2612_v18, 1.0  ;;  %vm2632_vm6 = vcmp.gt.f32.partialorder %v2616_v49, 0.0  ;;  %vm2631_vm7 = vcmp.gt.f32.partialorder %v2615_v61, 0.0  ;;  %vm2634_vm8 = vcmp.gt.f32.partialorder %v2618_v10, 0.0  ;;  %v2620_v36 = vld [vmem:[#allocation3 + $0x48] sm:$0xff]  ;;  %v2619_v48 = vld [vmem:[#allocation3 + $0x40] sm:$0xff] }
 0x366   : > { %v2648_v38 = vsel %vm2632_vm6, %v2616_v49, 1.0  ;;  %v2647_v7 = vsel %vm2631_vm7, %v2615_v61, 1.0  ;;  %vm2633_vm9 = vcmp.gt.f32.partialorder %v2617_v60, 0.0  ;;  %v2650_v27 = vsel %vm2634_vm8, %v2618_v10, 1.0  ;;  %v2622_v51 = vld [vmem:[#allocation3 + $0x58] sm:$0xff]  ;;  %v2621_v53 = vld [vmem:[#allocation3 + $0x50] sm:$0xff] }
 0x367   : > { %v2649_v56 = vsel %vm2633_vm9, %v2617_v60, 1.0  ;;  %vm2636_vm10 = vcmp.gt.f32.partialorder %v2620_v36, 0.0  ;;  %vm2635_vm11 = vcmp.gt.f32.partialorder %v2619_v48, 0.0  ;;  %vm2638_vm12 = vcmp.gt.f32.partialorder %v2622_v51, 0.0  ;;  %v2624_v17 = vld [vmem:[#allocation3 + $0x68] sm:$0xff]  ;;  %v2623_v45 = vld [vmem:[#allocation3 + $0x60] sm:$0xff] }
 0x368   : > { %v2652_v42 = vsel %vm2636_vm10, %v2620_v36, 1.0  ;;  %v2651_v59 = vsel %vm2635_vm11, %v2619_v48, 1.0  ;;  %vm2637_vm13 = vcmp.gt.f32.partialorder %v2621_v53, 0.0  ;;  %v2654_v5 = vsel %vm2638_vm12, %v2622_v51, 1.0  ;;  %v2626_v1 = vld [vmem:[#allocation3 + $0x78] sm:$0xff]  ;;  %v2625_v22 = vld [vmem:[#allocation3 + $0x70] sm:$0xff] }
 0x369   : > { %2692 = vperm.xlu1 %3890, %v2646_v57   ;;  %2682 = vperm.xlu0 %3889, %v2644_v44   ;;  %v2653_v23 = vsel %vm2637_vm13, %v2621_v53, 1.0  ;;  %vm2640_vm14 = vcmp.gt.f32.partialorder %v2624_v17, 0.0  ;;  %vm2639_vm15 = vcmp.gt.f32.partialorder %v2623_v45, 0.0  ;;  %vm2642_vm0 = vcmp.gt.f32.partialorder %v2626_v1, 0.0  ;;  %v2804_v8 = vld [vmem:[#allocation3 + $0x88] sm:$0xff]  ;;  %v2803_v13 = vld [vmem:[#allocation3 + $0x80] sm:$0xff] }
 0x36a   : > { %v2656_v34 = vsel %vm2640_vm14, %v2624_v17, 1.0  ;;  %v2655_v43 = vsel %vm2639_vm15, %v2623_v45, 1.0  ;;  %vm2641_vm1 = vcmp.gt.f32.partialorder %v2625_v22, 0.0  ;;  %v2658_v29 = vsel %vm2642_vm0, %v2626_v1, 1.0  ;;  %v2806_v19 = vld [vmem:[#allocation3 + $0x98] sm:$0xff]  ;;  %v2805_v46 = vld [vmem:[#allocation3 + $0x90] sm:$0xff] }
 0x36b   : > { %v2657_v33 = vsel %vm2641_vm1, %v2625_v22, 1.0  ;;  %vm2820_vm2 = vcmp.gt.f32.partialorder %v2804_v8, 0.0  ;;  %vm2819_vm3 = vcmp.gt.f32.partialorder %v2803_v13, 0.0  ;;  %vm2822_vm4 = vcmp.gt.f32.partialorder %v2806_v19, 0.0  ;;  %v2808_v26 = vld [vmem:[#allocation3 + $0xa8] sm:$0xff]  ;;  %v2807_v63 = vld [vmem:[#allocation3 + $0xa0] sm:$0xff] }
 0x36c   : > { %v2836_v2 = vsel %vm2820_vm2, %v2804_v8, 1.0  ;;  %v2835_v31 = vsel %vm2819_vm3, %v2803_v13, 1.0  ;;  %vm2821_vm5 = vcmp.gt.f32.partialorder %v2805_v46, 0.0  ;;  %v2838_v54 = vsel %vm2822_vm4, %v2806_v19, 1.0  ;;  %v2810_v16 = vld [vmem:[#allocation3 + $0xb8] sm:$0xff]  ;;  %v2809_v52 = vld [vmem:[#allocation3 + $0xb0] sm:$0xff] }
 0x36d   : > { %2702 = vperm.xlu1 %3890, %v2648_v38   ;;  %2697 = vperm.xlu0 %3889, %v2647_v7   ;;  %v2837_v6 = vsel %vm2821_vm5, %v2805_v46, 1.0  ;;  %vm2824_vm6 = vcmp.gt.f32.partialorder %v2808_v26, 0.0  ;;  %vm2823_vm7 = vcmp.gt.f32.partialorder %v2807_v63, 0.0  ;;  %vm2826_vm8 = vcmp.gt.f32.partialorder %v2810_v16, 0.0  ;;  %v2812_v28 = vld [vmem:[#allocation3 + $0xc8] sm:$0xff]  ;;  %v2811_v21 = vld [vmem:[#allocation3 + $0xc0] sm:$0xff] }
 0x36e   : > { %v2840_v25 = vsel %vm2824_vm6, %v2808_v26, 1.0  ;;  %v2839_v32 = vsel %vm2823_vm7, %v2807_v63, 1.0  ;;  %vm2825_vm9 = vcmp.gt.f32.partialorder %v2809_v52, 0.0  ;;  %v2842_v47 = vsel %vm2826_vm8, %v2810_v16, 1.0  ;;  %v2814_v0 = vld [vmem:[#allocation3 + $0xd8] sm:$0xff]  ;;  %v2813_v4 = vld [vmem:[#allocation3 + $0xd0] sm:$0xff] }
 0x36f   : > { %v2841_v58 = vsel %vm2825_vm9, %v2809_v52, 1.0  ;;  %vm2828_vm10 = vcmp.gt.f32.partialorder %v2812_v28, 0.0  ;;  %vm2827_vm11 = vcmp.gt.f32.partialorder %v2811_v21, 0.0  ;;  %vm2830_vm12 = vcmp.gt.f32.partialorder %v2814_v0, 0.0  ;;  %v2816_v30 = vld [vmem:[#allocation3 + $0xe8] sm:$0xff]  ;;  %v2815_v24 = vld [vmem:[#allocation3 + $0xe0] sm:$0xff] }
 0x370   : > { %v2844_v12 = vsel %vm2828_vm10, %v2812_v28, 1.0  ;;  %v2843_v55 = vsel %vm2827_vm11, %v2811_v21, 1.0  ;;  %vm2829_vm13 = vcmp.gt.f32.partialorder %v2813_v4, 0.0  ;;  %v2846_v9 = vsel %vm2830_vm12, %v2814_v0, 1.0  ;;  %v2818_v37 = vld [vmem:[#allocation3 + $0xf8] sm:$0xff]  ;;  %v2817_v20 = vld [vmem:[#allocation3 + $0xf0] sm:$0xff] }
 0x371   : > { %2712 = vperm.xlu1 %3890, %v2650_v27   ;;  %2707 = vperm.xlu0 %3889, %v2649_v56   ;;  %v2845_v41 = vsel %vm2829_vm13, %v2813_v4, 1.0  ;;  %vm2832_vm14 = vcmp.gt.f32.partialorder %v2816_v30, 0.0  ;;  %vm2831_vm15 = vcmp.gt.f32.partialorder %v2815_v24, 0.0  ;;  %vm2834_vm0 = vcmp.gt.f32.partialorder %v2818_v37, 0.0  ;;  %v2660_v22 = vld [vmem:[#allocation4] sm:$0xff]  ;;  %v2659_v8 = vld [vmem:[#allocation4 + $0xb0] sm:$0xff] }
 0x372   : > { %v2848_v14 = vsel %vm2832_vm14, %v2816_v30, 1.0  ;;  %v2847_v11 = vsel %vm2831_vm15, %v2815_v24, 1.0  ;;  %vm2833_vm1 = vcmp.gt.f32.partialorder %v2817_v20, 0.0  ;;  %v2850_v50 = vsel %vm2834_vm0, %v2818_v37, 1.0  ;;  %v2851_v13 = vld [vmem:[#allocation4 + $0x38] sm:$0xff]  ;;  %v2854_v16 = vld [vmem:[#allocation4 + $0xc8] sm:$0xff] }
 0x373   : > { %v2849_v35 = vsel %vm2833_vm1, %v2817_v20, 1.0  ;;  %v2853_v28 = vld [vmem:[#allocation4 + $0x40] sm:$0xff] }
 0x375   : > { %2722 = vperm.xlu1 %3890, %v2652_v42   ;;  %2717 = vperm.xlu0 %3889, %v2651_v59   ;;  %v3011_v42 = vlaneseq }
 0x377   : > { %v3012_v45 = vand.u32 127, %v3011_v42  ;;  %v2666_v42 = vld [vmem:[#allocation4 + $0x48] sm:$0xff] }
 0x379   : > { %2732 = vperm.xlu1 %3890, %v2654_v5   ;;  %2727 = vperm.xlu0 %3889, %v2653_v23   ;;  %vm3013_vm2 = vcmp.lt.s32.totalorder %v3012_v45, 64 }
 0x37d   : > { %2742 = vperm.xlu1 %3890, %v2656_v34   ;;  %2737 = vperm.xlu0 %3889, %v2655_v43   ;;  %v2852_v34 = vld [vmem:[#allocation4 + $0x58] sm:$0xff] }
 0x381   : > { %2752 = vperm.xlu1 %3890, %v2658_v29   ;;  %2747 = vperm.xlu0 %3889, %v2657_v33  }
 0x385   : > { %2874 = vperm.xlu1 %3890, %v2836_v2   ;;  %2869 = vperm.xlu0 %3889, %v2835_v31  }
 0x389   : > { %2884 = vperm.xlu1 %3890, %v2838_v54   ;;  %2879 = vperm.xlu0 %3889, %v2837_v6   ;;  %v2662_v6 = vld [vmem:[#allocation4 + $0x18] sm:$0xff] }
 0x38d   : > { %2894 = vperm.xlu1 %3890, %v2840_v25   ;;  %2889 = vperm.xlu0 %3889, %v2839_v32   ;;  %v2661_v32 = vld [vmem:[#allocation4 + $0xd8] sm:$0xff] }
 0x391   : > { %2904 = vperm.xlu1 %3890, %v2842_v47   ;;  %2899 = vperm.xlu0 %3889, %v2841_v58   ;;  %v4079_v47 = vmov 0.0  }
 0x392   : > { %v5409_v58 = vsel %vm3013_vm2, 1.0, %v4079_v47 }
 0x395   : > { %2914 = vperm.xlu1 %3890, %v2844_v12   ;;  %2909 = vperm.xlu0 %3889, %v2843_v55  }
 0x399   : > { %2924 = vperm.xlu1 %3890, %v2846_v9   ;;  %2919 = vperm.xlu0 %3889, %v2845_v41  }
 0x39d   : > { %2934 = vperm.xlu1 %3890, %v2848_v14   ;;  %2929 = vperm.xlu0 %3889, %v2847_v11   ;;  %v2664_v11 = vld [vmem:[#allocation4 + $0x68] sm:$0xff] }
 0x3a1   : > { %2944 = vperm.xlu1 %3890, %v2850_v50   ;;  %2939 = vperm.xlu0 %3889, %v2849_v35   ;;  %v2856_v50 = vld [vmem:[#allocation4 + $0x90] sm:$0xff] }
 0x3e0   : > { %v2688_v62 = vpop.permute.xlu1 %2687  ;;  %v2678_v15 = vpop.permute.xlu0 %2677 }
 0x3e4   : > { %v2693_v3 = vpop.permute.xlu1 %2692  ;;  %v2683_v18 = vpop.permute.xlu0 %2682 }
 0x3e5   : > { %3891 = vrcp.f32 %v2683_v18  ;;  %v2855_v18 = vld [vmem:[#allocation4 + $0xe0] sm:$0xff] }
 0x3e6   : > { %3893 = vrcp.f32 %v2678_v15 }
 0x3e8   : > { %v2703_v40 = vpop.permute.xlu1 %2702  ;;  %v2698_v39 = vpop.permute.xlu0 %2697 }
 0x3ec   : > { %v2713_v49 = vpop.permute.xlu1 %2712  ;;  %v2708_v61 = vpop.permute.xlu0 %2707 }
 0x3f0   : > { %v2723_v57 = vpop.permute.xlu1 %2722  ;;  %v2718_v44 = vpop.permute.xlu0 %2717 }
 0x3f2   : > { %v3892_v5 = vpop.eup %3891 }
 0x3f3   : > { %v3894_v43 = vpop.eup %3893  ;;  %v2758_v19 = vmul.f32 %v3892_v5, %v2660_v22  ;;  %v2665_v5 = vld [vmem:[#allocation4 + $0x30] sm:$0xff] }
 0x3f4   : > { %v2733_v10 = vpop.permute.xlu1 %2732  ;;  %v5398_v60 = vpop.permute.xlu0 %2727  ;;  %v2756_v63 = vmul.f32 %v3894_v43, %v2659_v8 }
 0x3f8   : > { %v5400_v38 = vpop.permute.xlu1 %2742  ;;  %v5402_v7 = vpop.permute.xlu0 %2737 }
 0x3fc   : > { %v5404_v36 = vpop.permute.xlu1 %2752  ;;  %v5406_v48 = vpop.permute.xlu0 %2747 }
 0x400   : > { %v2875_v27 = vpop.permute.xlu1 %2874  ;;  %v2870_v56 = vpop.permute.xlu0 %2869 }
 0x401   : > { %3895 = vrcp.f32 %v2875_v27 }
 0x402   : > { %3897 = vrcp.f32 %v2870_v56 }
 0x403   : > { %3899 = vrcp.f32 %v2693_v3  ;;  %v2663_v3 = vld [vmem:[#allocation4 + $0x50] sm:$0xff] }
 0x404   : > { %3901 = vrcp.f32 %v2688_v62  ;;  %v2885_v51 = vpop.permute.xlu1 %2884  ;;  %v2880_v53 = vpop.permute.xlu0 %2879 }
 0x405   : > { %3903 = vrcp.f32 %v2885_v51 }
 0x406   : > { %3905 = vrcp.f32 %v2880_v53 }
 0x407   : > { %3907 = vrcp.f32 %v2703_v40 }
 0x408   : > { %3909 = vrcp.f32 %v2698_v39  ;;  %v2895_v59 = vpop.permute.xlu1 %2894  ;;  %v2890_v17 = vpop.permute.xlu0 %2889 }
 0x409   : > { %3911 = vrcp.f32 %v2895_v59  ;;  %v2858_v59 = vld [vmem:[#allocation4 + $0xc0] sm:$0xff] }
 0x40a   : > { %3913 = vrcp.f32 %v2890_v17 }
 0x40b   : > { %3915 = vrcp.f32 %v2713_v49 }
 0x40c   : > { %3917 = vrcp.f32 %v2708_v61  ;;  %v2905_v23 = vpop.permute.xlu1 %2904  ;;  %v2900_v1 = vpop.permute.xlu0 %2899 }
 0x40d   : > { %3919 = vrcp.f32 %v2905_v23  ;;  %v2857_v23 = vld [vmem:[#allocation4 + $0x70] sm:$0xff] }
 0x40e   : > { %v3896_v29 = vpop.eup %3895  ;;  %3921 = vrcp.f32 %v2900_v1 }
 0x40f   : > { %v3898_v33 = vpop.eup %3897  ;;  %3923 = vrcp.f32 %v2723_v57  ;;  %v2950_v46 = vmul.f32 %v3896_v29, %v2852_v34 }
 0x410   : > { %v3900_v2 = vpop.eup %3899  ;;  %3925 = vrcp.f32 %v2718_v44  ;;  %v2915_v31 = vpop.permute.xlu1 %2914  ;;  %v2948_v54 = vmul.f32 %v3898_v33, %v2851_v13 }
 0x411   : > { %v2910_v26 = vpop.permute.xlu0 %2909  ;;  %v3902_v52 = vpop.eup %3901  ;;  %3927 = vrcp.f32 %v2915_v31  ;;  %v2980_v25 = vadd.f32 %v2950_v46, %v2758_v19  ;;  %v2762_v55 = vmul.f32 %v3900_v2, %v2662_v6  ;;  %v2860_v31 = vld [vmem:[#allocation4 + $0xd0] sm:$0xff]  ;;  %v2859_v6 = vld [vmem:[#allocation4 + $0xa8] sm:$0xff] }
 0x412   : > { %v3904_v21 = vpop.eup %3903  ;;  %3929 = vrcp.f32 %v2910_v26  ;;  %v2979_v0 = vadd.f32 %v2948_v54, %v2756_v63  ;;  %v2760_v20 = vmul.f32 %v3902_v52, %v2661_v32 }
 0x413   : > { %v3906_v4 = vpop.eup %3905  ;;  %3931 = vrcp.f32 %v2733_v10  ;;  %v5411_v12 = vmul.f32 0.5, %v2980_v25  ;;  %v2954_v30 = vmul.f32 %v3904_v21, %v2854_v16  ;;  %v2668_v16 = vld [vmem:[#allocation4 + $0x88] sm:$0xff] }
 0x414   : > { %v3908_v24 = vpop.eup %3907  ;;  %3933 = vrcp.f32 %v5398_v60  ;;  %v2925_v9 = vpop.permute.xlu1 %2924  ;;  %v5414_v37 = vmul.f32 0.5, %v2979_v0  ;;  %v2952_v14 = vmul.f32 %v3906_v4, %v2853_v28 }
 0x415   : > { %v2920_v41 = vpop.permute.xlu0 %2919  ;;  %v3910_v35 = vpop.eup %3909  ;;  %3935 = vrcp.f32 %v2925_v9  ;;  %v3017_v62 = vmul.f32 %v5409_v58, %v5411_v12  ;;  %v2982_v15 = vadd.f32 %v2954_v30, %v2762_v55  ;;  %v2766_v57 = vmul.f32 %v3908_v24, %v2664_v11  ;;  %v2670_v24 = vld [vmem:[#allocation4 + $0xb8] sm:$0xff]  ;;  %v2862_v9 = vld [vmem:[#allocation4 + $0x28] sm:$0xff]  ;;  %v2861_v11 = vld [vmem:[#allocation4 + $0x10] sm:$0xff] }
 0x416   : > { %v3912_v40 = vpop.eup %3911  ;;  %3937 = vrcp.f32 %v2920_v41  ;;  %v3016_v39 = vmul.f32 %v5409_v58, %v5414_v37  ;;  %v2981_v49 = vadd.f32 %v2952_v14, %v2760_v20  ;;  %v2764_v51 = vmul.f32 %v3910_v35, %v2663_v3  ;;  %v2669_v14 = vld [vmem:[#allocation4 + $0xe8] sm:$0xff] }
 0x417   : > { %v3914_v61 = vpop.eup %3913  ;;  %3939 = vrcp.f32 %v5400_v38  ;;  %3034 = vadd.xlane.f32.xlu1 %v3017_v62  ;;  %v2958_v44 = vmul.f32 %v3912_v40, %v2856_v50  ;;  %v5424_v45 = vmul.f32 0.5, %v2982_v15 }
 0x418   : > { %v3916_v10 = vpop.eup %3915  ;;  %3941 = vrcp.f32 %v5402_v7  ;;  %3032 = vadd.xlane.f32.xlu0 %v3016_v39  ;;  %v2935_v60 = vpop.permute.xlu1 %2934  ;;  %v5422_v56 = vmul.f32 0.5, %v2981_v49  ;;  %v2956_v53 = vmul.f32 %v3914_v61, %v2855_v18 }
 0x419   : > { %v2930_v27 = vpop.permute.xlu0 %2929  ;;  %v3918_v17 = vpop.eup %3917  ;;  %3943 = vrcp.f32 %v2935_v60  ;;  %v2984_v38 = vadd.f32 %v2958_v44, %v2766_v57  ;;  %v2770_v43 = vmul.f32 %v3916_v10, %v2666_v42  ;;  %v3019_v63 = vmul.f32 %v5409_v58, %v5424_v45  ;;  %v2864_v10 = vld [vmem:[#allocation4 + $0xf8] sm:$0xff]  ;;  %v2672_v42 = vld [vmem:[#allocation4 + $0xf0] sm:$0xff] }
 0x41a   : > { %v3920_v1 = vpop.eup %3919  ;;  %3945 = vrcp.f32 %v2930_v27  ;;  %v3018_v7 = vmul.f32 %v5409_v58, %v5422_v56  ;;  %v2983_v22 = vadd.f32 %v2956_v53, %v2764_v51  ;;  %v2768_v46 = vmul.f32 %v3918_v17, %v2665_v5  ;;  %v2671_v51 = vld [vmem:[#allocation4 + $0x60] sm:$0xff] }
 0x41b   : > { %v3922_v34 = vpop.eup %3921  ;;  %3947 = vrcp.f32 %v5404_v36  ;;  %v2962_v8 = vmul.f32 %v3920_v1, %v2858_v59  ;;  %v5434_v54 = vmul.f32 0.5, %v2984_v38  ;;  %v2667_v36 = vld [vmem:[#allocation4 + $0x80] sm:$0xff] }
 0x41c   : > { %v3924_v13 = vpop.eup %3923  ;;  %3949 = vrcp.f32 %v5406_v48  ;;  %3036 = vadd.xlane.f32.xlu0 %v3018_v7  ;;  %v2945_v29 = vpop.permute.xlu1 %2944  ;;  %v5430_v19 = vmul.f32 0.5, %v2983_v22  ;;  %v2960_v2 = vmul.f32 %v3922_v34, %v2857_v23  ;;  %v2863_v53 = vld [vmem:[#allocation4 + $0xa0] sm:$0xff] }
 0x41d   : > { %v2940_v33 = vpop.permute.xlu0 %2939  ;;  %v3926_v26 = vpop.eup %3925  ;;  %3951 = vrcp.f32 %v2945_v29  ;;  %v2986_v32 = vadd.f32 %v2962_v8, %v2770_v43  ;;  %v2774_v30 = vmul.f32 %v3924_v13, %v2668_v16  ;;  %v3021_v20 = vmul.f32 %v5409_v58, %v5434_v54  ;;  %v2866_v29 = vld [vmem:[#allocation4 + $0x98] sm:$0xff] }
 0x41e   : > { %v3928_v52 = vpop.eup %3927  ;;  %3953 = vrcp.f32 %v2940_v33  ;;  %v3020_v48 = vmul.f32 %v5409_v58, %v5430_v19  ;;  %v2985_v25 = vadd.f32 %v2960_v2, %v2768_v46  ;;  %v2772_v4 = vmul.f32 %v3926_v26, %v2667_v36  ;;  %v2673_v2 = vld [vmem:[#allocation4 + $0x8] sm:$0xff]  ;;  %v2674_v26 = vld [vmem:[#allocation4 + $0x78] sm:$0xff] }
 0x41f   : > { %v3930_v28 = vpop.eup %3929  ;;  %v2966_v21 = vmul.f32 %v3928_v52, %v2860_v31  ;;  %v5444_v62 = vmul.f32 0.5, %v2986_v32  ;;  %v2865_v31 = vld [vmem:[#allocation4 + $0x20] sm:$0xff] }
 0x420   : > { %v3932_v47 = vpop.eup %3931  ;;  %3038 = vadd.xlane.f32.xlu0 %v3019_v63  ;;  %3040 = vadd.xlane.f32.xlu1 %v3020_v48  ;;  %v5438_v0 = vmul.f32 0.5, %v2985_v25  ;;  %v2964_v55 = vmul.f32 %v3930_v28, %v2859_v6 }
 0x421   : > { %v3934_v41 = vpop.eup %3933  ;;  %v2988_v3 = vadd.f32 %v2966_v21, %v2774_v30  ;;  %v2778_v40 = vmul.f32 %v3932_v47, %v2670_v24  ;;  %v3023_v17 = vmul.f32 %v5409_v58, %v5444_v62 }
 0x422   : > { %v3936_v50 = vpop.eup %3935  ;;  %v3022_v35 = vmul.f32 %v5409_v58, %v5438_v0  ;;  %v2987_v15 = vadd.f32 %v2964_v55, %v2772_v4  ;;  %v2776_v57 = vmul.f32 %v3934_v41, %v2669_v14 }
 0x423   : > { %v3938_v18 = vpop.eup %3937  ;;  %v2970_v39 = vmul.f32 %v3936_v50, %v2862_v9  ;;  %v5452_v5 = vmul.f32 0.5, %v2988_v3 }
 0x424   : > { %v3940_v49 = vpop.eup %3939  ;;  %3042 = vadd.xlane.f32.xlu0 %v3021_v20  ;;  %3044 = vadd.xlane.f32.xlu1 %v3022_v35  ;;  %v5446_v61 = vmul.f32 0.5, %v2987_v15  ;;  %v2968_v44 = vmul.f32 %v3938_v18, %v2861_v11 }
 0x425   : > { %v3942_v60 = vpop.eup %3941  ;;  %v2990_v27 = vadd.f32 %v2970_v39, %v2778_v40  ;;  %v2782_v13 = vmul.f32 %v3940_v49, %v2672_v42  ;;  %v3025_v36 = vmul.f32 %v5409_v58, %v5452_v5 }
 0x426   : > { %v3944_v59 = vpop.eup %3943  ;;  %v3024_v38 = vmul.f32 %v5409_v58, %v5446_v61  ;;  %v2989_v23 = vadd.f32 %v2968_v44, %v2776_v57  ;;  %v2780_v43 = vmul.f32 %v3942_v60, %v2671_v51 }
 0x427   : > { %v3946_v1 = vpop.eup %3945  ;;  %v2974_v7 = vmul.f32 %v3944_v59, %v2864_v10  ;;  %v5456_v46 = vmul.f32 0.5, %v2990_v27 }
 0x428   : > { %v3948_v22 = vpop.eup %3947  ;;  %3046 = vadd.xlane.f32.xlu0 %v3023_v17  ;;  %3048 = vadd.xlane.f32.xlu1 %v3024_v38  ;;  %v5454_v34 = vmul.f32 0.5, %v2989_v23  ;;  %v2972_v8 = vmul.f32 %v3946_v1, %v2863_v53 }
 0x429   : > { %v3950_v33 = vpop.eup %3949  ;;  %v2992_v52 = vadd.f32 %v2974_v7, %v2782_v13  ;;  %v2786_v47 = vmul.f32 %v3948_v22, %v2674_v26  ;;  %v3027_v4 = vmul.f32 %v5409_v58, %v5456_v46 }
 0x42a   : > { %v3952_v63 = vpop.eup %3951  ;;  %v3026_v6 = vmul.f32 %v5409_v58, %v5454_v34  ;;  %v2991_v16 = vadd.f32 %v2972_v8, %v2780_v43  ;;  %v2784_v28 = vmul.f32 %v3950_v33, %v2673_v2 }
 0x42b   : > { %v3954_v48 = vpop.eup %3953  ;;  %v2978_v25 = vmul.f32 %v3952_v63, %v2866_v29  ;;  %v5468_v30 = vmul.f32 0.5, %v2992_v52 }
 0x42c   : > { %3050 = vadd.xlane.f32.xlu0 %v3025_v36  ;;  %3052 = vadd.xlane.f32.xlu1 %v3026_v6  ;;  %v5462_v32 = vmul.f32 0.5, %v2991_v16  ;;  %v2976_v21 = vmul.f32 %v3954_v48, %v2865_v31 }
 0x42d   : > { %v2994_v9 = vadd.f32 %v2978_v25, %v2786_v47  ;;  %v3029_v20 = vmul.f32 %v5409_v58, %v5468_v30 }
 0x42e   : > { %v3028_v55 = vmul.f32 %v5409_v58, %v5462_v32  ;;  %v2993_v24 = vadd.f32 %v2976_v21, %v2784_v28 }
 0x42f   : > { %v5476_v11 = vmul.f32 0.5, %v2994_v9 }
 0x430   : > { %3054 = vadd.xlane.f32.xlu0 %v3027_v4  ;;  %3056 = vadd.xlane.f32.xlu1 %v3028_v55  ;;  %v5470_v41 = vmul.f32 0.5, %v2993_v24 }
 0x431   : > { %v3031_v50 = vmul.f32 %v5409_v58, %v5476_v11 }
 0x432   : > { %v3030_v14 = vmul.f32 %v5409_v58, %v5470_v41 }
 0x434   : > { %3058 = vadd.xlane.f32.xlu0 %v3029_v20  ;;  %3060 = vadd.xlane.f32.xlu1 %v3030_v14 }
 0x438   : > { %3062 = vadd.xlane.f32.xlu0 %v3031_v50 }
 0x4a0   : > { %v3035_v35 = vpop.xlane.xlu1 %3034 }
 0x4a1   : > { %v3065_v15 = vmul.f32 0.015625, %v3035_v35  ;;  %v3033_v3 = vpop.xlane.xlu0 %3032 }
 0x4a2   : > { %v3064_v18 = vmul.f32 0.015625, %v3033_v3 }
 0x4a3   : > { %v3081_v40 = vsub.f32 %v5411_v12, %v3065_v15 }
 0x4a4   : > { %v3080_v39 = vsub.f32 %v5414_v37, %v3064_v18 }
 0x4a5   : > { %v3037_v49 = vpop.xlane.xlu0 %3036  ;;  %v5483_v57 = vmul.f32 %v5409_v58, %v3081_v40 }
 0x4a6   : > { %v3066_v44 = vmul.f32 0.015625, %v3037_v49  ;;  %v5486_v10 = vmul.f32 %v5409_v58, %v3080_v39 }
 0x4a7   : > { %v3113_v60 = vmul.f32 %v5483_v57, %v5483_v57 }
 0x4a8   : > { %v3082_v27 = vsub.f32 %v5422_v56, %v3066_v44  ;;  %v3112_v51 = vmul.f32 %v5486_v10, %v5486_v10 }
 0x4a9   : > { %v3041_v53 = vpop.xlane.xlu1 %3040  ;;  %v3039_v12 = vpop.xlane.xlu0 %3038  ;;  %3130 = vadd.xlane.f32.xlu0 %v3113_v60 }
 0x4aa   : > { %v3068_v37 = vmul.f32 0.015625, %v3041_v53  ;;  %v3067_v42 = vmul.f32 0.015625, %v3039_v12  ;;  %3128 = vadd.xlane.f32.xlu1 %v3112_v51  ;;  %v5494_v59 = vmul.f32 %v5409_v58, %v3082_v27 }
 0x4ac   : > { %v3084_v17 = vsub.f32 %v5430_v19, %v3068_v37  ;;  %v3083_v38 = vsub.f32 %v5424_v45, %v3067_v42  ;;  %v3114_v23 = vmul.f32 %v5494_v59, %v5494_v59 }
 0x4ad   : > { %v3045_v56 = vpop.xlane.xlu1 %3044  ;;  %v3043_v1 = vpop.xlane.xlu0 %3042 }
 0x4ae   : > { %v3070_v7 = vmul.f32 0.015625, %v3045_v56  ;;  %v3069_v22 = vmul.f32 0.015625, %v3043_v1  ;;  %3132 = vadd.xlane.f32.xlu1 %v3114_v23  ;;  %v5501_v43 = vmul.f32 %v5409_v58, %v3084_v17  ;;  %v5504_v8 = vmul.f32 %v5409_v58, %v3083_v38 }
 0x4b0   : > { %v3086_v13 = vsub.f32 %v5438_v0, %v3070_v7  ;;  %v3085_v19 = vsub.f32 %v5434_v54, %v3069_v22  ;;  %v3116_v45 = vmul.f32 %v5501_v43, %v5501_v43  ;;  %v3115_v29 = vmul.f32 %v5504_v8, %v5504_v8 }
 0x4b1   : > { %v3049_v33 = vpop.xlane.xlu1 %3048  ;;  %v3047_v2 = vpop.xlane.xlu0 %3046 }
 0x4b2   : > { %v3072_v31 = vmul.f32 0.015625, %v3049_v33  ;;  %v3071_v26 = vmul.f32 0.015625, %v3047_v2  ;;  %3136 = vadd.xlane.f32.xlu1 %v3116_v45  ;;  %3134 = vadd.xlane.f32.xlu0 %v3115_v29  ;;  %v5513_v63 = vmul.f32 %v5409_v58, %v3086_v13  ;;  %v5516_v36 = vmul.f32 %v5409_v58, %v3085_v19 }
 0x4b4   : > { %v3088_v54 = vsub.f32 %v5446_v61, %v3072_v31  ;;  %v3087_v0 = vsub.f32 %v5444_v62, %v3071_v26  ;;  %v3118_v6 = vmul.f32 %v5513_v63, %v5513_v63  ;;  %v3117_v16 = vmul.f32 %v5516_v36, %v5516_v36 }
 0x4b5   : > { %v3053_v52 = vpop.xlane.xlu1 %3052  ;;  %v3051_v48 = vpop.xlane.xlu0 %3050 }
 0x4b6   : > { %v3074_v25 = vmul.f32 0.015625, %v3053_v52  ;;  %v3073_v28 = vmul.f32 0.015625, %v3051_v48  ;;  %3140 = vadd.xlane.f32.xlu1 %v3118_v6  ;;  %3138 = vadd.xlane.f32.xlu0 %v3117_v16  ;;  %v5525_v21 = vmul.f32 %v5409_v58, %v3088_v54  ;;  %v5528_v47 = vmul.f32 %v5409_v58, %v3087_v0 }
 0x4b8   : > { %v3090_v62 = vsub.f32 %v5454_v34, %v3074_v25  ;;  %v3089_v61 = vsub.f32 %v5452_v5, %v3073_v28  ;;  %v3120_v4 = vmul.f32 %v5525_v21, %v5525_v21  ;;  %v3119_v55 = vmul.f32 %v5528_v47, %v5528_v47  ;;  %v3509_v25 = vld [vmem:[%s5689_s5] ss:$0 sm:$0xff] }
 0x4b9   : > { %v3057_v24 = vpop.xlane.xlu1 %3056  ;;  %v3055_v9 = vpop.xlane.xlu0 %3054 }
 0x4ba   : > { %v3076_v20 = vmul.f32 0.015625, %v3057_v24  ;;  %v3075_v14 = vmul.f32 0.015625, %v3055_v9  ;;  %3144 = vadd.xlane.f32.xlu1 %v3120_v4  ;;  %3142 = vadd.xlane.f32.xlu0 %v3119_v55  ;;  %v5537_v50 = vmul.f32 %v5409_v58, %v3090_v62  ;;  %v5540_v35 = vmul.f32 %v5409_v58, %v3089_v61  ;;  %v5582_v24 = vld [vmem:[%s5688_s4] ss:$0 sm:$0xff] }
 0x4bc   : > { %v3092_v5 = vsub.f32 %v5462_v32, %v3076_v20  ;;  %v3091_v34 = vsub.f32 %v5456_v46, %v3075_v14  ;;  %v3122_v15 = vmul.f32 %v5537_v50, %v5537_v50  ;;  %v3121_v3 = vmul.f32 %v5540_v35, %v5540_v35 }
 0x4bd   : > { %v3061_v18 = vpop.xlane.xlu1 %3060  ;;  %v3059_v40 = vpop.xlane.xlu0 %3058 }
 0x4be   : > { %v3078_v39 = vmul.f32 0.015625, %v3061_v18  ;;  %v3077_v49 = vmul.f32 0.015625, %v3059_v40  ;;  %3148 = vadd.xlane.f32.xlu1 %v3122_v15  ;;  %3146 = vadd.xlane.f32.xlu0 %v3121_v3  ;;  %v5549_v44 = vmul.f32 %v5409_v58, %v3092_v5  ;;  %v5552_v60 = vmul.f32 %v5409_v58, %v3091_v34 }
 0x4bf   : > { %v5585_v5 = vmul.f32 %v3509_v25, %v5409_v58 }
 0x4c0   : > { %v3094_v46 = vsub.f32 %v5470_v41, %v3078_v39  ;;  %v3093_v32 = vsub.f32 %v5468_v30, %v3077_v49  ;;  %v3124_v27 = vmul.f32 %v5549_v44, %v5549_v44  ;;  %v3123_v51 = vmul.f32 %v5552_v60, %v5552_v60 }
 0x4c1   : > { %v3063_v53 = vpop.xlane.xlu0 %3062 }
 0x4c2   : > { %v3079_v12 = vmul.f32 0.015625, %v3063_v53  ;;  %3152 = vadd.xlane.f32.xlu1 %v3124_v27  ;;  %3150 = vadd.xlane.f32.xlu0 %v3123_v51  ;;  %v5561_v37 = vmul.f32 %v5409_v58, %v3094_v46  ;;  %v5564_v42 = vmul.f32 %v5409_v58, %v3093_v32 }
 0x4c4   : > { %v3095_v41 = vsub.f32 %v5476_v11, %v3079_v12  ;;  %v3126_v30 = vmul.f32 %v5561_v37, %v5561_v37  ;;  %v3125_v17 = vmul.f32 %v5564_v42, %v5564_v42 }
 0x4c6   : > { %3156 = vadd.xlane.f32.xlu1 %v3126_v30  ;;  %3154 = vadd.xlane.f32.xlu0 %v3125_v17  ;;  %v5572_v38 = vmul.f32 %v5409_v58, %v3095_v41 }
 0x4c8   : > { %v3127_v23 = vmul.f32 %v5572_v38, %v5572_v38 }
 0x4ca   : > { %3158 = vadd.xlane.f32.xlu0 %v3127_v23 }
 0x532   : > { %v3131_v56 = vpop.xlane.xlu0 %3130 }
 0x533   : > { %v3129_v1 = vpop.xlane.xlu1 %3128  ;;  %v3161_v7 = vmul.f32 0.015625, %v3131_v56 }
 0x534   : > { %v3160_v22 = vmul.f32 0.015625, %v3129_v1 }
 0x535   : > { %v3177_v11 = vadd.f32 1e-05, %v3161_v7 }
 0x536   : > { %v3176_v13 = vadd.f32 1e-05, %v3160_v22 }
 0x537   : > { %3955 = vrsqrt.f32 %v3177_v11  ;;  %v3133_v19 = vpop.xlane.xlu1 %3132 }
 0x538   : > { %3957 = vrsqrt.f32 %v3176_v13  ;;  %v3162_v45 = vmul.f32 0.015625, %v3133_v19 }
 0x53a   : > { %v3178_v29 = vadd.f32 1e-05, %v3162_v45 }
 0x53b   : > { %v3137_v33 = vpop.xlane.xlu1 %3136  ;;  %v3135_v2 = vpop.xlane.xlu0 %3134 }
 0x53c   : > { %3959 = vrsqrt.f32 %v3178_v29  ;;  %v3164_v31 = vmul.f32 0.015625, %v3137_v33  ;;  %v3163_v26 = vmul.f32 0.015625, %v3135_v2 }
 0x53e   : > { %v3180_v54 = vadd.f32 1e-05, %v3164_v31  ;;  %v3179_v0 = vadd.f32 1e-05, %v3163_v26 }
 0x53f   : > { %v3141_v6 = vpop.xlane.xlu1 %3140  ;;  %v3139_v16 = vpop.xlane.xlu0 %3138 }
 0x540   : > { %3961 = vrsqrt.f32 %v3180_v54  ;;  %v3166_v52 = vmul.f32 0.015625, %v3141_v6  ;;  %v3165_v48 = vmul.f32 0.015625, %v3139_v16 }
 0x541   : > { %3963 = vrsqrt.f32 %v3179_v0 }
 0x542   : > { %v3182_v28 = vadd.f32 1e-05, %v3166_v52  ;;  %v3181_v62 = vadd.f32 1e-05, %v3165_v48 }
 0x543   : > { %v3145_v61 = vpop.xlane.xlu1 %3144  ;;  %v3143_v4 = vpop.xlane.xlu0 %3142 }
 0x544   : > { %v3956_v55 = vpop.eup %3955  ;;  %3965 = vrsqrt.f32 %v3182_v28  ;;  %v3168_v9 = vmul.f32 0.015625, %v3145_v61  ;;  %v3167_v20 = vmul.f32 0.015625, %v3143_v4 }
 0x545   : > { %v3958_v14 = vpop.eup %3957  ;;  %v3209_v34 = vmul.f32 %v3956_v55, %v5483_v57  ;;  %3967 = vrsqrt.f32 %v3181_v62 }
 0x546   : > { %v3208_v15 = vmul.f32 %v3958_v14, %v5486_v10  ;;  %v3184_v3 = vadd.f32 1e-05, %v3168_v9  ;;  %v3183_v18 = vadd.f32 1e-05, %v3167_v20 }
 0x547   : > { %v3232_v40 = vmul.f32 %v5582_v24, %v3209_v34  ;;  %v3149_v39 = vpop.xlane.xlu1 %3148  ;;  %v3147_v49 = vpop.xlane.xlu0 %3146 }
 0x548   : > { %v3231_v46 = vmul.f32 %v5582_v24, %v3208_v15  ;;  %3969 = vrsqrt.f32 %v3184_v3  ;;  %v3170_v32 = vmul.f32 0.015625, %v3149_v39  ;;  %v3169_v27 = vmul.f32 0.015625, %v3147_v49 }
 0x549   : > { %v3960_v51 = vpop.eup %3959  ;;  %v3256_v58 = vadd.f32 %v5585_v5, %v3232_v40  ;;  %3971 = vrsqrt.f32 %v3183_v18 }
 0x54a   : > { %v3255_v57 = vadd.f32 %v5585_v5, %v3231_v46  ;;  %v3210_v10 = vmul.f32 %v3960_v51, %v5494_v59  ;;  %v3186_v53 = vadd.f32 1e-05, %v3170_v32  ;;  %v3185_v12 = vadd.f32 1e-05, %v3169_v27 }
 0x54b   : > { %v3272_v41 = vmax.f32 %v3256_v58, 0.0  ;;  %v3153_v30 = vpop.xlane.xlu1 %3152  ;;  %v3151_v17 = vpop.xlane.xlu0 %3150 }
 0x54c   : > { %v3271_v23 = vmax.f32 %v3255_v57, 0.0  ;;  %v3233_v56 = vmul.f32 %v5582_v24, %v3210_v10  ;;  %3973 = vrsqrt.f32 %v3186_v53  ;;  %v3172_v1 = vmul.f32 0.015625, %v3153_v30 }
 0x54d   : > { %v3962_v7 = vpop.eup %3961  ;;  %3288 = vst [vmem:[%s4363_s8 + $0x8] sm:$0xff] %v3272_v41  ;;  %3975 = vrsqrt.f32 %v3185_v12  ;;  %v3171_v22 = vmul.f32 0.015625, %v3151_v17 }
 0x54e   : > { %v3964_v11 = vpop.eup %3963  ;;  %3287 = vst [vmem:[%s4363_s8] sm:$0xff] %v3271_v23  ;;  %v3257_v13 = vadd.f32 %v5585_v5, %v3233_v56  ;;  %v3212_v59 = vmul.f32 %v3962_v7, %v5501_v43  ;;  %v3188_v19 = vadd.f32 1e-05, %v3172_v1 }
 0x54f   : > { %v3211_v45 = vmul.f32 %v3964_v11, %v5504_v8  ;;  %v3187_v29 = vadd.f32 1e-05, %v3171_v22  ;;  %v3157_v33 = vpop.xlane.xlu1 %3156  ;;  %v3155_v2 = vpop.xlane.xlu0 %3154 }
 0x550   : > { %v3273_v31 = vmax.f32 %v3257_v13, 0.0  ;;  %v3235_v26 = vmul.f32 %v5582_v24, %v3212_v59  ;;  %3977 = vrsqrt.f32 %v3188_v19  ;;  %v3174_v54 = vmul.f32 0.015625, %v3157_v33 }
 0x551   : > { %v3966_v0 = vpop.eup %3965  ;;  %v3234_v6 = vmul.f32 %v5582_v24, %v3211_v45  ;;  %3979 = vrsqrt.f32 %v3187_v29  ;;  %v3173_v16 = vmul.f32 0.015625, %v3155_v2 }
 0x552   : > { %v3968_v52 = vpop.eup %3967  ;;  %3289 = vst [vmem:[%s4363_s8 + $0x10] sm:$0xff] %v3273_v31  ;;  %v3259_v43 = vadd.f32 %v5585_v5, %v3235_v26  ;;  %v3214_v8 = vmul.f32 %v3966_v0, %v5513_v63  ;;  %v3190_v48 = vadd.f32 1e-05, %v3174_v54 }
 0x553   : > { %v3258_v25 = vadd.f32 %v5585_v5, %v3234_v6  ;;  %v3213_v28 = vmul.f32 %v3968_v52, %v5516_v36  ;;  %v3189_v62 = vadd.f32 1e-05, %v3173_v16  ;;  %v3159_v61 = vpop.xlane.xlu0 %3158 }
 0x554   : > { %v3275_v4 = vmax.f32 %v3259_v43, 0.0  ;;  %v3237_v55 = vmul.f32 %v5582_v24, %v3214_v8  ;;  %3981 = vrsqrt.f32 %v3190_v48  ;;  %v3175_v9 = vmul.f32 0.015625, %v3159_v61 }
 0x555   : > { %v3970_v20 = vpop.eup %3969  ;;  %v3274_v14 = vmax.f32 %v3258_v25, 0.0  ;;  %v3236_v34 = vmul.f32 %v5582_v24, %v3213_v28  ;;  %3983 = vrsqrt.f32 %v3189_v62 }
 0x556   : > { %v3972_v63 = vpop.eup %3971  ;;  %3291 = vst [vmem:[%s4363_s8 + $0x20] sm:$0xff] %v3275_v4  ;;  %v3261_v15 = vadd.f32 %v5585_v5, %v3237_v55  ;;  %v3216_v36 = vmul.f32 %v3970_v20, %v5525_v21  ;;  %v3191_v3 = vadd.f32 1e-05, %v3175_v9 }
 0x557   : > { %3290 = vst [vmem:[%s4363_s8 + $0x18] sm:$0xff] %v3274_v14  ;;  %v3260_v18 = vadd.f32 %v5585_v5, %v3236_v34  ;;  %v3215_v40 = vmul.f32 %v3972_v63, %v5528_v47 }
 0x558   : > { %v3277_v39 = vmax.f32 %v3261_v15, 0.0  ;;  %v3239_v49 = vmul.f32 %v5582_v24, %v3216_v36  ;;  %3985 = vrsqrt.f32 %v3191_v3 }
 0x559   : > { %v3974_v46 = vpop.eup %3973  ;;  %v3276_v32 = vmax.f32 %v3260_v18, 0.0  ;;  %v3238_v27 = vmul.f32 %v5582_v24, %v3215_v40 }
 0x55a   : > { %v3976_v51 = vpop.eup %3975  ;;  %3293 = vst [vmem:[%s4363_s8 + $0x30] sm:$0xff] %v3277_v39  ;;  %v3263_v21 = vadd.f32 %v5585_v5, %v3239_v49  ;;  %v3218_v58 = vmul.f32 %v3974_v46, %v5537_v50 }
 0x55b   : > { %3292 = vst [vmem:[%s4363_s8 + $0x28] sm:$0xff] %v3276_v32  ;;  %v3262_v57 = vadd.f32 %v5585_v5, %v3238_v27  ;;  %v3217_v47 = vmul.f32 %v3976_v51, %v5540_v35 }
 0x55c   : > { %v3279_v10 = vmax.f32 %v3263_v21, 0.0  ;;  %v3241_v53 = vmul.f32 %v5582_v24, %v3218_v58 }
 0x55d   : > { %v3978_v12 = vpop.eup %3977  ;;  %v3278_v41 = vmax.f32 %v3262_v57, 0.0  ;;  %v3240_v30 = vmul.f32 %v5582_v24, %v3217_v47 }
 0x55e   : > { %v3980_v17 = vpop.eup %3979  ;;  %3295 = vst [vmem:[%s4363_s8 + $0x40] sm:$0xff] %v3279_v10  ;;  %v3265_v23 = vadd.f32 %v5585_v5, %v3241_v53  ;;  %v3220_v50 = vmul.f32 %v3978_v12, %v5549_v44 }
 0x55f   : > { %3294 = vst [vmem:[%s4363_s8 + $0x38] sm:$0xff] %v3278_v41  ;;  %v3264_v56 = vadd.f32 %v5585_v5, %v3240_v30  ;;  %v3219_v35 = vmul.f32 %v3980_v17, %v5552_v60 }
 0x560   : > { %v3281_v1 = vmax.f32 %v3265_v23, 0.0  ;;  %v3243_v7 = vmul.f32 %v5582_v24, %v3220_v50 }
 0x561   : > { %v3982_v22 = vpop.eup %3981  ;;  %v3280_v11 = vmax.f32 %v3264_v56, 0.0  ;;  %v3242_v13 = vmul.f32 %v5582_v24, %v3219_v35 }
 0x562   : > { %v3984_v59 = vpop.eup %3983  ;;  %3297 = vst [vmem:[%s4363_s8 + $0x50] sm:$0xff] %v3281_v1  ;;  %v3267_v19 = vadd.f32 %v5585_v5, %v3243_v7  ;;  %v3222_v44 = vmul.f32 %v3982_v22, %v5561_v37 }
 0x563   : > { %3296 = vst [vmem:[%s4363_s8 + $0x48] sm:$0xff] %v3280_v11  ;;  %v3266_v45 = vadd.f32 %v5585_v5, %v3242_v13  ;;  %v3221_v60 = vmul.f32 %v3984_v59, %v5564_v42 }
 0x564   : > { %v3283_v29 = vmax.f32 %v3267_v19, 0.0  ;;  %v3245_v33 = vmul.f32 %v5582_v24, %v3222_v44 }
 0x565   : > { %v3986_v2 = vpop.eup %3985  ;;  %v3282_v31 = vmax.f32 %v3266_v45, 0.0  ;;  %v3244_v26 = vmul.f32 %v5582_v24, %v3221_v60 }
 0x566   : > { %3299 = vst [vmem:[%s4363_s8 + $0x60] sm:$0xff] %v3283_v29  ;;  %v3269_v54 = vadd.f32 %v5585_v5, %v3245_v33  ;;  %v3223_v37 = vmul.f32 %v3986_v2, %v5572_v38 }
 0x567   : > { %3298 = vst [vmem:[%s4363_s8 + $0x58] sm:$0xff] %v3282_v31  ;;  %v3268_v0 = vadd.f32 %v5585_v5, %v3244_v26 }
 0x568   : > { %v3285_v6 = vmax.f32 %v3269_v54, 0.0  ;;  %v3246_v42 = vmul.f32 %v5582_v24, %v3223_v37 }
 0x569   : > { %v3284_v16 = vmax.f32 %v3268_v0, 0.0 }
 0x56a   : > { %3301 = vst [vmem:[%s4363_s8 + $0x70] sm:$0xff] %v3285_v6  ;;  %v3270_v52 = vadd.f32 %v5585_v5, %v3246_v42 }
 0x56b   : > { %3300 = vst [vmem:[%s4363_s8 + $0x68] sm:$0xff] %v3284_v16 }
 0x56c   : > { %v3286_v43 = vmax.f32 %v3270_v52, 0.0 }
 0x56e   : > { %3302 = vst [vmem:[%s4363_s8 + $0x78] sm:$0xff] %v3286_v43 }
 0x56f PF: > { %s16_s7 = sadd.s32 1, %s4073_s7   ;;  %s5886_s1 = sld [smem:[#allocation9_spill]] }
 0x570   : > { %p13_p5 = scmp.ge.s32.totalorder %s16_s7, 6   ;;  %s5887_s13 = sld [smem:[#allocation10_spill]] }
 0x571   : > { %s5888_s21 = smov %s4037_s22  ;;  %s5889_s22 = smov %s4208_s20 }
 0x572   : > { %s5890_s23 = smov %s4045_s24  ;;  %s5891_s24 = smov %s4205_s19 }
 0x573   : > { %s5892_s25 = smov %s4053_s26  ;;  %s5893_s26 = smov %s4193_s14 }
 0x574   : > { %s5894_s27 = smov %s4065_s29  ;;  %s5895_s28 = smov %s4069_s30 }
 0x575   : > { %s5896_s29 = smov %s5886_s1  ;;  %15 = sbr.rel (!%p13_p5) target bundleno = 10 (0xa), region = 271 }
 0x576   : > { %s5897_s30 = smov %s5887_s13 }

</bundles_post_ra>
